<compile_context>
chip_gen: v7x
topology: tpu7x:2x2x1
jax: 0.10.0
libtpu: 0.0.40
codegen_flags: <defaults>
</compile_context>

<pallas_src>
import jax
import jax.numpy as jnp
from jax import lax
from jax.experimental import pallas as pl
from jax.experimental.pallas import tpu as pltpu


# ----------------------------------------------------------------------------
# small helpers
# ----------------------------------------------------------------------------

def _round_up(x, m):
    return (x + m - 1) // m * m


def _pick_block_n(n, cap=128):
    """Batch-tile size: multiple of 8 (sublane).  Large cap (VMEM is not tight at
    these shapes); prefer >= 2 grid steps when possible so a dual-TensorCore chip
    (v7x) has work for both cores."""
    n8 = _round_up(max(n, 1), 8)
    nb = min(cap, n8)
    if n8 // nb < 2 and n8 >= 16:
        nb = _round_up((n8 + 1) // 2, 8)
    return nb


def _rep_spec(shape):
    """Whole-array VMEM block (weights), resident across the 1-D grid."""
    nd = len(shape)
    return pl.BlockSpec(shape, lambda i, _n=nd: (0,) * _n)


# ----------------------------------------------------------------------------
# Kernel 1: fused encode stack  (BiGRU#1 -> BiGRU#2 -> weighted embedding mix)
# ----------------------------------------------------------------------------

def _bigru_pass(x16, wih_ref, whh_ref, bih_ref, bhh_ref, gi_ref, of_ref, ob_ref):
    """One bidirectional GRU layer over a time-major input.

    x16    : (L*Nb, Din) bf16   flattened time-major input
    wih_ref: (Din, 6H)  bf16    [fwd r|z|n , bwd r|z|n] packed along lanes
    whh_ref: (2H, 6H)   bf16    block-diagonal [Whh_f ; Whh_b]
    bih/bhh: (1, 6H)    f32
    gi_ref : (L, Nb, 6H) f32    scratch: hoisted input projections
    of_ref : (L, Nb, H)  f32    forward outputs
    ob_ref : (L, Nb, H)  f32    backward outputs
    """
    L, Nb, H6 = gi_ref.shape
    H = H6 // 6
    H2, H3 = 2 * H, 3 * H

    # Hoisted input projection: ONE matmul for both directions and all 3 gates.
    gi = jnp.dot(x16, wih_ref[...], preferred_element_type=jnp.float32) + bih_ref[...]
    gi_ref[...] = gi.reshape(L, Nb, H6)

    whh16 = whh_ref[...]            # (2H, 6H) bf16, block-diagonal
    bhh = bhh_ref[...]              # (1, 6H)  f32

    def step(t, carry):
        hf, hb = carry
        hcat = jnp.concatenate([hf, hb], axis=-1).astype(jnp.bfloat16)   # (Nb, 2H)
        gh = jnp.dot(hcat, whh16, preferred_element_type=jnp.float32) + bhh
        gif = gi_ref[t][:, 0:H3]
        gib = gi_ref[L - 1 - t][:, H3:2 * H3]
        ghf = gh[:, 0:H3]
        ghb = gh[:, H3:2 * H3]
        # forward direction (PyTorch gate order r, z, n)
        rzf = jax.nn.sigmoid(gif[:, 0:H2] + ghf[:, 0:H2])
        nf = jnp.tanh(gif[:, H2:H3] + rzf[:, 0:H] * ghf[:, H2:H3])
        hf = (1.0 - rzf[:, H:H2]) * nf + rzf[:, H:H2] * hf
        # backward direction
        rzb = jax.nn.sigmoid(gib[:, 0:H2] + ghb[:, 0:H2])
        nb_ = jnp.tanh(gib[:, H2:H3] + rzb[:, 0:H] * ghb[:, H2:H3])
        hb = (1.0 - rzb[:, H:H2]) * nb_ + rzb[:, H:H2] * hb
        of_ref[t] = hf
        ob_ref[L - 1 - t] = hb
        return hf, hb

    h0 = jnp.zeros((Nb, H), jnp.float32)
    lax.fori_loop(0, L, step, (h0, h0))


def _encode_kernel(x_ref, wih1, whh1, bih1, bhh1, wih2, whh2, bih2, bhh2, s_ref,
                   o_ref, gi_ref, g1f, g1b, g2f, g2b):
    L, Nb, Ein = x_ref.shape
    H = g1f.shape[-1]
    E = 2 * H                       # == Ein for this model

    x16 = x_ref[...].reshape(L * Nb, Ein).astype(jnp.bfloat16)
    _bigru_pass(x16, wih1, whh1, bih1, bhh1, gi_ref, g1f, g1b)

    g1_16 = jnp.concatenate([g1f[...], g1b[...]], axis=-1) \
        .reshape(L * Nb, E).astype(jnp.bfloat16)
    _bigru_pass(g1_16, wih2, whh2, bih2, bhh2, gi_ref, g2f, g2b)

    # Weighted embedding mix, written batch-major into a lane-dense (Nb, L*E) slab.
    s0, s1, s2, s3 = s_ref[0], s_ref[1], s_ref[2], s_ref[3]
    for t in range(L):
        g1_t = jnp.concatenate([g1f[t], g1b[t]], axis=-1)     # (Nb, E)
        g2_t = jnp.concatenate([g2f[t], g2b[t]], axis=-1)
        o_ref[:, t * E:(t + 1) * E] = s3 * (s0 * x_ref[t] + s1 * g1_t + s2 * g2_t)


def _encode_call(emb_tm, pack1, pack2, mix_s, nb):
    """emb_tm: (L, n_pad, E) time-major embeddings -> (n_pad, L*E) mixed encodings."""
    L, n_pad, Ein = emb_tm.shape
    H = pack1[1].shape[0] // 2
    E = 2 * H
    in_specs = ([pl.BlockSpec((L, nb, Ein), lambda i: (0, i, 0))]
                + [_rep_spec(p.shape) for p in pack1]
                + [_rep_spec(p.shape) for p in pack2]
                + [pl.BlockSpec(memory_space=pltpu.MemorySpace.SMEM)])
    return pl.pallas_call(
        _encode_kernel,
        out_shape=jax.ShapeDtypeStruct((n_pad, L * E), jnp.float32),
        grid=(n_pad // nb,),
        in_specs=in_specs,
        out_specs=pl.BlockSpec((nb, L * E), lambda i: (i, 0)),
        scratch_shapes=[pltpu.VMEM((L, nb, 6 * H), jnp.float32),
                        pltpu.VMEM((L, nb, H), jnp.float32),
                        pltpu.VMEM((L, nb, H), jnp.float32),
                        pltpu.VMEM((L, nb, H), jnp.float32),
                        pltpu.VMEM((L, nb, H), jnp.float32)],
        compiler_params=pltpu.CompilerParams(dimension_semantics=("parallel",)),
    )(emb_tm, *pack1, *pack2, mix_s)


# ----------------------------------------------------------------------------
# Kernel 2: attention + FIX + enc_GRU + final_GRU + turn-weighted sum
# ----------------------------------------------------------------------------

def _match_kernel(u_ref, r_ref, w1_ref, b1_ref,
                  wih_e, whh_e, bih_e, bhh_e,
                  wih_f, whh_f, bih_f, bhh_f, wl_ref,
                  o_ref, gi_ref):
    NB, T, L, E = u_ref.shape
    NT = NB * T
    NS = NB * (T + 1)
    E2, E3 = 2 * E, 3 * E

    U = u_ref[...]                                   # (NB, T, L, E) f32
    R = r_ref[...]                                   # (NB, L, E)    f32
    Uq = U.reshape(NB, T * L, E).astype(jnp.bfloat16)
    Rq = R.astype(jnp.bfloat16)

    # ---- every utterance turn attends the response --------------------------
    s_u = jnp.einsum('nqe,nke->nqk', Uq, Rq,
                     preferred_element_type=jnp.float32)          # (NB, T*L, L)
    s_u = s_u - jnp.max(s_u, axis=-1, keepdims=True)
    p_u = jnp.exp(s_u)
    att_u = jnp.einsum('nqk,nke->nqe', p_u.astype(jnp.bfloat16), Rq,
                       preferred_element_type=jnp.float32)
    att_u = att_u / jnp.sum(p_u, axis=-1, keepdims=True)          # (NB, T*L, E)

    # ---- the response attends the concatenation of all turns ----------------
    s_r = jnp.einsum('nqe,nke->nqk', Rq, Uq,
                     preferred_element_type=jnp.float32)          # (NB, L, T*L)
    s_r = s_r - jnp.max(s_r, axis=-1, keepdims=True)
    p_r = jnp.exp(s_r)
    att_r = jnp.einsum('nqk,nke->nqe', p_r.astype(jnp.bfloat16), Uq,
                       preferred_element_type=jnp.float32)
    att_r = att_r / jnp.sum(p_r, axis=-1, keepdims=True)          # (NB, L, E)

    # ---- stack the NB*T utterance sequences followed by the NB responses ----
    A = jnp.concatenate([U.reshape(NT, L, E), R], axis=0)         # (NS, L, E)
    ATT = jnp.concatenate([att_u.reshape(NT, L, E), att_r], axis=0)
    red = A - ATT
    feats = jnp.concatenate([A, ATT, red, red * red, A * ATT], axis=1)   # (NS,5L,E)

    # ---- FIX projection: single (L,5L) x (5L,E) matmul per sequence ---------
    w1b = jnp.broadcast_to(w1_ref[...], (NS, L, 5 * L))           # bf16
    fix = jnp.einsum('npq,nqe->npe', w1b, feats.astype(jnp.bfloat16),
                     preferred_element_type=jnp.float32)          # (NS, L, E)
    fix = jnp.maximum(fix + b1_ref[...].reshape(1, 1, E), 0.0)

    # ---- enc_GRU over the L token positions (hoisted input projection) ------
    gi = jnp.dot(fix.reshape(NS * L, E).astype(jnp.bfloat16), wih_e[...],
                 preferred_element_type=jnp.float32) + bih_e[...]
    gi = gi.reshape(NS, L, E3)
    for t in range(L):               # time-major scratch (the "transpose")
        gi_ref[t] = gi[:, t, :]

    whh_e16, bhh_e_v = whh_e[...], bhh_e[...]

    def enc_step(t, h):
        gh = jnp.dot(h.astype(jnp.bfloat16), whh_e16,
                     preferred_element_type=jnp.float32) + bhh_e_v
        g = gi_ref[t]
        rz = jax.nn.sigmoid(g[:, 0:E2] + gh[:, 0:E2])
        n = jnp.tanh(g[:, E2:E3] + rz[:, 0:E] * gh[:, E2:E3])
        return (1.0 - rz[:, E:E2]) * n + rz[:, E:E2] * h

    h_enc = lax.fori_loop(0, L, enc_step, jnp.zeros((NS, E), jnp.float32))

    # ---- final_GRU over the T+1 matching vectors + turn-weighted sum --------
    gi_f = jnp.dot(h_enc.astype(jnp.bfloat16), wih_f[...],
                   preferred_element_type=jnp.float32) + bih_f[...]     # (NS, 3E)
    gi_fu = gi_f[0:NT].reshape(NB, T, E3)
    gi_fr = gi_f[NT:NS]
    whh_f16, bhh_f_v = whh_f[...], bhh_f[...]

    h = jnp.zeros((NB, E), jnp.float32)
    acc = jnp.zeros((NB, E), jnp.float32)
    for s in range(T + 1):
        gh = jnp.dot(h.astype(jnp.bfloat16), whh_f16,
                     preferred_element_type=jnp.float32) + bhh_f_v
        g = gi_fu[:, s, :] if s < T else gi_fr
        rz = jax.nn.sigmoid(g[:, 0:E2] + gh[:, 0:E2])
        n = jnp.tanh(g[:, E2:E3] + rz[:, 0:E] * gh[:, E2:E3])
        h = (1.0 - rz[:, E:E2]) * n + rz[:, E:E2] * h
        acc = acc + wl_ref[s] * h
    o_ref[...] = acc


def _match_call(utt_enc, res_enc, w1, b1, pack_enc, pack_fin, wl, nb):
    """utt_enc: (B_pad, T, L, E), res_enc: (B_pad, L, E) -> (B_pad, E)."""
    b_pad, T, L, E = utt_enc.shape
    in_specs = ([pl.BlockSpec((nb, T, L, E), lambda i: (i, 0, 0, 0)),
                 pl.BlockSpec((nb, L, E), lambda i: (i, 0, 0)),
                 _rep_spec(w1.shape), _rep_spec(b1.shape)]
                + [_rep_spec(p.shape) for p in pack_enc]
                + [_rep_spec(p.shape) for p in pack_fin]
                + [pl.BlockSpec(memory_space=pltpu.MemorySpace.SMEM)])
    return pl.pallas_call(
        _match_kernel,
        out_shape=jax.ShapeDtypeStruct((b_pad, E), jnp.float32),
        grid=(b_pad // nb,),
        in_specs=in_specs,
        out_specs=pl.BlockSpec((nb, E), lambda i: (i, 0)),
        scratch_shapes=[pltpu.VMEM((L, nb * (T + 1), 3 * E), jnp.float32)],
        compiler_params=pltpu.CompilerParams(dimension_semantics=("parallel",)),
    )(utt_enc, res_enc, w1, b1, *pack_enc, *pack_fin, wl)


# ----------------------------------------------------------------------------
# parameter packing (torch layout -> gate/direction-packed bf16 weights)
# ----------------------------------------------------------------------------

def _pack_gru(p):
    """torch (3H,Din),(3H,H),(3H,),(3H,) -> (Din,3H) bf16, (H,3H) bf16, (1,3H)x2 f32."""
    wih, whh, bih, bhh = p
    H = whh.shape[1]
    return (jnp.transpose(wih).astype(jnp.bfloat16),
            jnp.transpose(whh).astype(jnp.bfloat16),
            bih.reshape(1, 3 * H).astype(jnp.float32),
            bhh.reshape(1, 3 * H).astype(jnp.float32))


def _pack_bigru(pf, pb):
    """Both directions packed: wih (Din,6H); whh block-diagonal (2H,6H)."""
    wf, hf, bif, bhf = _pack_gru(pf)
    wb, hb, bib, bhb = _pack_gru(pb)
    H = hf.shape[0]
    wih = jnp.concatenate([wf, wb], axis=1)                       # (Din, 6H)
    whh = jnp.zeros((2 * H, 6 * H), jnp.bfloat16)
    whh = whh.at[0:H, 0:3 * H].set(hf).at[H:2 * H, 3 * H:6 * H].set(hb)
    bih = jnp.concatenate([bif, bib], axis=1)                     # (1, 6H)
    bhh = jnp.concatenate([bhf, bhb], axis=1)
    return wih, whh, bih, bhh


# ----------------------------------------------------------------------------
# HAMR forward pass
# ----------------------------------------------------------------------------

def hamr_forward(params, utterance, response):
    """utterance: (B, T, L) int32, response: (B, L) int32 -> (B,) float32."""
    B, T, L = utterance.shape
    E = params['embedding'].shape[1]
    H = params['utt_gru_f'][1].shape[1]          # rnn_units
    assert 2 * H == E, "model requires word_embedding_size == 2 * rnn_units"

    sw = jax.nn.softmax(params['emb_weight'])
    mix_s = jnp.concatenate([sw, params['emb_scale']]).astype(jnp.float32)   # (4,)

    pack1 = _pack_bigru(params['utt_gru_f'], params['utt_gru_b'])
    pack2 = _pack_bigru(params['utt2_gru_f'], params['utt2_gru_b'])
    pack_enc = _pack_gru(params['enc_gru'])
    pack_fin = _pack_gru(params['final_gru'])
    w1 = params['weight_1'].astype(jnp.bfloat16)                  # (L, 5L)
    b1 = params['bais_1'].reshape(1, E).astype(jnp.float32)
    wl = params['wl_w'][0].astype(jnp.float32)                    # (T+1,)

    # ---- kernel 1: fused encode stack over [response ; all utterance turns] ---
    tokens_all = jnp.concatenate([response, utterance.reshape(B * T, L)], axis=0)
    n_all = tokens_all.shape[0]
    nb_e = _pick_block_n(n_all, cap=128)
    n_pad = _round_up(n_all, nb_e)
    if n_pad != n_all:
        tokens_all = jnp.pad(tokens_all, ((0, n_pad - n_all), (0, 0)))
    # TODO(synk): embedding gather is a data-dependent lookup; left to XLA.
    emb_tm = jnp.take(params['embedding'], tokens_all.T, axis=0)  # (L, n_pad, E)
    mixed = _encode_call(emb_tm, pack1, pack2, mix_s, nb_e)       # (n_pad, L*E)

    res_enc = mixed[:B].reshape(B, L, E)
    utt_enc = mixed[B:B + B * T].reshape(B, T, L, E)

    # ---- kernel 2: attention + FIX + enc_GRU + final_GRU + turn weighting -----
    nb_m = _pick_block_n(B, cap=8)
    b_pad = _round_up(B, nb_m)
    if b_pad != B:
        utt_enc = jnp.pad(utt_enc, ((0, b_pad - B), (0, 0), (0, 0), (0, 0)))
        res_enc = jnp.pad(res_enc, ((0, b_pad - B), (0, 0), (0, 0)))
    h2 = _match_call(utt_enc, res_enc, w1, b1, pack_enc, pack_fin, wl, nb_m)

    # ---- tiny head (weight_linear bias + final_linear): left to XLA -----------
    h2 = h2[:B] + params['wl_b'][0]
    return h2 @ params['fl_w'][0] + params['fl_b'][0]


# ----------------------------------------------------------------------------
# Deterministic parameter init (synthetic, matching the module's shapes)
# ----------------------------------------------------------------------------

def init_params(key, vocab, E, R, L, T):
    ks = jax.random.split(key, 12)

    def gru_p(k, din, h):
        k1, k2, k3, k4 = jax.random.split(k, 4)
        return (0.1 * jax.random.normal(k1, (3 * h, din), jnp.float32),   # weight_ih
                0.1 * jax.random.normal(k2, (3 * h, h), jnp.float32),     # weight_hh
                0.05 * jax.random.normal(k3, (3 * h,), jnp.float32),      # bias_ih
                0.05 * jax.random.normal(k4, (3 * h,), jnp.float32))      # bias_hh

    return {
        'embedding': 0.5 * jax.random.normal(ks[0], (vocab, E), jnp.float32),
        'emb_weight': jnp.zeros((3,), jnp.float32),       # -> softmax = 1/3 each
        'emb_scale': jnp.ones((1,), jnp.float32),
        'utt_gru_f': gru_p(ks[1], E, R),
        'utt_gru_b': gru_p(ks[2], E, R),
        'utt2_gru_f': gru_p(ks[3], 2 * R, R),
        'utt2_gru_b': gru_p(ks[4], 2 * R, R),
        'weight_1': jax.random.uniform(ks[5], (L, 5 * L), jnp.float32, -0.3, 0.3),
        'bais_1': jnp.zeros((E,), jnp.float32),
        'enc_gru': gru_p(ks[6], 2 * R, 2 * R),
        'final_gru': gru_p(ks[7], 2 * R, 2 * R),
        'wl_w': jax.random.uniform(ks[8], (1, T + 1), jnp.float32, -0.5, 0.5),
        'wl_b': jnp.zeros((1,), jnp.float32),
        'fl_w': jax.random.uniform(ks[9], (1, 2 * R), jnp.float32, -0.25, 0.25),
        'fl_b': jnp.zeros((1,), jnp.float32),
    }


if __name__ == "__main__":
    # Small shapes consistent with the module (embedding size == 2 * rnn_units).
    B, T, L = 2, 3, 8          # batch, max_turn_num, max_turn_len
    E, R = 32, 16              # word_embedding_size, rnn_units
    VOCAB = 64

    key = jax.random.PRNGKey(0)
    kp, ku, kr = jax.random.split(key, 3)
    params = init_params(kp, VOCAB, E, R, L, T)

    utterance = jax.random.randint(ku, (B, T, L), 0, VOCAB, dtype=jnp.int32)
    response = jax.random.randint(kr, (B, L), 0, VOCAB, dtype=jnp.int32)

    y_pred = jax.jit(hamr_forward)(params, utterance, response)
    jax.block_until_ready(y_pred)
    assert y_pred.shape == (B,) and y_pred.dtype == jnp.float32
    print("KERNEL_OK")
</pallas_src>

<mosaic_0001>
module attributes {stable_mosaic.version = 11 : i64} {
  func.func @_match_kernel(%arg0: i32, %arg1: memref<8x3x8x32xf32, #tpu.memory_space<vmem>>, %arg2: memref<8x8x32xf32, #tpu.memory_space<vmem>>, %arg3: memref<8x40xbf16, #tpu.memory_space<vmem>>, %arg4: memref<1x32xf32, #tpu.memory_space<vmem>>, %arg5: memref<32x96xbf16, #tpu.memory_space<vmem>>, %arg6: memref<32x96xbf16, #tpu.memory_space<vmem>>, %arg7: memref<1x96xf32, #tpu.memory_space<vmem>>, %arg8: memref<1x96xf32, #tpu.memory_space<vmem>>, %arg9: memref<32x96xbf16, #tpu.memory_space<vmem>>, %arg10: memref<32x96xbf16, #tpu.memory_space<vmem>>, %arg11: memref<1x96xf32, #tpu.memory_space<vmem>>, %arg12: memref<1x96xf32, #tpu.memory_space<vmem>>, %arg13: memref<4xf32, #tpu.memory_space<smem>>, %arg14: memref<8x32xf32, #tpu.memory_space<vmem>>, %arg15: memref<8x32x96xf32, #tpu.memory_space<vmem>>) attributes {dimension_semantics = [#tpu.dimension_semantics<parallel>], iteration_bounds = array<i64: 1>, scalar_prefetch = 0 : i64, scratch_operands = 1 : i64, tpu.core_type = #tpu.core_type<tc>, window_params = [{transform_indices = @transform_0, window_bounds = array<i64: 8, 3, 8, 32>}, {transform_indices = @transform_1, window_bounds = array<i64: 8, 8, 32>}, {pipeline_mode = #tpu.pipeline_mode<synchronous>, transform_indices = @transform_2, window_bounds = array<i64: 8, 40>}, {pipeline_mode = #tpu.pipeline_mode<synchronous>, transform_indices = @transform_3, window_bounds = array<i64: 1, 32>}, {pipeline_mode = #tpu.pipeline_mode<synchronous>, transform_indices = @transform_4, window_bounds = array<i64: 32, 96>}, {pipeline_mode = #tpu.pipeline_mode<synchronous>, transform_indices = @transform_5, window_bounds = array<i64: 32, 96>}, {pipeline_mode = #tpu.pipeline_mode<synchronous>, transform_indices = @transform_6, window_bounds = array<i64: 1, 96>}, {pipeline_mode = #tpu.pipeline_mode<synchronous>, transform_indices = @transform_7, window_bounds = array<i64: 1, 96>}, {pipeline_mode = #tpu.pipeline_mode<synchronous>, transform_indices = @transform_8, window_bounds = array<i64: 32, 96>}, {pipeline_mode = #tpu.pipeline_mode<synchronous>, transform_indices = @transform_9, window_bounds = array<i64: 32, 96>}, {pipeline_mode = #tpu.pipeline_mode<synchronous>, transform_indices = @transform_10, window_bounds = array<i64: 1, 96>}, {pipeline_mode = #tpu.pipeline_mode<synchronous>, transform_indices = @transform_11, window_bounds = array<i64: 1, 96>}, {transform_indices = @transform_12, window_bounds = array<i64: 4>}, {transform_indices = @transform_13, window_bounds = array<i64: 8, 32>}]} {
    %c0 = arith.constant 0 : index
    %c0_0 = arith.constant 0 : index
    %c0_1 = arith.constant 0 : index
    %c0_2 = arith.constant 0 : index
    %0 = vector.load %arg1[%c0, %c0_0, %c0_1, %c0_2] : memref<8x3x8x32xf32, #tpu.memory_space<vmem>>, vector<8x3x8x32xf32>
    %c0_3 = arith.constant 0 : index
    %c0_4 = arith.constant 0 : index
    %c0_5 = arith.constant 0 : index
    %1 = vector.load %arg2[%c0_3, %c0_4, %c0_5] : memref<8x8x32xf32, #tpu.memory_space<vmem>>, vector<8x8x32xf32>
    %2 = vector.shape_cast %0 : vector<8x3x8x32xf32> to vector<8x24x32xf32>
    %3 = arith.truncf %2 : vector<8x24x32xf32> to vector<8x24x32xbf16>
    %4 = arith.truncf %1 : vector<8x8x32xf32> to vector<8x8x32xbf16>
    "tpu.trace_start"() <{level = 10 : i32, message = "nqe,nke->nqk"}> : () -> ()
    %cst = arith.constant dense<0.000000e+00> : vector<8x24x8xf32>
    %5 = tpu.matmul %3, %4, %cst {dimension_numbers = #tpu.dot_dimension_numbers<[2], [2], [1], [1], [0, 0, 0, 1, 1, 1], [0], [0]>} : vector<8x24x32xbf16>, vector<8x8x32xbf16>, vector<8x24x8xf32> -> vector<8x24x8xf32>
    "tpu.trace_stop"() : () -> ()
    %cst_6 = arith.constant dense<0xFF800000> : vector<8x24xf32>
    %6 = vector.multi_reduction <maximumf>, %5, %cst_6 [2] : vector<8x24x8xf32> to vector<8x24xf32>
    %7 = vector.shape_cast %6 : vector<8x24xf32> to vector<8x24x1xf32>
    %8 = vector.broadcast %7 : vector<8x24x1xf32> to vector<8x24x8xf32>
    %9 = arith.subf %5, %8 : vector<8x24x8xf32>
    %10 = math.exp %9 : vector<8x24x8xf32>
    %11 = arith.truncf %10 : vector<8x24x8xf32> to vector<8x24x8xbf16>
    "tpu.trace_start"() <{level = 10 : i32, message = "nqk,nke->nqe"}> : () -> ()
    %cst_7 = arith.constant dense<0.000000e+00> : vector<8x24x32xf32>
    %12 = tpu.matmul %11, %4, %cst_7 {dimension_numbers = #tpu.dot_dimension_numbers<[2], [1], [1], [2], [0, 0, 0, 1, 1, 2], [0], [0]>} : vector<8x24x8xbf16>, vector<8x8x32xbf16>, vector<8x24x32xf32> -> vector<8x24x32xf32>
    "tpu.trace_stop"() : () -> ()
    %cst_8 = arith.constant dense<0.000000e+00> : vector<8x24xf32>
    %13 = vector.multi_reduction <add>, %10, %cst_8 [2] : vector<8x24x8xf32> to vector<8x24xf32>
    %14 = vector.shape_cast %13 : vector<8x24xf32> to vector<8x24x1xf32>
    %15 = vector.broadcast %14 : vector<8x24x1xf32> to vector<8x24x32xf32>
    %16 = arith.divf %12, %15 : vector<8x24x32xf32>
    "tpu.trace_start"() <{level = 10 : i32, message = "nqe,nke->nqk"}> : () -> ()
    %cst_9 = arith.constant dense<0.000000e+00> : vector<8x8x24xf32>
    %17 = tpu.matmul %4, %3, %cst_9 {dimension_numbers = #tpu.dot_dimension_numbers<[2], [2], [1], [1], [0, 0, 0, 1, 1, 1], [0], [0]>} : vector<8x8x32xbf16>, vector<8x24x32xbf16>, vector<8x8x24xf32> -> vector<8x8x24xf32>
    "tpu.trace_stop"() : () -> ()
    %cst_10 = arith.constant dense<0xFF800000> : vector<8x8xf32>
    %18 = vector.multi_reduction <maximumf>, %17, %cst_10 [2] : vector<8x8x24xf32> to vector<8x8xf32>
    %19 = vector.shape_cast %18 : vector<8x8xf32> to vector<8x8x1xf32>
    %20 = vector.broadcast %19 : vector<8x8x1xf32> to vector<8x8x24xf32>
    %21 = arith.subf %17, %20 : vector<8x8x24xf32>
    %22 = math.exp %21 : vector<8x8x24xf32>
    %23 = arith.truncf %22 : vector<8x8x24xf32> to vector<8x8x24xbf16>
    "tpu.trace_start"() <{level = 10 : i32, message = "nqk,nke->nqe"}> : () -> ()
    %cst_11 = arith.constant dense<0.000000e+00> : vector<8x8x32xf32>
    %24 = tpu.matmul %23, %3, %cst_11 {dimension_numbers = #tpu.dot_dimension_numbers<[2], [1], [1], [2], [0, 0, 0, 1, 1, 2], [0], [0]>} : vector<8x8x24xbf16>, vector<8x24x32xbf16>, vector<8x8x32xf32> -> vector<8x8x32xf32>
    "tpu.trace_stop"() : () -> ()
    %cst_12 = arith.constant dense<0.000000e+00> : vector<8x8xf32>
    %25 = vector.multi_reduction <add>, %22, %cst_12 [2] : vector<8x8x24xf32> to vector<8x8xf32>
    %26 = vector.shape_cast %25 : vector<8x8xf32> to vector<8x8x1xf32>
    %27 = vector.broadcast %26 : vector<8x8x1xf32> to vector<8x8x32xf32>
    %28 = arith.divf %24, %27 : vector<8x8x32xf32>
    %29 = vector.shape_cast %0 : vector<8x3x8x32xf32> to vector<24x8x32xf32>
    %30 = tpu.concatenate %29, %1 in 0 : vector<24x8x32xf32>, vector<8x8x32xf32> -> vector<32x8x32xf32>
    %31 = vector.shape_cast %16 : vector<8x24x32xf32> to vector<24x8x32xf32>
    %32 = tpu.concatenate %31, %28 in 0 : vector<24x8x32xf32>, vector<8x8x32xf32> -> vector<32x8x32xf32>
    %33 = arith.subf %30, %32 : vector<32x8x32xf32>
    %34 = arith.mulf %33, %33 : vector<32x8x32xf32>
    %35 = arith.mulf %30, %32 : vector<32x8x32xf32>
    %36 = tpu.concatenate %30, %32, %33, %34, %35 in 1 : vector<32x8x32xf32>, vector<32x8x32xf32>, vector<32x8x32xf32>, vector<32x8x32xf32>, vector<32x8x32xf32> -> vector<32x40x32xf32>
    %c0_13 = arith.constant 0 : index
    %c0_14 = arith.constant 0 : index
    %37 = vector.load %arg3[%c0_13, %c0_14] : memref<8x40xbf16, #tpu.memory_space<vmem>>, vector<8x40xbf16>
    %38 = vector.shape_cast %37 : vector<8x40xbf16> to vector<1x8x40xbf16>
    %39 = vector.broadcast %38 : vector<1x8x40xbf16> to vector<32x8x40xbf16>
    %40 = arith.truncf %36 : vector<32x40x32xf32> to vector<32x40x32xbf16>
    "tpu.trace_start"() <{level = 10 : i32, message = "npq,nqe->npe"}> : () -> ()
    %cst_15 = arith.constant dense<0.000000e+00> : vector<32x8x32xf32>
    %41 = tpu.matmul %39, %40, %cst_15 {dimension_numbers = #tpu.dot_dimension_numbers<[2], [1], [1], [2], [0, 0, 0, 1, 1, 2], [0], [0]>} : vector<32x8x40xbf16>, vector<32x40x32xbf16>, vector<32x8x32xf32> -> vector<32x8x32xf32>
    "tpu.trace_stop"() : () -> ()
    %c0_16 = arith.constant 0 : index
    %c0_17 = arith.constant 0 : index
    %42 = vector.load %arg4[%c0_16, %c0_17] : memref<1x32xf32, #tpu.memory_space<vmem>>, vector<1x32xf32>
    %43 = vector.shape_cast %42 : vector<1x32xf32> to vector<1x1x32xf32>
    %44 = vector.broadcast %43 : vector<1x1x32xf32> to vector<32x8x32xf32>
    %45 = arith.addf %41, %44 : vector<32x8x32xf32>
    %cst_18 = arith.constant 0.000000e+00 : f32
    %46 = vector.broadcast %cst_18 : f32 to vector<32x8x32xf32>
    %47 = arith.maximumf %45, %46 : vector<32x8x32xf32>
    %48 = vector.shape_cast %47 : vector<32x8x32xf32> to vector<256x32xf32>
    %49 = arith.truncf %48 : vector<256x32xf32> to vector<256x32xbf16>
    %c0_19 = arith.constant 0 : index
    %c0_20 = arith.constant 0 : index
    %50 = vector.load %arg5[%c0_19, %c0_20] : memref<32x96xbf16, #tpu.memory_space<vmem>>, vector<32x96xbf16>
    %cst_21 = arith.constant dense<0.000000e+00> : vector<256x96xf32>
    %51 = tpu.matmul %49, %50, %cst_21 {dimension_numbers = #tpu.dot_dimension_numbers<[1], [0], [0], [1], [0, 0, 1, 1], [], []>} : vector<256x32xbf16>, vector<32x96xbf16>, vector<256x96xf32> -> vector<256x96xf32>
    %c0_22 = arith.constant 0 : index
    %c0_23 = arith.constant 0 : index
    %52 = vector.load %arg7[%c0_22, %c0_23] : memref<1x96xf32, #tpu.memory_space<vmem>>, vector<1x96xf32>
    %53 = vector.broadcast %52 : vector<1x96xf32> to vector<256x96xf32>
    %54 = arith.addf %51, %53 : vector<256x96xf32>
    %55 = vector.shape_cast %54 : vector<256x96xf32> to vector<32x8x96xf32>
    %56 = vector.extract_strided_slice %55 {offsets = [0, 0, 0], sizes = [32, 1, 96], strides = [1, 1, 1]} : vector<32x8x96xf32> to vector<32x1x96xf32>
    %57 = vector.shape_cast %56 : vector<32x1x96xf32> to vector<32x96xf32>
    %c0_24 = arith.constant 0 : index
    %c0_25 = arith.constant 0 : index
    %c0_26 = arith.constant 0 : index
    %58 = vector.load %arg15[%c0_24, %c0_25, %c0_26] : memref<8x32x96xf32, #tpu.memory_space<vmem>>, vector<1x32x96xf32>
    %59 = vector.shape_cast %58 : vector<1x32x96xf32> to vector<32x96xf32>
    %60 = vector.shape_cast %57 : vector<32x96xf32> to vector<1x32x96xf32>
    tpu.vector_store %arg15[%c0_24, %c0_25, %c0_26], %60 {strides = array<i32>} : memref<8x32x96xf32, #tpu.memory_space<vmem>>, vector<1x32x96xf32>,
    %61 = vector.extract_strided_slice %55 {offsets = [0, 1, 0], sizes = [32, 1, 96], strides = [1, 1, 1]} : vector<32x8x96xf32> to vector<32x1x96xf32>
    %62 = vector.shape_cast %61 : vector<32x1x96xf32> to vector<32x96xf32>
    %c1 = arith.constant 1 : index
    %c0_27 = arith.constant 0 : index
    %c0_28 = arith.constant 0 : index
    %63 = vector.load %arg15[%c1, %c0_27, %c0_28] : memref<8x32x96xf32, #tpu.memory_space<vmem>>, vector<1x32x96xf32>
    %64 = vector.shape_cast %63 : vector<1x32x96xf32> to vector<32x96xf32>
    %65 = vector.shape_cast %62 : vector<32x96xf32> to vector<1x32x96xf32>
    tpu.vector_store %arg15[%c1, %c0_27, %c0_28], %65 {strides = array<i32>} : memref<8x32x96xf32, #tpu.memory_space<vmem>>, vector<1x32x96xf32>,
    %66 = vector.extract_strided_slice %55 {offsets = [0, 2, 0], sizes = [32, 1, 96], strides = [1, 1, 1]} : vector<32x8x96xf32> to vector<32x1x96xf32>
    %67 = vector.shape_cast %66 : vector<32x1x96xf32> to vector<32x96xf32>
    %c2 = arith.constant 2 : index
    %c0_29 = arith.constant 0 : index
    %c0_30 = arith.constant 0 : index
    %68 = vector.load %arg15[%c2, %c0_29, %c0_30] : memref<8x32x96xf32, #tpu.memory_space<vmem>>, vector<1x32x96xf32>
    %69 = vector.shape_cast %68 : vector<1x32x96xf32> to vector<32x96xf32>
    %70 = vector.shape_cast %67 : vector<32x96xf32> to vector<1x32x96xf32>
    tpu.vector_store %arg15[%c2, %c0_29, %c0_30], %70 {strides = array<i32>} : memref<8x32x96xf32, #tpu.memory_space<vmem>>, vector<1x32x96xf32>,
    %71 = vector.extract_strided_slice %55 {offsets = [0, 3, 0], sizes = [32, 1, 96], strides = [1, 1, 1]} : vector<32x8x96xf32> to vector<32x1x96xf32>
    %72 = vector.shape_cast %71 : vector<32x1x96xf32> to vector<32x96xf32>
    %c3 = arith.constant 3 : index
    %c0_31 = arith.constant 0 : index
    %c0_32 = arith.constant 0 : index
    %73 = vector.load %arg15[%c3, %c0_31, %c0_32] : memref<8x32x96xf32, #tpu.memory_space<vmem>>, vector<1x32x96xf32>
    %74 = vector.shape_cast %73 : vector<1x32x96xf32> to vector<32x96xf32>
    %75 = vector.shape_cast %72 : vector<32x96xf32> to vector<1x32x96xf32>
    tpu.vector_store %arg15[%c3, %c0_31, %c0_32], %75 {strides = array<i32>} : memref<8x32x96xf32, #tpu.memory_space<vmem>>, vector<1x32x96xf32>,
    %76 = vector.extract_strided_slice %55 {offsets = [0, 4, 0], sizes = [32, 1, 96], strides = [1, 1, 1]} : vector<32x8x96xf32> to vector<32x1x96xf32>
    %77 = vector.shape_cast %76 : vector<32x1x96xf32> to vector<32x96xf32>
    %c4 = arith.constant 4 : index
    %c0_33 = arith.constant 0 : index
    %c0_34 = arith.constant 0 : index
    %78 = vector.load %arg15[%c4, %c0_33, %c0_34] : memref<8x32x96xf32, #tpu.memory_space<vmem>>, vector<1x32x96xf32>
    %79 = vector.shape_cast %78 : vector<1x32x96xf32> to vector<32x96xf32>
    %80 = vector.shape_cast %77 : vector<32x96xf32> to vector<1x32x96xf32>
    tpu.vector_store %arg15[%c4, %c0_33, %c0_34], %80 {strides = array<i32>} : memref<8x32x96xf32, #tpu.memory_space<vmem>>, vector<1x32x96xf32>,
    %81 = vector.extract_strided_slice %55 {offsets = [0, 5, 0], sizes = [32, 1, 96], strides = [1, 1, 1]} : vector<32x8x96xf32> to vector<32x1x96xf32>
    %82 = vector.shape_cast %81 : vector<32x1x96xf32> to vector<32x96xf32>
    %c5 = arith.constant 5 : index
    %c0_35 = arith.constant 0 : index
    %c0_36 = arith.constant 0 : index
    %83 = vector.load %arg15[%c5, %c0_35, %c0_36] : memref<8x32x96xf32, #tpu.memory_space<vmem>>, vector<1x32x96xf32>
    %84 = vector.shape_cast %83 : vector<1x32x96xf32> to vector<32x96xf32>
    %85 = vector.shape_cast %82 : vector<32x96xf32> to vector<1x32x96xf32>
    tpu.vector_store %arg15[%c5, %c0_35, %c0_36], %85 {strides = array<i32>} : memref<8x32x96xf32, #tpu.memory_space<vmem>>, vector<1x32x96xf32>,
    %86 = vector.extract_strided_slice %55 {offsets = [0, 6, 0], sizes = [32, 1, 96], strides = [1, 1, 1]} : vector<32x8x96xf32> to vector<32x1x96xf32>
    %87 = vector.shape_cast %86 : vector<32x1x96xf32> to vector<32x96xf32>
    %c6 = arith.constant 6 : index
    %c0_37 = arith.constant 0 : index
    %c0_38 = arith.constant 0 : index
    %88 = vector.load %arg15[%c6, %c0_37, %c0_38] : memref<8x32x96xf32, #tpu.memory_space<vmem>>, vector<1x32x96xf32>
    %89 = vector.shape_cast %88 : vector<1x32x96xf32> to vector<32x96xf32>
    %90 = vector.shape_cast %87 : vector<32x96xf32> to vector<1x32x96xf32>
    tpu.vector_store %arg15[%c6, %c0_37, %c0_38], %90 {strides = array<i32>} : memref<8x32x96xf32, #tpu.memory_space<vmem>>, vector<1x32x96xf32>,
    %91 = vector.extract_strided_slice %55 {offsets = [0, 7, 0], sizes = [32, 1, 96], strides = [1, 1, 1]} : vector<32x8x96xf32> to vector<32x1x96xf32>
    %92 = vector.shape_cast %91 : vector<32x1x96xf32> to vector<32x96xf32>
    %c7 = arith.constant 7 : index
    %c0_39 = arith.constant 0 : index
    %c0_40 = arith.constant 0 : index
    %93 = vector.load %arg15[%c7, %c0_39, %c0_40] : memref<8x32x96xf32, #tpu.memory_space<vmem>>, vector<1x32x96xf32>
    %94 = vector.shape_cast %93 : vector<1x32x96xf32> to vector<32x96xf32>
    %95 = vector.shape_cast %92 : vector<32x96xf32> to vector<1x32x96xf32>
    tpu.vector_store %arg15[%c7, %c0_39, %c0_40], %95 {strides = array<i32>} : memref<8x32x96xf32, #tpu.memory_space<vmem>>, vector<1x32x96xf32>,
    %c0_41 = arith.constant 0 : index
    %c0_42 = arith.constant 0 : index
    %96 = vector.load %arg6[%c0_41, %c0_42] : memref<32x96xbf16, #tpu.memory_space<vmem>>, vector<32x96xbf16>
    %c0_43 = arith.constant 0 : index
    %c0_44 = arith.constant 0 : index
    %97 = vector.load %arg8[%c0_43, %c0_44] : memref<1x96xf32, #tpu.memory_space<vmem>>, vector<1x96xf32>
    %cst_45 = arith.constant 0.000000e+00 : f32
    %98 = vector.broadcast %cst_45 : f32 to vector<32x32xf32>
    %c0_i32 = arith.constant 0 : i32
    %c8_i32 = arith.constant 8 : i32
    %99 = arith.addi %c0_i32, %c8_i32 : i32
    %c1_i32 = arith.constant 1 : i32
    %100 = scf.for %arg16 = %c0_i32 to %99 step %c1_i32 iter_args(%arg17 = %98) -> (vector<32x32xf32>)  : i32 {
      %237 = arith.truncf %arg17 : vector<32x32xf32> to vector<32x32xbf16>
      %cst_76 = arith.constant dense<0.000000e+00> : vector<32x96xf32>
      %238 = tpu.matmul %237, %96, %cst_76 {dimension_numbers = #tpu.dot_dimension_numbers<[1], [0], [0], [1], [0, 0, 1, 1], [], []>} : vector<32x32xbf16>, vector<32x96xbf16>, vector<32x96xf32> -> vector<32x96xf32>
      %239 = vector.broadcast %97 : vector<1x96xf32> to vector<32x96xf32>
      %240 = arith.addf %238, %239 : vector<32x96xf32>
      %241 = arith.index_cast %arg16 : i32 to index
      %c0_77 = arith.constant 0 : index
      %c0_78 = arith.constant 0 : index
      %242 = vector.load %arg15[%241, %c0_77, %c0_78] : memref<8x32x96xf32, #tpu.memory_space<vmem>>, vector<1x32x96xf32>
      %243 = vector.shape_cast %242 : vector<1x32x96xf32> to vector<32x96xf32>
      %244 = vector.extract_strided_slice %243 {offsets = [0, 0], sizes = [32, 64], strides = [1, 1]} : vector<32x96xf32> to vector<32x64xf32>
      %245 = vector.extract_strided_slice %240 {offsets = [0, 0], sizes = [32, 64], strides = [1, 1]} : vector<32x96xf32> to vector<32x64xf32>
      %246 = arith.addf %244, %245 : vector<32x64xf32>
      %247 = arith.negf %246 : vector<32x64xf32>
      %248 = math.exp %247 : vector<32x64xf32>
      %cst_79 = arith.constant 1.000000e+00 : f32
      %249 = vector.broadcast %cst_79 : f32 to vector<32x64xf32>
      %250 = arith.addf %249, %248 : vector<32x64xf32>
      %251 = arith.divf %249, %250 : vector<32x64xf32>
      %252 = vector.extract_strided_slice %243 {offsets = [0, 64], sizes = [32, 32], strides = [1, 1]} : vector<32x96xf32> to vector<32x32xf32>
      %253 = vector.extract_strided_slice %251 {offsets = [0, 0], sizes = [32, 32], strides = [1, 1]} : vector<32x64xf32> to vector<32x32xf32>
      %254 = vector.extract_strided_slice %240 {offsets = [0, 64], sizes = [32, 32], strides = [1, 1]} : vector<32x96xf32> to vector<32x32xf32>
      %255 = arith.mulf %253, %254 : vector<32x32xf32>
      %256 = arith.addf %252, %255 : vector<32x32xf32>
      %257 = math.tanh %256 : vector<32x32xf32>
      %258 = vector.extract_strided_slice %251 {offsets = [0, 32], sizes = [32, 32], strides = [1, 1]} : vector<32x64xf32> to vector<32x32xf32>
      %cst_80 = arith.constant 1.000000e+00 : f32
      %259 = vector.broadcast %cst_80 : f32 to vector<32x32xf32>
      %260 = arith.subf %259, %258 : vector<32x32xf32>
      %261 = arith.mulf %260, %257 : vector<32x32xf32>
      %262 = vector.extract_strided_slice %251 {offsets = [0, 32], sizes = [32, 32], strides = [1, 1]} : vector<32x64xf32> to vector<32x32xf32>
      %263 = arith.mulf %262, %arg17 : vector<32x32xf32>
      %264 = arith.addf %261, %263 : vector<32x32xf32>
      scf.yield %264 : vector<32x32xf32>
    }
    %c8_i32_46 = arith.constant 8 : i32
    %101 = arith.truncf %100 : vector<32x32xf32> to vector<32x32xbf16>
    %c0_47 = arith.constant 0 : index
    %c0_48 = arith.constant 0 : index
    %102 = vector.load %arg9[%c0_47, %c0_48] : memref<32x96xbf16, #tpu.memory_space<vmem>>, vector<32x96xbf16>
    %cst_49 = arith.constant dense<0.000000e+00> : vector<32x96xf32>
    %103 = tpu.matmul %101, %102, %cst_49 {dimension_numbers = #tpu.dot_dimension_numbers<[1], [0], [0], [1], [0, 0, 1, 1], [], []>} : vector<32x32xbf16>, vector<32x96xbf16>, vector<32x96xf32> -> vector<32x96xf32>
    %c0_50 = arith.constant 0 : index
    %c0_51 = arith.constant 0 : index
    %104 = vector.load %arg11[%c0_50, %c0_51] : memref<1x96xf32, #tpu.memory_space<vmem>>, vector<1x96xf32>
    %105 = vector.broadcast %104 : vector<1x96xf32> to vector<32x96xf32>
    %106 = arith.addf %103, %105 : vector<32x96xf32>
    %107 = vector.extract_strided_slice %106 {offsets = [0, 0], sizes = [24, 96], strides = [1, 1]} : vector<32x96xf32> to vector<24x96xf32>
    %108 = vector.shape_cast %107 : vector<24x96xf32> to vector<8x3x96xf32>
    %109 = vector.extract_strided_slice %106 {offsets = [24, 0], sizes = [8, 96], strides = [1, 1]} : vector<32x96xf32> to vector<8x96xf32>
    %c0_52 = arith.constant 0 : index
    %c0_53 = arith.constant 0 : index
    %110 = vector.load %arg10[%c0_52, %c0_53] : memref<32x96xbf16, #tpu.memory_space<vmem>>, vector<32x96xbf16>
    %c0_54 = arith.constant 0 : index
    %c0_55 = arith.constant 0 : index
    %111 = vector.load %arg12[%c0_54, %c0_55] : memref<1x96xf32, #tpu.memory_space<vmem>>, vector<1x96xf32>
    %cst_56 = arith.constant 0.000000e+00 : f32
    %112 = vector.broadcast %cst_56 : f32 to vector<8x32xf32>
    %cst_57 = arith.constant 0.000000e+00 : f32
    %113 = vector.broadcast %cst_57 : f32 to vector<8x32xf32>
    %114 = arith.truncf %112 : vector<8x32xf32> to vector<8x32xbf16>
    %cst_58 = arith.constant dense<0.000000e+00> : vector<8x96xf32>
    %115 = tpu.matmul %114, %110, %cst_58 {dimension_numbers = #tpu.dot_dimension_numbers<[1], [0], [0], [1], [0, 0, 1, 1], [], []>} : vector<8x32xbf16>, vector<32x96xbf16>, vector<8x96xf32> -> vector<8x96xf32>
    %116 = vector.broadcast %111 : vector<1x96xf32> to vector<8x96xf32>
    %117 = arith.addf %115, %116 : vector<8x96xf32>
    %118 = vector.extract_strided_slice %108 {offsets = [0, 0, 0], sizes = [8, 1, 96], strides = [1, 1, 1]} : vector<8x3x96xf32> to vector<8x1x96xf32>
    %119 = vector.shape_cast %118 : vector<8x1x96xf32> to vector<8x96xf32>
    %120 = vector.extract_strided_slice %119 {offsets = [0, 0], sizes = [8, 64], strides = [1, 1]} : vector<8x96xf32> to vector<8x64xf32>
    %121 = vector.extract_strided_slice %117 {offsets = [0, 0], sizes = [8, 64], strides = [1, 1]} : vector<8x96xf32> to vector<8x64xf32>
    %122 = arith.addf %120, %121 : vector<8x64xf32>
    %123 = arith.negf %122 : vector<8x64xf32>
    %124 = math.exp %123 : vector<8x64xf32>
    %cst_59 = arith.constant 1.000000e+00 : f32
    %125 = vector.broadcast %cst_59 : f32 to vector<8x64xf32>
    %126 = arith.addf %125, %124 : vector<8x64xf32>
    %127 = arith.divf %125, %126 : vector<8x64xf32>
    %128 = vector.extract_strided_slice %119 {offsets = [0, 64], sizes = [8, 32], strides = [1, 1]} : vector<8x96xf32> to vector<8x32xf32>
    %129 = vector.extract_strided_slice %127 {offsets = [0, 0], sizes = [8, 32], strides = [1, 1]} : vector<8x64xf32> to vector<8x32xf32>
    %130 = vector.extract_strided_slice %117 {offsets = [0, 64], sizes = [8, 32], strides = [1, 1]} : vector<8x96xf32> to vector<8x32xf32>
    %131 = arith.mulf %129, %130 : vector<8x32xf32>
    %132 = arith.addf %128, %131 : vector<8x32xf32>
    %133 = math.tanh %132 : vector<8x32xf32>
    %134 = vector.extract_strided_slice %127 {offsets = [0, 32], sizes = [8, 32], strides = [1, 1]} : vector<8x64xf32> to vector<8x32xf32>
    %cst_60 = arith.constant 1.000000e+00 : f32
    %135 = vector.broadcast %cst_60 : f32 to vector<8x32xf32>
    %136 = arith.subf %135, %134 : vector<8x32xf32>
    %137 = arith.mulf %136, %133 : vector<8x32xf32>
    %138 = vector.extract_strided_slice %127 {offsets = [0, 32], sizes = [8, 32], strides = [1, 1]} : vector<8x64xf32> to vector<8x32xf32>
    %139 = arith.mulf %138, %112 : vector<8x32xf32>
    %140 = arith.addf %137, %139 : vector<8x32xf32>
    %c0_61 = arith.constant 0 : index
    %141 = memref.load %arg13[%c0_61] : memref<4xf32, #tpu.memory_space<smem>>
    %142 = vector.broadcast %141 : f32 to vector<8x32xf32>
    %143 = arith.mulf %142, %140 : vector<8x32xf32>
    %144 = arith.addf %113, %143 : vector<8x32xf32>
    %145 = arith.truncf %140 : vector<8x32xf32> to vector<8x32xbf16>
    %cst_62 = arith.constant dense<0.000000e+00> : vector<8x96xf32>
    %146 = tpu.matmul %145, %110, %cst_62 {dimension_numbers = #tpu.dot_dimension_numbers<[1], [0], [0], [1], [0, 0, 1, 1], [], []>} : vector<8x32xbf16>, vector<32x96xbf16>, vector<8x96xf32> -> vector<8x96xf32>
    %147 = vector.broadcast %111 : vector<1x96xf32> to vector<8x96xf32>
    %148 = arith.addf %146, %147 : vector<8x96xf32>
    %149 = vector.extract_strided_slice %108 {offsets = [0, 1, 0], sizes = [8, 1, 96], strides = [1, 1, 1]} : vector<8x3x96xf32> to vector<8x1x96xf32>
    %150 = vector.shape_cast %149 : vector<8x1x96xf32> to vector<8x96xf32>
    %151 = vector.extract_strided_slice %150 {offsets = [0, 0], sizes = [8, 64], strides = [1, 1]} : vector<8x96xf32> to vector<8x64xf32>
    %152 = vector.extract_strided_slice %148 {offsets = [0, 0], sizes = [8, 64], strides = [1, 1]} : vector<8x96xf32> to vector<8x64xf32>
    %153 = arith.addf %151, %152 : vector<8x64xf32>
    %154 = arith.negf %153 : vector<8x64xf32>
    %155 = math.exp %154 : vector<8x64xf32>
    %cst_63 = arith.constant 1.000000e+00 : f32
    %156 = vector.broadcast %cst_63 : f32 to vector<8x64xf32>
    %157 = arith.addf %156, %155 : vector<8x64xf32>
    %158 = arith.divf %156, %157 : vector<8x64xf32>
    %159 = vector.extract_strided_slice %150 {offsets = [0, 64], sizes = [8, 32], strides = [1, 1]} : vector<8x96xf32> to vector<8x32xf32>
    %160 = vector.extract_strided_slice %158 {offsets = [0, 0], sizes = [8, 32], strides = [1, 1]} : vector<8x64xf32> to vector<8x32xf32>
    %161 = vector.extract_strided_slice %148 {offsets = [0, 64], sizes = [8, 32], strides = [1, 1]} : vector<8x96xf32> to vector<8x32xf32>
    %162 = arith.mulf %160, %161 : vector<8x32xf32>
    %163 = arith.addf %159, %162 : vector<8x32xf32>
    %164 = math.tanh %163 : vector<8x32xf32>
    %165 = vector.extract_strided_slice %158 {offsets = [0, 32], sizes = [8, 32], strides = [1, 1]} : vector<8x64xf32> to vector<8x32xf32>
    %cst_64 = arith.constant 1.000000e+00 : f32
    %166 = vector.broadcast %cst_64 : f32 to vector<8x32xf32>
    %167 = arith.subf %166, %165 : vector<8x32xf32>
    %168 = arith.mulf %167, %164 : vector<8x32xf32>
    %169 = vector.extract_strided_slice %158 {offsets = [0, 32], sizes = [8, 32], strides = [1, 1]} : vector<8x64xf32> to vector<8x32xf32>
    %170 = arith.mulf %169, %140 : vector<8x32xf32>
    %171 = arith.addf %168, %170 : vector<8x32xf32>
    %c1_65 = arith.constant 1 : index
    %172 = memref.load %arg13[%c1_65] : memref<4xf32, #tpu.memory_space<smem>>
    %173 = vector.broadcast %172 : f32 to vector<8x32xf32>
    %174 = arith.mulf %173, %171 : vector<8x32xf32>
    %175 = arith.addf %144, %174 : vector<8x32xf32>
    %176 = arith.truncf %171 : vector<8x32xf32> to vector<8x32xbf16>
    %cst_66 = arith.constant dense<0.000000e+00> : vector<8x96xf32>
    %177 = tpu.matmul %176, %110, %cst_66 {dimension_numbers = #tpu.dot_dimension_numbers<[1], [0], [0], [1], [0, 0, 1, 1], [], []>} : vector<8x32xbf16>, vector<32x96xbf16>, vector<8x96xf32> -> vector<8x96xf32>
    %178 = vector.broadcast %111 : vector<1x96xf32> to vector<8x96xf32>
    %179 = arith.addf %177, %178 : vector<8x96xf32>
    %180 = vector.extract_strided_slice %108 {offsets = [0, 2, 0], sizes = [8, 1, 96], strides = [1, 1, 1]} : vector<8x3x96xf32> to vector<8x1x96xf32>
    %181 = vector.shape_cast %180 : vector<8x1x96xf32> to vector<8x96xf32>
    %182 = vector.extract_strided_slice %181 {offsets = [0, 0], sizes = [8, 64], strides = [1, 1]} : vector<8x96xf32> to vector<8x64xf32>
    %183 = vector.extract_strided_slice %179 {offsets = [0, 0], sizes = [8, 64], strides = [1, 1]} : vector<8x96xf32> to vector<8x64xf32>
    %184 = arith.addf %182, %183 : vector<8x64xf32>
    %185 = arith.negf %184 : vector<8x64xf32>
    %186 = math.exp %185 : vector<8x64xf32>
    %cst_67 = arith.constant 1.000000e+00 : f32
    %187 = vector.broadcast %cst_67 : f32 to vector<8x64xf32>
    %188 = arith.addf %187, %186 : vector<8x64xf32>
    %189 = arith.divf %187, %188 : vector<8x64xf32>
    %190 = vector.extract_strided_slice %181 {offsets = [0, 64], sizes = [8, 32], strides = [1, 1]} : vector<8x96xf32> to vector<8x32xf32>
    %191 = vector.extract_strided_slice %189 {offsets = [0, 0], sizes = [8, 32], strides = [1, 1]} : vector<8x64xf32> to vector<8x32xf32>
    %192 = vector.extract_strided_slice %179 {offsets = [0, 64], sizes = [8, 32], strides = [1, 1]} : vector<8x96xf32> to vector<8x32xf32>
    %193 = arith.mulf %191, %192 : vector<8x32xf32>
    %194 = arith.addf %190, %193 : vector<8x32xf32>
    %195 = math.tanh %194 : vector<8x32xf32>
    %196 = vector.extract_strided_slice %189 {offsets = [0, 32], sizes = [8, 32], strides = [1, 1]} : vector<8x64xf32> to vector<8x32xf32>
    %cst_68 = arith.constant 1.000000e+00 : f32
    %197 = vector.broadcast %cst_68 : f32 to vector<8x32xf32>
    %198 = arith.subf %197, %196 : vector<8x32xf32>
    %199 = arith.mulf %198, %195 : vector<8x32xf32>
    %200 = vector.extract_strided_slice %189 {offsets = [0, 32], sizes = [8, 32], strides = [1, 1]} : vector<8x64xf32> to vector<8x32xf32>
    %201 = arith.mulf %200, %171 : vector<8x32xf32>
    %202 = arith.addf %199, %201 : vector<8x32xf32>
    %c2_69 = arith.constant 2 : index
    %203 = memref.load %arg13[%c2_69] : memref<4xf32, #tpu.memory_space<smem>>
    %204 = vector.broadcast %203 : f32 to vector<8x32xf32>
    %205 = arith.mulf %204, %202 : vector<8x32xf32>
    %206 = arith.addf %175, %205 : vector<8x32xf32>
    %207 = arith.truncf %202 : vector<8x32xf32> to vector<8x32xbf16>
    %cst_70 = arith.constant dense<0.000000e+00> : vector<8x96xf32>
    %208 = tpu.matmul %207, %110, %cst_70 {dimension_numbers = #tpu.dot_dimension_numbers<[1], [0], [0], [1], [0, 0, 1, 1], [], []>} : vector<8x32xbf16>, vector<32x96xbf16>, vector<8x96xf32> -> vector<8x96xf32>
    %209 = vector.broadcast %111 : vector<1x96xf32> to vector<8x96xf32>
    %210 = arith.addf %208, %209 : vector<8x96xf32>
    %211 = vector.extract_strided_slice %109 {offsets = [0, 0], sizes = [8, 64], strides = [1, 1]} : vector<8x96xf32> to vector<8x64xf32>
    %212 = vector.extract_strided_slice %210 {offsets = [0, 0], sizes = [8, 64], strides = [1, 1]} : vector<8x96xf32> to vector<8x64xf32>
    %213 = arith.addf %211, %212 : vector<8x64xf32>
    %214 = arith.negf %213 : vector<8x64xf32>
    %215 = math.exp %214 : vector<8x64xf32>
    %cst_71 = arith.constant 1.000000e+00 : f32
    %216 = vector.broadcast %cst_71 : f32 to vector<8x64xf32>
    %217 = arith.addf %216, %215 : vector<8x64xf32>
    %218 = arith.divf %216, %217 : vector<8x64xf32>
    %219 = vector.extract_strided_slice %109 {offsets = [0, 64], sizes = [8, 32], strides = [1, 1]} : vector<8x96xf32> to vector<8x32xf32>
    %220 = vector.extract_strided_slice %218 {offsets = [0, 0], sizes = [8, 32], strides = [1, 1]} : vector<8x64xf32> to vector<8x32xf32>
    %221 = vector.extract_strided_slice %210 {offsets = [0, 64], sizes = [8, 32], strides = [1, 1]} : vector<8x96xf32> to vector<8x32xf32>
    %222 = arith.mulf %220, %221 : vector<8x32xf32>
    %223 = arith.addf %219, %222 : vector<8x32xf32>
    %224 = math.tanh %223 : vector<8x32xf32>
    %225 = vector.extract_strided_slice %218 {offsets = [0, 32], sizes = [8, 32], strides = [1, 1]} : vector<8x64xf32> to vector<8x32xf32>
    %cst_72 = arith.constant 1.000000e+00 : f32
    %226 = vector.broadcast %cst_72 : f32 to vector<8x32xf32>
    %227 = arith.subf %226, %225 : vector<8x32xf32>
    %228 = arith.mulf %227, %224 : vector<8x32xf32>
    %229 = vector.extract_strided_slice %218 {offsets = [0, 32], sizes = [8, 32], strides = [1, 1]} : vector<8x64xf32> to vector<8x32xf32>
    %230 = arith.mulf %229, %202 : vector<8x32xf32>
    %231 = arith.addf %228, %230 : vector<8x32xf32>
    %c3_73 = arith.constant 3 : index
    %232 = memref.load %arg13[%c3_73] : memref<4xf32, #tpu.memory_space<smem>>
    %233 = vector.broadcast %232 : f32 to vector<8x32xf32>
    %234 = arith.mulf %233, %231 : vector<8x32xf32>
    %235 = arith.addf %206, %234 : vector<8x32xf32>
    %c0_74 = arith.constant 0 : index
    %c0_75 = arith.constant 0 : index
    %236 = vector.load %arg14[%c0_74, %c0_75] : memref<8x32xf32, #tpu.memory_space<vmem>>, vector<8x32xf32>
    tpu.vector_store %arg14[%c0_74, %c0_75], %235 {strides = array<i32>} : memref<8x32xf32, #tpu.memory_space<vmem>>, vector<8x32xf32>,
    return
  }
  func.func @transform_0(%arg0: i32) -> (i32, i32, i32, i32) {
    %c0_i32 = arith.constant 0 : i32
    %c0_i32_0 = arith.constant 0 : i32
    %c0_i32_1 = arith.constant 0 : i32
    %c0_i32_2 = arith.constant 0 : i32
    return %arg0, %c0_i32, %c0_i32_0, %c0_i32_1 : i32, i32, i32, i32
  }
  func.func @transform_1(%arg0: i32) -> (i32, i32, i32) {
    %c0_i32 = arith.constant 0 : i32
    %c0_i32_0 = arith.constant 0 : i32
    %c0_i32_1 = arith.constant 0 : i32
    return %arg0, %c0_i32, %c0_i32_0 : i32, i32, i32
  }
  func.func @transform_2(%arg0: i32) -> (i32, i32) {
    %c0_i32 = arith.constant 0 : i32
    %c0_i32_0 = arith.constant 0 : i32
    %c0_i32_1 = arith.constant 0 : i32
    return %c0_i32, %c0_i32_0 : i32, i32
  }
  func.func @transform_3(%arg0: i32) -> (i32, i32) {
    %c0_i32 = arith.constant 0 : i32
    %c0_i32_0 = arith.constant 0 : i32
    %c0_i32_1 = arith.constant 0 : i32
    return %c0_i32, %c0_i32_0 : i32, i32
  }
  func.func @transform_4(%arg0: i32) -> (i32, i32) {
    %c0_i32 = arith.constant 0 : i32
    %c0_i32_0 = arith.constant 0 : i32
    %c0_i32_1 = arith.constant 0 : i32
    return %c0_i32, %c0_i32_0 : i32, i32
  }
  func.func @transform_5(%arg0: i32) -> (i32, i32) {
    %c0_i32 = arith.constant 0 : i32
    %c0_i32_0 = arith.constant 0 : i32
    %c0_i32_1 = arith.constant 0 : i32
    return %c0_i32, %c0_i32_0 : i32, i32
  }
  func.func @transform_6(%arg0: i32) -> (i32, i32) {
    %c0_i32 = arith.constant 0 : i32
    %c0_i32_0 = arith.constant 0 : i32
    %c0_i32_1 = arith.constant 0 : i32
    return %c0_i32, %c0_i32_0 : i32, i32
  }
  func.func @transform_7(%arg0: i32) -> (i32, i32) {
    %c0_i32 = arith.constant 0 : i32
    %c0_i32_0 = arith.constant 0 : i32
    %c0_i32_1 = arith.constant 0 : i32
    return %c0_i32, %c0_i32_0 : i32, i32
  }
  func.func @transform_8(%arg0: i32) -> (i32, i32) {
    %c0_i32 = arith.constant 0 : i32
    %c0_i32_0 = arith.constant 0 : i32
    %c0_i32_1 = arith.constant 0 : i32
    return %c0_i32, %c0_i32_0 : i32, i32
  }
  func.func @transform_9(%arg0: i32) -> (i32, i32) {
    %c0_i32 = arith.constant 0 : i32
    %c0_i32_0 = arith.constant 0 : i32
    %c0_i32_1 = arith.constant 0 : i32
    return %c0_i32, %c0_i32_0 : i32, i32
  }
  func.func @transform_10(%arg0: i32) -> (i32, i32) {
    %c0_i32 = arith.constant 0 : i32
    %c0_i32_0 = arith.constant 0 : i32
    %c0_i32_1 = arith.constant 0 : i32
    return %c0_i32, %c0_i32_0 : i32, i32
  }
  func.func @transform_11(%arg0: i32) -> (i32, i32) {
    %c0_i32 = arith.constant 0 : i32
    %c0_i32_0 = arith.constant 0 : i32
    %c0_i32_1 = arith.constant 0 : i32
    return %c0_i32, %c0_i32_0 : i32, i32
  }
  func.func @transform_12(%arg0: i32) -> i32 {
    %c0_i32 = arith.constant 0 : i32
    %c0_i32_0 = arith.constant 0 : i32
    return %c0_i32 : i32
  }
  func.func @transform_13(%arg0: i32) -> (i32, i32) {
    %c0_i32 = arith.constant 0 : i32
    %c0_i32_0 = arith.constant 0 : i32
    return %arg0, %c0_i32 : i32, i32
  }
}

module attributes {stable_mosaic.version = 11 : i64} {
  func.func @_encode_kernel(%arg0: i32, %arg1: memref<8x8x32xf32, #tpu.memory_space<vmem>>, %arg2: memref<32x96xbf16, #tpu.memory_space<vmem>>, %arg3: memref<32x96xbf16, #tpu.memory_space<vmem>>, %arg4: memref<1x96xf32, #tpu.memory_space<vmem>>, %arg5: memref<1x96xf32, #tpu.memory_space<vmem>>, %arg6: memref<32x96xbf16, #tpu.memory_space<vmem>>, %arg7: memref<32x96xbf16, #tpu.memory_space<vmem>>, %arg8: memref<1x96xf32, #tpu.memory_space<vmem>>, %arg9: memref<1x96xf32, #tpu.memory_space<vmem>>, %arg10: memref<4xf32, #tpu.memory_space<smem>>, %arg11: memref<8x256xf32, #tpu.memory_space<vmem>>, %arg12: memref<8x8x96xf32, #tpu.memory_space<vmem>>, %arg13: memref<8x8x16xf32, #tpu.memory_space<vmem>>, %arg14: memref<8x8x16xf32, #tpu.memory_space<vmem>>, %arg15: memref<8x8x16xf32, #tpu.memory_space<vmem>>, %arg16: memref<8x8x16xf32, #tpu.memory_space<vmem>>) attributes {dimension_semantics = [#tpu.dimension_semantics<parallel>], iteration_bounds = array<i64: 1>, scalar_prefetch = 0 : i64, scratch_operands = 5 : i64, tpu.core_type = #tpu.core_type<tc>, window_params = [{transform_indices = @transform_0, window_bounds = array<i64: 8, 8, 32>}, {pipeline_mode = #tpu.pipeline_mode<synchronous>, transform_indices = @transform_1, window_bounds = array<i64: 32, 96>}, {pipeline_mode = #tpu.pipeline_mode<synchronous>, transform_indices = @transform_2, window_bounds = array<i64: 32, 96>}, {pipeline_mode = #tpu.pipeline_mode<synchronous>, transform_indices = @transform_3, window_bounds = array<i64: 1, 96>}, {pipeline_mode = #tpu.pipeline_mode<synchronous>, transform_indices = @transform_4, window_bounds = array<i64: 1, 96>}, {pipeline_mode = #tpu.pipeline_mode<synchronous>, transform_indices = @transform_5, window_bounds = array<i64: 32, 96>}, {pipeline_mode = #tpu.pipeline_mode<synchronous>, transform_indices = @transform_6, window_bounds = array<i64: 32, 96>}, {pipeline_mode = #tpu.pipeline_mode<synchronous>, transform_indices = @transform_7, window_bounds = array<i64: 1, 96>}, {pipeline_mode = #tpu.pipeline_mode<synchronous>, transform_indices = @transform_8, window_bounds = array<i64: 1, 96>}, {transform_indices = @transform_9, window_bounds = array<i64: 4>}, {transform_indices = @transform_10, window_bounds = array<i64: 8, 256>}]} {
    %c0 = arith.constant 0 : index
    %c0_0 = arith.constant 0 : index
    %c0_1 = arith.constant 0 : index
    %0 = vector.load %arg1[%c0, %c0_0, %c0_1] : memref<8x8x32xf32, #tpu.memory_space<vmem>>, vector<8x8x32xf32>
    %1 = vector.shape_cast %0 : vector<8x8x32xf32> to vector<64x32xf32>
    %2 = arith.truncf %1 : vector<64x32xf32> to vector<64x32xbf16>
    %c0_2 = arith.constant 0 : index
    %c0_3 = arith.constant 0 : index
    %3 = vector.load %arg2[%c0_2, %c0_3] : memref<32x96xbf16, #tpu.memory_space<vmem>>, vector<32x96xbf16>
    %cst = arith.constant dense<0.000000e+00> : vector<64x96xf32>
    %4 = tpu.matmul %2, %3, %cst {dimension_numbers = #tpu.dot_dimension_numbers<[1], [0], [0], [1], [0, 0, 1, 1], [], []>} : vector<64x32xbf16>, vector<32x96xbf16>, vector<64x96xf32> -> vector<64x96xf32>
    %c0_4 = arith.constant 0 : index
    %c0_5 = arith.constant 0 : index
    %5 = vector.load %arg4[%c0_4, %c0_5] : memref<1x96xf32, #tpu.memory_space<vmem>>, vector<1x96xf32>
    %6 = vector.broadcast %5 : vector<1x96xf32> to vector<64x96xf32>
    %7 = arith.addf %4, %6 : vector<64x96xf32>
    %8 = vector.shape_cast %7 : vector<64x96xf32> to vector<8x8x96xf32>
    %c0_6 = arith.constant 0 : index
    %c0_7 = arith.constant 0 : index
    %c0_8 = arith.constant 0 : index
    %9 = vector.load %arg12[%c0_6, %c0_7, %c0_8] : memref<8x8x96xf32, #tpu.memory_space<vmem>>, vector<8x8x96xf32>
    tpu.vector_store %arg12[%c0_6, %c0_7, %c0_8], %8 {strides = array<i32>} : memref<8x8x96xf32, #tpu.memory_space<vmem>>, vector<8x8x96xf32>,
    %c0_9 = arith.constant 0 : index
    %c0_10 = arith.constant 0 : index
    %10 = vector.load %arg3[%c0_9, %c0_10] : memref<32x96xbf16, #tpu.memory_space<vmem>>, vector<32x96xbf16>
    %c0_11 = arith.constant 0 : index
    %c0_12 = arith.constant 0 : index
    %11 = vector.load %arg5[%c0_11, %c0_12] : memref<1x96xf32, #tpu.memory_space<vmem>>, vector<1x96xf32>
    %cst_13 = arith.constant 0.000000e+00 : f32
    %12 = vector.broadcast %cst_13 : f32 to vector<8x16xf32>
    %c0_i32 = arith.constant 0 : i32
    %c8_i32 = arith.constant 8 : i32
    %13 = arith.addi %c0_i32, %c8_i32 : i32
    %c1_i32 = arith.constant 1 : i32
    %14:2 = scf.for %arg17 = %c0_i32 to %13 step %c1_i32 iter_args(%arg18 = %12, %arg19 = %12) -> (vector<8x16xf32>, vector<8x16xf32>)  : i32 {
      %220 = tpu.concatenate %arg18, %arg19 in 1 : vector<8x16xf32>, vector<8x16xf32> -> vector<8x32xf32>
      %221 = arith.truncf %220 : vector<8x32xf32> to vector<8x32xbf16>
      %cst_164 = arith.constant dense<0.000000e+00> : vector<8x96xf32>
      %222 = tpu.matmul %221, %10, %cst_164 {dimension_numbers = #tpu.dot_dimension_numbers<[1], [0], [0], [1], [0, 0, 1, 1], [], []>} : vector<8x32xbf16>, vector<32x96xbf16>, vector<8x96xf32> -> vector<8x96xf32>
      %223 = vector.broadcast %11 : vector<1x96xf32> to vector<8x96xf32>
      %224 = arith.addf %222, %223 : vector<8x96xf32>
      %225 = arith.index_cast %arg17 : i32 to index
      %c0_165 = arith.constant 0 : index
      %c0_166 = arith.constant 0 : index
      %226 = vector.load %arg12[%225, %c0_165, %c0_166] : memref<8x8x96xf32, #tpu.memory_space<vmem>>, vector<1x8x96xf32>
      %227 = vector.shape_cast %226 : vector<1x8x96xf32> to vector<8x96xf32>
      %228 = vector.extract_strided_slice %227 {offsets = [0, 0], sizes = [8, 48], strides = [1, 1]} : vector<8x96xf32> to vector<8x48xf32>
      %c7_i32 = arith.constant 7 : i32
      %229 = arith.subi %c7_i32, %arg17 : i32
      %230 = arith.index_cast %229 : i32 to index
      %c0_167 = arith.constant 0 : index
      %c0_168 = arith.constant 0 : index
      %231 = vector.load %arg12[%230, %c0_167, %c0_168] : memref<8x8x96xf32, #tpu.memory_space<vmem>>, vector<1x8x96xf32>
      %232 = vector.shape_cast %231 : vector<1x8x96xf32> to vector<8x96xf32>
      %233 = vector.extract_strided_slice %232 {offsets = [0, 48], sizes = [8, 48], strides = [1, 1]} : vector<8x96xf32> to vector<8x48xf32>
      %234 = vector.extract_strided_slice %224 {offsets = [0, 0], sizes = [8, 48], strides = [1, 1]} : vector<8x96xf32> to vector<8x48xf32>
      %235 = vector.extract_strided_slice %224 {offsets = [0, 48], sizes = [8, 48], strides = [1, 1]} : vector<8x96xf32> to vector<8x48xf32>
      %236 = vector.extract_strided_slice %228 {offsets = [0, 0], sizes = [8, 32], strides = [1, 1]} : vector<8x48xf32> to vector<8x32xf32>
      %237 = vector.extract_strided_slice %234 {offsets = [0, 0], sizes = [8, 32], strides = [1, 1]} : vector<8x48xf32> to vector<8x32xf32>
      %238 = arith.addf %236, %237 : vector<8x32xf32>
      %239 = arith.negf %238 : vector<8x32xf32>
      %240 = math.exp %239 : vector<8x32xf32>
      %cst_169 = arith.constant 1.000000e+00 : f32
      %241 = vector.broadcast %cst_169 : f32 to vector<8x32xf32>
      %242 = arith.addf %241, %240 : vector<8x32xf32>
      %243 = arith.divf %241, %242 : vector<8x32xf32>
      %244 = vector.extract_strided_slice %228 {offsets = [0, 32], sizes = [8, 16], strides = [1, 1]} : vector<8x48xf32> to vector<8x16xf32>
      %245 = vector.extract_strided_slice %243 {offsets = [0, 0], sizes = [8, 16], strides = [1, 1]} : vector<8x32xf32> to vector<8x16xf32>
      %246 = vector.extract_strided_slice %234 {offsets = [0, 32], sizes = [8, 16], strides = [1, 1]} : vector<8x48xf32> to vector<8x16xf32>
      %247 = arith.mulf %245, %246 : vector<8x16xf32>
      %248 = arith.addf %244, %247 : vector<8x16xf32>
      %249 = math.tanh %248 : vector<8x16xf32>
      %250 = vector.extract_strided_slice %243 {offsets = [0, 16], sizes = [8, 16], strides = [1, 1]} : vector<8x32xf32> to vector<8x16xf32>
      %cst_170 = arith.constant 1.000000e+00 : f32
      %251 = vector.broadcast %cst_170 : f32 to vector<8x16xf32>
      %252 = arith.subf %251, %250 : vector<8x16xf32>
      %253 = arith.mulf %252, %249 : vector<8x16xf32>
      %254 = vector.extract_strided_slice %243 {offsets = [0, 16], sizes = [8, 16], strides = [1, 1]} : vector<8x32xf32> to vector<8x16xf32>
      %255 = arith.mulf %254, %arg18 : vector<8x16xf32>
      %256 = arith.addf %253, %255 : vector<8x16xf32>
      %257 = vector.extract_strided_slice %233 {offsets = [0, 0], sizes = [8, 32], strides = [1, 1]} : vector<8x48xf32> to vector<8x32xf32>
      %258 = vector.extract_strided_slice %235 {offsets = [0, 0], sizes = [8, 32], strides = [1, 1]} : vector<8x48xf32> to vector<8x32xf32>
      %259 = arith.addf %257, %258 : vector<8x32xf32>
      %260 = arith.negf %259 : vector<8x32xf32>
      %261 = math.exp %260 : vector<8x32xf32>
      %cst_171 = arith.constant 1.000000e+00 : f32
      %262 = vector.broadcast %cst_171 : f32 to vector<8x32xf32>
      %263 = arith.addf %262, %261 : vector<8x32xf32>
      %264 = arith.divf %262, %263 : vector<8x32xf32>
      %265 = vector.extract_strided_slice %233 {offsets = [0, 32], sizes = [8, 16], strides = [1, 1]} : vector<8x48xf32> to vector<8x16xf32>
      %266 = vector.extract_strided_slice %264 {offsets = [0, 0], sizes = [8, 16], strides = [1, 1]} : vector<8x32xf32> to vector<8x16xf32>
      %267 = vector.extract_strided_slice %235 {offsets = [0, 32], sizes = [8, 16], strides = [1, 1]} : vector<8x48xf32> to vector<8x16xf32>
      %268 = arith.mulf %266, %267 : vector<8x16xf32>
      %269 = arith.addf %265, %268 : vector<8x16xf32>
      %270 = math.tanh %269 : vector<8x16xf32>
      %271 = vector.extract_strided_slice %264 {offsets = [0, 16], sizes = [8, 16], strides = [1, 1]} : vector<8x32xf32> to vector<8x16xf32>
      %cst_172 = arith.constant 1.000000e+00 : f32
      %272 = vector.broadcast %cst_172 : f32 to vector<8x16xf32>
      %273 = arith.subf %272, %271 : vector<8x16xf32>
      %274 = arith.mulf %273, %270 : vector<8x16xf32>
      %275 = vector.extract_strided_slice %264 {offsets = [0, 16], sizes = [8, 16], strides = [1, 1]} : vector<8x32xf32> to vector<8x16xf32>
      %276 = arith.mulf %275, %arg19 : vector<8x16xf32>
      %277 = arith.addf %274, %276 : vector<8x16xf32>
      %278 = arith.index_cast %arg17 : i32 to index
      %c0_173 = arith.constant 0 : index
      %c0_174 = arith.constant 0 : index
      %279 = vector.load %arg13[%278, %c0_173, %c0_174] : memref<8x8x16xf32, #tpu.memory_space<vmem>>, vector<1x8x16xf32>
      %280 = vector.shape_cast %279 : vector<1x8x16xf32> to vector<8x16xf32>
      %281 = vector.shape_cast %256 : vector<8x16xf32> to vector<1x8x16xf32>
      tpu.vector_store %arg13[%278, %c0_173, %c0_174], %281 {strides = array<i32>} : memref<8x8x16xf32, #tpu.memory_space<vmem>>, vector<1x8x16xf32>,
      %c7_i32_175 = arith.constant 7 : i32
      %282 = arith.subi %c7_i32_175, %arg17 : i32
      %283 = arith.index_cast %282 : i32 to index
      %c0_176 = arith.constant 0 : index
      %c0_177 = arith.constant 0 : index
      %284 = vector.load %arg14[%283, %c0_176, %c0_177] : memref<8x8x16xf32, #tpu.memory_space<vmem>>, vector<1x8x16xf32>
      %285 = vector.shape_cast %284 : vector<1x8x16xf32> to vector<8x16xf32>
      %286 = vector.shape_cast %277 : vector<8x16xf32> to vector<1x8x16xf32>
      tpu.vector_store %arg14[%283, %c0_176, %c0_177], %286 {strides = array<i32>} : memref<8x8x16xf32, #tpu.memory_space<vmem>>, vector<1x8x16xf32>,
      scf.yield %256, %277 : vector<8x16xf32>, vector<8x16xf32>
    }
    %c8_i32_14 = arith.constant 8 : i32
    %c0_15 = arith.constant 0 : index
    %c0_16 = arith.constant 0 : index
    %c0_17 = arith.constant 0 : index
    %15 = vector.load %arg13[%c0_15, %c0_16, %c0_17] : memref<8x8x16xf32, #tpu.memory_space<vmem>>, vector<8x8x16xf32>
    %c0_18 = arith.constant 0 : index
    %c0_19 = arith.constant 0 : index
    %c0_20 = arith.constant 0 : index
    %16 = vector.load %arg14[%c0_18, %c0_19, %c0_20] : memref<8x8x16xf32, #tpu.memory_space<vmem>>, vector<8x8x16xf32>
    %17 = tpu.concatenate %15, %16 in 2 : vector<8x8x16xf32>, vector<8x8x16xf32> -> vector<8x8x32xf32>
    %18 = vector.shape_cast %17 : vector<8x8x32xf32> to vector<64x32xf32>
    %19 = arith.truncf %18 : vector<64x32xf32> to vector<64x32xbf16>
    %c0_21 = arith.constant 0 : index
    %c0_22 = arith.constant 0 : index
    %20 = vector.load %arg6[%c0_21, %c0_22] : memref<32x96xbf16, #tpu.memory_space<vmem>>, vector<32x96xbf16>
    %cst_23 = arith.constant dense<0.000000e+00> : vector<64x96xf32>
    %21 = tpu.matmul %19, %20, %cst_23 {dimension_numbers = #tpu.dot_dimension_numbers<[1], [0], [0], [1], [0, 0, 1, 1], [], []>} : vector<64x32xbf16>, vector<32x96xbf16>, vector<64x96xf32> -> vector<64x96xf32>
    %c0_24 = arith.constant 0 : index
    %c0_25 = arith.constant 0 : index
    %22 = vector.load %arg8[%c0_24, %c0_25] : memref<1x96xf32, #tpu.memory_space<vmem>>, vector<1x96xf32>
    %23 = vector.broadcast %22 : vector<1x96xf32> to vector<64x96xf32>
    %24 = arith.addf %21, %23 : vector<64x96xf32>
    %25 = vector.shape_cast %24 : vector<64x96xf32> to vector<8x8x96xf32>
    %c0_26 = arith.constant 0 : index
    %c0_27 = arith.constant 0 : index
    %c0_28 = arith.constant 0 : index
    %26 = vector.load %arg12[%c0_26, %c0_27, %c0_28] : memref<8x8x96xf32, #tpu.memory_space<vmem>>, vector<8x8x96xf32>
    tpu.vector_store %arg12[%c0_26, %c0_27, %c0_28], %25 {strides = array<i32>} : memref<8x8x96xf32, #tpu.memory_space<vmem>>, vector<8x8x96xf32>,
    %c0_29 = arith.constant 0 : index
    %c0_30 = arith.constant 0 : index
    %27 = vector.load %arg7[%c0_29, %c0_30] : memref<32x96xbf16, #tpu.memory_space<vmem>>, vector<32x96xbf16>
    %c0_31 = arith.constant 0 : index
    %c0_32 = arith.constant 0 : index
    %28 = vector.load %arg9[%c0_31, %c0_32] : memref<1x96xf32, #tpu.memory_space<vmem>>, vector<1x96xf32>
    %cst_33 = arith.constant 0.000000e+00 : f32
    %29 = vector.broadcast %cst_33 : f32 to vector<8x16xf32>
    %c0_i32_34 = arith.constant 0 : i32
    %c8_i32_35 = arith.constant 8 : i32
    %30 = arith.addi %c0_i32_34, %c8_i32_35 : i32
    %c1_i32_36 = arith.constant 1 : i32
    %31:2 = scf.for %arg17 = %c0_i32_34 to %30 step %c1_i32_36 iter_args(%arg18 = %29, %arg19 = %29) -> (vector<8x16xf32>, vector<8x16xf32>)  : i32 {
      %220 = tpu.concatenate %arg18, %arg19 in 1 : vector<8x16xf32>, vector<8x16xf32> -> vector<8x32xf32>
      %221 = arith.truncf %220 : vector<8x32xf32> to vector<8x32xbf16>
      %cst_164 = arith.constant dense<0.000000e+00> : vector<8x96xf32>
      %222 = tpu.matmul %221, %27, %cst_164 {dimension_numbers = #tpu.dot_dimension_numbers<[1], [0], [0], [1], [0, 0, 1, 1], [], []>} : vector<8x32xbf16>, vector<32x96xbf16>, vector<8x96xf32> -> vector<8x96xf32>
      %223 = vector.broadcast %28 : vector<1x96xf32> to vector<8x96xf32>
      %224 = arith.addf %222, %223 : vector<8x96xf32>
      %225 = arith.index_cast %arg17 : i32 to index
      %c0_165 = arith.constant 0 : index
      %c0_166 = arith.constant 0 : index
      %226 = vector.load %arg12[%225, %c0_165, %c0_166] : memref<8x8x96xf32, #tpu.memory_space<vmem>>, vector<1x8x96xf32>
      %227 = vector.shape_cast %226 : vector<1x8x96xf32> to vector<8x96xf32>
      %228 = vector.extract_strided_slice %227 {offsets = [0, 0], sizes = [8, 48], strides = [1, 1]} : vector<8x96xf32> to vector<8x48xf32>
      %c7_i32 = arith.constant 7 : i32
      %229 = arith.subi %c7_i32, %arg17 : i32
      %230 = arith.index_cast %229 : i32 to index
      %c0_167 = arith.constant 0 : index
      %c0_168 = arith.constant 0 : index
      %231 = vector.load %arg12[%230, %c0_167, %c0_168] : memref<8x8x96xf32, #tpu.memory_space<vmem>>, vector<1x8x96xf32>
      %232 = vector.shape_cast %231 : vector<1x8x96xf32> to vector<8x96xf32>
      %233 = vector.extract_strided_slice %232 {offsets = [0, 48], sizes = [8, 48], strides = [1, 1]} : vector<8x96xf32> to vector<8x48xf32>
      %234 = vector.extract_strided_slice %224 {offsets = [0, 0], sizes = [8, 48], strides = [1, 1]} : vector<8x96xf32> to vector<8x48xf32>
      %235 = vector.extract_strided_slice %224 {offsets = [0, 48], sizes = [8, 48], strides = [1, 1]} : vector<8x96xf32> to vector<8x48xf32>
      %236 = vector.extract_strided_slice %228 {offsets = [0, 0], sizes = [8, 32], strides = [1, 1]} : vector<8x48xf32> to vector<8x32xf32>
      %237 = vector.extract_strided_slice %234 {offsets = [0, 0], sizes = [8, 32], strides = [1, 1]} : vector<8x48xf32> to vector<8x32xf32>
      %238 = arith.addf %236, %237 : vector<8x32xf32>
      %239 = arith.negf %238 : vector<8x32xf32>
      %240 = math.exp %239 : vector<8x32xf32>
      %cst_169 = arith.constant 1.000000e+00 : f32
      %241 = vector.broadcast %cst_169 : f32 to vector<8x32xf32>
      %242 = arith.addf %241, %240 : vector<8x32xf32>
      %243 = arith.divf %241, %242 : vector<8x32xf32>
      %244 = vector.extract_strided_slice %228 {offsets = [0, 32], sizes = [8, 16], strides = [1, 1]} : vector<8x48xf32> to vector<8x16xf32>
      %245 = vector.extract_strided_slice %243 {offsets = [0, 0], sizes = [8, 16], strides = [1, 1]} : vector<8x32xf32> to vector<8x16xf32>
      %246 = vector.extract_strided_slice %234 {offsets = [0, 32], sizes = [8, 16], strides = [1, 1]} : vector<8x48xf32> to vector<8x16xf32>
      %247 = arith.mulf %245, %246 : vector<8x16xf32>
      %248 = arith.addf %244, %247 : vector<8x16xf32>
      %249 = math.tanh %248 : vector<8x16xf32>
      %250 = vector.extract_strided_slice %243 {offsets = [0, 16], sizes = [8, 16], strides = [1, 1]} : vector<8x32xf32> to vector<8x16xf32>
      %cst_170 = arith.constant 1.000000e+00 : f32
      %251 = vector.broadcast %cst_170 : f32 to vector<8x16xf32>
      %252 = arith.subf %251, %250 : vector<8x16xf32>
      %253 = arith.mulf %252, %249 : vector<8x16xf32>
      %254 = vector.extract_strided_slice %243 {offsets = [0, 16], sizes = [8, 16], strides = [1, 1]} : vector<8x32xf32> to vector<8x16xf32>
      %255 = arith.mulf %254, %arg18 : vector<8x16xf32>
      %256 = arith.addf %253, %255 : vector<8x16xf32>
      %257 = vector.extract_strided_slice %233 {offsets = [0, 0], sizes = [8, 32], strides = [1, 1]} : vector<8x48xf32> to vector<8x32xf32>
      %258 = vector.extract_strided_slice %235 {offsets = [0, 0], sizes = [8, 32], strides = [1, 1]} : vector<8x48xf32> to vector<8x32xf32>
      %259 = arith.addf %257, %258 : vector<8x32xf32>
      %260 = arith.negf %259 : vector<8x32xf32>
      %261 = math.exp %260 : vector<8x32xf32>
      %cst_171 = arith.constant 1.000000e+00 : f32
      %262 = vector.broadcast %cst_171 : f32 to vector<8x32xf32>
      %263 = arith.addf %262, %261 : vector<8x32xf32>
      %264 = arith.divf %262, %263 : vector<8x32xf32>
      %265 = vector.extract_strided_slice %233 {offsets = [0, 32], sizes = [8, 16], strides = [1, 1]} : vector<8x48xf32> to vector<8x16xf32>
      %266 = vector.extract_strided_slice %264 {offsets = [0, 0], sizes = [8, 16], strides = [1, 1]} : vector<8x32xf32> to vector<8x16xf32>
      %267 = vector.extract_strided_slice %235 {offsets = [0, 32], sizes = [8, 16], strides = [1, 1]} : vector<8x48xf32> to vector<8x16xf32>
      %268 = arith.mulf %266, %267 : vector<8x16xf32>
      %269 = arith.addf %265, %268 : vector<8x16xf32>
      %270 = math.tanh %269 : vector<8x16xf32>
      %271 = vector.extract_strided_slice %264 {offsets = [0, 16], sizes = [8, 16], strides = [1, 1]} : vector<8x32xf32> to vector<8x16xf32>
      %cst_172 = arith.constant 1.000000e+00 : f32
      %272 = vector.broadcast %cst_172 : f32 to vector<8x16xf32>
      %273 = arith.subf %272, %271 : vector<8x16xf32>
      %274 = arith.mulf %273, %270 : vector<8x16xf32>
      %275 = vector.extract_strided_slice %264 {offsets = [0, 16], sizes = [8, 16], strides = [1, 1]} : vector<8x32xf32> to vector<8x16xf32>
      %276 = arith.mulf %275, %arg19 : vector<8x16xf32>
      %277 = arith.addf %274, %276 : vector<8x16xf32>
      %278 = arith.index_cast %arg17 : i32 to index
      %c0_173 = arith.constant 0 : index
      %c0_174 = arith.constant 0 : index
      %279 = vector.load %arg15[%278, %c0_173, %c0_174] : memref<8x8x16xf32, #tpu.memory_space<vmem>>, vector<1x8x16xf32>
      %280 = vector.shape_cast %279 : vector<1x8x16xf32> to vector<8x16xf32>
      %281 = vector.shape_cast %256 : vector<8x16xf32> to vector<1x8x16xf32>
      tpu.vector_store %arg15[%278, %c0_173, %c0_174], %281 {strides = array<i32>} : memref<8x8x16xf32, #tpu.memory_space<vmem>>, vector<1x8x16xf32>,
      %c7_i32_175 = arith.constant 7 : i32
      %282 = arith.subi %c7_i32_175, %arg17 : i32
      %283 = arith.index_cast %282 : i32 to index
      %c0_176 = arith.constant 0 : index
      %c0_177 = arith.constant 0 : index
      %284 = vector.load %arg16[%283, %c0_176, %c0_177] : memref<8x8x16xf32, #tpu.memory_space<vmem>>, vector<1x8x16xf32>
      %285 = vector.shape_cast %284 : vector<1x8x16xf32> to vector<8x16xf32>
      %286 = vector.shape_cast %277 : vector<8x16xf32> to vector<1x8x16xf32>
      tpu.vector_store %arg16[%283, %c0_176, %c0_177], %286 {strides = array<i32>} : memref<8x8x16xf32, #tpu.memory_space<vmem>>, vector<1x8x16xf32>,
      scf.yield %256, %277 : vector<8x16xf32>, vector<8x16xf32>
    }
    %c8_i32_37 = arith.constant 8 : i32
    %c0_38 = arith.constant 0 : index
    %32 = memref.load %arg10[%c0_38] : memref<4xf32, #tpu.memory_space<smem>>
    %c1 = arith.constant 1 : index
    %33 = memref.load %arg10[%c1] : memref<4xf32, #tpu.memory_space<smem>>
    %c2 = arith.constant 2 : index
    %34 = memref.load %arg10[%c2] : memref<4xf32, #tpu.memory_space<smem>>
    %c3 = arith.constant 3 : index
    %35 = memref.load %arg10[%c3] : memref<4xf32, #tpu.memory_space<smem>>
    %c0_39 = arith.constant 0 : index
    %c0_40 = arith.constant 0 : index
    %c0_41 = arith.constant 0 : index
    %36 = vector.load %arg13[%c0_39, %c0_40, %c0_41] : memref<8x8x16xf32, #tpu.memory_space<vmem>>, vector<1x8x16xf32>
    %37 = vector.shape_cast %36 : vector<1x8x16xf32> to vector<8x16xf32>
    %c0_42 = arith.constant 0 : index
    %c0_43 = arith.constant 0 : index
    %c0_44 = arith.constant 0 : index
    %38 = vector.load %arg14[%c0_42, %c0_43, %c0_44] : memref<8x8x16xf32, #tpu.memory_space<vmem>>, vector<1x8x16xf32>
    %39 = vector.shape_cast %38 : vector<1x8x16xf32> to vector<8x16xf32>
    %40 = tpu.concatenate %37, %39 in 1 : vector<8x16xf32>, vector<8x16xf32> -> vector<8x32xf32>
    %c0_45 = arith.constant 0 : index
    %c0_46 = arith.constant 0 : index
    %c0_47 = arith.constant 0 : index
    %41 = vector.load %arg15[%c0_45, %c0_46, %c0_47] : memref<8x8x16xf32, #tpu.memory_space<vmem>>, vector<1x8x16xf32>
    %42 = vector.shape_cast %41 : vector<1x8x16xf32> to vector<8x16xf32>
    %c0_48 = arith.constant 0 : index
    %c0_49 = arith.constant 0 : index
    %c0_50 = arith.constant 0 : index
    %43 = vector.load %arg16[%c0_48, %c0_49, %c0_50] : memref<8x8x16xf32, #tpu.memory_space<vmem>>, vector<1x8x16xf32>
    %44 = vector.shape_cast %43 : vector<1x8x16xf32> to vector<8x16xf32>
    %45 = tpu.concatenate %42, %44 in 1 : vector<8x16xf32>, vector<8x16xf32> -> vector<8x32xf32>
    %c0_51 = arith.constant 0 : index
    %c0_52 = arith.constant 0 : index
    %c0_53 = arith.constant 0 : index
    %46 = vector.load %arg1[%c0_51, %c0_52, %c0_53] : memref<8x8x32xf32, #tpu.memory_space<vmem>>, vector<1x8x32xf32>
    %47 = vector.shape_cast %46 : vector<1x8x32xf32> to vector<8x32xf32>
    %48 = vector.broadcast %32 : f32 to vector<8x32xf32>
    %49 = arith.mulf %48, %47 : vector<8x32xf32>
    %50 = vector.broadcast %33 : f32 to vector<8x32xf32>
    %51 = arith.mulf %50, %40 : vector<8x32xf32>
    %52 = arith.addf %49, %51 : vector<8x32xf32>
    %53 = vector.broadcast %34 : f32 to vector<8x32xf32>
    %54 = arith.mulf %53, %45 : vector<8x32xf32>
    %55 = arith.addf %52, %54 : vector<8x32xf32>
    %56 = vector.broadcast %35 : f32 to vector<8x32xf32>
    %57 = arith.mulf %56, %55 : vector<8x32xf32>
    %c0_54 = arith.constant 0 : index
    %c0_55 = arith.constant 0 : index
    %58 = vector.load %arg11[%c0_54, %c0_55] : memref<8x256xf32, #tpu.memory_space<vmem>>, vector<8x32xf32>
    tpu.vector_store %arg11[%c0_54, %c0_55], %57 {strides = array<i32>} : memref<8x256xf32, #tpu.memory_space<vmem>>, vector<8x32xf32>,
    %c1_56 = arith.constant 1 : index
    %c0_57 = arith.constant 0 : index
    %c0_58 = arith.constant 0 : index
    %59 = vector.load %arg13[%c1_56, %c0_57, %c0_58] : memref<8x8x16xf32, #tpu.memory_space<vmem>>, vector<1x8x16xf32>
    %60 = vector.shape_cast %59 : vector<1x8x16xf32> to vector<8x16xf32>
    %c1_59 = arith.constant 1 : index
    %c0_60 = arith.constant 0 : index
    %c0_61 = arith.constant 0 : index
    %61 = vector.load %arg14[%c1_59, %c0_60, %c0_61] : memref<8x8x16xf32, #tpu.memory_space<vmem>>, vector<1x8x16xf32>
    %62 = vector.shape_cast %61 : vector<1x8x16xf32> to vector<8x16xf32>
    %63 = tpu.concatenate %60, %62 in 1 : vector<8x16xf32>, vector<8x16xf32> -> vector<8x32xf32>
    %c1_62 = arith.constant 1 : index
    %c0_63 = arith.constant 0 : index
    %c0_64 = arith.constant 0 : index
    %64 = vector.load %arg15[%c1_62, %c0_63, %c0_64] : memref<8x8x16xf32, #tpu.memory_space<vmem>>, vector<1x8x16xf32>
    %65 = vector.shape_cast %64 : vector<1x8x16xf32> to vector<8x16xf32>
    %c1_65 = arith.constant 1 : index
    %c0_66 = arith.constant 0 : index
    %c0_67 = arith.constant 0 : index
    %66 = vector.load %arg16[%c1_65, %c0_66, %c0_67] : memref<8x8x16xf32, #tpu.memory_space<vmem>>, vector<1x8x16xf32>
    %67 = vector.shape_cast %66 : vector<1x8x16xf32> to vector<8x16xf32>
    %68 = tpu.concatenate %65, %67 in 1 : vector<8x16xf32>, vector<8x16xf32> -> vector<8x32xf32>
    %c1_68 = arith.constant 1 : index
    %c0_69 = arith.constant 0 : index
    %c0_70 = arith.constant 0 : index
    %69 = vector.load %arg1[%c1_68, %c0_69, %c0_70] : memref<8x8x32xf32, #tpu.memory_space<vmem>>, vector<1x8x32xf32>
    %70 = vector.shape_cast %69 : vector<1x8x32xf32> to vector<8x32xf32>
    %71 = vector.broadcast %32 : f32 to vector<8x32xf32>
    %72 = arith.mulf %71, %70 : vector<8x32xf32>
    %73 = vector.broadcast %33 : f32 to vector<8x32xf32>
    %74 = arith.mulf %73, %63 : vector<8x32xf32>
    %75 = arith.addf %72, %74 : vector<8x32xf32>
    %76 = vector.broadcast %34 : f32 to vector<8x32xf32>
    %77 = arith.mulf %76, %68 : vector<8x32xf32>
    %78 = arith.addf %75, %77 : vector<8x32xf32>
    %79 = vector.broadcast %35 : f32 to vector<8x32xf32>
    %80 = arith.mulf %79, %78 : vector<8x32xf32>
    %c0_71 = arith.constant 0 : index
    %c32 = arith.constant 32 : index
    %81 = vector.load %arg11[%c0_71, %c32] : memref<8x256xf32, #tpu.memory_space<vmem>>, vector<8x32xf32>
    tpu.vector_store %arg11[%c0_71, %c32], %80 {strides = array<i32>} : memref<8x256xf32, #tpu.memory_space<vmem>>, vector<8x32xf32>,
    %c2_72 = arith.constant 2 : index
    %c0_73 = arith.constant 0 : index
    %c0_74 = arith.constant 0 : index
    %82 = vector.load %arg13[%c2_72, %c0_73, %c0_74] : memref<8x8x16xf32, #tpu.memory_space<vmem>>, vector<1x8x16xf32>
    %83 = vector.shape_cast %82 : vector<1x8x16xf32> to vector<8x16xf32>
    %c2_75 = arith.constant 2 : index
    %c0_76 = arith.constant 0 : index
    %c0_77 = arith.constant 0 : index
    %84 = vector.load %arg14[%c2_75, %c0_76, %c0_77] : memref<8x8x16xf32, #tpu.memory_space<vmem>>, vector<1x8x16xf32>
    %85 = vector.shape_cast %84 : vector<1x8x16xf32> to vector<8x16xf32>
    %86 = tpu.concatenate %83, %85 in 1 : vector<8x16xf32>, vector<8x16xf32> -> vector<8x32xf32>
    %c2_78 = arith.constant 2 : index
    %c0_79 = arith.constant 0 : index
    %c0_80 = arith.constant 0 : index
    %87 = vector.load %arg15[%c2_78, %c0_79, %c0_80] : memref<8x8x16xf32, #tpu.memory_space<vmem>>, vector<1x8x16xf32>
    %88 = vector.shape_cast %87 : vector<1x8x16xf32> to vector<8x16xf32>
    %c2_81 = arith.constant 2 : index
    %c0_82 = arith.constant 0 : index
    %c0_83 = arith.constant 0 : index
    %89 = vector.load %arg16[%c2_81, %c0_82, %c0_83] : memref<8x8x16xf32, #tpu.memory_space<vmem>>, vector<1x8x16xf32>
    %90 = vector.shape_cast %89 : vector<1x8x16xf32> to vector<8x16xf32>
    %91 = tpu.concatenate %88, %90 in 1 : vector<8x16xf32>, vector<8x16xf32> -> vector<8x32xf32>
    %c2_84 = arith.constant 2 : index
    %c0_85 = arith.constant 0 : index
    %c0_86 = arith.constant 0 : index
    %92 = vector.load %arg1[%c2_84, %c0_85, %c0_86] : memref<8x8x32xf32, #tpu.memory_space<vmem>>, vector<1x8x32xf32>
    %93 = vector.shape_cast %92 : vector<1x8x32xf32> to vector<8x32xf32>
    %94 = vector.broadcast %32 : f32 to vector<8x32xf32>
    %95 = arith.mulf %94, %93 : vector<8x32xf32>
    %96 = vector.broadcast %33 : f32 to vector<8x32xf32>
    %97 = arith.mulf %96, %86 : vector<8x32xf32>
    %98 = arith.addf %95, %97 : vector<8x32xf32>
    %99 = vector.broadcast %34 : f32 to vector<8x32xf32>
    %100 = arith.mulf %99, %91 : vector<8x32xf32>
    %101 = arith.addf %98, %100 : vector<8x32xf32>
    %102 = vector.broadcast %35 : f32 to vector<8x32xf32>
    %103 = arith.mulf %102, %101 : vector<8x32xf32>
    %c0_87 = arith.constant 0 : index
    %c64 = arith.constant 64 : index
    %104 = vector.load %arg11[%c0_87, %c64] : memref<8x256xf32, #tpu.memory_space<vmem>>, vector<8x32xf32>
    tpu.vector_store %arg11[%c0_87, %c64], %103 {strides = array<i32>} : memref<8x256xf32, #tpu.memory_space<vmem>>, vector<8x32xf32>,
    %c3_88 = arith.constant 3 : index
    %c0_89 = arith.constant 0 : index
    %c0_90 = arith.constant 0 : index
    %105 = vector.load %arg13[%c3_88, %c0_89, %c0_90] : memref<8x8x16xf32, #tpu.memory_space<vmem>>, vector<1x8x16xf32>
    %106 = vector.shape_cast %105 : vector<1x8x16xf32> to vector<8x16xf32>
    %c3_91 = arith.constant 3 : index
    %c0_92 = arith.constant 0 : index
    %c0_93 = arith.constant 0 : index
    %107 = vector.load %arg14[%c3_91, %c0_92, %c0_93] : memref<8x8x16xf32, #tpu.memory_space<vmem>>, vector<1x8x16xf32>
    %108 = vector.shape_cast %107 : vector<1x8x16xf32> to vector<8x16xf32>
    %109 = tpu.concatenate %106, %108 in 1 : vector<8x16xf32>, vector<8x16xf32> -> vector<8x32xf32>
    %c3_94 = arith.constant 3 : index
    %c0_95 = arith.constant 0 : index
    %c0_96 = arith.constant 0 : index
    %110 = vector.load %arg15[%c3_94, %c0_95, %c0_96] : memref<8x8x16xf32, #tpu.memory_space<vmem>>, vector<1x8x16xf32>
    %111 = vector.shape_cast %110 : vector<1x8x16xf32> to vector<8x16xf32>
    %c3_97 = arith.constant 3 : index
    %c0_98 = arith.constant 0 : index
    %c0_99 = arith.constant 0 : index
    %112 = vector.load %arg16[%c3_97, %c0_98, %c0_99] : memref<8x8x16xf32, #tpu.memory_space<vmem>>, vector<1x8x16xf32>
    %113 = vector.shape_cast %112 : vector<1x8x16xf32> to vector<8x16xf32>
    %114 = tpu.concatenate %111, %113 in 1 : vector<8x16xf32>, vector<8x16xf32> -> vector<8x32xf32>
    %c3_100 = arith.constant 3 : index
    %c0_101 = arith.constant 0 : index
    %c0_102 = arith.constant 0 : index
    %115 = vector.load %arg1[%c3_100, %c0_101, %c0_102] : memref<8x8x32xf32, #tpu.memory_space<vmem>>, vector<1x8x32xf32>
    %116 = vector.shape_cast %115 : vector<1x8x32xf32> to vector<8x32xf32>
    %117 = vector.broadcast %32 : f32 to vector<8x32xf32>
    %118 = arith.mulf %117, %116 : vector<8x32xf32>
    %119 = vector.broadcast %33 : f32 to vector<8x32xf32>
    %120 = arith.mulf %119, %109 : vector<8x32xf32>
    %121 = arith.addf %118, %120 : vector<8x32xf32>
    %122 = vector.broadcast %34 : f32 to vector<8x32xf32>
    %123 = arith.mulf %122, %114 : vector<8x32xf32>
    %124 = arith.addf %121, %123 : vector<8x32xf32>
    %125 = vector.broadcast %35 : f32 to vector<8x32xf32>
    %126 = arith.mulf %125, %124 : vector<8x32xf32>
    %c0_103 = arith.constant 0 : index
    %c96 = arith.constant 96 : index
    %127 = vector.load %arg11[%c0_103, %c96] : memref<8x256xf32, #tpu.memory_space<vmem>>, vector<8x32xf32>
    tpu.vector_store %arg11[%c0_103, %c96], %126 {strides = array<i32>} : memref<8x256xf32, #tpu.memory_space<vmem>>, vector<8x32xf32>,
    %c4 = arith.constant 4 : index
    %c0_104 = arith.constant 0 : index
    %c0_105 = arith.constant 0 : index
    %128 = vector.load %arg13[%c4, %c0_104, %c0_105] : memref<8x8x16xf32, #tpu.memory_space<vmem>>, vector<1x8x16xf32>
    %129 = vector.shape_cast %128 : vector<1x8x16xf32> to vector<8x16xf32>
    %c4_106 = arith.constant 4 : index
    %c0_107 = arith.constant 0 : index
    %c0_108 = arith.constant 0 : index
    %130 = vector.load %arg14[%c4_106, %c0_107, %c0_108] : memref<8x8x16xf32, #tpu.memory_space<vmem>>, vector<1x8x16xf32>
    %131 = vector.shape_cast %130 : vector<1x8x16xf32> to vector<8x16xf32>
    %132 = tpu.concatenate %129, %131 in 1 : vector<8x16xf32>, vector<8x16xf32> -> vector<8x32xf32>
    %c4_109 = arith.constant 4 : index
    %c0_110 = arith.constant 0 : index
    %c0_111 = arith.constant 0 : index
    %133 = vector.load %arg15[%c4_109, %c0_110, %c0_111] : memref<8x8x16xf32, #tpu.memory_space<vmem>>, vector<1x8x16xf32>
    %134 = vector.shape_cast %133 : vector<1x8x16xf32> to vector<8x16xf32>
    %c4_112 = arith.constant 4 : index
    %c0_113 = arith.constant 0 : index
    %c0_114 = arith.constant 0 : index
    %135 = vector.load %arg16[%c4_112, %c0_113, %c0_114] : memref<8x8x16xf32, #tpu.memory_space<vmem>>, vector<1x8x16xf32>
    %136 = vector.shape_cast %135 : vector<1x8x16xf32> to vector<8x16xf32>
    %137 = tpu.concatenate %134, %136 in 1 : vector<8x16xf32>, vector<8x16xf32> -> vector<8x32xf32>
    %c4_115 = arith.constant 4 : index
    %c0_116 = arith.constant 0 : index
    %c0_117 = arith.constant 0 : index
    %138 = vector.load %arg1[%c4_115, %c0_116, %c0_117] : memref<8x8x32xf32, #tpu.memory_space<vmem>>, vector<1x8x32xf32>
    %139 = vector.shape_cast %138 : vector<1x8x32xf32> to vector<8x32xf32>
    %140 = vector.broadcast %32 : f32 to vector<8x32xf32>
    %141 = arith.mulf %140, %139 : vector<8x32xf32>
    %142 = vector.broadcast %33 : f32 to vector<8x32xf32>
    %143 = arith.mulf %142, %132 : vector<8x32xf32>
    %144 = arith.addf %141, %143 : vector<8x32xf32>
    %145 = vector.broadcast %34 : f32 to vector<8x32xf32>
    %146 = arith.mulf %145, %137 : vector<8x32xf32>
    %147 = arith.addf %144, %146 : vector<8x32xf32>
    %148 = vector.broadcast %35 : f32 to vector<8x32xf32>
    %149 = arith.mulf %148, %147 : vector<8x32xf32>
    %c0_118 = arith.constant 0 : index
    %c128 = arith.constant 128 : index
    %150 = vector.load %arg11[%c0_118, %c128] : memref<8x256xf32, #tpu.memory_space<vmem>>, vector<8x32xf32>
    tpu.vector_store %arg11[%c0_118, %c128], %149 {strides = array<i32>} : memref<8x256xf32, #tpu.memory_space<vmem>>, vector<8x32xf32>,
    %c5 = arith.constant 5 : index
    %c0_119 = arith.constant 0 : index
    %c0_120 = arith.constant 0 : index
    %151 = vector.load %arg13[%c5, %c0_119, %c0_120] : memref<8x8x16xf32, #tpu.memory_space<vmem>>, vector<1x8x16xf32>
    %152 = vector.shape_cast %151 : vector<1x8x16xf32> to vector<8x16xf32>
    %c5_121 = arith.constant 5 : index
    %c0_122 = arith.constant 0 : index
    %c0_123 = arith.constant 0 : index
    %153 = vector.load %arg14[%c5_121, %c0_122, %c0_123] : memref<8x8x16xf32, #tpu.memory_space<vmem>>, vector<1x8x16xf32>
    %154 = vector.shape_cast %153 : vector<1x8x16xf32> to vector<8x16xf32>
    %155 = tpu.concatenate %152, %154 in 1 : vector<8x16xf32>, vector<8x16xf32> -> vector<8x32xf32>
    %c5_124 = arith.constant 5 : index
    %c0_125 = arith.constant 0 : index
    %c0_126 = arith.constant 0 : index
    %156 = vector.load %arg15[%c5_124, %c0_125, %c0_126] : memref<8x8x16xf32, #tpu.memory_space<vmem>>, vector<1x8x16xf32>
    %157 = vector.shape_cast %156 : vector<1x8x16xf32> to vector<8x16xf32>
    %c5_127 = arith.constant 5 : index
    %c0_128 = arith.constant 0 : index
    %c0_129 = arith.constant 0 : index
    %158 = vector.load %arg16[%c5_127, %c0_128, %c0_129] : memref<8x8x16xf32, #tpu.memory_space<vmem>>, vector<1x8x16xf32>
    %159 = vector.shape_cast %158 : vector<1x8x16xf32> to vector<8x16xf32>
    %160 = tpu.concatenate %157, %159 in 1 : vector<8x16xf32>, vector<8x16xf32> -> vector<8x32xf32>
    %c5_130 = arith.constant 5 : index
    %c0_131 = arith.constant 0 : index
    %c0_132 = arith.constant 0 : index
    %161 = vector.load %arg1[%c5_130, %c0_131, %c0_132] : memref<8x8x32xf32, #tpu.memory_space<vmem>>, vector<1x8x32xf32>
    %162 = vector.shape_cast %161 : vector<1x8x32xf32> to vector<8x32xf32>
    %163 = vector.broadcast %32 : f32 to vector<8x32xf32>
    %164 = arith.mulf %163, %162 : vector<8x32xf32>
    %165 = vector.broadcast %33 : f32 to vector<8x32xf32>
    %166 = arith.mulf %165, %155 : vector<8x32xf32>
    %167 = arith.addf %164, %166 : vector<8x32xf32>
    %168 = vector.broadcast %34 : f32 to vector<8x32xf32>
    %169 = arith.mulf %168, %160 : vector<8x32xf32>
    %170 = arith.addf %167, %169 : vector<8x32xf32>
    %171 = vector.broadcast %35 : f32 to vector<8x32xf32>
    %172 = arith.mulf %171, %170 : vector<8x32xf32>
    %c0_133 = arith.constant 0 : index
    %c160 = arith.constant 160 : index
    %173 = vector.load %arg11[%c0_133, %c160] : memref<8x256xf32, #tpu.memory_space<vmem>>, vector<8x32xf32>
    tpu.vector_store %arg11[%c0_133, %c160], %172 {strides = array<i32>} : memref<8x256xf32, #tpu.memory_space<vmem>>, vector<8x32xf32>,
    %c6 = arith.constant 6 : index
    %c0_134 = arith.constant 0 : index
    %c0_135 = arith.constant 0 : index
    %174 = vector.load %arg13[%c6, %c0_134, %c0_135] : memref<8x8x16xf32, #tpu.memory_space<vmem>>, vector<1x8x16xf32>
    %175 = vector.shape_cast %174 : vector<1x8x16xf32> to vector<8x16xf32>
    %c6_136 = arith.constant 6 : index
    %c0_137 = arith.constant 0 : index
    %c0_138 = arith.constant 0 : index
    %176 = vector.load %arg14[%c6_136, %c0_137, %c0_138] : memref<8x8x16xf32, #tpu.memory_space<vmem>>, vector<1x8x16xf32>
    %177 = vector.shape_cast %176 : vector<1x8x16xf32> to vector<8x16xf32>
    %178 = tpu.concatenate %175, %177 in 1 : vector<8x16xf32>, vector<8x16xf32> -> vector<8x32xf32>
    %c6_139 = arith.constant 6 : index
    %c0_140 = arith.constant 0 : index
    %c0_141 = arith.constant 0 : index
    %179 = vector.load %arg15[%c6_139, %c0_140, %c0_141] : memref<8x8x16xf32, #tpu.memory_space<vmem>>, vector<1x8x16xf32>
    %180 = vector.shape_cast %179 : vector<1x8x16xf32> to vector<8x16xf32>
    %c6_142 = arith.constant 6 : index
    %c0_143 = arith.constant 0 : index
    %c0_144 = arith.constant 0 : index
    %181 = vector.load %arg16[%c6_142, %c0_143, %c0_144] : memref<8x8x16xf32, #tpu.memory_space<vmem>>, vector<1x8x16xf32>
    %182 = vector.shape_cast %181 : vector<1x8x16xf32> to vector<8x16xf32>
    %183 = tpu.concatenate %180, %182 in 1 : vector<8x16xf32>, vector<8x16xf32> -> vector<8x32xf32>
    %c6_145 = arith.constant 6 : index
    %c0_146 = arith.constant 0 : index
    %c0_147 = arith.constant 0 : index
    %184 = vector.load %arg1[%c6_145, %c0_146, %c0_147] : memref<8x8x32xf32, #tpu.memory_space<vmem>>, vector<1x8x32xf32>
    %185 = vector.shape_cast %184 : vector<1x8x32xf32> to vector<8x32xf32>
    %186 = vector.broadcast %32 : f32 to vector<8x32xf32>
    %187 = arith.mulf %186, %185 : vector<8x32xf32>
    %188 = vector.broadcast %33 : f32 to vector<8x32xf32>
    %189 = arith.mulf %188, %178 : vector<8x32xf32>
    %190 = arith.addf %187, %189 : vector<8x32xf32>
    %191 = vector.broadcast %34 : f32 to vector<8x32xf32>
    %192 = arith.mulf %191, %183 : vector<8x32xf32>
    %193 = arith.addf %190, %192 : vector<8x32xf32>
    %194 = vector.broadcast %35 : f32 to vector<8x32xf32>
    %195 = arith.mulf %194, %193 : vector<8x32xf32>
    %c0_148 = arith.constant 0 : index
    %c192 = arith.constant 192 : index
    %196 = vector.load %arg11[%c0_148, %c192] : memref<8x256xf32, #tpu.memory_space<vmem>>, vector<8x32xf32>
    tpu.vector_store %arg11[%c0_148, %c192], %195 {strides = array<i32>} : memref<8x256xf32, #tpu.memory_space<vmem>>, vector<8x32xf32>,
    %c7 = arith.constant 7 : index
    %c0_149 = arith.constant 0 : index
    %c0_150 = arith.constant 0 : index
    %197 = vector.load %arg13[%c7, %c0_149, %c0_150] : memref<8x8x16xf32, #tpu.memory_space<vmem>>, vector<1x8x16xf32>
    %198 = vector.shape_cast %197 : vector<1x8x16xf32> to vector<8x16xf32>
    %c7_151 = arith.constant 7 : index
    %c0_152 = arith.constant 0 : index
    %c0_153 = arith.constant 0 : index
    %199 = vector.load %arg14[%c7_151, %c0_152, %c0_153] : memref<8x8x16xf32, #tpu.memory_space<vmem>>, vector<1x8x16xf32>
    %200 = vector.shape_cast %199 : vector<1x8x16xf32> to vector<8x16xf32>
    %201 = tpu.concatenate %198, %200 in 1 : vector<8x16xf32>, vector<8x16xf32> -> vector<8x32xf32>
    %c7_154 = arith.constant 7 : index
    %c0_155 = arith.constant 0 : index
    %c0_156 = arith.constant 0 : index
    %202 = vector.load %arg15[%c7_154, %c0_155, %c0_156] : memref<8x8x16xf32, #tpu.memory_space<vmem>>, vector<1x8x16xf32>
    %203 = vector.shape_cast %202 : vector<1x8x16xf32> to vector<8x16xf32>
    %c7_157 = arith.constant 7 : index
    %c0_158 = arith.constant 0 : index
    %c0_159 = arith.constant 0 : index
    %204 = vector.load %arg16[%c7_157, %c0_158, %c0_159] : memref<8x8x16xf32, #tpu.memory_space<vmem>>, vector<1x8x16xf32>
    %205 = vector.shape_cast %204 : vector<1x8x16xf32> to vector<8x16xf32>
    %206 = tpu.concatenate %203, %205 in 1 : vector<8x16xf32>, vector<8x16xf32> -> vector<8x32xf32>
    %c7_160 = arith.constant 7 : index
    %c0_161 = arith.constant 0 : index
    %c0_162 = arith.constant 0 : index
    %207 = vector.load %arg1[%c7_160, %c0_161, %c0_162] : memref<8x8x32xf32, #tpu.memory_space<vmem>>, vector<1x8x32xf32>
    %208 = vector.shape_cast %207 : vector<1x8x32xf32> to vector<8x32xf32>
    %209 = vector.broadcast %32 : f32 to vector<8x32xf32>
    %210 = arith.mulf %209, %208 : vector<8x32xf32>
    %211 = vector.broadcast %33 : f32 to vector<8x32xf32>
    %212 = arith.mulf %211, %201 : vector<8x32xf32>
    %213 = arith.addf %210, %212 : vector<8x32xf32>
    %214 = vector.broadcast %34 : f32 to vector<8x32xf32>
    %215 = arith.mulf %214, %206 : vector<8x32xf32>
    %216 = arith.addf %213, %215 : vector<8x32xf32>
    %217 = vector.broadcast %35 : f32 to vector<8x32xf32>
    %218 = arith.mulf %217, %216 : vector<8x32xf32>
    %c0_163 = arith.constant 0 : index
    %c224 = arith.constant 224 : index
    %219 = vector.load %arg11[%c0_163, %c224] : memref<8x256xf32, #tpu.memory_space<vmem>>, vector<8x32xf32>
    tpu.vector_store %arg11[%c0_163, %c224], %218 {strides = array<i32>} : memref<8x256xf32, #tpu.memory_space<vmem>>, vector<8x32xf32>,
    return
  }
  func.func @transform_0(%arg0: i32) -> (i32, i32, i32) {
    %c0_i32 = arith.constant 0 : i32
    %c0_i32_0 = arith.constant 0 : i32
    %c0_i32_1 = arith.constant 0 : i32
    return %c0_i32, %arg0, %c0_i32_0 : i32, i32, i32
  }
  func.func @transform_1(%arg0: i32) -> (i32, i32) {
    %c0_i32 = arith.constant 0 : i32
    %c0_i32_0 = arith.constant 0 : i32
    %c0_i32_1 = arith.constant 0 : i32
    return %c0_i32, %c0_i32_0 : i32, i32
  }
  func.func @transform_2(%arg0: i32) -> (i32, i32) {
    %c0_i32 = arith.constant 0 : i32
    %c0_i32_0 = arith.constant 0 : i32
    %c0_i32_1 = arith.constant 0 : i32
    return %c0_i32, %c0_i32_0 : i32, i32
  }
  func.func @transform_3(%arg0: i32) -> (i32, i32) {
    %c0_i32 = arith.constant 0 : i32
    %c0_i32_0 = arith.constant 0 : i32
    %c0_i32_1 = arith.constant 0 : i32
    return %c0_i32, %c0_i32_0 : i32, i32
  }
  func.func @transform_4(%arg0: i32) -> (i32, i32) {
    %c0_i32 = arith.constant 0 : i32
    %c0_i32_0 = arith.constant 0 : i32
    %c0_i32_1 = arith.constant 0 : i32
    return %c0_i32, %c0_i32_0 : i32, i32
  }
  func.func @transform_5(%arg0: i32) -> (i32, i32) {
    %c0_i32 = arith.constant 0 : i32
    %c0_i32_0 = arith.constant 0 : i32
    %c0_i32_1 = arith.constant 0 : i32
    return %c0_i32, %c0_i32_0 : i32, i32
  }
  func.func @transform_6(%arg0: i32) -> (i32, i32) {
    %c0_i32 = arith.constant 0 : i32
    %c0_i32_0 = arith.constant 0 : i32
    %c0_i32_1 = arith.constant 0 : i32
    return %c0_i32, %c0_i32_0 : i32, i32
  }
  func.func @transform_7(%arg0: i32) -> (i32, i32) {
    %c0_i32 = arith.constant 0 : i32
    %c0_i32_0 = arith.constant 0 : i32
    %c0_i32_1 = arith.constant 0 : i32
    return %c0_i32, %c0_i32_0 : i32, i32
  }
  func.func @transform_8(%arg0: i32) -> (i32, i32) {
    %c0_i32 = arith.constant 0 : i32
    %c0_i32_0 = arith.constant 0 : i32
    %c0_i32_1 = arith.constant 0 : i32
    return %c0_i32, %c0_i32_0 : i32, i32
  }
  func.func @transform_9(%arg0: i32) -> i32 {
    %c0_i32 = arith.constant 0 : i32
    %c0_i32_0 = arith.constant 0 : i32
    return %c0_i32 : i32
  }
  func.func @transform_10(%arg0: i32) -> (i32, i32) {
    %c0_i32 = arith.constant 0 : i32
    %c0_i32_0 = arith.constant 0 : i32
    return %arg0, %c0_i32 : i32, i32
  }
}

</mosaic_0001>

<bundles_post_ra>
// kernel: hamr_forward.2
= control target key start
LH: loop header
LB: loop body
LE: loop exit
PB: predicated region body
PF: predicated region fallthrough
CT: control target
= control target key end

     0   :  { %15 = vsyncpa [#allocation8], 0  ;;  %s1640_s0 = inlined_call_operand.vmem [shape: f32[8,8,32], index: 0, kind: input, shape index: {}]   ;;  %s1641_s1 = inlined_call_operand.vmem [shape: bf16[32,96], index: 1, kind: input, shape index: {}]   ;;  %s1642_s2 = inlined_call_operand.vmem [shape: bf16[32,96], index: 2, kind: input, shape index: {}]   ;;  %s1643_s3 = inlined_call_operand.vmem [shape: f32[1,96], index: 3, kind: input, shape index: {}]   ;;  %s1644_s4 = inlined_call_operand.vmem [shape: f32[1,96], index: 4, kind: input, shape index: {}]   ;;  %s1645_s5 = inlined_call_operand.vmem [shape: bf16[32,96], index: 5, kind: input, shape index: {}]   ;;  %s1646_s6 = inlined_call_operand.vmem [shape: bf16[32,96], index: 6, kind: input, shape index: {}]   ;;  %s1647_s7 = inlined_call_operand.vmem [shape: f32[1,96], index: 7, kind: input, shape index: {}]   ;;  %s1648_s8 = inlined_call_operand.vmem [shape: f32[1,96], index: 8, kind: input, shape index: {}]   ;;  %s1649_s9 = inlined_call_operand.vmem [shape: f32[4], index: 9, kind: input, shape index: {}]   ;;  %s1650_s10 = inlined_call_operand.vmem [shape: f32[8,256], index: 10, kind: output, shape index: {}]  }
   0x1   :  { %s40_s15 = sshll.u32 %s1649_s9, 4  ;;  %s41_s15 = int_to_ptr.vmem [resolvable:$true] %s40_s15 }
   0x2   :  { %s1153_s16 = scalar_lea.vmem %s41_s15, 16  ;;  %p1158_p1 = scmp.lt.s32.totalorder %s41_s15, %s41_s15 }
   0x3   :  { %p1154_p0 = scmp.ne.s32.totalorder %s41_s15, %s1153_s16  ;;  %p1159_p2 = scmp.lt.s32.totalorder %s1153_s16, %s1153_s16 }
   0x5   :  { %p1160_p3 = por %p1159_p2, %p1158_p1 }
   0x7   :  { %p1161_p4 = pnand %p1160_p3, %p1154_p0 }
   0x9   :  { %1164 = shalt.err (!%p1161_p4)
}
   0xa   :  { %s1215_s17 = smov [#allocation7]  }
   0xb   :  { %43 = dma.vmem_to_smem %s41_s15, 16, %s1215_s17, [#allocation8]  }
   0xc   :  { %1189 = dma.done.wait [#allocation8], 16  }
   0xd   :  { %1190 = vsyncadd [#allocation8], 4294967280 }
   0xe   :  { %47 = sfence }
   0xf   :  { %v1105_v0 = vld [vmem:[%s1641_s1] sm:$0xff]   ;;  %v1106_v1 = vld [vmem:[%s1641_s1 + $0x8] sm:$0xff]   ;;  %vm84_vm0 = vcmask 261120   ;;  %v51_v7 = vld [vmem:[%s1640_s0 + $0x10] sm:$0xff]  ;;  %vm162_vm1 = vcmask 785408   ;;  %v1362_v36 = vmov 0.0  }
  0x10   :  { %990 = vmatprep.subr.bf16.mxu0 %v1105_v0  ;;  %1030 = vmatprep.subr.bf16.mxu1 %v1105_v0  ;;  %v49_v2 = vld [vmem:[%s1640_s0] sm:$0xff]  ;;  %v50_v3 = vld [vmem:[%s1640_s0 + $0x8] sm:$0xff]  ;;  %v52_v8 = vld [vmem:[%s1640_s0 + $0x18] sm:$0xff]  ;;  %v1364_v37 = vmov 0.0  }
  0x11   :  { %v53_v4 = vld [vmem:[%s1640_s0 + $0x20] sm:$0xff]  ;;  %991 = vmatpush3.bf16.msra.mxu0 %v1105_v0  ;;  %1032 = vmatpush3.bf16.msra.mxu1 %v1105_v0  ;;  %v57_v5 = vpack.c.bf16 %v50_v3, %v49_v2  ;;  %v54_v6 = vld [vmem:[%s1640_s0 + $0x28] sm:$0xff]  ;;  %v55_v10 = vld [vmem:[%s1640_s0 + $0x30] sm:$0xff]  ;;  %v58_v12 = vpack.c.bf16 %v52_v8, %v51_v7 }
  0x12   :  { %992 = vmatprep.subr.bf16.mxu0 %v1106_v1  ;;  %1031 = vmatprep.subr.bf16.mxu1 %v1106_v1  ;;  %v59_v9 = vpack.c.bf16 %v54_v6, %v53_v4  ;;  %v56_v11 = vld [vmem:[%s1640_s0 + $0x38] sm:$0xff]  ;;  %v1329_v14 = vld [vmem:[%s1642_s2] sm:$0xf]  ;;  %v1334_v15 = vld [vmem:[%s1642_s2 + $0x4] sm:$0xf] }
  0x13   :  { %994 = vmatprep.mubr.msk.bf16.mxu0 %vm84_vm0, %v57_v5  ;;  %v60_v13 = vpack.c.bf16 %v56_v11, %v55_v10  ;;  %v1339_v16 = vld [vmem:[%s1642_s2 + $0x8] sm:$0xf]  ;;  %v1344_v17 = vld [vmem:[%s1642_s2 + $0xc] sm:$0xf]  ;;  %v1349_v18 = vld [vmem:[%s1644_s4] ss:$0 sm:$0xff] }
  0x14   :  { %998 = vmatprep.mubr.msk.bf16.mxu1 %vm84_vm0, %v59_v9  ;;  %v932_v19 = vld [vmem:[%s1643_s3] ss:$0 sm:$0xff]  ;;  %s1366_s2 = smov 0  }
  0x15   :  { %993 = vmatpush3.bf16.msra.mxu0 %v1106_v1  ;;  %1033 = vmatpush3.bf16.msra.mxu1 %v1106_v1 }
  0x18   :  { %995 = vmatmul.mubr.msk.bf16.vlgmr.msra.gmra.mrb[0].mxu0 %vm84_vm0, %v58_v12  ;;  %999 = vmatmul.mubr.msk.bf16.vlgmr.msra.gmra.mrb[0].mxu1 %vm84_vm0, %v60_v13 }
  0xeb   :  { %v996_v20 = vpop.f32.mrb[0].mxu0  ;;  %v1000_v21 = vpop.f32.mrb[0].mxu1 }
  0xec   :  { %v140_v22 = vadd.f32 %v996_v20, %v932_v19  ;;  %v156_v23 = vadd.f32 %v1000_v21, %v932_v19  ;;  %v131_v24 = vpop.f32.mrb[1].mxu0  ;;  %v147_v25 = vpop.f32.mrb[1].mxu1 }
  0xed   :  { %v132_v26 = vadd.f32 %v932_v19, %v131_v24  ;;  %v148_v27 = vadd.f32 %v932_v19, %v147_v25  ;;  %v997_v28 = vpop.f32.mrb[2].mxu0  ;;  %v1001_v29 = vpop.f32.mrb[2].mxu1 }
  0xee   :  { %165 = vst.msk [vmem:[#allocation2 + $0x10] sm:$0xff] %vm162_vm1, %v140_v22  ;;  %169 = vst.msk [vmem:[#allocation2 + $0x30] sm:$0xff] %vm162_vm1, %v156_v23  ;;  %v143_v30 = vadd.f32 %v997_v28, %v932_v19  ;;  %v159_v31 = vadd.f32 %v1001_v29, %v932_v19  ;;  %v134_v32 = vpop.f32.mrb[3].mxu0  ;;  %v150_v33 = vpop.f32.mrb[3].mxu1 }
  0xef   :  { %163 = vst.msk [vmem:[#allocation2] sm:$0xff] %vm162_vm1, %v132_v26  ;;  %167 = vst.msk [vmem:[#allocation2 + $0x20] sm:$0xff] %vm162_vm1, %v148_v27  ;;  %v135_v34 = vadd.f32 %v932_v19, %v134_v32  ;;  %v151_v35 = vadd.f32 %v932_v19, %v150_v33 }
  0xf0   :  { %166 = vst.msk [vmem:[#allocation2 + $0x18] sm:$0xff] %vm162_vm1, %v143_v30  ;;  %170 = vst.msk [vmem:[#allocation2 + $0x38] sm:$0xff] %vm162_vm1, %v159_v31 }
  0xf1   :  { %164 = vst.msk [vmem:[#allocation2 + $0x8] sm:$0xff] %vm162_vm1, %v135_v34  ;;  %168 = vst.msk [vmem:[#allocation2 + $0x28] sm:$0xff] %vm162_vm1, %v151_v35 }
  0xf2 LB: > { %v940_v38 = vcombine.low %v1329_v14, %v1334_v15  ;;  %v1216_v39 = vmov 0.0   ;;  %s1217_s3 = smov 112   ;;  %v941_v40 = vcombine.low %v1339_v16, %v1344_v17  ;;  %vm1218_vm2 = vmmov 0   ;;  %s1219_s4 = smov 80   ;;  %s1201_s2 = sphi %s1366_s2, %s181_s2   ;;  %v1197_v37 = vphi %v1364_v37, %v288_v37   ;;  %v1193_v36 = vphi %v1362_v36, %v310_v36  }
  0xf3   : > { %1002 = vmatprep.subr.bf16.mxu0 %v1216_v39  ;;  %185 = vrot.lane.b32.xlu0 %v1197_v37, %s1217_s3  ;;  %vm192_vm3 = vcmask 130048   ;;  %s1220_s27 = smov 96   ;;  %s259_s1 = ssub.s32 7, %s1201_s2 }
  0xf4   : > { %1003 = vmatpush3.bf16.msra.mxu0 %v940_v38  ;;  %1006 = vmatprep.mubr.msk.bf16.mxu0 %vm1218_vm2, %v1216_v39  ;;  %s943_s28 = sshll.u32 %s1201_s2, 3  ;;  %s1389_s29 = sshll.u32 %s259_s1, 3 }
  0xf5   : > { %1004 = vmatprep.subr.bf16.mxu0 %v1216_v39  ;;  %s257_s30 = scalar_lea.vmem [#allocation2], %s943_s28  ;;  %s261_s11 = scalar_lea.vmem [#allocation2], %s1389_s29 }
  0xf6   : > { %s1221_s12 = smov 32   ;;  %s1222_s13 = smov 64  }
  0xf7   : > { %189 = vrot.lane.b32.xlu0 %v1193_v36, %s1219_s4  ;;  %s321_s14 = scalar_lea.vmem [#allocation4], %s1389_s29  ;;  %s315_s15 = scalar_lea.vmem [#allocation3], %s943_s28 }
  0xf8   : > { %1005 = vmatpush3.bf16.msra.mxu0 %v941_v40  ;;  %v258_v50 = vld [vmem:[%s257_s30] sm:$0xff]  ;;  %s181_s2 = sadd.s32 1, %s1201_s2  }
  0xf9   : > { %v262_v51 = vld [vmem:[%s261_s11] sm:$0xff]  ;;  %p178_p5 = scmp.ge.s32.totalorder %s181_s2, 8  }
  0xfa   :  { %s1223_s16 = smov (%p178_p5), 16   ;;  %v1139_v33 = vld [vmem:[%s1645_s5] sm:$0xff] (%p178_p5)   ;;  %v1140_v15 = vld [vmem:[%s1645_s5 + $0x8] sm:$0xff] (%p178_p5)  }
  0xfb   :  { %1010 = vmatprep.subr.bf16.mxu0 (%p178_p5), %v1139_v33  ;;  %1034 = vmatprep.subr.bf16.mxu1 (%p178_p5), %v1139_v33 }
  0xfc   :  { %1036 = vmatpush3.bf16.msra.mxu1 (%p178_p5), %v1139_v33 }
  0xfd   :  { %1035 = vmatprep.subr.bf16.mxu1 (%p178_p5), %v1140_v15 }
 0x100   :  { %1037 = vmatpush3.bf16.msra.mxu1 (%p178_p5), %v1140_v15 }
 0x165   : > { %v186_v41 = vpop.permute.xlu0 %185 }
 0x169   : > { %v190_v42 = vpop.permute.xlu0 %189 }
 0x16a   : > { %v193_v43 = vsel %vm192_vm3, %v186_v41, %v190_v42 }
 0x16b   : > { %v194_v44 = vpack.c.bf16 %v193_v43, %v193_v43 }
 0x16d   : > { %1007 = vmatmul.mubr.msk.bf16.vlgmr.msra.gmra.mrb[0].mxu0 %vm84_vm0, %v194_v44 }
 0x16e   :  { %1011 = vmatpush3.bf16.msra.mxu0 (%p178_p5), %v1139_v33 }
 0x16f   :  { %1012 = vmatprep.subr.bf16.mxu0 (%p178_p5), %v1140_v15 }
 0x172   :  { %1013 = vmatpush3.bf16.msra.mxu0 (%p178_p5), %v1140_v15 }
 0x240   : > { %v250_v45 = vpop.f32.mrb[0].mxu0 }
 0x241   : > { %v251_v46 = vadd.f32 %v1349_v18, %v250_v45  ;;  %v1008_v47 = vpop.f32.mrb[1].mxu0 }
 0x242   : > { %v253_v48 = vpop.f32.mrb[2].mxu0 }
 0x243   : > { %271 = vrot.lane.b32.xlu1 %v251_v46, %s1220_s27  ;;  %v1009_v49 = vpop.f32.mrb[3].mxu0  ;;  %v263_v52 = vadd.f32 %v258_v50, %v251_v46  ;;  %v289_v53 = vadd.f32 %v262_v51, %v251_v46 }
 0x245   : > { %v945_v54 = vmul.f32 -1.442695, %v263_v52  ;;  %v946_v55 = vmul.f32 -1.442695, %v289_v53 }
 0x247   : > { %1107 = vpow2.f32 %v945_v54 }
 0x248   : > { %1109 = vpow2.f32 %v946_v55 }
 0x251   : > { %v1108_v56 = vpop.eup %1107 }
 0x252   : > { %v1110_v57 = vpop.eup %1109  ;;  %v267_v58 = vadd.f32 1.0, %v1108_v56 }
 0x253   : > { %v293_v59 = vadd.f32 1.0, %v1110_v57 }
 0x254   : > { %1111 = vrcp.f32 %v267_v58 }
 0x255   : > { %1113 = vrcp.f32 %v293_v59 }
 0x25e   : > { %v1112_v60 = vpop.eup %1111 }
 0x25f   : > { %v1114_v61 = vpop.eup %1113  ;;  %v281_v9 = vsub.f32 1.0, %v1112_v60  ;;  %v287_v13 = vmul.f32 %v1197_v37, %v1112_v60 }
 0x260   : > { %v303_v7 = vsub.f32 1.0, %v1114_v61  ;;  %v309_v10 = vmul.f32 %v1193_v36, %v1114_v61 }
 0x2b5   : > { %v272_v62 = vpop.permute.xlu1 %271 }
 0x2b6   : > { %v274_v63 = vmul.f32 %v1112_v60, %v272_v62  ;;  %v296_v0 = vmul.f32 %v1114_v61, %v272_v62 }
 0x2b8   : > { %298 = vrot.lane.b32.xlu0 %v296_v0, %s1221_s12  ;;  %276 = vrot.lane.b32.xlu1 %v274_v63, %s1221_s12  ;;  %v1436_v63 = vld [vmem:[%s1646_s6] sm:$0xf] (%p178_p5)  ;;  %v1441_v0 = vld [vmem:[%s1646_s6 + $0x4] sm:$0xf] (%p178_p5) }
 0x32a   : > { %v299_v1 = vpop.permute.xlu0 %298  ;;  %v277_v2 = vpop.permute.xlu1 %276 }
 0x32b   : > { %v301_v3 = vadd.f32 %v299_v1, %v262_v51  ;;  %v279_v4 = vadd.f32 %v277_v2, %v258_v50  ;;  %v1446_v1 = vld [vmem:[%s1646_s6 + $0x8] sm:$0xf] (%p178_p5)  ;;  %v1451_v2 = vld [vmem:[%s1646_s6 + $0xc] sm:$0xf] (%p178_p5)  ;;  %s1473_s6 = smov (%p178_p5), 0  }
 0x32d   : > { %1115 = vtanh.f32 %v301_v3  ;;  %v1456_v3 = vld [vmem:[%s1648_s8] ss:$0 sm:$0xff] (%p178_p5) }
 0x32e   : > { %1117 = vtanh.f32 %v279_v4  ;;  %v947_v4 = vld [vmem:[%s1647_s7] ss:$0 sm:$0xff] (%p178_p5) }
 0x337   : > { %v1116_v5 = vpop.eup %1115 }
 0x338   : > { %v1118_v6 = vpop.eup %1117  ;;  %305 = vrot.lane.b32.xlu0 %v1116_v5, %s1217_s3 }
 0x339   : > { %283 = vrot.lane.b32.xlu1 %v1118_v6, %s1217_s3 }
 0x3aa   : > { %v306_v8 = vpop.permute.xlu0 %305 }
 0x3ab   : > { %v308_v11 = vmul.f32 %v306_v8, %v303_v7  ;;  %v284_v12 = vpop.permute.xlu1 %283 }
 0x3ac   : > { %v286_v19 = vmul.f32 %v284_v12, %v281_v9 }
 0x3ad   : > { %v310_v36 = vadd.f32 %v309_v10, %v308_v11  }
 0x3ae   : > { %v288_v37 = vadd.f32 %v287_v13, %v286_v19  }
 0x3af   : > { %318 = vrot.lane.b32.xlu0 %v310_v36, %s1222_s13 }
 0x3b0   : > { %312 = vrot.lane.b32.xlu1 %v288_v37, %s1217_s3 }
 0x41d   :  { %180 = sbr.rel (!%p178_p5) target bundleno = 242 (0xf2), region = 121 }
 0x421   : > { %v319_v20 = vpop.permute.xlu0 %318 }
 0x422   : > { %322 = vst.msk [vmem:[%s321_s14] sm:$0xff] %vm192_vm3, %v319_v20  ;;  %v313_v21 = vpop.permute.xlu1 %312 }
 0x423   : > { %316 = vst.msk [vmem:[%s315_s15] sm:$0xff] %vm192_vm3, %v313_v21 }
 0x429   :  { %v331_v22 = vld [vmem:[#allocation4] sm:$0xff]  ;;  %v332_v23 = vld [vmem:[#allocation4 + $0x8] sm:$0xff]  ;;  %v333_v24 = vld [vmem:[#allocation4 + $0x10] sm:$0xff] }
 0x42a   :  { %v1119_v25 = vpack.i.bf16 %v332_v23, %v331_v22  ;;  %v334_v26 = vld [vmem:[#allocation4 + $0x18] sm:$0xff]  ;;  %v335_v27 = vld [vmem:[#allocation4 + $0x20] sm:$0xff]  ;;  %v336_v28 = vld [vmem:[#allocation4 + $0x28] sm:$0xff] }
 0x42b   :  { %v1129_v29 = vpack.i.bf16 %v334_v26, %v333_v24  ;;  %v337_v30 = vld [vmem:[#allocation4 + $0x30] sm:$0xff]  ;;  %v338_v31 = vld [vmem:[#allocation4 + $0x38] sm:$0xff]  ;;  %v1124_v32 = vpack.i.bf16 %v336_v28, %v335_v27  ;;  %v323_v17 = vld [vmem:[#allocation3] sm:$0xff]  ;;  %v1469_v26 = vmov 0.0   ;;  %v1471_v27 = vmov 0.0  }
 0x42c   :  { %1120 = vrot.lane.b32.xlu0 %v1119_v25, %s1223_s16  ;;  %v1134_v14 = vpack.i.bf16 %v338_v31, %v337_v30  ;;  %v324_v18 = vld [vmem:[#allocation3 + $0x8] sm:$0xff]  ;;  %v325_v37 = vld [vmem:[#allocation3 + $0x10] sm:$0xff]  ;;  %v326_v38 = vld [vmem:[#allocation3 + $0x18] sm:$0xff] }
 0x42d   :  { %1130 = vrot.lane.b32.xlu1 %v1129_v29, %s1223_s16  ;;  %v327_v47 = vld [vmem:[#allocation3 + $0x20] sm:$0xff]  ;;  %v328_v48 = vld [vmem:[#allocation3 + $0x28] sm:$0xff]  ;;  %v329_v52 = vld [vmem:[#allocation3 + $0x30] sm:$0xff] }
 0x42e   :  { %v330_v53 = vld [vmem:[#allocation3 + $0x38] sm:$0xff] }
 0x430   :  { %1125 = vrot.lane.b32.xlu0 %v1124_v32, %s1223_s16 }
 0x431   :  { %1135 = vrot.lane.b32.xlu1 %v1134_v14, %s1223_s16 }
 0x49e   :  { %v1121_v16 = vpop.permute.xlu0 %1120 }
 0x49f   :  { %v1123_v34 = vunpack.i.h.bf16 %v1121_v16  ;;  %v1122_v35 = vunpack.i.l.bf16 %v1121_v16  ;;  %v1131_v36 = vpop.permute.xlu1 %1130 }
 0x4a0   :  { %v1133_v39 = vunpack.i.h.bf16 %v1131_v36  ;;  %v1132_v40 = vunpack.i.l.bf16 %v1131_v36 }
 0x4a1   :  { %v372_v41 = vsel %vm192_vm3, %v323_v17, %v1122_v35  ;;  %v373_v42 = vsel %vm192_vm3, %v324_v18, %v1123_v34 }
 0x4a2   :  { %v374_v43 = vsel %vm192_vm3, %v325_v37, %v1132_v40  ;;  %v375_v44 = vsel %vm192_vm3, %v326_v38, %v1133_v39  ;;  %v1126_v45 = vpop.permute.xlu0 %1125  ;;  %v380_v46 = vpack.c.bf16 %v373_v42, %v372_v41 }
 0x4a3   :  { %v1128_v49 = vunpack.i.h.bf16 %v1126_v45  ;;  %v1127_v50 = vunpack.i.l.bf16 %v1126_v45  ;;  %v1136_v51 = vpop.permute.xlu1 %1135  ;;  %v381_v54 = vpack.c.bf16 %v375_v44, %v374_v43 }
 0x4a4   :  { %v1138_v55 = vunpack.i.h.bf16 %v1136_v51  ;;  %v1137_v56 = vunpack.i.l.bf16 %v1136_v51  ;;  %1014 = vmatprep.mubr.msk.bf16.mxu0 %vm84_vm0, %v380_v46 }
 0x4a5   :  { %1015 = vmatmul.mubr.msk.bf16.vlgmr.msra.gmra.mrb[0].mxu0 %vm84_vm0, %v381_v54  ;;  %v376_v57 = vsel %vm192_vm3, %v327_v47, %v1127_v50  ;;  %v377_v58 = vsel %vm192_vm3, %v328_v48, %v1128_v49 }
 0x4a6   :  { %v378_v59 = vsel %vm192_vm3, %v329_v52, %v1137_v56  ;;  %v379_v60 = vsel %vm192_vm3, %v330_v53, %v1138_v55  ;;  %v382_v61 = vpack.c.bf16 %v377_v58, %v376_v57 }
 0x4a7   :  { %v383_v62 = vpack.c.bf16 %v379_v60, %v378_v59 }
 0x4a8   :  { %1018 = vmatprep.mubr.msk.bf16.mxu1 %vm84_vm0, %v382_v61 }
 0x4a9   :  { %1019 = vmatmul.mubr.msk.bf16.vlgmr.msra.gmra.mrb[0].mxu1 %vm84_vm0, %v383_v62 }
 0x578   :  { %v1016_v5 = vpop.f32.mrb[0].mxu0 }
 0x579   :  { %v462_v6 = vadd.f32 %v1016_v5, %v947_v4  ;;  %v453_v7 = vpop.f32.mrb[1].mxu0 }
 0x57a   :  { %v454_v8 = vadd.f32 %v947_v4, %v453_v7  ;;  %v1017_v9 = vpop.f32.mrb[2].mxu0 }
 0x57b   :  { %486 = vst.msk [vmem:[#allocation2 + $0x10] sm:$0xff] %vm162_vm1, %v462_v6  ;;  %v465_v10 = vadd.f32 %v1017_v9, %v947_v4  ;;  %v456_v11 = vpop.f32.mrb[3].mxu0 }
 0x57c   :  { %484 = vst.msk [vmem:[#allocation2] sm:$0xff] %vm162_vm1, %v454_v8  ;;  %v457_v12 = vadd.f32 %v947_v4, %v456_v11  ;;  %v1020_v13 = vpop.f32.mrb[0].mxu1 }
 0x57d   :  { %487 = vst.msk [vmem:[#allocation2 + $0x18] sm:$0xff] %vm162_vm1, %v465_v10  ;;  %v478_v19 = vadd.f32 %v1020_v13, %v947_v4  ;;  %v469_v20 = vpop.f32.mrb[1].mxu1 }
 0x57e   :  { %485 = vst.msk [vmem:[#allocation2 + $0x8] sm:$0xff] %vm162_vm1, %v457_v12  ;;  %v470_v21 = vadd.f32 %v947_v4, %v469_v20  ;;  %v1021_v22 = vpop.f32.mrb[2].mxu1 }
 0x57f   :  { %490 = vst.msk [vmem:[#allocation2 + $0x30] sm:$0xff] %vm162_vm1, %v478_v19  ;;  %v481_v23 = vadd.f32 %v1021_v22, %v947_v4  ;;  %v472_v24 = vpop.f32.mrb[3].mxu1 }
 0x580   :  { %488 = vst.msk [vmem:[#allocation2 + $0x20] sm:$0xff] %vm162_vm1, %v470_v21  ;;  %v473_v25 = vadd.f32 %v947_v4, %v472_v24 }
 0x581   :  { %491 = vst.msk [vmem:[#allocation2 + $0x38] sm:$0xff] %vm162_vm1, %v481_v23 }
 0x582   :  { %489 = vst.msk [vmem:[#allocation2 + $0x28] sm:$0xff] %vm162_vm1, %v473_v25 }
 0x583 LB: > { %v955_v28 = vcombine.low %v1436_v63, %v1441_v0  ;;  %v1224_v29 = vmov 0.0   ;;  %s1225_s7 = smov 112   ;;  %v956_v30 = vcombine.low %v1446_v1, %v1451_v2  ;;  %vm1226_vm4 = vmmov 0   ;;  %s1227_s8 = smov 80   ;;  %s1213_s6 = sphi %s1473_s6, %s502_s6   ;;  %v1209_v27 = vphi %v1471_v27, %v608_v27   ;;  %v1205_v26 = vphi %v1469_v26, %v630_v26  }
 0x584   : > { %1022 = vmatprep.subr.bf16.mxu0 %v1224_v29  ;;  %506 = vrot.lane.b32.xlu0 %v1209_v27, %s1225_s7  ;;  %s1228_s1 = smov 96   ;;  %s579_s28 = ssub.s32 7, %s1213_s6 }
 0x585   : > { %1023 = vmatpush3.bf16.msra.mxu0 %v955_v28  ;;  %1026 = vmatprep.mubr.msk.bf16.mxu0 %vm1226_vm4, %v1224_v29  ;;  %s958_s29 = sshll.u32 %s1213_s6, 3  ;;  %s1496_s30 = sshll.u32 %s579_s28, 3 }
 0x586   : > { %1024 = vmatprep.subr.bf16.mxu0 %v1224_v29  ;;  %s577_s11 = scalar_lea.vmem [#allocation2], %s958_s29  ;;  %s581_s12 = scalar_lea.vmem [#allocation2], %s1496_s30 }
 0x587   : > { %s1229_s13 = smov 32   ;;  %s1230_s14 = smov 64  }
 0x588   : > { %510 = vrot.lane.b32.xlu0 %v1205_v26, %s1227_s8  ;;  %s641_s15 = scalar_lea.vmem [#allocation6], %s1496_s30  ;;  %s635_s17 = scalar_lea.vmem [#allocation5], %s958_s29 }
 0x589   : > { %1025 = vmatpush3.bf16.msra.mxu0 %v956_v30  ;;  %v578_v35 = vld [vmem:[%s577_s11] sm:$0xff]  ;;  %s502_s6 = sadd.s32 1, %s1213_s6  }
 0x58a   : > { %v582_v36 = vld [vmem:[%s581_s12] sm:$0xff]  ;;  %p499_p6 = scmp.ge.s32.totalorder %s502_s6, 8  }
 0x58b   :  { %v708_v7 = vld [vmem:[#allocation4 + $0x10] sm:$0xff] (%p499_p6)  ;;  %v676_v8 = vld [vmem:[#allocation4 + $0x8] sm:$0xff] (%p499_p6)  ;;  %v740_v11 = vld [vmem:[#allocation4 + $0x18] sm:$0xff] (%p499_p6)  ;;  %s643_s18 = sld [smem:[#allocation7]] (%p499_p6)  ;;  %s962_s19 = sld [smem:[#allocation7 + $0x1]] (%p499_p6)  ;;  %vm703_vm5 = vcmask (%p499_p6), 523520  }
 0x58c   :  { %v830_v9 = vld [vmem:[#allocation4 + $0x30] sm:$0xff] (%p499_p6)  ;;  %v799_v10 = vld [vmem:[#allocation4 + $0x28] sm:$0xff] (%p499_p6)  ;;  %v861_v13 = vld [vmem:[#allocation4 + $0x38] sm:$0xff] (%p499_p6)  ;;  %s963_s20 = sld [smem:[#allocation7 + $0x2]] (%p499_p6)  ;;  %s964_s9 = sld [smem:[#allocation7 + $0x3]] (%p499_p6)  ;;  %vm735_vm6 = vcmask (%p499_p6), 785920  }
 0x58d   :  { %v772_v20 = vld [vmem:[#allocation4 + $0x20] sm:$0xff] (%p499_p6)  ;;  %v674_v25 = vld [vmem:[#allocation3 + $0x8] sm:$0xff] (%p499_p6)  ;;  %s1231_s6 = smov (%p499_p6), 32   ;;  %s1232_s29 = smov (%p499_p6), 64   ;;  %vm767_vm7 = vcmask (%p499_p6), 1048320  }
 0x58e   :  { %v965_v28 = vld [vmem:[%s1640_s0 + $0x8] sm:$0xff] (%p499_p6) }
 0x58f   :  { %v797_v30 = vld [vmem:[#allocation3 + $0x28] sm:$0xff] (%p499_p6) }
 0x5f6   : > { %v507_v31 = vpop.permute.xlu0 %506 }
 0x5fa   : > { %v511_v32 = vpop.permute.xlu0 %510 }
 0x5fb   : > { %v513_v33 = vsel %vm192_vm3, %v507_v31, %v511_v32 }
 0x5fc   : > { %v514_v14 = vpack.c.bf16 %v513_v33, %v513_v33  ;;  %v706_v33 = vld [vmem:[#allocation3 + $0x10] sm:$0xff] (%p499_p6) }
 0x5fe   : > { %1027 = vmatmul.mubr.msk.bf16.vlgmr.msra.gmra.mrb[0].mxu0 %vm84_vm0, %v514_v14 }
 0x6d1   : > { %v570_v15 = vpop.f32.mrb[0].mxu0 }
 0x6d2   : > { %v571_v16 = vadd.f32 %v1456_v3, %v570_v15  ;;  %v1028_v17 = vpop.f32.mrb[1].mxu0  ;;  %v648_v3 = vld [vmem:[#allocation4] sm:$0xff] (%p499_p6) }
 0x6d3   : > { %v573_v18 = vpop.f32.mrb[2].mxu0 }
 0x6d4   : > { %591 = vrot.lane.b32.xlu1 %v571_v16, %s1228_s1  ;;  %v1029_v34 = vpop.f32.mrb[3].mxu0  ;;  %v583_v37 = vadd.f32 %v578_v35, %v571_v16  ;;  %v609_v38 = vadd.f32 %v582_v36, %v571_v16  ;;  %v969_v16 = vld [vmem:[%s1640_s0 + $0x28] sm:$0xff] (%p499_p6) }
 0x6d5   :  { %v828_v34 = vld [vmem:[#allocation3 + $0x30] sm:$0xff] (%p499_p6) }
 0x6d6   : > { %v960_v39 = vmul.f32 -1.442695, %v583_v37  ;;  %v961_v40 = vmul.f32 -1.442695, %v609_v38  ;;  %v966_v38 = vld [vmem:[%s1640_s0 + $0x10] sm:$0xff] (%p499_p6) }
 0x6d8   : > { %1141 = vpow2.f32 %v960_v39 }
 0x6d9   : > { %1143 = vpow2.f32 %v961_v40 }
 0x6e2   : > { %v1142_v41 = vpop.eup %1141 }
 0x6e3   : > { %v1144_v42 = vpop.eup %1143  ;;  %v587_v43 = vadd.f32 1.0, %v1142_v41 }
 0x6e4   : > { %v613_v44 = vadd.f32 1.0, %v1144_v42 }
 0x6e5   : > { %1145 = vrcp.f32 %v587_v43 }
 0x6e6   : > { %1147 = vrcp.f32 %v613_v44  ;;  %v970_v44 = vld [vmem:[%s1640_s0 + $0x30] sm:$0xff] (%p499_p6) }
 0x6ef   : > { %v1146_v45 = vpop.eup %1145 }
 0x6f0   : > { %v1148_v46 = vpop.eup %1147  ;;  %v601_v58 = vsub.f32 1.0, %v1146_v45  ;;  %v607_v62 = vmul.f32 %v1209_v27, %v1146_v45 }
 0x6f1   : > { %v623_v56 = vsub.f32 1.0, %v1148_v46  ;;  %v629_v59 = vmul.f32 %v1205_v26, %v1148_v46 }
 0x746   : > { %v592_v47 = vpop.permute.xlu1 %591 }
 0x747   : > { %v594_v48 = vmul.f32 %v1146_v45, %v592_v47  ;;  %v616_v49 = vmul.f32 %v1148_v46, %v592_v47 }
 0x749   : > { %618 = vrot.lane.b32.xlu0 %v616_v49, %s1229_s13  ;;  %596 = vrot.lane.b32.xlu1 %v594_v48, %s1229_s13  ;;  %v738_v48 = vld [vmem:[#allocation3 + $0x18] sm:$0xff] (%p499_p6) }
 0x74a   :  { %v859_v49 = vld [vmem:[#allocation3 + $0x38] sm:$0xff] (%p499_p6) }
 0x7bb   : > { %v619_v50 = vpop.permute.xlu0 %618  ;;  %v597_v51 = vpop.permute.xlu1 %596 }
 0x7bc   : > { %v621_v52 = vadd.f32 %v619_v50, %v582_v36  ;;  %v599_v53 = vadd.f32 %v597_v51, %v578_v35  ;;  %v1548_v35 = vstv (%p499_p6), %s963_s20  ;;  %v1562_v50 = vstv (%p499_p6), %s964_s9 }
 0x7be   : > { %1149 = vtanh.f32 %v621_v52 }
 0x7bf   : > { %1151 = vtanh.f32 %v599_v53 }
 0x7c8   : > { %v1150_v54 = vpop.eup %1149 }
 0x7c9   : > { %v1152_v55 = vpop.eup %1151  ;;  %625 = vrot.lane.b32.xlu0 %v1150_v54, %s1225_s7 }
 0x7ca   : > { %603 = vrot.lane.b32.xlu1 %v1152_v55, %s1225_s7 }
 0x83b   : > { %v626_v57 = vpop.permute.xlu0 %625 }
 0x83c   : > { %v628_v60 = vmul.f32 %v626_v57, %v623_v56  ;;  %v604_v61 = vpop.permute.xlu1 %603 }
 0x83d   : > { %v606_v4 = vmul.f32 %v604_v61, %v601_v58 }
 0x83e   : > { %v630_v26 = vadd.f32 %v629_v59, %v628_v60   ;;  %v967_v59 = vld [vmem:[%s1640_s0 + $0x18] sm:$0xff] (%p499_p6) }
 0x83f   : > { %v608_v27 = vadd.f32 %v607_v62, %v606_v4   ;;  %v971_v60 = vld [vmem:[%s1640_s0 + $0x38] sm:$0xff] (%p499_p6) }
 0x840   : > { %638 = vrot.lane.b32.xlu0 %v630_v26, %s1230_s14  ;;  %v1534_v26 = vstv (%p499_p6), %s643_s18 }
 0x841   : > { %632 = vrot.lane.b32.xlu1 %v608_v27, %s1225_s7  ;;  %v1536_v27 = vstv (%p499_p6), %s962_s19  ;;  %v693_v14 = vmul.f32 (%p499_p6), %v965_v28, %v1534_v26  ;;  %v816_v40 = vmul.f32 (%p499_p6), %v969_v16, %v1534_v26  ;;  %v725_v51 = vmul.f32 (%p499_p6), %v966_v38, %v1534_v26  ;;  %v968_v16 = vld [vmem:[%s1640_s0 + $0x20] sm:$0xff] (%p499_p6) }
 0x842   :  { %v847_v56 = vmul.f32 (%p499_p6), %v970_v44, %v1534_v26  ;;  %v770_v38 = vld [vmem:[#allocation3 + $0x20] sm:$0xff] (%p499_p6)  ;;  %v789_v44 = vmul.f32 (%p499_p6), %v968_v16, %v1534_v26 }
 0x844   :  { %678 = vrot.lane.b32.xlu0 (%p499_p6), %v676_v8, %s1223_s16 }
 0x845   :  { %710 = vrot.lane.b32.xlu1 (%p499_p6), %v708_v7, %s1223_s16 }
 0x848   :  { %801 = vrot.lane.b32.xlu0 (%p499_p6), %v799_v10, %s1223_s16  ;;  %v757_v10 = vmul.f32 (%p499_p6), %v967_v59, %v1534_v26 }
 0x849   :  { %832 = vrot.lane.b32.xlu1 (%p499_p6), %v830_v9, %s1223_s16 }
 0x84d   :  { %742 = vrot.lane.b32.xlu1 (%p499_p6), %v740_v11, %s1223_s16  ;;  %v878_v11 = vmul.f32 (%p499_p6), %v971_v60, %v1534_v26 }
 0x851   :  { %863 = vrot.lane.b32.xlu1 (%p499_p6), %v861_v13, %s1223_s16 }
 0x8ae   :  { %501 = sbr.rel (!%p499_p6) target bundleno = 1411 (0x583), region = 132 }
 0x8b2   : > { %v639_v5 = vpop.permute.xlu0 %638 }
 0x8b3   : > { %642 = vst.msk [vmem:[%s641_s15] sm:$0xff] %vm192_vm3, %v639_v5  ;;  %v633_v6 = vpop.permute.xlu1 %632 }
 0x8b4   : > { %636 = vst.msk [vmem:[%s635_s17] sm:$0xff] %vm192_vm3, %v633_v6 }
 0x8b6   :  { %v679_v24 = vpop.permute.xlu0 %678 }
 0x8b7   :  { %v711_v23 = vpop.permute.xlu1 %710  ;;  %v681_v29 = vsel %vm192_vm3, %v674_v25, %v679_v24 }
 0x8b8   :  { %v694_v15 = vmul.f32 %v681_v29, %v1536_v27  ;;  %v713_v39 = vsel %vm192_vm3, %v706_v33, %v711_v23 }
 0x8b9   :  { %v726_v52 = vmul.f32 %v713_v39, %v1536_v27 }
 0x8ba   :  { %v685_v12 = vld [vmem:[#allocation6 + $0x8] sm:$0xff]  ;;  %v839_v63 = vld [vmem:[#allocation6 + $0x30] sm:$0xff]  ;;  %v870_v1 = vld [vmem:[#allocation6 + $0x38] sm:$0xff]  ;;  %v802_v32 = vpop.permute.xlu0 %801  ;;  %v695_v43 = vadd.f32 %v694_v15, %v693_v14 }
 0x8bb   :  { %687 = vrot.lane.b32.xlu0 %v685_v12, %s1223_s16  ;;  %v808_v19 = vld [vmem:[#allocation6 + $0x28] sm:$0xff]  ;;  %v717_v0 = vld [vmem:[#allocation6 + $0x10] sm:$0xff]  ;;  %841 = vrot.lane.b32.xlu1 %v839_v63, %s1223_s16  ;;  %v749_v2 = vld [vmem:[#allocation6 + $0x18] sm:$0xff]  ;;  %v833_v31 = vpop.permute.xlu1 %832  ;;  %v804_v17 = vsel %vm192_vm3, %v797_v30, %v802_v32  ;;  %v727_v9 = vadd.f32 %v726_v52, %v725_v51 }
 0x8bc   :  { %v655_v21 = vld [vmem:[#allocation6] sm:$0xff]  ;;  %v683_v18 = vld [vmem:[#allocation5 + $0x8] sm:$0xff]  ;;  %v817_v41 = vmul.f32 %v804_v17, %v1536_v27  ;;  %v835_v45 = vsel %vm192_vm3, %v828_v34, %v833_v31  ;;  %v837_v6 = vld [vmem:[#allocation5 + $0x30] sm:$0xff] }
 0x8bd   :  { %v781_v22 = vld [vmem:[#allocation6 + $0x20] sm:$0xff]  ;;  %v806_v47 = vld [vmem:[#allocation5 + $0x28] sm:$0xff]  ;;  %v848_v57 = vmul.f32 %v835_v45, %v1536_v27  ;;  %v715_v7 = vld [vmem:[#allocation5 + $0x10] sm:$0xff] }
 0x8be   :  { %v818_v58 = vadd.f32 %v817_v41, %v816_v40  ;;  %v747_v23 = vld [vmem:[#allocation5 + $0x18] sm:$0xff]  ;;  %v661_v31 = vld [vmem:[%s1640_s0] sm:$0xff]  ;;  %s1233_s0 = smov 96  }
 0x8bf   :  { %810 = vrot.lane.b32.xlu0 %v808_v19, %s1223_s16  ;;  %872 = vrot.lane.b32.xlu1 %v870_v1, %s1223_s16  ;;  %v743_v36 = vpop.permute.xlu1 %742  ;;  %v663_v39 = vmul.f32 %v1534_v26, %v661_v31  ;;  %v654_v52 = vld [vmem:[#allocation5] sm:$0xff] }
 0x8c0   :  { %v745_v62 = vsel %vm192_vm3, %v738_v48, %v743_v36 }
 0x8c1   :  { %v758_v63 = vmul.f32 %v745_v62, %v1536_v27 }
 0x8c3   :  { %719 = vrot.lane.b32.xlu0 %v717_v0, %s1223_s16  ;;  %774 = vrot.lane.b32.xlu1 %v772_v20, %s1223_s16  ;;  %v864_v54 = vpop.permute.xlu1 %863  ;;  %v759_v32 = vadd.f32 %v758_v63, %v757_v10 }
 0x8c4   :  { %v866_v4 = vsel %vm192_vm3, %v859_v49, %v864_v54 }
 0x8c5   :  { %v879_v0 = vmul.f32 %v866_v4, %v1536_v27 }
 0x8c7   :  { %751 = vrot.lane.b32.xlu0 %v749_v2, %s1223_s16  ;;  %783 = vrot.lane.b32.xlu1 %v781_v22, %s1223_s16  ;;  %v868_v22 = vld [vmem:[#allocation5 + $0x38] sm:$0xff]  ;;  %v880_v33 = vadd.f32 %v879_v0, %v878_v11 }
 0x8cb   :  { %650 = vrot.lane.b32.xlu0 %v648_v3, %s1223_s16  ;;  %v849_v3 = vadd.f32 %v848_v57, %v847_v56 }
 0x8cf   :  { %657 = vrot.lane.b32.xlu0 %v655_v21, %s1223_s16 }
 0x92d   :  { %v688_v37 = vpop.permute.xlu0 %687  ;;  %v842_v13 = vpop.permute.xlu1 %841 }
 0x92e   :  { %v690_v42 = vsel %vm192_vm3, %v683_v18, %v688_v37  ;;  %v844_v1 = vsel %vm192_vm3, %v837_v6, %v842_v13  ;;  %v647_v37 = vld [vmem:[#allocation3] sm:$0xff] }
 0x92f   :  { %v696_v46 = vmul.f32 %v690_v42, %v1548_v35  ;;  %v850_v20 = vmul.f32 %v844_v1, %v1548_v35 }
 0x931   :  { %v697_v53 = vadd.f32 %v696_v46, %v695_v43  ;;  %v811_v55 = vpop.permute.xlu0 %810  ;;  %v851_v25 = vadd.f32 %v850_v20, %v849_v3  ;;  %v873_v29 = vpop.permute.xlu1 %872 }
 0x932   :  { %v813_v61 = vsel %vm192_vm3, %v806_v47, %v811_v55  ;;  %v875_v14 = vsel %vm192_vm3, %v868_v22, %v873_v29 }
 0x933   :  { %v819_v5 = vmul.f32 %v813_v61, %v1548_v35  ;;  %v698_v8 = vmul.f32 %v697_v53, %v1562_v50  ;;  %v881_v17 = vmul.f32 %v875_v14, %v1548_v35  ;;  %v852_v34 = vmul.f32 %v851_v25, %v1562_v50  ;;  %v779_v53 = vld [vmem:[#allocation5 + $0x20] sm:$0xff] }
 0x935   :  { %v820_v12 = vadd.f32 %v819_v5, %v818_v58  ;;  %v720_v19 = vpop.permute.xlu0 %719  ;;  %700 = vrot.lane.b32.xlu0 %v698_v8, %s1231_s6  ;;  %v882_v40 = vadd.f32 %v881_v17, %v880_v33  ;;  %v775_v43 = vpop.permute.xlu1 %774 }
 0x936   :  { %v722_v2 = vsel %vm192_vm3, %v715_v7, %v720_v19  ;;  %v777_v46 = vsel %vm192_vm3, %v770_v38, %v775_v43 }
 0x937   :  { %v728_v21 = vmul.f32 %v722_v2, %v1548_v35  ;;  %v821_v24 = vmul.f32 %v820_v12, %v1562_v50  ;;  %v883_v47 = vmul.f32 %v882_v40, %v1562_v50  ;;  %v790_v51 = vmul.f32 %v777_v46, %v1536_v27 }
 0x939   :  { %v729_v28 = vadd.f32 %v728_v21, %v727_v9  ;;  %v752_v30 = vpop.permute.xlu0 %751  ;;  %823 = vrot.lane.b32.xlu1 %v821_v24, %s1231_s6  ;;  %v791_v55 = vadd.f32 %v790_v51, %v789_v44  ;;  %v784_v56 = vpop.permute.xlu1 %783 }
 0x93a   :  { %v754_v15 = vsel %vm192_vm3, %v747_v23, %v752_v30  ;;  %v786_v58 = vsel %vm192_vm3, %v779_v53, %v784_v56 }
 0x93b   :  { %v760_v18 = vmul.f32 %v754_v15, %v1548_v35  ;;  %v730_v36 = vmul.f32 %v729_v28, %v1562_v50  ;;  %v792_v60 = vmul.f32 %v786_v58, %v1548_v35 }
 0x93d   :  { %v761_v41 = vadd.f32 %v760_v18, %v759_v32  ;;  %854 = vrot.lane.b32.xlu1 %v852_v34, %s1232_s29  ;;  %732 = vrot.lane.b32.xlu0 %v730_v36, %s1232_s29  ;;  %v651_v42 = vpop.permute.xlu0 %650  ;;  %v793_v62 = vadd.f32 %v792_v60, %v791_v55 }
 0x93e   :  { %v653_v45 = vsel %vm192_vm3, %v647_v37, %v651_v42 }
 0x93f   :  { %v762_v48 = vmul.f32 %v761_v41, %v1562_v50  ;;  %v665_v49 = vmul.f32 %v1536_v27, %v653_v45  ;;  %v794_v4 = vmul.f32 %v793_v62, %v1562_v50 }
 0x941   :  { %885 = vrot.lane.b32.xlu1 %v883_v47, %s1233_s0  ;;  %764 = vrot.lane.b32.xlu0 %v762_v48, %s1233_s0  ;;  %v666_v54 = vadd.f32 %v665_v49, %v663_v39  ;;  %v658_v26 = vpop.permute.xlu0 %657  ;;  %795 = vst.msk [vmem:[%s1650_s10 + $0x8] sm:$0xff] %vm84_vm0, %v794_v4 }
 0x942   :  { %v660_v57 = vsel %vm192_vm3, %v654_v52, %v658_v26 }
 0x943   :  { %v668_v59 = vmul.f32 %v1548_v35, %v660_v57 }
 0x945   :  { %v669_v61 = vadd.f32 %v668_v59, %v666_v54 }
 0x947   :  { %v671_v27 = vmul.f32 %v1562_v50, %v669_v61 }
 0x949   :  { %672 = vst.msk [vmem:[%s1650_s10] sm:$0xff] %vm84_vm0, %v671_v27 }
 0x9a7   :  { %v701_v5 = vpop.permute.xlu0 %700 }
 0x9a8   :  { %704 = vst.msk [vmem:[%s1650_s10] sm:$0xff] %vm703_vm5, %v701_v5 }
 0x9ab   :  { %v824_v35 = vpop.permute.xlu1 %823 }
 0x9ac   :  { %826 = vst.msk [vmem:[%s1650_s10 + $0x8] sm:$0xff] %vm703_vm5, %v824_v35 }
 0x9af   :  { %v855_v50 = vpop.permute.xlu1 %854  ;;  %v733_v6 = vpop.permute.xlu0 %732 }
 0x9b0   :  { %857 = vst.msk [vmem:[%s1650_s10 + $0x8] sm:$0xff] %vm735_vm6, %v855_v50  ;;  %736 = vst.msk [vmem:[%s1650_s10] sm:$0xff] %vm735_vm6, %v733_v6 }
 0x9b3   :  { %v886_v7 = vpop.permute.xlu1 %885  ;;  %v765_v8 = vpop.permute.xlu0 %764 }
 0x9b4   :  { %888 = vst.msk [vmem:[%s1650_s10 + $0x8] sm:$0xff] %vm767_vm7, %v886_v7  ;;  %768 = vst.msk [vmem:[%s1650_s10] sm:$0xff] %vm767_vm7, %v765_v8 }
 0x9b5   :  { %893 = vsyncpa [#allocation8], 1 }

// kernel: hamr_forward.3
= control target key start
LH: loop header
LB: loop body
LE: loop exit
PB: predicated region body
PF: predicated region fallthrough
CT: control target
= control target key end

     0   :  { %18 = vsyncpa [#allocation4], 0  ;;  %s9959_s0 = inlined_call_operand.vmem [shape: f32[8,3,8,32], index: 0, kind: input, shape index: {}]   ;;  %s9960_s1 = inlined_call_operand.vmem [shape: f32[8,8,32], index: 1, kind: input, shape index: {}]   ;;  %s9961_s2 = inlined_call_operand.vmem [shape: bf16[8,40], index: 2, kind: input, shape index: {}]   ;;  %s9962_s3 = inlined_call_operand.vmem [shape: f32[1,32], index: 3, kind: input, shape index: {}]   ;;  %s9963_s4 = inlined_call_operand.vmem [shape: bf16[32,96], index: 4, kind: input, shape index: {}]   ;;  %s9964_s5 = inlined_call_operand.vmem [shape: bf16[32,96], index: 5, kind: input, shape index: {}]   ;;  %s9965_s6 = inlined_call_operand.vmem [shape: f32[1,96], index: 6, kind: input, shape index: {}]   ;;  %s9966_s7 = inlined_call_operand.vmem [shape: f32[1,96], index: 7, kind: input, shape index: {}]   ;;  %s9967_s8 = inlined_call_operand.vmem [shape: bf16[32,96], index: 8, kind: input, shape index: {}]   ;;  %s9968_s9 = inlined_call_operand.vmem [shape: bf16[32,96], index: 9, kind: input, shape index: {}]   ;;  %s9969_s10 = inlined_call_operand.vmem [shape: f32[1,96], index: 10, kind: input, shape index: {}]   ;;  %s9970_s11 = inlined_call_operand.vmem [shape: f32[1,96], index: 11, kind: input, shape index: {}]   ;;  %s9971_s12 = inlined_call_operand.vmem [shape: f32[4], index: 12, kind: input, shape index: {}]   ;;  %s9972_s13 = inlined_call_operand.vmem [shape: f32[8,32], index: 13, kind: output, shape index: {}]  }
   0x1   :  { %s49_s27 = sshll.u32 %s9971_s12, 4  ;;  %s50_s27 = int_to_ptr.vmem [resolvable:$true] %s49_s27 }
   0x2   :  { %s7622_s28 = scalar_lea.vmem %s50_s27, 16  ;;  %p7627_p1 = scmp.lt.s32.totalorder %s50_s27, %s50_s27 }
   0x3   :  { %p7623_p0 = scmp.ne.s32.totalorder %s50_s27, %s7622_s28  ;;  %p7628_p2 = scmp.lt.s32.totalorder %s7622_s28, %s7622_s28 }
   0x5   :  { %p7629_p3 = por %p7628_p2, %p7627_p1 }
   0x7   :  { %p7630_p4 = pnand %p7629_p3, %p7623_p0 }
   0x9   :  { %7633 = shalt.err (!%p7630_p4)
}
   0xa   :  { %s7676_s29 = smov [#allocation3]  }
   0xb   :  { %52 = dma.vmem_to_smem %s50_s27, 16, %s7676_s29, [#allocation4]  }
   0xc   :  { %7654 = dma.done.wait [#allocation4], 16  }
   0xd   :  { %7655 = vsyncadd [#allocation4], 4294967280 }
   0xe   :  { %56 = sfence }
   0xf   :  { %v82_v0 = vld [vmem:[%s9960_s1] sm:$0xff]  ;;  %vm114_vm0 = vcmask 261120   ;;  %v83_v1 = vld [vmem:[%s9960_s1 + $0x8] sm:$0xff]  ;;  %v61_v6 = vld [vmem:[%s9959_s0 + $0x18] sm:$0xff]  ;;  %vm571_vm1 = vcmask 64512   ;;  %vm738_vm2 = vcmask 1043456  }
  0x10   :  { %v58_v2 = vld [vmem:[%s9959_s0] sm:$0xff]  ;;  %v7767_v3 = vpack.c.bf16 %v82_v0, %v82_v0  ;;  %v7769_v4 = vpack.c.bf16 %v83_v1, %v83_v1  ;;  %v59_v5 = vld [vmem:[%s9959_s0 + $0x8] sm:$0xff]  ;;  %v84_v10 = vld [vmem:[%s9960_s1 + $0x10] sm:$0xff]  ;;  %vm9976_vm3 = vmmov 0   ;;  %vm1621_vm4 = vcmask 195584  }
  0x11   :  { %v62_v7 = vld [vmem:[%s9959_s0 + $0x20] sm:$0xff]  ;;  %v7780_v8 = vpack.c.bf16 %v59_v5, %v58_v2  ;;  %v85_v13 = vld [vmem:[%s9960_s1 + $0x18] sm:$0xff]  ;;  %v60_v14 = vld [vmem:[%s9959_s0 + $0x10] sm:$0xff]  ;;  %v7804_v16 = vpack.c.bf16 %v84_v10, %v84_v10  ;;  %vm2278_vm5 = vcmask 326656   ;;  %vm4315_vm6 = vcmask 785415  }
  0x12   :  { %v7782_v9 = vpack.c.bf16 %v62_v7, %v61_v6  ;;  %7215 = vmatprep.subr.msk.bf16.mxu0 %vm114_vm0, %v7767_v3  ;;  %7216 = vmatprep.subr.msk.bf16.mxu1 %vm114_vm0, %v7769_v4  ;;  %v122_v11 = vsel %vm114_vm0, %v7767_v3, 0  ;;  %v179_v12 = vsel %vm114_vm0, %v7769_v4, 0  ;;  %v63_v15 = vld [vmem:[%s9959_s0 + $0x28] sm:$0xff]  ;;  %v7806_v17 = vpack.c.bf16 %v85_v13, %v85_v13  ;;  %v64_v18 = vld [vmem:[%s9959_s0 + $0x30] sm:$0xff]  ;;  %v65_v19 = vld [vmem:[%s9959_s0 + $0x38] sm:$0xff] }
  0x13   :  { %6584 = vmatpush3.bf16.xpose.msra.mxu0 %v122_v11  ;;  %6590 = vmatpush3.bf16.xpose.msra.mxu1 %v179_v12  ;;  %v67_v20 = vld [vmem:[%s9959_s0 + $0x48] sm:$0xff]  ;;  %v68_v21 = vld [vmem:[%s9959_s0 + $0x50] sm:$0xff]  ;;  %v7828_v22 = vpack.c.bf16 %v60_v14, %v60_v14  ;;  %v7830_v23 = vpack.c.bf16 %v63_v15, %v63_v15  ;;  %v86_v24 = vld [vmem:[%s9960_s1 + $0x20] sm:$0xff]  ;;  %v236_v26 = vsel %vm114_vm0, %v7804_v16, 0  ;;  %v7842_v28 = vpack.c.bf16 %v65_v19, %v64_v18 }
  0x14   :  { %6585 = vmatprep.mubr.msk.bf16.mxu0 %vm114_vm0, %v7780_v8  ;;  %6591 = vmatprep.mubr.msk.bf16.mxu1 %vm114_vm0, %v7782_v9  ;;  %v87_v25 = vld [vmem:[%s9960_s1 + $0x28] sm:$0xff]  ;;  %v293_v27 = vsel %vm114_vm0, %v7806_v17, 0  ;;  %v7844_v29 = vpack.c.bf16 %v68_v21, %v67_v20  ;;  %v7846_v30 = vpack.c.bf16 %v86_v24, %v86_v24  ;;  %v66_v32 = vld [vmem:[%s9959_s0 + $0x40] sm:$0xff]  ;;  %v69_v33 = vld [vmem:[%s9959_s0 + $0x58] sm:$0xff]  ;;  %vm3971_vm7 = vcmask 1041409  }
  0x15   :  { %7217 = vmatprep.subr.msk.bf16.mxu0 %vm114_vm0, %v7804_v16  ;;  %7218 = vmatprep.subr.msk.bf16.mxu1 %vm114_vm0, %v7806_v17  ;;  %v7848_v31 = vpack.c.bf16 %v87_v25, %v87_v25  ;;  %v70_v34 = vld [vmem:[%s9959_s0 + $0x60] sm:$0xff]  ;;  %v71_v35 = vld [vmem:[%s9959_s0 + $0x68] sm:$0xff]  ;;  %v73_v36 = vld [vmem:[%s9959_s0 + $0x78] sm:$0xff]  ;;  %v7880_v38 = vpack.c.bf16 %v66_v32, %v66_v32  ;;  %v7882_v39 = vpack.c.bf16 %v69_v33, %v69_v33  ;;  %vm3974_vm8 = vcmask 1042434  }
  0x16   :  { %v74_v37 = vld [vmem:[%s9959_s0 + $0x80] sm:$0xff]  ;;  %v88_v40 = vld [vmem:[%s9960_s1 + $0x30] sm:$0xff]  ;;  %v89_v41 = vld [vmem:[%s9960_s1 + $0x38] sm:$0xff]  ;;  %v350_v42 = vsel %vm114_vm0, %v7846_v30, 0  ;;  %v7894_v44 = vpack.c.bf16 %v71_v35, %v70_v34  ;;  %vm3977_vm9 = vcmask 1043459   ;;  %vm3980_vm10 = vcmask 1044484  }
  0x17   :  { %v407_v43 = vsel %vm114_vm0, %v7848_v31, 0  ;;  %v7896_v45 = vpack.c.bf16 %v74_v37, %v73_v36  ;;  %v7898_v46 = vpack.c.bf16 %v88_v40, %v88_v40  ;;  %v7900_v47 = vpack.c.bf16 %v89_v41, %v89_v41  ;;  %v72_v48 = vld [vmem:[%s9959_s0 + $0x70] sm:$0xff]  ;;  %v75_v49 = vld [vmem:[%s9959_s0 + $0x88] sm:$0xff]  ;;  %v77_v51 = vld [vmem:[%s9959_s0 + $0x98] sm:$0xff] }
  0x18   :  { %v76_v50 = vld [vmem:[%s9959_s0 + $0x90] sm:$0xff]  ;;  %v79_v52 = vld [vmem:[%s9959_s0 + $0xa8] sm:$0xff]  ;;  %v7932_v54 = vpack.c.bf16 %v72_v48, %v72_v48  ;;  %v7934_v55 = vpack.c.bf16 %v75_v49, %v75_v49  ;;  %v78_v60 = vld [vmem:[%s9959_s0 + $0xa0] sm:$0xff]  ;;  %vm3983_vm11 = vcmask 1045509   ;;  %vm3986_vm12 = vcmask 1046534  }
  0x19   :  { %v80_v53 = vld [vmem:[%s9959_s0 + $0xb0] sm:$0xff]  ;;  %v464_v56 = vsel %vm114_vm0, %v7898_v46, 0  ;;  %v521_v57 = vsel %vm114_vm0, %v7900_v47, 0  ;;  %v7940_v58 = vpack.c.bf16 %v77_v51, %v76_v50  ;;  %v81_v61 = vld [vmem:[%s9959_s0 + $0xb8] sm:$0xff]  ;;  %v7958_v62 = vpack.c.bf16 %v78_v60, %v78_v60 }
  0x1a   :  { %6586 = vmatmul.mubr.msk.bf16.vlgmr.msra.gmra.mrb[0].mxu0 %vm114_vm0, %v7828_v22  ;;  %6592 = vmatmul.mubr.msk.bf16.vlgmr.msra.gmra.mrb[0].mxu1 %vm114_vm0, %v7830_v23  ;;  %v7942_v59 = vpack.c.bf16 %v80_v53, %v79_v52  ;;  %v7960_v63 = vpack.c.bf16 %v81_v61, %v81_v61  ;;  %vm3989_vm13 = vcmask 1047559   ;;  %vm4195_vm14 = vcmask 785412  }
  0x1b   :  { %6596 = vmatpush3.bf16.xpose.msra.mxu0 %v236_v26  ;;  %6602 = vmatpush3.bf16.xpose.msra.mxu1 %v293_v27  ;;  %vm4235_vm15 = vcmask 785413  }
  0x1c   :  { %6597 = vmatprep.mubr.msk.bf16.mxu0 %vm114_vm0, %v7842_v28  ;;  %6603 = vmatprep.mubr.msk.bf16.mxu1 %vm114_vm0, %v7844_v29 }
  0x1d   :  { %7219 = vmatprep.subr.msk.bf16.mxu0 %vm114_vm0, %v7846_v30  ;;  %7220 = vmatprep.subr.msk.bf16.mxu1 %vm114_vm0, %v7848_v31 }
  0x22   :  { %6598 = vmatmul.mubr.msk.bf16.vlgmr.msra.gmra.mrb[4].mxu0 %vm114_vm0, %v7880_v38  ;;  %6604 = vmatmul.mubr.msk.bf16.vlgmr.msra.gmra.mrb[4].mxu1 %vm114_vm0, %v7882_v39 }
  0x23   :  { %6608 = vmatpush3.bf16.xpose.msra.mxu0 %v350_v42  ;;  %6614 = vmatpush3.bf16.xpose.msra.mxu1 %v407_v43 }
  0x24   :  { %6609 = vmatprep.mubr.msk.bf16.mxu0 %vm114_vm0, %v7894_v44  ;;  %6615 = vmatprep.mubr.msk.bf16.mxu1 %vm114_vm0, %v7896_v45 }
  0x25   :  { %7221 = vmatprep.subr.msk.bf16.mxu0 %vm114_vm0, %v7898_v46  ;;  %7222 = vmatprep.subr.msk.bf16.mxu1 %vm114_vm0, %v7900_v47 }
  0x2a   :  { %6610 = vmatmul.mubr.msk.bf16.vlgmr.msra.gmra.mrb[8].mxu0 %vm114_vm0, %v7932_v54  ;;  %6616 = vmatmul.mubr.msk.bf16.vlgmr.msra.gmra.mrb[8].mxu1 %vm114_vm0, %v7934_v55 }
  0x2b   :  { %6620 = vmatpush3.bf16.xpose.msra.mxu0 %v464_v56  ;;  %6626 = vmatpush3.bf16.xpose.msra.mxu1 %v521_v57 }
  0x2c   :  { %6621 = vmatprep.mubr.msk.bf16.mxu0 %vm114_vm0, %v7940_v58  ;;  %6627 = vmatprep.mubr.msk.bf16.mxu1 %vm114_vm0, %v7942_v59 }
  0x2d   :  { %7223 = vmatprep.subr.msk.bf16.mxu0 %vm738_vm2, %v7767_v3  ;;  %7224 = vmatprep.subr.msk.bf16.mxu1 %vm738_vm2, %v7769_v4 }
  0x32   :  { %6622 = vmatmul.mubr.msk.bf16.vlgmr.msra.gmra.mrb[12].mxu0 %vm114_vm0, %v7958_v62  ;;  %6628 = vmatmul.mubr.msk.bf16.vlgmr.msra.gmra.mrb[12].mxu1 %vm114_vm0, %v7960_v63 }
  0xed   :  { %v7966_v0 = vpop.f32.mrb[0].mxu0  ;;  %v7968_v1 = vpop.f32.mrb[0].mxu1 }
  0xee   :  { %v7970_v2 = vpop.f32.mrb[1].mxu0  ;;  %v7972_v5 = vpop.f32.mrb[1].mxu1  ;;  %v587_v6 = vsel %vm571_vm1, %v7968_v1, -inf  ;;  %v578_v7 = vsel %vm571_vm1, %v7966_v0, -inf }
  0xef   :  { %588 = vmax.xlane.f32.xlu1 %v587_v6  ;;  %v6594_v10 = vpop.f32.mrb[2].mxu1  ;;  %579 = vmax.xlane.f32.xlu0 %v578_v7  ;;  %v6588_v11 = vpop.f32.mrb[2].mxu0  ;;  %v581_v14 = vsel %vm571_vm1, %v7972_v5, -inf  ;;  %v572_v15 = vsel %vm571_vm1, %v7970_v2, -inf }
  0xf0   :  { %v7978_v12 = vpop.f32.mrb[3].mxu0  ;;  %v7980_v13 = vpop.f32.mrb[3].mxu1 }
  0xf1   :  { %v584_v20 = vsel %vm571_vm1, %v7980_v13, -inf  ;;  %v575_v24 = vsel %vm571_vm1, %v7978_v12, -inf }
  0xf3   :  { %582 = vmax.xlane.f32.xlu1 %v581_v14  ;;  %573 = vmax.xlane.f32.xlu0 %v572_v15 }
  0xf5   :  { %v7986_v18 = vpop.f32.mrb[4].mxu0  ;;  %v7988_v19 = vpop.f32.mrb[4].mxu1 }
  0xf6   :  { %v7992_v21 = vpop.f32.mrb[5].mxu1  ;;  %v7996_v25 = vpop.f32.mrb[5].mxu0  ;;  %v605_v34 = vsel %vm571_vm1, %v7988_v19, -inf  ;;  %v596_v35 = vsel %vm571_vm1, %v7986_v18, -inf }
  0xf7   :  { %585 = vmax.xlane.f32.xlu1 %v584_v20  ;;  %576 = vmax.xlane.f32.xlu0 %v575_v24  ;;  %v6600_v26 = vpop.f32.mrb[6].mxu0  ;;  %v6606_v27 = vpop.f32.mrb[6].mxu1  ;;  %v590_v40 = vsel %vm571_vm1, %v7996_v25, -inf  ;;  %v599_v52 = vsel %vm571_vm1, %v7992_v21, -inf }
  0xf8   :  { %v7998_v32 = vpop.f32.mrb[7].mxu0  ;;  %v8000_v33 = vpop.f32.mrb[7].mxu1 }
  0xf9   :  { %v593_v41 = vsel %vm571_vm1, %v7998_v32, -inf  ;;  %v602_v53 = vsel %vm571_vm1, %v8000_v33, -inf }
  0xfb   :  { %606 = vmax.xlane.f32.xlu1 %v605_v34  ;;  %597 = vmax.xlane.f32.xlu0 %v596_v35 }
  0xfd   :  { %v8006_v36 = vpop.f32.mrb[8].mxu0  ;;  %v8008_v37 = vpop.f32.mrb[8].mxu1 }
  0xfe   :  { %v8014_v42 = vpop.f32.mrb[9].mxu1  ;;  %v8016_v43 = vpop.f32.mrb[9].mxu0  ;;  %v623_v56 = vsel %vm571_vm1, %v8008_v37, -inf  ;;  %v614_v57 = vsel %vm571_vm1, %v8006_v36, -inf }
  0xff   :  { %591 = vmax.xlane.f32.xlu0 %v590_v40  ;;  %594 = vmax.xlane.f32.xlu1 %v593_v41  ;;  %v6612_v48 = vpop.f32.mrb[10].mxu0  ;;  %v6618_v49 = vpop.f32.mrb[10].mxu1  ;;  %v608_v20 = vsel %vm571_vm1, %v8016_v43, -inf  ;;  %v617_v26 = vsel %vm571_vm1, %v8014_v42, -inf  ;;  %v739_v40 = vsel %vm738_vm2, %v7767_v3, 0  ;;  %v795_v41 = vsel %vm738_vm2, %v7769_v4, 0 }
 0x100   :  { %v8018_v50 = vpop.f32.mrb[11].mxu0  ;;  %v8020_v51 = vpop.f32.mrb[11].mxu1  ;;  %6632 = vmatpush3.bf16.msra.mxu0 %v739_v40  ;;  %6638 = vmatpush3.bf16.msra.mxu1 %v795_v41 }
 0x101   :  { %v611_v24 = vsel %vm571_vm1, %v8018_v50, -inf  ;;  %v620_v27 = vsel %vm571_vm1, %v8020_v51, -inf  ;;  %7225 = vmatprep.subr.msk.bf16.mxu0 %vm738_vm2, %v7804_v16  ;;  %7226 = vmatprep.subr.msk.bf16.mxu1 %vm738_vm2, %v7806_v17 }
 0x103   :  { %600 = vmax.xlane.f32.xlu0 %v599_v52  ;;  %603 = vmax.xlane.f32.xlu1 %v602_v53 }
 0x105   :  { %v8030_v60 = vpop.f32.mrb[12].mxu0  ;;  %v8032_v61 = vpop.f32.mrb[12].mxu1 }
 0x106   :  { %v8034_v6 = vpop.f32.mrb[13].mxu0  ;;  %v8036_v7 = vpop.f32.mrb[13].mxu1  ;;  %v632_v52 = vsel %vm571_vm1, %v8030_v60, -inf  ;;  %v641_v53 = vsel %vm571_vm1, %v8032_v61, -inf }
 0x107   :  { %624 = vmax.xlane.f32.xlu1 %v623_v56  ;;  %615 = vmax.xlane.f32.xlu0 %v614_v57  ;;  %v6624_v10 = vpop.f32.mrb[14].mxu0  ;;  %v6630_v11 = vpop.f32.mrb[14].mxu1  ;;  %v626_v34 = vsel %vm571_vm1, %v8034_v6, -inf  ;;  %v635_v48 = vsel %vm571_vm1, %v8036_v7, -inf }
 0x108   :  { %v8038_v14 = vpop.f32.mrb[15].mxu0  ;;  %v8040_v15 = vpop.f32.mrb[15].mxu1 }
 0x109   :  { %v629_v35 = vsel %vm571_vm1, %v8038_v14, -inf  ;;  %v638_v49 = vsel %vm571_vm1, %v8040_v15, -inf }
 0x10b   :  { %609 = vmax.xlane.f32.xlu0 %v608_v20  ;;  %612 = vmax.xlane.f32.xlu1 %v611_v24 }
 0x10f   :  { %618 = vmax.xlane.f32.xlu0 %v617_v26  ;;  %621 = vmax.xlane.f32.xlu1 %v620_v27 }
 0x113   :  { %627 = vmax.xlane.f32.xlu0 %v626_v34  ;;  %630 = vmax.xlane.f32.xlu1 %v629_v35 }
 0x117   :  { %636 = vmax.xlane.f32.xlu0 %v635_v48  ;;  %639 = vmax.xlane.f32.xlu1 %v638_v49 }
 0x11b   :  { %633 = vmax.xlane.f32.xlu0 %v632_v52  ;;  %642 = vmax.xlane.f32.xlu1 %v641_v53 }
 0x17c   :  { %v589_v56 = vpop.xlane.xlu1 %588  ;;  %v580_v57 = vpop.xlane.xlu0 %579 }
 0x17d   :  { %v649_v10 = vsub.f32 %v7968_v1, %v589_v56  ;;  %v646_v11 = vsub.f32 %v7966_v0, %v580_v57 }
 0x17f   :  { %v678_v26 = vmul.f32 1.442695, %v649_v10  ;;  %v672_v35 = vmul.f32 1.442695, %v646_v11 }
 0x180   :  { %v583_v20 = vpop.xlane.xlu1 %582  ;;  %v574_v24 = vpop.xlane.xlu0 %573 }
 0x181   :  { %v647_v27 = vsub.f32 %v7972_v5, %v583_v20  ;;  %v644_v34 = vsub.f32 %v7970_v2, %v574_v24  ;;  %7282 = vpow2.f32 %v678_v26 }
 0x182   :  { %7284 = vpow2.f32 %v672_v35 }
 0x183   :  { %v674_v40 = vmul.f32 1.442695, %v647_v27  ;;  %v668_v41 = vmul.f32 1.442695, %v644_v34 }
 0x184   :  { %v586_v48 = vpop.xlane.xlu1 %585  ;;  %v577_v49 = vpop.xlane.xlu0 %576 }
 0x185   :  { %v648_v52 = vsub.f32 %v7980_v13, %v586_v48  ;;  %v645_v53 = vsub.f32 %v7978_v12, %v577_v49  ;;  %7286 = vpow2.f32 %v674_v40 }
 0x186   :  { %7288 = vpow2.f32 %v668_v41 }
 0x187   :  { %v676_v0 = vmul.f32 1.442695, %v648_v52  ;;  %v670_v1 = vmul.f32 1.442695, %v645_v53 }
 0x188   :  { %v607_v56 = vpop.xlane.xlu1 %606  ;;  %v598_v57 = vpop.xlane.xlu0 %597 }
 0x189   :  { %7290 = vpow2.f32 %v676_v0  ;;  %v652_v2 = vsub.f32 %v7986_v18, %v598_v57  ;;  %v655_v5 = vsub.f32 %v7988_v19, %v607_v56 }
 0x18a   :  { %7292 = vpow2.f32 %v670_v1 }
 0x18b   :  { %v684_v10 = vmul.f32 1.442695, %v652_v2  ;;  %v8084_v24 = vpop.eup %7282  ;;  %v690_v35 = vmul.f32 1.442695, %v655_v5 }
 0x18c   :  { %v592_v11 = vpop.xlane.xlu0 %591  ;;  %v595_v20 = vpop.xlane.xlu1 %594  ;;  %v719_v2 = vpack.c.bf16 %v8084_v24, %v8084_v24 }
 0x18d   :  { %v650_v13 = vsub.f32 %v7996_v25, %v592_v11  ;;  %v651_v12 = vsub.f32 %v7998_v32, %v595_v20  ;;  %v8086_v34 = vpop.eup %7284  ;;  %7294 = vpow2.f32 %v684_v10  ;;  %v851_v10 = vsel %vm738_vm2, %v7804_v16, 0 }
 0x18e   :  { %v717_v5 = vpack.c.bf16 %v8086_v34, %v8086_v34 }
 0x18f   :  { %v680_v26 = vmul.f32 1.442695, %v650_v13  ;;  %v682_v27 = vmul.f32 1.442695, %v651_v12  ;;  %v8088_v41 = vpop.eup %7286 }
 0x190   :  { %v601_v40 = vpop.xlane.xlu0 %600  ;;  %v604_v18 = vpop.xlane.xlu1 %603 }
 0x191   :  { %7296 = vpow2.f32 %v680_v26  ;;  %v653_v19 = vsub.f32 %v7992_v21, %v601_v40  ;;  %v654_v48 = vsub.f32 %v8000_v33, %v604_v18  ;;  %v8092_v25 = vpop.eup %7288  ;;  %v907_v21 = vsel %vm738_vm2, %v7806_v17, 0 }
 0x192   :  { %7298 = vpow2.f32 %v682_v27 }
 0x193   :  { %v8094_v32 = vpop.eup %7290  ;;  %v686_v49 = vmul.f32 1.442695, %v653_v19  ;;  %v688_v52 = vmul.f32 1.442695, %v654_v48  ;;  %7300 = vpow2.f32 %v690_v35 }
 0x194   :  { %v8096_v53 = vpop.eup %7292  ;;  %v625_v0 = vpop.xlane.xlu1 %624  ;;  %v718_v56 = vpack.c.bf16 %v8094_v32, %v8088_v41 }
 0x195   :  { %v616_v1 = vpop.xlane.xlu0 %615  ;;  %7302 = vpow2.f32 %v686_v49  ;;  %v716_v57 = vpack.c.bf16 %v8096_v53, %v8092_v25 }
 0x196   :  { %v658_v33 = vsub.f32 %v8006_v36, %v616_v1  ;;  %7304 = vpow2.f32 %v688_v52  ;;  %6639 = vmatprep.mubr.msk.bf16.mxu1 %vm571_vm1, %v718_v56  ;;  %v661_v36 = vsub.f32 %v8008_v37, %v625_v0  ;;  %v963_v56 = vsel %vm738_vm2, %v7846_v30, 0 }
 0x197   :  { %6633 = vmatprep.mubr.msk.bf16.mxu0 %vm571_vm1, %v716_v57  ;;  %6640 = vmatmul.mubr.msk.bf16.vlgmr.msra.gmra.mrb[16].mxu1 %vm571_vm1, %v719_v2  ;;  %v8120_v27 = vpop.eup %7294 }
 0x198   :  { %v696_v11 = vmul.f32 1.442695, %v658_v33  ;;  %6634 = vmatmul.mubr.msk.bf16.vlgmr.msra.gmra.mrb[16].mxu0 %vm571_vm1, %v717_v5  ;;  %v613_v13 = vpop.xlane.xlu1 %612  ;;  %6650 = vmatpush3.bf16.msra.mxu1 %v907_v21  ;;  %v702_v19 = vmul.f32 1.442695, %v661_v36  ;;  %v721_v1 = vpack.c.bf16 %v8120_v27, %v8120_v27 }
 0x199   :  { %v610_v20 = vpop.xlane.xlu0 %609  ;;  %v657_v26 = vsub.f32 %v8018_v50, %v613_v13  ;;  %6644 = vmatpush3.bf16.msra.mxu0 %v851_v10  ;;  %7228 = vmatprep.subr.msk.bf16.mxu1 %vm738_vm2, %v7848_v31 }
 0x19a   :  { %v656_v12 = vsub.f32 %v8016_v43, %v610_v20  ;;  %7227 = vmatprep.subr.msk.bf16.mxu0 %vm738_vm2, %v7846_v30  ;;  %7306 = vpow2.f32 %v696_v11  ;;  %v1019_v20 = vsel %vm738_vm2, %v7848_v31, 0 }
 0x19b   :  { %v8124_v37 = vpop.eup %7296  ;;  %v694_v40 = vmul.f32 1.442695, %v657_v26 }
 0x19c   :  { %v692_v35 = vmul.f32 1.442695, %v656_v12  ;;  %v8126_v18 = vpop.eup %7298  ;;  %v622_v48 = vpop.xlane.xlu1 %621 }
 0x19d   :  { %v619_v43 = vpop.xlane.xlu0 %618  ;;  %v660_v49 = vsub.f32 %v8020_v51, %v622_v48  ;;  %v720_v52 = vpack.c.bf16 %v8126_v18, %v8124_v37  ;;  %v8132_v0 = vpop.eup %7300 }
 0x19e   :  { %7308 = vpow2.f32 %v692_v35  ;;  %v659_v50 = vsub.f32 %v8014_v42, %v619_v43  ;;  %v723_v11 = vpack.c.bf16 %v8132_v0, %v8132_v0 }
 0x19f   :  { %7310 = vpow2.f32 %v694_v40  ;;  %v8138_v21 = vpop.eup %7302  ;;  %v700_v57 = vmul.f32 1.442695, %v660_v49  ;;  %6645 = vmatprep.mubr.msk.bf16.mxu0 %vm571_vm1, %v720_v52 }
 0x1a0   :  { %v698_v33 = vmul.f32 1.442695, %v659_v50  ;;  %v8141_v42 = vpop.eup %7304  ;;  %7312 = vpow2.f32 %v702_v19  ;;  %6646 = vmatmul.mubr.msk.bf16.vlgmr.msra.gmra.mrb[20].mxu0 %vm571_vm1, %v721_v1  ;;  %v631_v2 = vpop.xlane.xlu1 %630 }
 0x1a1   :  { %v628_v51 = vpop.xlane.xlu0 %627  ;;  %v663_v10 = vsub.f32 %v8038_v14, %v631_v2  ;;  %v722_v36 = vpack.c.bf16 %v8141_v42, %v8138_v21  ;;  %6656 = vmatpush3.bf16.msra.mxu0 %v963_v56 }
 0x1a2   :  { %7314 = vpow2.f32 %v698_v33  ;;  %v662_v5 = vsub.f32 %v8034_v6, %v628_v51  ;;  %7229 = vmatprep.subr.msk.bf16.mxu0 %vm738_vm2, %v7898_v46 }
 0x1a3   :  { %7316 = vpow2.f32 %v700_v57  ;;  %v706_v12 = vmul.f32 1.442695, %v663_v10  ;;  %6651 = vmatprep.mubr.msk.bf16.mxu1 %vm571_vm1, %v722_v36  ;;  %v1075_v57 = vsel %vm738_vm2, %v7898_v46, 0  ;;  %v1131_v36 = vsel %vm738_vm2, %v7900_v47, 0 }
 0x1a4   :  { %v704_v13 = vmul.f32 1.442695, %v662_v5  ;;  %6652 = vmatmul.mubr.msk.bf16.vlgmr.msra.gmra.mrb[20].mxu1 %vm571_vm1, %v723_v11  ;;  %v640_v14 = vpop.xlane.xlu1 %639  ;;  %v8158_v40 = vpop.eup %7306  ;;  %v9973_v11 = vmov 0.0  }
 0x1a5   :  { %v637_v6 = vpop.xlane.xlu0 %636  ;;  %v666_v35 = vsub.f32 %v8040_v15, %v640_v14  ;;  %6662 = vmatpush3.bf16.msra.mxu1 %v1019_v20  ;;  %v725_v33 = vpack.c.bf16 %v8158_v40, %v8158_v40 }
 0x1a6   :  { %7318 = vpow2.f32 %v704_v13  ;;  %v665_v26 = vsub.f32 %v8036_v7, %v637_v6  ;;  %7230 = vmatprep.subr.msk.bf16.mxu1 %vm738_vm2, %v7900_v47 }
 0x1a7   :  { %7320 = vpow2.f32 %v706_v12  ;;  %v712_v48 = vmul.f32 1.442695, %v666_v35 }
 0x1a8   :  { %v8162_v19 = vpop.eup %7308  ;;  %v710_v43 = vmul.f32 1.442695, %v665_v26  ;;  %v643_v52 = vpop.xlane.xlu1 %642 }
 0x1a9   :  { %v8164_v50 = vpop.eup %7310  ;;  %v634_v49 = vpop.xlane.xlu0 %633  ;;  %v667_v15 = vsub.f32 %v8032_v61, %v643_v52 }
 0x1aa   :  { %7322 = vpow2.f32 %v710_v43  ;;  %v664_v7 = vsub.f32 %v8030_v60, %v634_v49  ;;  %v724_v1 = vpack.c.bf16 %v8164_v50, %v8162_v19  ;;  %v8170_v56 = vpop.eup %7312  ;;  %v116_v49 = vsel %vm114_vm0, %v7780_v8, 0 }
 0x1ab   :  { %7324 = vpow2.f32 %v712_v48  ;;  %v714_v5 = vmul.f32 1.442695, %v667_v15  ;;  %v727_v10 = vpack.c.bf16 %v8170_v56, %v8170_v56  ;;  %v119_v15 = vsel %vm114_vm0, %v7828_v22, 0 }
 0x1ac   :  { %v8176_v51 = vpop.eup %7314  ;;  %v708_v2 = vmul.f32 1.442695, %v664_v7  ;;  %6657 = vmatprep.mubr.msk.bf16.mxu0 %vm571_vm1, %v724_v1  ;;  %v173_v7 = vsel %vm114_vm0, %v7782_v9, 0  ;;  %v176_v1 = vsel %vm114_vm0, %v7830_v23, 0 }
 0x1ad   :  { %v8179_v60 = vpop.eup %7316  ;;  %6658 = vmatmul.mubr.msk.bf16.vlgmr.msra.gmra.mrb[24].mxu0 %vm571_vm1, %v725_v33  ;;  %v230_v33 = vsel %vm114_vm0, %v7842_v28, 0 }
 0x1ae   :  { %7326 = vpow2.f32 %v708_v2  ;;  %v726_v61 = vpack.c.bf16 %v8179_v60, %v8176_v51  ;;  %6668 = vmatpush3.bf16.msra.mxu0 %v1075_v57  ;;  %v287_v57 = vsel %vm114_vm0, %v7844_v29, 0  ;;  %v233_v2 = vsel %vm114_vm0, %v7880_v38, 0 }
 0x1af   :  { %7328 = vpow2.f32 %v714_v5  ;;  %6679 = vmatprep.subr.bf16.mxu0 %v9973_v11  ;;  %v401_v5 = vsel %vm114_vm0, %v7896_v45, 0 }
 0x1b0   :  { %v8189_v20 = vpop.eup %7318  ;;  %6663 = vmatprep.mubr.msk.bf16.mxu1 %vm571_vm1, %v726_v61  ;;  %v347_v61 = vsel %vm114_vm0, %v7932_v54, 0 }
 0x1b1   :  { %v8192_v13 = vpop.eup %7320  ;;  %6664 = vmatmul.mubr.msk.bf16.vlgmr.msra.gmra.mrb[24].mxu1 %vm571_vm1, %v727_v10  ;;  %v515_v10 = vsel %vm114_vm0, %v7942_v59, 0 }
 0x1b2   :  { %6674 = vmatpush3.bf16.msra.mxu1 %v1131_v36  ;;  %v728_v12 = vpack.c.bf16 %v8192_v13, %v8189_v20  ;;  %v461_v36 = vsel %vm114_vm0, %v7958_v62, 0 }
 0x1b3   :  { %6687 = vmatprep.subr.bf16.mxu1 %v9973_v11 }
 0x1b4   :  { %v8198_v6 = vpop.eup %7322  ;;  %6669 = vmatprep.mubr.msk.bf16.mxu0 %vm571_vm1, %v728_v12 }
 0x1b5   :  { %v8201_v14 = vpop.eup %7324 }
 0x1b6   :  { %v730_v26 = vpack.c.bf16 %v8201_v14, %v8198_v6 }
 0x1b8   :  { %v8205_v35 = vpop.eup %7326  ;;  %6675 = vmatprep.mubr.msk.bf16.mxu1 %vm571_vm1, %v730_v26 }
 0x1b9   :  { %v8208_v43 = vpop.eup %7328  ;;  %v729_v48 = vpack.c.bf16 %v8205_v35, %v8205_v35 }
 0x1ba   :  { %v731_v52 = vpack.c.bf16 %v8208_v43, %v8208_v43 }
 0x1bb   :  { %6670 = vmatmul.mubr.msk.bf16.vlgmr.msra.gmra.mrb[28].mxu0 %vm571_vm1, %v729_v48 }
 0x1bc   :  { %6676 = vmatmul.mubr.msk.bf16.vlgmr.msra.gmra.mrb[28].mxu1 %vm571_vm1, %v731_v52  ;;  %6680 = vmatpush3.bf16.xpose.msra.mxu0 %v116_v49 }
 0x1bd   :  { %6688 = vmatpush3.bf16.xpose.msra.mxu1 %v173_v7  ;;  %6681 = vmatprep.subr.bf16.mxu0 %v9973_v11 }
 0x1be   :  { %6689 = vmatprep.subr.bf16.mxu1 %v9973_v11  ;;  %6683 = vmatprep.mubr.msk.bf16.mxu0 %vm9976_vm3, %v9973_v11 }
 0x1bf   :  { %6691 = vmatprep.mubr.msk.bf16.mxu1 %vm9976_vm3, %v9973_v11 }
 0x1c4   :  { %6682 = vmatpush3.bf16.xpose.msra.mxu0 %v119_v15 }
 0x1c5   :  { %6690 = vmatpush3.bf16.xpose.msra.mxu1 %v176_v1  ;;  %6695 = vmatprep.subr.bf16.mxu0 %v9973_v11 }
 0x1c6   :  { %6703 = vmatprep.subr.bf16.mxu1 %v9973_v11 }
 0x1cb   :  { %6684 = vmatmul.mubr.msk.bf16.vlgmr.msra.gmra.mrb[32].mxu0 %vm114_vm0, %v7767_v3  ;;  %v290_v3 = vsel %vm114_vm0, %v7882_v39, 0 }
 0x1cc   :  { %6692 = vmatmul.mubr.msk.bf16.vlgmr.msra.gmra.mrb[32].mxu1 %vm114_vm0, %v7769_v4  ;;  %6696 = vmatpush3.bf16.xpose.msra.mxu0 %v230_v33  ;;  %v344_v4 = vsel %vm114_vm0, %v7894_v44, 0 }
 0x1cd   :  { %6704 = vmatpush3.bf16.xpose.msra.mxu1 %v287_v57  ;;  %6697 = vmatprep.subr.bf16.mxu0 %v9973_v11 }
 0x1ce   :  { %6705 = vmatprep.subr.bf16.mxu1 %v9973_v11  ;;  %6699 = vmatprep.mubr.msk.bf16.mxu0 %vm9976_vm3, %v9973_v11 }
 0x1cf   :  { %6707 = vmatprep.mubr.msk.bf16.mxu1 %vm9976_vm3, %v9973_v11 }
 0x1d4   :  { %6698 = vmatpush3.bf16.xpose.msra.mxu0 %v233_v2 }
 0x1d5   :  { %6706 = vmatpush3.bf16.xpose.msra.mxu1 %v290_v3  ;;  %6711 = vmatprep.subr.bf16.mxu0 %v9973_v11 }
 0x1d6   :  { %6719 = vmatprep.subr.bf16.mxu1 %v9973_v11 }
 0x1db   :  { %6700 = vmatmul.mubr.msk.bf16.vlgmr.msra.gmra.mrb[36].mxu0 %vm114_vm0, %v7804_v16  ;;  %v404_v16 = vsel %vm114_vm0, %v7934_v55, 0 }
 0x1dc   :  { %6708 = vmatmul.mubr.msk.bf16.vlgmr.msra.gmra.mrb[36].mxu1 %vm114_vm0, %v7806_v17  ;;  %6712 = vmatpush3.bf16.xpose.msra.mxu0 %v344_v4  ;;  %v458_v17 = vsel %vm114_vm0, %v7940_v58, 0 }
 0x1dd   :  { %6720 = vmatpush3.bf16.xpose.msra.mxu1 %v401_v5  ;;  %6713 = vmatprep.subr.bf16.mxu0 %v9973_v11 }
 0x1de   :  { %6721 = vmatprep.subr.bf16.mxu1 %v9973_v11  ;;  %6715 = vmatprep.mubr.msk.bf16.mxu0 %vm9976_vm3, %v9973_v11 }
 0x1df   :  { %6723 = vmatprep.mubr.msk.bf16.mxu1 %vm9976_vm3, %v9973_v11 }
 0x1e4   :  { %6714 = vmatpush3.bf16.xpose.msra.mxu0 %v347_v61 }
 0x1e5   :  { %6722 = vmatpush3.bf16.xpose.msra.mxu1 %v404_v16  ;;  %6727 = vmatprep.subr.bf16.mxu0 %v9973_v11 }
 0x1e6   :  { %6735 = vmatprep.subr.bf16.mxu1 %v9973_v11 }
 0x1eb   :  { %6716 = vmatmul.mubr.msk.bf16.vlgmr.msra.gmra.mrb[40].mxu0 %vm114_vm0, %v7846_v30  ;;  %v518_v30 = vsel %vm114_vm0, %v7960_v63, 0 }
 0x1ec   :  { %6724 = vmatmul.mubr.msk.bf16.vlgmr.msra.gmra.mrb[40].mxu1 %vm114_vm0, %v7848_v31  ;;  %6728 = vmatpush3.bf16.xpose.msra.mxu0 %v458_v17 }
 0x1ed   :  { %6736 = vmatpush3.bf16.xpose.msra.mxu1 %v515_v10  ;;  %6729 = vmatprep.subr.bf16.mxu0 %v9973_v11 }
 0x1ee   :  { %6737 = vmatprep.subr.bf16.mxu1 %v9973_v11  ;;  %6731 = vmatprep.mubr.msk.bf16.mxu0 %vm9976_vm3, %v9973_v11 }
 0x1ef   :  { %6739 = vmatprep.mubr.msk.bf16.mxu1 %vm9976_vm3, %v9973_v11 }
 0x1f4   :  { %6730 = vmatpush3.bf16.xpose.msra.mxu0 %v461_v36 }
 0x1f5   :  { %6738 = vmatpush3.bf16.xpose.msra.mxu1 %v518_v30  ;;  %6743 = vmatprep.subr.bf16.mxu0 %v9973_v11 }
 0x1f6   :  { %6751 = vmatprep.subr.bf16.mxu1 %v9973_v11 }
 0x1fb   :  { %6732 = vmatmul.mubr.msk.bf16.vlgmr.msra.gmra.mrb[44].mxu0 %vm114_vm0, %v7898_v46 }
 0x1fc   :  { %6740 = vmatmul.mubr.msk.bf16.vlgmr.msra.gmra.mrb[44].mxu1 %vm114_vm0, %v7900_v47  ;;  %6744 = vmatpush3.bf16.msra.mxu0 %v7780_v8 }
 0x1fd   :  { %6752 = vmatpush3.bf16.msra.mxu1 %v7782_v9  ;;  %6745 = vmatprep.subr.bf16.mxu0 %v9973_v11 }
 0x1fe   :  { %6753 = vmatprep.subr.bf16.mxu1 %v9973_v11  ;;  %6755 = vmatprep.mubr.msk.bf16.mxu1 %vm9976_vm3, %v9973_v11 }
 0x1ff   :  { %6747 = vmatprep.mubr.msk.bf16.mxu0 %vm9976_vm3, %v9973_v11 }
 0x26a   :  { %v8304_v31 = vpop.f32.mrb[16].mxu1 }
 0x26b   :  { %v8306_v46 = vpop.f32.mrb[16].mxu0  ;;  %v8308_v12 = vpop.f32.mrb[17].mxu1 }
 0x26c   :  { %v8310_v47 = vpop.f32.mrb[17].mxu0  ;;  %v6642_v8 = vpop.f32.mrb[18].mxu1 }
 0x26d   :  { %v6636_v9 = vpop.f32.mrb[18].mxu0  ;;  %v8312_v26 = vpop.f32.mrb[19].mxu1 }
 0x26e   :  { %v8314_v48 = vpop.f32.mrb[19].mxu0 }
 0x273   :  { %v8316_v49 = vpop.f32.mrb[20].mxu0 }
 0x274   :  { %9978 = vst [vmem:[#allocation6_spill] sm:$0xff] %v8316_v49  ;;  %v8318_v52 = vpop.f32.mrb[21].mxu0 }
 0x275   :  { %v6648_v7 = vpop.f32.mrb[22].mxu0 }
 0x276   :  { %v8320_v15 = vpop.f32.mrb[23].mxu0 }
 0x277   :  { %v8322_v1 = vpop.f32.mrb[20].mxu1 }
 0x278   :  { %9979 = vst [vmem:[#allocation7_spill] sm:$0xff] %v8322_v1  ;;  %v8324_v33 = vpop.f32.mrb[21].mxu1 }
 0x279   :  { %9980 = vst [vmem:[#allocation8_spill] sm:$0xff] %v8324_v33  ;;  %v6654_v57 = vpop.f32.mrb[22].mxu1 }
 0x27a   :  { %v8326_v2 = vpop.f32.mrb[23].mxu1 }
 0x27b   :  { %9981 = vst [vmem:[#allocation9_spill] sm:$0xff] %v8326_v2 }
 0x280   :  { %v8328_v3 = vpop.f32.mrb[24].mxu0 }
 0x281   :  { %9982 = vst [vmem:[#allocation10_spill] sm:$0xff] %v8328_v3  ;;  %v8330_v4 = vpop.f32.mrb[25].mxu0 }
 0x282   :  { %9983 = vst [vmem:[#allocation11_spill] sm:$0xff] %v8330_v4  ;;  %v6660_v5 = vpop.f32.mrb[26].mxu0 }
 0x283   :  { %v8332_v61 = vpop.f32.mrb[27].mxu0 }
 0x284   :  { %9984 = vst [vmem:[#allocation12_spill] sm:$0xff] %v8332_v61  ;;  %v8334_v16 = vpop.f32.mrb[24].mxu1 }
 0x285   :  { %9985 = vst [vmem:[#allocation13_spill] sm:$0xff] %v8334_v16  ;;  %v8336_v17 = vpop.f32.mrb[25].mxu1 }
 0x286   :  { %9986 = vst [vmem:[#allocation14_spill] sm:$0xff] %v8336_v17  ;;  %v6666_v10 = vpop.f32.mrb[26].mxu1 }
 0x287   :  { %v8338_v36 = vpop.f32.mrb[27].mxu1 }
 0x288   :  { %9987 = vst [vmem:[#allocation15_spill] sm:$0xff] %v8338_v36 }
 0x28e   :  { %v8340_v30 = vpop.f32.mrb[28].mxu0 }
 0x28f   :  { %9988 = vst [vmem:[#allocation16_spill] sm:$0xff] %v8340_v30  ;;  %v8342_v8 = vpop.f32.mrb[28].mxu1  ;;  %v8344_v9 = vpop.f32.mrb[29].mxu0 }
 0x290   :  { %9989 = vst [vmem:[#allocation17_spill] sm:$0xff] %v8342_v8  ;;  %9990 = vst [vmem:[#allocation18_spill] sm:$0xff] %v8344_v9  ;;  %v8346_v7 = vpop.f32.mrb[29].mxu1  ;;  %v6672_v57 = vpop.f32.mrb[30].mxu0 }
 0x291   :  { %9991 = vst [vmem:[#allocation19_spill] sm:$0xff] %v8346_v7  ;;  %v6678_v11 = vpop.f32.mrb[30].mxu1  ;;  %v8348_v5 = vpop.f32.mrb[31].mxu0 }
 0x292   :  { %9992 = vst [vmem:[#allocation20_spill] sm:$0xff] %v8348_v5  ;;  %v8350_v3 = vpop.f32.mrb[31].mxu1 }
 0x293   :  { %9993 = vst [vmem:[#allocation21_spill] sm:$0xff] %v8350_v3 }
 0x29e   :  { %v8352_v16 = vpop.f32.mrb[32].mxu0 }
 0x29f   :  { %v8354_v10 = vpop.f32.mrb[32].mxu1  ;;  %v6685_v36 = vpop.f32.mrb[33].mxu0  ;;  %v1622_v30 = vsel %vm1621_vm4, %v8352_v16, -inf }
 0x2a0   :  { %v6693_v8 = vpop.f32.mrb[33].mxu1  ;;  %v1625_v9 = vsel %vm1621_vm4, %v8354_v10, -inf  ;;  %1623 = vmax.xlane.f32.xlu0 %v1622_v30  ;;  %v1338_v57 = vpop.f32.mrb[34].mxu0 }
 0x2a1   :  { %1626 = vmax.xlane.f32.xlu1 %v1625_v9  ;;  %v1378_v11 = vpop.f32.mrb[34].mxu1  ;;  %v6686_v7 = vpop.f32.mrb[35].mxu0 }
 0x2a2   :  { %v6694_v5 = vpop.f32.mrb[35].mxu1  ;;  %v1681_v7 = vsel %vm738_vm2, %v7828_v22, 0 }
 0x2a3   :  { %v1726_v5 = vsel %vm738_vm2, %v7830_v23, 0  ;;  %6746 = vmatpush3.bf16.msra.mxu0 %v1681_v7 }
 0x2a4   :  { %6754 = vmatpush3.bf16.msra.mxu1 %v1726_v5 }
 0x2ae   :  { %v8360_v3 = vpop.f32.mrb[36].mxu0 }
 0x2af   :  { %v8362_v17 = vpop.f32.mrb[36].mxu1  ;;  %v6701_v4 = vpop.f32.mrb[37].mxu0  ;;  %v1628_v36 = vsel %vm1621_vm4, %v8360_v3, -inf }
 0x2b0   :  { %v6709_v61 = vpop.f32.mrb[37].mxu1  ;;  %v1631_v8 = vsel %vm1621_vm4, %v8362_v17, -inf  ;;  %1629 = vmax.xlane.f32.xlu0 %v1628_v36  ;;  %v1418_v2 = vpop.f32.mrb[38].mxu0  ;;  %v9994_v4 = vmov 0.0  }
 0x2b1   :  { %1632 = vmax.xlane.f32.xlu1 %v1631_v8  ;;  %v1458_v30 = vpop.f32.mrb[38].mxu1  ;;  %v6702_v9 = vpop.f32.mrb[39].mxu0  ;;  %6759 = vmatprep.subr.bf16.mxu0 %v9994_v4 }
 0x2b2   :  { %v6710_v57 = vpop.f32.mrb[39].mxu1  ;;  %6767 = vmatprep.subr.bf16.mxu1 %v9994_v4 }
 0x2be   :  { %v8374_v61 = vpop.f32.mrb[40].mxu0 }
 0x2bf   :  { %v8376_v11 = vpop.f32.mrb[40].mxu1  ;;  %v6717_v2 = vpop.f32.mrb[41].mxu0  ;;  %v1634_v36 = vsel %vm1621_vm4, %v8374_v61, -inf }
 0x2c0   :  { %v6725_v8 = vpop.f32.mrb[41].mxu1  ;;  %v1637_v22 = vsel %vm1621_vm4, %v8376_v11, -inf  ;;  %1635 = vmax.xlane.f32.xlu0 %v1634_v36  ;;  %v1498_v23 = vpop.f32.mrb[42].mxu0 }
 0x2c1   :  { %1638 = vmax.xlane.f32.xlu1 %v1637_v22  ;;  %v1538_v30 = vpop.f32.mrb[42].mxu1  ;;  %v6718_v9 = vpop.f32.mrb[43].mxu0 }
 0x2c2   :  { %v6726_v57 = vpop.f32.mrb[43].mxu1  ;;  %v1181_v30 = vsel %vm571_vm1, %v8092_v25, 0.0  ;;  %v1184_v9 = vsel %vm571_vm1, %v8096_v53, 0.0  ;;  %v1199_v25 = vsel %vm571_vm1, %v8124_v37, 0.0  ;;  %v1202_v53 = vsel %vm571_vm1, %v8126_v18, 0.0 }
 0x2c3   :  { %v1196_v57 = vsel %vm571_vm1, %v8084_v24, 0.0  ;;  %v1211_v24 = vsel %vm571_vm1, %v8141_v42, 0.0  ;;  %v1217_v37 = vsel %vm571_vm1, %v8162_v19, 0.0  ;;  %v1220_v18 = vsel %vm571_vm1, %v8164_v50, 0.0 }
 0x2c4   :  { %v1232_v42 = vsel %vm571_vm1, %v8170_v56, 0.0  ;;  %v1235_v19 = vsel %vm571_vm1, %v8189_v20, 0.0  ;;  %v1238_v50 = vsel %vm571_vm1, %v8192_v13, 0.0  ;;  %v1247_v56 = vsel %vm571_vm1, %v8201_v14, 0.0 }
 0x2ce   :  { %v8382_v7 = vpop.f32.mrb[44].mxu0 }
 0x2cf   :  { %v8384_v5 = vpop.f32.mrb[44].mxu1  ;;  %v6733_v1 = vpop.f32.mrb[45].mxu0  ;;  %v1640_v2 = vsel %vm1621_vm4, %v8382_v7, -inf }
 0x2d0   :  { %v6741_v49 = vpop.f32.mrb[45].mxu1  ;;  %v1643_v8 = vsel %vm1621_vm4, %v8384_v5, -inf  ;;  %1641 = vmax.xlane.f32.xlu0 %v1640_v2  ;;  %v1578_v33 = vpop.f32.mrb[46].mxu0  ;;  %v1190_v1 = vsel %vm571_vm1, %v8088_v41, 0.0  ;;  %v1208_v41 = vsel %vm571_vm1, %v8138_v21, 0.0  ;;  %v1226_v21 = vsel %vm571_vm1, %v8176_v51, 0.0 }
 0x2d1   :  { %1644 = vmax.xlane.f32.xlu1 %v1643_v8  ;;  %v1618_v36 = vpop.f32.mrb[46].mxu1  ;;  %v6734_v22 = vpop.f32.mrb[47].mxu0  ;;  %v1187_v49 = vsel %vm571_vm1, %v8086_v34, 0.0  ;;  %v1193_v33 = vsel %vm571_vm1, %v8094_v32, 0.0  ;;  %v1205_v34 = vsel %vm571_vm1, %v8120_v27, 0.0  ;;  %v1214_v32 = vsel %vm571_vm1, %v8132_v0, 0.0 }
 0x2d2   :  { %v6742_v23 = vpop.f32.mrb[47].mxu1  ;;  %v1223_v27 = vsel %vm571_vm1, %v8158_v40, 0.0  ;;  %v1229_v0 = vsel %vm571_vm1, %v8179_v60, 0.0  ;;  %v1241_v40 = vsel %vm571_vm1, %v8205_v35, 0.0  ;;  %v1244_v51 = vsel %vm571_vm1, %v8198_v6, 0.0 }
 0x2d3   :  { %v1250_v60 = vsel %vm571_vm1, %v8208_v43, 0.0  ;;  %vm4275_vm1 = vcmask 785414  }
 0x2d4   :  { %1182 = vadd.xlane.f32.xlu0 %v1181_v30 }
 0x2d5   :  { %1185 = vadd.xlane.f32.xlu1 %v1184_v9 }
 0x2d8   :  { %1188 = vadd.xlane.f32.xlu0 %v1187_v49 }
 0x2d9   :  { %1191 = vadd.xlane.f32.xlu1 %v1190_v1 }
 0x2dc   :  { %1194 = vadd.xlane.f32.xlu0 %v1193_v33 }
 0x2dd   :  { %1197 = vadd.xlane.f32.xlu1 %v1196_v57 }
 0x2e0   :  { %1200 = vadd.xlane.f32.xlu0 %v1199_v25 }
 0x2e1   :  { %1203 = vadd.xlane.f32.xlu1 %v1202_v53 }
 0x2e4   :  { %1206 = vadd.xlane.f32.xlu0 %v1205_v34 }
 0x2e5   :  { %1209 = vadd.xlane.f32.xlu1 %v1208_v41 }
 0x2e8   :  { %1212 = vadd.xlane.f32.xlu0 %v1211_v24 }
 0x2e9   :  { %1215 = vadd.xlane.f32.xlu1 %v1214_v32 }
 0x2ec   :  { %1218 = vadd.xlane.f32.xlu0 %v1217_v37 }
 0x2ed   :  { %1221 = vadd.xlane.f32.xlu1 %v1220_v18 }
 0x2f0   :  { %1224 = vadd.xlane.f32.xlu0 %v1223_v27 }
 0x2f1   :  { %1227 = vadd.xlane.f32.xlu1 %v1226_v21 }
 0x2f4   :  { %1230 = vadd.xlane.f32.xlu0 %v1229_v0 }
 0x2f5   :  { %1233 = vadd.xlane.f32.xlu1 %v1232_v42 }
 0x2f8   :  { %1236 = vadd.xlane.f32.xlu0 %v1235_v19 }
 0x2f9   :  { %1239 = vadd.xlane.f32.xlu1 %v1238_v50 }
 0x2fc   :  { %1242 = vadd.xlane.f32.xlu0 %v1241_v40 }
 0x2fd   :  { %1245 = vadd.xlane.f32.xlu1 %v1244_v51 }
 0x300   :  { %1248 = vadd.xlane.f32.xlu0 %v1247_v56 }
 0x301   :  { %1251 = vadd.xlane.f32.xlu1 %v1250_v60 }
 0x32d   :  { %v1624_v20 = vpop.xlane.xlu0 %1623 }
 0x32e   :  { %v1627_v13 = vpop.xlane.xlu1 %1626  ;;  %v1646_v2 = vsub.f32 %v8352_v16, %v1624_v20 }
 0x32f   :  { %v1647_v8 = vsub.f32 %v8354_v10, %v1627_v13 }
 0x330   :  { %v1654_v35 = vmul.f32 1.442695, %v1646_v2 }
 0x331   :  { %v1656_v36 = vmul.f32 1.442695, %v1647_v8 }
 0x332   :  { %7330 = vpow2.f32 %v1654_v35 }
 0x333   :  { %7332 = vpow2.f32 %v1656_v36 }
 0x33c   :  { %v7331_v6 = vpop.eup %7330 }
 0x33d   :  { %v7333_v22 = vpop.eup %7332  ;;  %v1630_v23 = vpop.xlane.xlu0 %1629  ;;  %v2038_v14 = vsel %vm1621_vm4, %v7331_v6, 0.0  ;;  %v1670_v30 = vpack.c.bf16 %v7331_v6, %v7331_v6 }
 0x33e   :  { %v1633_v9 = vpop.xlane.xlu1 %1632  ;;  %v1648_v43 = vsub.f32 %v8360_v3, %v1630_v23  ;;  %v2041_v49 = vsel %vm1621_vm4, %v7333_v22, 0.0  ;;  %2039 = vadd.xlane.f32.xlu0 %v2038_v14  ;;  %v1671_v1 = vpack.c.bf16 %v7333_v22, %v7333_v22  ;;  %v1771_v3 = vsel %vm738_vm2, %v7880_v38, 0  ;;  %v7410_v23 = vld [vmem:[%s9959_s0 + $0x8] sm:$0xff] }
 0x33f   :  { %v1649_v16 = vsub.f32 %v8362_v17, %v1633_v9  ;;  %2042 = vadd.xlane.f32.xlu1 %v2041_v49  ;;  %6748 = vmatmul.mubr.msk.bf16.vlgmr.msra.gmra.mrb[48].mxu0 %vm1621_vm4, %v1670_v30  ;;  %v1816_v17 = vsel %vm738_vm2, %v7882_v39, 0 }
 0x340   :  { %v1658_v10 = vmul.f32 1.442695, %v1648_v43  ;;  %6756 = vmatmul.mubr.msk.bf16.vlgmr.msra.gmra.mrb[48].mxu1 %vm1621_vm4, %v1671_v1  ;;  %6760 = vmatpush3.bf16.msra.mxu0 %v7842_v28 }
 0x341   :  { %v1660_v33 = vmul.f32 1.442695, %v1649_v16  ;;  %6768 = vmatpush3.bf16.msra.mxu1 %v7844_v29  ;;  %6761 = vmatprep.subr.bf16.mxu0 %v9994_v4 }
 0x342   :  { %7334 = vpow2.f32 %v1658_v10  ;;  %6769 = vmatprep.subr.bf16.mxu1 %v9994_v4  ;;  %6771 = vmatprep.mubr.msk.bf16.mxu1 %vm9976_vm3, %v9994_v4 }
 0x343   :  { %7336 = vpow2.f32 %v1660_v33  ;;  %6763 = vmatprep.mubr.msk.bf16.mxu0 %vm9976_vm3, %v9994_v4 }
 0x344   :  { %6762 = vmatpush3.bf16.msra.mxu0 %v1771_v3 }
 0x345   :  { %6770 = vmatpush3.bf16.msra.mxu1 %v1816_v17  ;;  %6775 = vmatprep.subr.bf16.mxu0 %v9994_v4 }
 0x346   :  { %6783 = vmatprep.subr.bf16.mxu1 %v9994_v4 }
 0x34c   :  { %v7335_v28 = vpop.eup %7334 }
 0x34d   :  { %v7337_v29 = vpop.eup %7336  ;;  %v1636_v38 = vpop.xlane.xlu0 %1635  ;;  %v2044_v57 = vsel %vm1621_vm4, %v7335_v28, 0.0  ;;  %v1672_v25 = vpack.c.bf16 %v7335_v28, %v7335_v28 }
 0x34e   :  { %v1639_v39 = vpop.xlane.xlu1 %1638  ;;  %v1650_v53 = vsub.f32 %v8374_v61, %v1636_v38  ;;  %v2047_v34 = vsel %vm1621_vm4, %v7337_v29, 0.0  ;;  %2045 = vadd.xlane.f32.xlu0 %v2044_v57  ;;  %v1673_v41 = vpack.c.bf16 %v7337_v29, %v7337_v29  ;;  %v1861_v61 = vsel %vm738_vm2, %v7932_v54, 0 }
 0x34f   :  { %v1651_v24 = vsub.f32 %v8376_v11, %v1639_v39  ;;  %2048 = vadd.xlane.f32.xlu1 %v2047_v34  ;;  %6764 = vmatmul.mubr.msk.bf16.vlgmr.msra.gmra.mrb[52].mxu0 %vm1621_vm4, %v1672_v25  ;;  %v1906_v11 = vsel %vm738_vm2, %v7934_v55, 0  ;;  %v7412_v39 = vld [vmem:[%s9959_s0 + $0x18] sm:$0xff] }
 0x350   :  { %v1662_v32 = vmul.f32 1.442695, %v1650_v53  ;;  %6772 = vmatmul.mubr.msk.bf16.vlgmr.msra.gmra.mrb[52].mxu1 %vm1621_vm4, %v1673_v41  ;;  %6776 = vmatpush3.bf16.msra.mxu0 %v7894_v44 }
 0x351   :  { %v1664_v37 = vmul.f32 1.442695, %v1651_v24  ;;  %6784 = vmatpush3.bf16.msra.mxu1 %v7896_v45  ;;  %6777 = vmatprep.subr.bf16.mxu0 %v9994_v4  ;;  %v8533_v24 = vld [vmem:[%s9961_s2] sm:$0xf] }
 0x352   :  { %7338 = vpow2.f32 %v1662_v32  ;;  %6785 = vmatprep.subr.bf16.mxu1 %v9994_v4  ;;  %6787 = vmatprep.mubr.msk.bf16.mxu1 %vm9976_vm3, %v9994_v4 }
 0x353   :  { %7340 = vpow2.f32 %v1664_v37  ;;  %6779 = vmatprep.mubr.msk.bf16.mxu0 %vm9976_vm3, %v9994_v4 }
 0x354   :  { %6778 = vmatpush3.bf16.msra.mxu0 %v1861_v61 }
 0x355   :  { %6786 = vmatpush3.bf16.msra.mxu1 %v1906_v11  ;;  %6791 = vmatprep.subr.bf16.mxu0 %v9994_v4 }
 0x356   :  { %6799 = vmatprep.subr.bf16.mxu1 %v9994_v4 }
 0x35c   :  { %v7339_v44 = vpop.eup %7338 }
 0x35d   :  { %v7341_v45 = vpop.eup %7340  ;;  %v1642_v54 = vpop.xlane.xlu0 %1641  ;;  %v2050_v18 = vsel %vm1621_vm4, %v7339_v44, 0.0  ;;  %v1674_v27 = vpack.c.bf16 %v7339_v44, %v7339_v44 }
 0x35e   :  { %v1645_v55 = vpop.xlane.xlu1 %1644  ;;  %v1652_v21 = vsub.f32 %v8382_v7, %v1642_v54  ;;  %v2053_v0 = vsel %vm1621_vm4, %v7341_v45, 0.0  ;;  %2051 = vadd.xlane.f32.xlu0 %v2050_v18  ;;  %v1675_v42 = vpack.c.bf16 %v7341_v45, %v7341_v45  ;;  %v1951_v7 = vsel %vm738_vm2, %v7958_v62, 0 }
 0x35f   :  { %v1653_v19 = vsub.f32 %v8384_v5, %v1645_v55  ;;  %2054 = vadd.xlane.f32.xlu1 %v2053_v0  ;;  %6780 = vmatmul.mubr.msk.bf16.vlgmr.msra.gmra.mrb[56].mxu0 %vm1621_vm4, %v1674_v27  ;;  %v1996_v5 = vsel %vm738_vm2, %v7960_v63, 0 }
 0x360   :  { %v1666_v50 = vmul.f32 1.442695, %v1652_v21  ;;  %6788 = vmatmul.mubr.msk.bf16.vlgmr.msra.gmra.mrb[56].mxu1 %vm1621_vm4, %v1675_v42  ;;  %6792 = vmatpush3.bf16.msra.mxu0 %v7940_v58 }
 0x361   :  { %v1668_v40 = vmul.f32 1.442695, %v1653_v19  ;;  %v1183_v51 = vpop.xlane.xlu0 %1182  ;;  %6800 = vmatpush3.bf16.msra.mxu1 %v7942_v59  ;;  %6793 = vmatprep.subr.bf16.mxu0 %v9994_v4 }
 0x362   :  { %7342 = vpow2.f32 %v1666_v50  ;;  %v1186_v56 = vpop.xlane.xlu1 %1185  ;;  %6801 = vmatprep.subr.bf16.mxu1 %v9994_v4  ;;  %6803 = vmatprep.mubr.msk.bf16.mxu1 %vm9976_vm3, %v9994_v4 }
 0x363   :  { %7344 = vpow2.f32 %v1668_v40  ;;  %6795 = vmatprep.mubr.msk.bf16.mxu0 %vm9976_vm3, %v9994_v4 }
 0x364   :  { %7346 = vrcp.f32 %v1186_v56  ;;  %6794 = vmatpush3.bf16.msra.mxu0 %v1951_v7 }
 0x365   :  { %7348 = vrcp.f32 %v1183_v51  ;;  %6802 = vmatpush3.bf16.msra.mxu1 %v1996_v5  ;;  %6807 = vmatprep.subr.bf16.mxu0 %v9994_v4  ;;  %v1189_v59 = vpop.xlane.xlu0 %1188 }
 0x366   :  { %v1192_v58 = vpop.xlane.xlu1 %1191  ;;  %6817 = vmatprep.subr.bf16.mxu1 %v9994_v4 }
 0x367   :  { %7350 = vrcp.f32 %v1192_v58 }
 0x368   :  { %7352 = vrcp.f32 %v1189_v59 }
 0x369   :  { %v1195_v9 = vpop.xlane.xlu0 %1194 }
 0x36a   :  { %v1198_v22 = vpop.xlane.xlu1 %1197 }
 0x36b   :  { %7354 = vrcp.f32 %v1198_v22 }
 0x36c   :  { %v7343_v62 = vpop.eup %7342  ;;  %7356 = vrcp.f32 %v1195_v9 }
 0x36d   :  { %v7345_v63 = vpop.eup %7344  ;;  %v2056_v60 = vsel %vm1621_vm4, %v7343_v62, 0.0  ;;  %v1676_v20 = vpack.c.bf16 %v7343_v62, %v7343_v62  ;;  %v1201_v44 = vpop.xlane.xlu0 %1200 }
 0x36e   :  { %v7347_v13 = vpop.eup %7346  ;;  %v2059_v2 = vsel %vm1621_vm4, %v7345_v63, 0.0  ;;  %2057 = vadd.xlane.f32.xlu0 %v2056_v60  ;;  %v1677_v8 = vpack.c.bf16 %v7345_v63, %v7345_v63  ;;  %v1204_v32 = vpop.xlane.xlu1 %1203 }
 0x36f   :  { %v7349_v35 = vpop.eup %7348  ;;  %v1256_v36 = vmul.f32 %v7347_v13, %v8314_v48  ;;  %2060 = vadd.xlane.f32.xlu1 %v2059_v2  ;;  %6796 = vmatmul.mubr.msk.bf16.vlgmr.msra.gmra.mrb[60].mxu0 %vm1621_vm4, %v1676_v20  ;;  %7358 = vrcp.f32 %v1204_v32  ;;  %v7418_v32 = vld [vmem:[%s9959_s0 + $0x48] sm:$0xff] }
 0x370   :  { %v1254_v6 = vmul.f32 %v7349_v35, %v8310_v47  ;;  %6804 = vmatmul.mubr.msk.bf16.vlgmr.msra.gmra.mrb[60].mxu1 %vm1621_vm4, %v1677_v8  ;;  %6813 = vmatprep.mubr.msk.bf16.mxu0 %vm9976_vm3, %v9994_v4  ;;  %v7411_v47 = vld [vmem:[%s9959_s0] sm:$0xff]  ;;  %7360 = vrcp.f32 %v1201_v44  ;;  %vm4115_vm4 = vcmask 785410  }
 0x371   :  { %v2178_v14 = vpack.c.bf16 %v1256_v36, %v7410_v23  ;;  %v2079_v30 = vsub.f32 %v7410_v23, %v1256_v36  ;;  %6823 = vmatprep.mubr.msk.bf16.mxu1 %vm9976_vm3, %v9994_v4  ;;  %v7351_v48 = vpop.eup %7350  ;;  %v2143_v1 = vmul.f32 %v7410_v23, %v1256_v36  ;;  %v1207_v60 = vpop.xlane.xlu0 %1206 }
 0x372   :  { %v2175_v43 = vpack.c.bf16 %v1254_v6, %v7411_v47  ;;  %v2078_v49 = vsub.f32 %v7411_v47, %v1254_v6  ;;  %v7353_v16 = vpop.eup %7352  ;;  %v2142_v33 = vmul.f32 %v7411_v47, %v1254_v6  ;;  %v1260_v17 = vmul.f32 %v7351_v48, %v8308_v12  ;;  %v1210_v58 = vpop.xlane.xlu1 %1209 }
 0x373   :  { %6818 = vmatpush3.bf16.msra.mxu1 %v2178_v14  ;;  %v2111_v10 = vmul.f32 %v2079_v30, %v2079_v30  ;;  %v1258_v29 = vmul.f32 %v7353_v16, %v8306_v46  ;;  %v2180_v57 = vpack.c.bf16 %v2143_v1, %v2143_v1  ;;  %v7413_v46 = vld [vmem:[%s9959_s0 + $0x10] sm:$0xff]  ;;  %7362 = vrcp.f32 %v1210_v58 }
 0x374   :  { %6808 = vmatpush3.bf16.msra.mxu0 %v2175_v43  ;;  %6819 = vmatprep.subr.bf16.mxu1 %v9994_v4  ;;  %v2110_v3 = vmul.f32 %v2078_v49, %v2078_v49  ;;  %v2177_v25 = vpack.c.bf16 %v2142_v33, %v2142_v33  ;;  %v2081_v12 = vsub.f32 %v7412_v39, %v1260_v17  ;;  %7364 = vrcp.f32 %v1207_v60 }
 0x375   :  { %6809 = vmatprep.subr.bf16.mxu0 %v9994_v4  ;;  %v2179_v28 = vpack.c.bf16 %v2111_v10, %v2079_v30  ;;  %v2326_v53 = vsel %vm738_vm2, %v2180_v57, 0  ;;  %v2080_v34 = vsub.f32 %v7413_v46, %v1258_v29  ;;  %v2184_v37 = vpack.c.bf16 %v1260_v17, %v7412_v39  ;;  %v7355_v11 = vpop.eup %7354  ;;  %v1213_v33 = vpop.xlane.xlu0 %1212  ;;  %v9995_v57 = vld [vmem:[#allocation8_spill] sm:$0xff] }
 0x376   :  { %v2176_v38 = vpack.c.bf16 %v2110_v3, %v2078_v49  ;;  %v2283_v41 = vsel %vm738_vm2, %v2177_v25, 0  ;;  %v2113_v61 = vmul.f32 %v2081_v12, %v2081_v12  ;;  %v2181_v45 = vpack.c.bf16 %v1258_v29, %v7413_v46  ;;  %v7357_v27 = vpop.eup %7356  ;;  %v1216_v49 = vpop.xlane.xlu1 %1215 }
 0x377   :  { %6820 = vmatpush3.bf16.msra.mxu1 %v2179_v28  ;;  %v2112_v54 = vmul.f32 %v2080_v34, %v2080_v34  ;;  %v2145_v18 = vmul.f32 %v7412_v39, %v1260_v17  ;;  %v2144_v55 = vmul.f32 %v7413_v46, %v1258_v29  ;;  %v1264_v21 = vmul.f32 %v7355_v11, %v8304_v31  ;;  %v7414_v31 = vld [vmem:[%s9959_s0 + $0x28] sm:$0xff]  ;;  %v7419_v11 = vld [vmem:[%s9959_s0 + $0x40] sm:$0xff] }
 0x378   :  { %6810 = vmatpush3.bf16.msra.mxu0 %v2176_v38  ;;  %6821 = vmatprep.subr.bf16.mxu1 %v9994_v4  ;;  %v2185_v0 = vpack.c.bf16 %v2113_v61, %v2081_v12  ;;  %v1262_v42 = vmul.f32 %v7357_v27, %v8312_v26  ;;  %v7415_v26 = vld [vmem:[%s9959_s0 + $0x20] sm:$0xff]  ;;  %7366 = vrcp.f32 %v1216_v49 }
 0x379   :  { %6811 = vmatprep.subr.bf16.mxu0 %v9994_v4  ;;  %v2182_v19 = vpack.c.bf16 %v2112_v54, %v2080_v34  ;;  %v2186_v50 = vpack.c.bf16 %v2145_v18, %v2145_v18  ;;  %v2183_v40 = vpack.c.bf16 %v2144_v55, %v2144_v55  ;;  %v2083_v51 = vsub.f32 %v7414_v31, %v1264_v21  ;;  %v7359_v63 = vpop.eup %7358  ;;  %v9996_v12 = vld [vmem:[#allocation6_spill] sm:$0xff] }
 0x37a   :  { %v2082_v56 = vsub.f32 %v7415_v26, %v1262_v42  ;;  %v2190_v59 = vpack.c.bf16 %v1264_v21, %v7414_v31  ;;  %v2187_v20 = vpack.c.bf16 %v1262_v42, %v7415_v26  ;;  %v2147_v2 = vmul.f32 %v7414_v31, %v1264_v21  ;;  %v7361_v8 = vpop.eup %7360  ;;  %v1222_v54 = vpop.xlane.xlu1 %1221  ;;  %v9997_v31 = vld [vmem:[#allocation7_spill] sm:$0xff] }
 0x37b   :  { %6822 = vmatpush3.bf16.msra.mxu1 %v2326_v53  ;;  %v2412_v7 = vsel %vm738_vm2, %v2186_v50, 0  ;;  %v2369_v5 = vsel %vm738_vm2, %v2183_v40, 0  ;;  %v2115_v62 = vmul.f32 %v2083_v51, %v2083_v51  ;;  %v2146_v35 = vmul.f32 %v7415_v26, %v1262_v42  ;;  %v1219_v21 = vpop.xlane.xlu0 %1218  ;;  %v9998_v26 = vld [vmem:[#allocation9_spill] sm:$0xff] }
 0x37c   :  { %6812 = vmatpush3.bf16.msra.mxu0 %v2283_v41  ;;  %6837 = vmatprep.subr.bf16.mxu1 %v9994_v4  ;;  %v2114_v13 = vmul.f32 %v2082_v56, %v2082_v56  ;;  %v1268_v36 = vmul.f32 %v7359_v63, %v8320_v15  ;;  %v1266_v22 = vmul.f32 %v7361_v8, %v8318_v52  ;;  %v7416_v15 = vld [vmem:[%s9959_s0 + $0x38] sm:$0xff]  ;;  %v7417_v52 = vld [vmem:[%s9959_s0 + $0x30] sm:$0xff]  ;;  %7368 = vrcp.f32 %v1213_v33  ;;  %v7422_v33 = vld [vmem:[%s9959_s0 + $0x68] sm:$0xff] }
 0x37d   :  { %6827 = vmatprep.subr.bf16.mxu0 %v9994_v4  ;;  %v2191_v6 = vpack.c.bf16 %v2115_v62, %v2083_v51  ;;  %v2192_v14 = vpack.c.bf16 %v2147_v2, %v2147_v2  ;;  %v2189_v30 = vpack.c.bf16 %v2146_v35, %v2146_v35  ;;  %v7363_v10 = vpop.eup %7362  ;;  %7370 = vrcp.f32 %v1222_v54  ;;  %v7420_v62 = vld [vmem:[%s9959_s0 + $0x58] sm:$0xff] }
 0x37e   :  { %6824 = vmatmul.mubr.msk.bf16.vlgmr.msra.gmra.mrb[64].mxu1 %vm2278_vm5, %v8533_v24  ;;  %v2188_v23 = vpack.c.bf16 %v2114_v13, %v2082_v56  ;;  %v2085_v48 = vsub.f32 %v7416_v15, %v1268_v36  ;;  %v2084_v47 = vsub.f32 %v7417_v52, %v1266_v22  ;;  %v2196_v1 = vpack.c.bf16 %v1268_v36, %v7416_v15  ;;  %v7365_v29 = vpop.eup %7364  ;;  %v1228_v8 = vpop.xlane.xlu1 %1227 }
 0x37f   :  { %6838 = vmatpush3.bf16.msra.mxu1 %v2184_v37  ;;  %6814 = vmatmul.mubr.msk.bf16.vlgmr.msra.gmra.mrb[64].mxu0 %vm2278_vm5, %v8533_v24  ;;  %v2498_v9 = vsel %vm738_vm2, %v2192_v14, 0  ;;  %v2455_v43 = vsel %vm738_vm2, %v2189_v30, 0  ;;  %v2193_v3 = vpack.c.bf16 %v1266_v22, %v7417_v52  ;;  %v2149_v28 = vmul.f32 %v7416_v15, %v1268_v36 }
 0x380   :  { %6828 = vmatpush3.bf16.msra.mxu0 %v2181_v45  ;;  %6839 = vmatprep.subr.bf16.mxu1 %v9994_v4  ;;  %v2117_v16 = vmul.f32 %v2085_v48, %v2085_v48  ;;  %v2116_v17 = vmul.f32 %v2084_v47, %v2084_v47  ;;  %v2148_v38 = vmul.f32 %v7417_v52, %v1266_v22  ;;  %7372 = vrcp.f32 %v1219_v21  ;;  %v1225_v22 = vpop.xlane.xlu0 %1224  ;;  %v7424_v21 = vld [vmem:[%s9959_s0 + $0x78] sm:$0xff] }
 0x381   :  { %6829 = vmatprep.subr.bf16.mxu0 %v9994_v4  ;;  %6833 = vmatprep.mubr.msk.bf16.mxu0 %vm9976_vm3, %v9994_v4  ;;  %v1272_v25 = vmul.f32 %v7363_v10, %v9995_v57  ;;  %v1270_v53 = vmul.f32 %v7365_v29, %v9996_v12  ;;  %v2198_v34 = vpack.c.bf16 %v2149_v28, %v2149_v28  ;;  %7374 = vrcp.f32 %v1228_v8  ;;  %v7423_v28 = vld [vmem:[%s9959_s0 + $0x60] sm:$0xff] }
 0x382   :  { %6843 = vmatprep.mubr.msk.bf16.mxu1 %vm9976_vm3, %v9994_v4  ;;  %v2197_v39 = vpack.c.bf16 %v2117_v16, %v2085_v48  ;;  %v2194_v46 = vpack.c.bf16 %v2116_v17, %v2084_v47  ;;  %v2195_v41 = vpack.c.bf16 %v2148_v38, %v2148_v38  ;;  %v7367_v55 = vpop.eup %7366  ;;  %7376 = vrcp.f32 %v1225_v22  ;;  %v1234_v57 = vpop.xlane.xlu1 %1233  ;;  %v7426_v22 = vld [vmem:[%s9959_s0 + $0x88] sm:$0xff] }
 0x383   :  { %6840 = vmatpush3.bf16.msra.mxu1 %v2185_v0  ;;  %v2087_v37 = vsub.f32 %v7418_v32, %v1272_v25  ;;  %v2584_v61 = vsel %vm738_vm2, %v2198_v34, 0  ;;  %v2086_v44 = vsub.f32 %v7419_v11, %v1270_v53  ;;  %v2202_v18 = vpack.c.bf16 %v1272_v25, %v7418_v32 }
 0x384   :  { %6830 = vmatpush3.bf16.msra.mxu0 %v2182_v19  ;;  %6841 = vmatprep.subr.bf16.mxu1 %v9994_v4  ;;  %v2541_v45 = vsel %vm738_vm2, %v2195_v41, 0  ;;  %v2199_v0 = vpack.c.bf16 %v1270_v53, %v7419_v11  ;;  %v2151_v19 = vmul.f32 %v7418_v32, %v1272_v25  ;;  %v2150_v40 = vmul.f32 %v7419_v11, %v1270_v53  ;;  %v1231_v53 = vpop.xlane.xlu0 %1230 }
 0x385   :  { %6831 = vmatprep.subr.bf16.mxu0 %v9994_v4  ;;  %v2119_v27 = vmul.f32 %v2087_v37, %v2087_v37  ;;  %v2118_v42 = vmul.f32 %v2086_v44, %v2086_v44  ;;  %v1276_v51 = vmul.f32 %v7367_v55, %v9997_v31  ;;  %7378 = vrcp.f32 %v1234_v57 }
 0x386   :  { %v7369_v50 = vpop.eup %7368  ;;  %v2204_v58 = vpack.c.bf16 %v2151_v19, %v2151_v19  ;;  %7380 = vrcp.f32 %v1231_v53  ;;  %v7425_v19 = vld [vmem:[%s9959_s0 + $0x70] sm:$0xff]  ;;  %v1240_v31 = vpop.xlane.xlu1 %1239  ;;  %v7428_v53 = vld [vmem:[%s9959_s0 + $0x98] sm:$0xff] }
 0x387   :  { %6842 = vmatpush3.bf16.msra.mxu1 %v2412_v7  ;;  %v2203_v7 = vpack.c.bf16 %v2119_v27, %v2087_v37  ;;  %v1274_v56 = vmul.f32 %v7369_v50, %v9998_v26  ;;  %v2089_v63 = vsub.f32 %v7420_v62, %v1276_v51  ;;  %v2208_v35 = vpack.c.bf16 %v1276_v51, %v7420_v62 }
 0x388   :  { %6832 = vmatpush3.bf16.msra.mxu0 %v2369_v5  ;;  %6857 = vmatprep.subr.bf16.mxu1 %v9994_v4  ;;  %v2200_v5 = vpack.c.bf16 %v2118_v42, %v2086_v44  ;;  %v2670_v60 = vsel %vm738_vm2, %v2204_v58, 0  ;;  %v2153_v30 = vmul.f32 %v7420_v62, %v1276_v51  ;;  %7382 = vrcp.f32 %v1240_v31 }
 0x389   :  { %6847 = vmatprep.subr.bf16.mxu0 %v9994_v4  ;;  %v2121_v36 = vmul.f32 %v2089_v63, %v2089_v63 }
 0x38a   :  { %6844 = vmatmul.mubr.msk.bf16.vlgmr.msra.gmra.mrb[68].mxu1 %vm2278_vm5, %v8533_v24  ;;  %v2210_v16 = vpack.c.bf16 %v2153_v30, %v2153_v30  ;;  %v7427_v30 = vld [vmem:[%s9959_s0 + $0x80] sm:$0xff] }
 0x38b   :  { %6858 = vmatpush3.bf16.msra.mxu1 %v2190_v59  ;;  %6834 = vmatmul.mubr.msk.bf16.vlgmr.msra.gmra.mrb[68].mxu0 %vm2278_vm5, %v8533_v24  ;;  %v2201_v59 = vpack.c.bf16 %v2150_v40, %v2150_v40  ;;  %v2209_v47 = vpack.c.bf16 %v2121_v36, %v2089_v63 }
 0x38c   :  { %6848 = vmatpush3.bf16.msra.mxu0 %v2187_v20  ;;  %6859 = vmatprep.subr.bf16.mxu1 %v9994_v4  ;;  %v7421_v20 = vld [vmem:[%s9959_s0 + $0x50] sm:$0xff]  ;;  %v2756_v17 = vsel %vm738_vm2, %v2210_v16, 0 }
 0x38d   :  { %6849 = vmatprep.subr.bf16.mxu0 %v9994_v4  ;;  %6853 = vmatprep.mubr.msk.bf16.mxu0 %vm9976_vm3, %v9994_v4  ;;  %v2088_v13 = vsub.f32 %v7421_v20, %v1274_v56  ;;  %v2627_v2 = vsel %vm738_vm2, %v2201_v59, 0  ;;  %v2152_v48 = vmul.f32 %v7421_v20, %v1274_v56 }
 0x38e   :  { %6863 = vmatprep.mubr.msk.bf16.mxu1 %vm9976_vm3, %v9994_v4 }
 0x38f   :  { %6860 = vmatpush3.bf16.msra.mxu1 %v2191_v6  ;;  %v7371_v6 = vpop.eup %7370  ;;  %v2120_v14 = vmul.f32 %v2088_v13, %v2088_v13  ;;  %v2207_v10 = vpack.c.bf16 %v2152_v48, %v2152_v48 }
 0x390   :  { %6850 = vmatpush3.bf16.msra.mxu0 %v2188_v23  ;;  %6861 = vmatprep.subr.bf16.mxu1 %v9994_v4  ;;  %v2205_v23 = vpack.c.bf16 %v1274_v56, %v7421_v20  ;;  %v7373_v15 = vpop.eup %7372  ;;  %v1237_v56 = vpop.xlane.xlu0 %1236 }
 0x391   :  { %6851 = vmatprep.subr.bf16.mxu0 %v9994_v4  ;;  %v2713_v38 = vsel %vm738_vm2, %v2207_v10, 0  ;;  %v7375_v12 = vpop.eup %7374  ;;  %7384 = vrcp.f32 %v1237_v56  ;;  %v7430_v56 = vld [vmem:[%s9959_s0 + $0xa8] sm:$0xff] }
 0x392   :  { %v7377_v32 = vpop.eup %7376 }
 0x393   :  { %6862 = vmatpush3.bf16.msra.mxu1 %v2498_v9  ;;  %v9999_v9 = vld [vmem:[#allocation12_spill] sm:$0xff]  ;;  %v7379_v26 = vpop.eup %7378 }
 0x394   :  { %6852 = vmatpush3.bf16.msra.mxu0 %v2455_v43  ;;  %6877 = vmatprep.subr.bf16.mxu1 %v9994_v4  ;;  %v1280_v52 = vmul.f32 %v7371_v6, %v9999_v9  ;;  %v10000_v43 = vld [vmem:[#allocation11_spill] sm:$0xff]  ;;  %v7381_v62 = vpop.eup %7380  ;;  %v1246_v9 = vpop.xlane.xlu1 %1245 }
 0x395   :  { %6867 = vmatprep.subr.bf16.mxu0 %v9994_v4  ;;  %v1278_v49 = vmul.f32 %v7373_v15, %v10000_v43  ;;  %v7383_v43 = vpop.eup %7382  ;;  %7386 = vrcp.f32 %v1246_v9 }
 0x396   :  { %6864 = vmatmul.mubr.msk.bf16.vlgmr.msra.gmra.mrb[72].mxu1 %vm2278_vm5, %v8533_v24  ;;  %v2214_v25 = vpack.c.bf16 %v1280_v52, %v7422_v33  ;;  %v2155_v41 = vmul.f32 %v7422_v33, %v1280_v52 }
 0x397   :  { %6854 = vmatmul.mubr.msk.bf16.vlgmr.msra.gmra.mrb[72].mxu0 %vm2278_vm5, %v8533_v24  ;;  %6878 = vmatpush3.bf16.msra.mxu1 %v2196_v1  ;;  %v2206_v1 = vpack.c.bf16 %v2120_v14, %v2088_v13  ;;  %v2090_v29 = vsub.f32 %v7423_v28, %v1278_v49  ;;  %v2154_v37 = vmul.f32 %v7423_v28, %v1278_v49 }
 0x398   :  { %6868 = vmatpush3.bf16.msra.mxu0 %v2193_v3  ;;  %6879 = vmatprep.subr.bf16.mxu1 %v9994_v4  ;;  %v2091_v3 = vsub.f32 %v7422_v33, %v1280_v52  ;;  %v2216_v27 = vpack.c.bf16 %v2155_v41, %v2155_v41  ;;  %v7429_v41 = vld [vmem:[%s9959_s0 + $0x90] sm:$0xff] }
 0x399   :  { %6869 = vmatprep.subr.bf16.mxu0 %v9994_v4  ;;  %6873 = vmatprep.mubr.msk.bf16.mxu0 %vm9976_vm3, %v9994_v4  ;;  %v2122_v34 = vmul.f32 %v2090_v29, %v2090_v29  ;;  %v2213_v55 = vpack.c.bf16 %v2154_v37, %v2154_v37 }
 0x39a   :  { %6883 = vmatprep.mubr.msk.bf16.mxu1 %vm9976_vm3, %v9994_v4  ;;  %v2842_v42 = vsel %vm738_vm2, %v2216_v27, 0 }
 0x39b   :  { %6880 = vmatpush3.bf16.msra.mxu1 %v2197_v39  ;;  %v2123_v39 = vmul.f32 %v2091_v3, %v2091_v3  ;;  %v2799_v40 = vsel %vm738_vm2, %v2213_v55, 0  ;;  %v7385_v33 = vpop.eup %7384 }
 0x39c   :  { %6870 = vmatpush3.bf16.msra.mxu0 %v2194_v46  ;;  %6881 = vmatprep.subr.bf16.mxu1 %v9994_v4  ;;  %v2211_v46 = vpack.c.bf16 %v1278_v49, %v7423_v28  ;;  %v1243_v49 = vpop.xlane.xlu0 %1242 }
 0x39d   :  { %6871 = vmatprep.subr.bf16.mxu0 %v9994_v4  ;;  %v2215_v44 = vpack.c.bf16 %v2123_v39, %v2091_v3  ;;  %7388 = vrcp.f32 %v1243_v49 }
 0x39f   :  { %6882 = vmatpush3.bf16.msra.mxu1 %v2584_v61  ;;  %v10001_v61 = vld [vmem:[#allocation14_spill] sm:$0xff] }
 0x3a0   :  { %6872 = vmatpush3.bf16.msra.mxu0 %v2541_v45  ;;  %6897 = vmatprep.subr.bf16.mxu1 %v9994_v4  ;;  %v1284_v11 = vmul.f32 %v7375_v12, %v10001_v61  ;;  %v10002_v45 = vld [vmem:[#allocation10_spill] sm:$0xff]  ;;  %v1252_v61 = vpop.xlane.xlu1 %1251 }
 0x3a1   :  { %6887 = vmatprep.subr.bf16.mxu0 %v9994_v4  ;;  %v1282_v54 = vmul.f32 %v7377_v32, %v10002_v45  ;;  %v7387_v45 = vpop.eup %7386  ;;  %7390 = vrcp.f32 %v1252_v61 }
 0x3a2   :  { %6884 = vmatmul.mubr.msk.bf16.vlgmr.msra.gmra.mrb[76].mxu1 %vm2278_vm5, %v8533_v24  ;;  %v2220_v51 = vpack.c.bf16 %v1284_v11, %v7424_v21  ;;  %v2157_v59 = vmul.f32 %v7424_v21, %v1284_v11 }
 0x3a3   :  { %6874 = vmatmul.mubr.msk.bf16.vlgmr.msra.gmra.mrb[76].mxu0 %vm2278_vm5, %v8533_v24  ;;  %6898 = vmatpush3.bf16.msra.mxu1 %v2202_v18  ;;  %v2212_v18 = vpack.c.bf16 %v2122_v34, %v2090_v29  ;;  %v2092_v50 = vsub.f32 %v7425_v19, %v1282_v54  ;;  %v2156_v63 = vmul.f32 %v7425_v19, %v1282_v54 }
 0x3a4   :  { %6888 = vmatpush3.bf16.msra.mxu0 %v2199_v0  ;;  %6899 = vmatprep.subr.bf16.mxu1 %v9994_v4  ;;  %v2093_v0 = vsub.f32 %v7424_v21, %v1284_v11  ;;  %v2222_v36 = vpack.c.bf16 %v2157_v59, %v2157_v59  ;;  %v7431_v59 = vld [vmem:[%s9959_s0 + $0xa0] sm:$0xff] }
 0x3a5   :  { %6889 = vmatprep.subr.bf16.mxu0 %v9994_v4  ;;  %6893 = vmatprep.mubr.msk.bf16.mxu0 %vm9976_vm3, %v9994_v4  ;;  %v2124_v58 = vmul.f32 %v2092_v50, %v2092_v50  ;;  %v2219_v6 = vpack.c.bf16 %v2156_v63, %v2156_v63 }
 0x3a6   :  { %6903 = vmatprep.mubr.msk.bf16.mxu1 %vm9976_vm3, %v9994_v4  ;;  %v2928_v14 = vsel %vm738_vm2, %v2222_v36, 0 }
 0x3a7   :  { %6900 = vmatpush3.bf16.msra.mxu1 %v2203_v7  ;;  %v2125_v7 = vmul.f32 %v2093_v0, %v2093_v0  ;;  %v2885_v48 = vsel %vm738_vm2, %v2219_v6, 0  ;;  %v7389_v21 = vpop.eup %7388 }
 0x3a8   :  { %6890 = vmatpush3.bf16.msra.mxu0 %v2200_v5  ;;  %6901 = vmatprep.subr.bf16.mxu1 %v9994_v4  ;;  %v2217_v5 = vpack.c.bf16 %v1282_v54, %v7425_v19  ;;  %v1249_v54 = vpop.xlane.xlu0 %1248 }
 0x3a9   :  { %6891 = vmatprep.subr.bf16.mxu0 %v9994_v4  ;;  %v2221_v13 = vpack.c.bf16 %v2125_v7, %v2093_v0  ;;  %7392 = vrcp.f32 %v1249_v54 }
 0x3ab   :  { %6902 = vmatpush3.bf16.msra.mxu1 %v2670_v60  ;;  %v10003_v60 = vld [vmem:[#allocation13_spill] sm:$0xff] }
 0x3ac   :  { %6892 = vmatpush3.bf16.msra.mxu0 %v2627_v2  ;;  %6917 = vmatprep.subr.bf16.mxu1 %v9994_v4  ;;  %v1288_v20 = vmul.f32 %v7379_v26, %v10003_v60  ;;  %v10004_v2 = vld [vmem:[#allocation15_spill] sm:$0xff] }
 0x3ad   :  { %6907 = vmatprep.subr.bf16.mxu0 %v9994_v4  ;;  %v1286_v8 = vmul.f32 %v7381_v62, %v10004_v2 }
 0x3ae   :  { %6904 = vmatmul.mubr.msk.bf16.vlgmr.msra.gmra.mrb[80].mxu1 %vm2278_vm5, %v8533_v24  ;;  %v2226_v52 = vpack.c.bf16 %v1288_v20, %v7426_v22  ;;  %v2159_v10 = vmul.f32 %v7426_v22, %v1288_v20 }
 0x3af   :  { %6894 = vmatmul.mubr.msk.bf16.vlgmr.msra.gmra.mrb[80].mxu0 %vm2278_vm5, %v8533_v24  ;;  %6918 = vmatpush3.bf16.msra.mxu1 %v2208_v35  ;;  %v2218_v35 = vpack.c.bf16 %v2124_v58, %v2092_v50  ;;  %v2094_v15 = vsub.f32 %v7427_v30, %v1286_v8  ;;  %v2158_v3 = vmul.f32 %v7427_v30, %v1286_v8 }
 0x3b0   :  { %6908 = vmatpush3.bf16.msra.mxu0 %v2205_v23  ;;  %6919 = vmatprep.subr.bf16.mxu1 %v9994_v4  ;;  %v2095_v23 = vsub.f32 %v7426_v22, %v1288_v20  ;;  %v2228_v39 = vpack.c.bf16 %v2159_v10, %v2159_v10  ;;  %v10009_v22 = vld [vmem:[#allocation17_spill] sm:$0xff] }
 0x3b1   :  { %6909 = vmatprep.subr.bf16.mxu0 %v9994_v4  ;;  %6913 = vmatprep.mubr.msk.bf16.mxu0 %vm9976_vm3, %v9994_v4  ;;  %v2126_v16 = vmul.f32 %v2094_v15, %v2094_v15  ;;  %v2225_v12 = vpack.c.bf16 %v2158_v3, %v2158_v3 }
 0x3b2   :  { %6923 = vmatprep.mubr.msk.bf16.mxu1 %vm9976_vm3, %v9994_v4  ;;  %v3014_v34 = vsel %vm738_vm2, %v2228_v39, 0 }
 0x3b3   :  { %6920 = vmatpush3.bf16.msra.mxu1 %v2209_v47  ;;  %v2127_v47 = vmul.f32 %v2095_v23, %v2095_v23  ;;  %v2971_v37 = vsel %vm738_vm2, %v2225_v12, 0 }
 0x3b4   :  { %6910 = vmatpush3.bf16.msra.mxu0 %v2206_v1  ;;  %6921 = vmatprep.subr.bf16.mxu1 %v9994_v4  ;;  %v2223_v1 = vpack.c.bf16 %v1286_v8, %v7427_v30  ;;  %v10010_v30 = vld [vmem:[#allocation21_spill] sm:$0xff] }
 0x3b5   :  { %6911 = vmatprep.subr.bf16.mxu0 %v9994_v4  ;;  %v2227_v29 = vpack.c.bf16 %v2127_v47, %v2095_v23  ;;  %v7432_v47 = vld [vmem:[%s9959_s0 + $0xb8] sm:$0xff] }
 0x3b7   :  { %6922 = vmatpush3.bf16.msra.mxu1 %v2756_v17  ;;  %v10005_v17 = vld [vmem:[#allocation20_spill] sm:$0xff] }
 0x3b8   :  { %6912 = vmatpush3.bf16.msra.mxu0 %v2713_v38  ;;  %6937 = vmatprep.subr.bf16.mxu1 %v9994_v4  ;;  %v1292_v28 = vmul.f32 %v7383_v43, %v10005_v17  ;;  %v10006_v38 = vld [vmem:[#allocation18_spill] sm:$0xff] }
 0x3b9   :  { %6927 = vmatprep.subr.bf16.mxu0 %v9994_v4  ;;  %v1290_v57 = vmul.f32 %v7385_v33, %v10006_v38 }
 0x3ba   :  { %6924 = vmatmul.mubr.msk.bf16.vlgmr.msra.gmra.mrb[84].mxu1 %vm2278_vm5, %v8533_v24  ;;  %v2232_v11 = vpack.c.bf16 %v1292_v28, %v7428_v53  ;;  %v2161_v55 = vmul.f32 %v7428_v53, %v1292_v28 }
 0x3bb   :  { %6914 = vmatmul.mubr.msk.bf16.vlgmr.msra.gmra.mrb[84].mxu0 %vm2278_vm5, %v8533_v24  ;;  %6938 = vmatpush3.bf16.msra.mxu1 %v2214_v25  ;;  %v2224_v25 = vpack.c.bf16 %v2126_v16, %v2094_v15  ;;  %v2096_v32 = vsub.f32 %v7429_v41, %v1290_v57  ;;  %v2160_v0 = vmul.f32 %v7429_v41, %v1290_v57 }
 0x3bc   :  { %6928 = vmatpush3.bf16.msra.mxu0 %v2211_v46  ;;  %6939 = vmatprep.subr.bf16.mxu1 %v9994_v4  ;;  %v2097_v46 = vsub.f32 %v7428_v53, %v1292_v28  ;;  %v2234_v7 = vpack.c.bf16 %v2161_v55, %v2161_v55 }
 0x3bd   :  { %6929 = vmatprep.subr.bf16.mxu0 %v9994_v4  ;;  %6933 = vmatprep.mubr.msk.bf16.mxu0 %vm9976_vm3, %v9994_v4  ;;  %v2128_v27 = vmul.f32 %v2096_v32, %v2096_v32  ;;  %v2231_v26 = vpack.c.bf16 %v2160_v0, %v2160_v0 }
 0x3be   :  { %6943 = vmatprep.mubr.msk.bf16.mxu1 %vm9976_vm3, %v9994_v4  ;;  %v3100_v58 = vsel %vm738_vm2, %v2234_v7, 0 }
 0x3bf   :  { %6940 = vmatpush3.bf16.msra.mxu1 %v2215_v44  ;;  %v2129_v44 = vmul.f32 %v2097_v46, %v2097_v46  ;;  %v3057_v63 = vsel %vm738_vm2, %v2231_v26, 0 }
 0x3c0   :  { %6930 = vmatpush3.bf16.msra.mxu0 %v2212_v18  ;;  %6941 = vmatprep.subr.bf16.mxu1 %v9994_v4  ;;  %v2229_v18 = vpack.c.bf16 %v1290_v57, %v7429_v41 }
 0x3c1   :  { %6931 = vmatprep.subr.bf16.mxu0 %v9994_v4  ;;  %v2233_v50 = vpack.c.bf16 %v2129_v44, %v2097_v46 }
 0x3c3   :  { %6942 = vmatpush3.bf16.msra.mxu1 %v2842_v42  ;;  %v10007_v42 = vld [vmem:[#allocation19_spill] sm:$0xff] }
 0x3c4   :  { %6932 = vmatpush3.bf16.msra.mxu0 %v2799_v40  ;;  %6957 = vmatprep.subr.bf16.mxu1 %v9994_v4  ;;  %v1296_v19 = vmul.f32 %v7387_v45, %v10007_v42  ;;  %v10008_v40 = vld [vmem:[#allocation16_spill] sm:$0xff] }
 0x3c5   :  { %6947 = vmatprep.subr.bf16.mxu0 %v9994_v4  ;;  %v1294_v31 = vmul.f32 %v7389_v21, %v10008_v40  ;;  %v7434_v21 = vld [vmem:[%s9960_s1] sm:$0xff] }
 0x3c6   :  { %6944 = vmatmul.mubr.msk.bf16.vlgmr.msra.gmra.mrb[88].mxu1 %vm2278_vm5, %v8533_v24  ;;  %v2238_v60 = vpack.c.bf16 %v1296_v19, %v7430_v56 }
 0x3c7   :  { %6934 = vmatmul.mubr.msk.bf16.vlgmr.msra.gmra.mrb[88].mxu0 %vm2278_vm5, %v8533_v24  ;;  %6958 = vmatpush3.bf16.msra.mxu1 %v2220_v51  ;;  %v2230_v51 = vpack.c.bf16 %v2128_v27, %v2096_v32  ;;  %v2098_v62 = vsub.f32 %v7431_v59, %v1294_v31  ;;  %v2235_v2 = vpack.c.bf16 %v1294_v31, %v7431_v59 }
 0x3c8   :  { %6948 = vmatpush3.bf16.msra.mxu0 %v2217_v5  ;;  %6959 = vmatprep.subr.bf16.mxu1 %v9994_v4  ;;  %v2099_v5 = vsub.f32 %v7430_v56, %v1296_v19  ;;  %v2162_v6 = vmul.f32 %v7431_v59, %v1294_v31 }
 0x3c9   :  { %6949 = vmatprep.subr.bf16.mxu0 %v9994_v4  ;;  %6953 = vmatprep.mubr.msk.bf16.mxu0 %vm9976_vm3, %v9994_v4  ;;  %v2130_v8 = vmul.f32 %v2098_v62, %v2098_v62 }
 0x3ca   :  { %6963 = vmatprep.mubr.msk.bf16.mxu1 %vm9976_vm3, %v9994_v4  ;;  %v2131_v20 = vmul.f32 %v2099_v5, %v2099_v5 }
 0x3cb   :  { %6960 = vmatpush3.bf16.msra.mxu1 %v2221_v13  ;;  %v7391_v13 = vpop.eup %7390 }
 0x3cc   :  { %6950 = vmatpush3.bf16.msra.mxu0 %v2218_v35  ;;  %6961 = vmatprep.subr.bf16.mxu1 %v9994_v4  ;;  %v2163_v35 = vmul.f32 %v7430_v56, %v1296_v19  ;;  %v7393_v36 = vpop.eup %7392  ;;  %v1300_v23 = vmul.f32 %v7391_v13, %v10009_v22  ;;  %v2043_v41 = vpop.xlane.xlu1 %2042 }
 0x3cd   :  { %6951 = vmatprep.subr.bf16.mxu0 %v9994_v4  ;;  %v1298_v15 = vmul.f32 %v7393_v36, %v10010_v30 }
 0x3ce   :  { %v2240_v9 = vpack.c.bf16 %v2163_v35, %v2163_v35  ;;  %v2101_v43 = vsub.f32 %v7432_v47, %v1300_v23  ;;  %v2244_v33 = vpack.c.bf16 %v1300_v23, %v7432_v47 }
 0x3cf   :  { %6962 = vmatpush3.bf16.msra.mxu1 %v2928_v14  ;;  %v2239_v14 = vpack.c.bf16 %v2131_v20, %v2099_v5 }
 0x3d0   :  { %6952 = vmatpush3.bf16.msra.mxu0 %v2885_v48  ;;  %6977 = vmatprep.subr.bf16.mxu1 %v9994_v4  ;;  %v2236_v48 = vpack.c.bf16 %v2130_v8, %v2098_v62  ;;  %v3186_v49 = vsel %vm738_vm2, %v2240_v9, 0  ;;  %v2133_v3 = vmul.f32 %v2101_v43, %v2101_v43  ;;  %v7436_v9 = vld [vmem:[%s9960_s1 + $0x10] sm:$0xff] }
 0x3d1   :  { %6967 = vmatprep.subr.bf16.mxu0 %v9994_v4 }
 0x3d2   :  { %6964 = vmatmul.mubr.msk.bf16.vlgmr.msra.gmra.mrb[92].mxu1 %vm2278_vm5, %v8533_v24  ;;  %v2245_v57 = vpack.c.bf16 %v2133_v3, %v2101_v43 }
 0x3d3   :  { %6954 = vmatmul.mubr.msk.bf16.vlgmr.msra.gmra.mrb[92].mxu0 %vm2278_vm5, %v8533_v24  ;;  %6978 = vmatpush3.bf16.msra.mxu1 %v2226_v52  ;;  %v2237_v52 = vpack.c.bf16 %v2162_v6, %v2162_v6 }
 0x3d4   :  { %6968 = vmatpush3.bf16.msra.mxu0 %v2223_v1  ;;  %6979 = vmatprep.subr.bf16.mxu1 %v9994_v4  ;;  %v7433_v1 = vld [vmem:[%s9959_s0 + $0xb0] sm:$0xff] }
 0x3d5   :  { %6969 = vmatprep.subr.bf16.mxu0 %v9994_v4  ;;  %6973 = vmatprep.mubr.msk.bf16.mxu0 %vm9976_vm3, %v9994_v4  ;;  %v2100_v16 = vsub.f32 %v7433_v1, %v1298_v15  ;;  %v3143_v10 = vsel %vm738_vm2, %v2237_v52, 0  ;;  %v2241_v17 = vpack.c.bf16 %v1298_v15, %v7433_v1  ;;  %v2164_v38 = vmul.f32 %v7433_v1, %v1298_v15 }
 0x3d6   :  { %6983 = vmatprep.mubr.msk.bf16.mxu1 %vm9976_vm3, %v9994_v4 }
 0x3d7   :  { %6980 = vmatpush3.bf16.msra.mxu1 %v2227_v29  ;;  %v2132_v28 = vmul.f32 %v2100_v16, %v2100_v16  ;;  %v2165_v29 = vmul.f32 %v7432_v47, %v1300_v23  ;;  %v2243_v12 = vpack.c.bf16 %v2164_v38, %v2164_v38 }
 0x3d8   :  { %6970 = vmatpush3.bf16.msra.mxu0 %v2224_v25  ;;  %6981 = vmatprep.subr.bf16.mxu1 %v9994_v4 }
 0x3d9   :  { %6971 = vmatprep.subr.bf16.mxu0 %v9994_v4  ;;  %v2242_v25 = vpack.c.bf16 %v2132_v28, %v2100_v16  ;;  %v2246_v39 = vpack.c.bf16 %v2165_v29, %v2165_v29  ;;  %v3229_v46 = vsel %vm738_vm2, %v2243_v12, 0 }
 0x3db   :  { %6982 = vmatpush3.bf16.msra.mxu1 %v3014_v34  ;;  %v3272_v53 = vsel %vm738_vm2, %v2246_v39, 0  ;;  %v2040_v34 = vpop.xlane.xlu0 %2039 }
 0x3dc   :  { %6972 = vmatpush3.bf16.msra.mxu0 %v2971_v37  ;;  %6997 = vmatprep.subr.bf16.mxu1 %v9994_v4  ;;  %7394 = vrcp.f32 %v2040_v34  ;;  %v2049_v40 = vpop.xlane.xlu1 %2048 }
 0x3dd   :  { %6987 = vmatprep.subr.bf16.mxu0 %v9994_v4  ;;  %7396 = vrcp.f32 %v2043_v41 }
 0x3de   :  { %6984 = vmatmul.mubr.msk.bf16.vlgmr.msra.gmra.mrb[96].mxu1 %vm2278_vm5, %v8533_v24 }
 0x3df   :  { %6974 = vmatmul.mubr.msk.bf16.vlgmr.msra.gmra.mrb[96].mxu0 %vm2278_vm5, %v8533_v24  ;;  %6998 = vmatpush3.bf16.msra.mxu1 %v2232_v11  ;;  %v2046_v37 = vpop.xlane.xlu0 %2045 }
 0x3e0   :  { %6988 = vmatpush3.bf16.msra.mxu0 %v2229_v18  ;;  %6999 = vmatprep.subr.bf16.mxu1 %v9994_v4  ;;  %7398 = vrcp.f32 %v2046_v37 }
 0x3e1   :  { %6989 = vmatprep.subr.bf16.mxu0 %v9994_v4  ;;  %6993 = vmatprep.mubr.msk.bf16.mxu0 %vm9976_vm3, %v9994_v4  ;;  %7400 = vrcp.f32 %v2049_v40  ;;  %v7440_v40 = vld [vmem:[%s9960_s1 + $0x28] sm:$0xff] }
 0x3e2   :  { %7003 = vmatprep.mubr.msk.bf16.mxu1 %vm9976_vm3, %v9994_v4 }
 0x3e3   :  { %7000 = vmatpush3.bf16.msra.mxu1 %v2233_v50 }
 0x3e4   :  { %6990 = vmatpush3.bf16.msra.mxu0 %v2230_v51  ;;  %7001 = vmatprep.subr.bf16.mxu1 %v9994_v4  ;;  %v7435_v51 = vld [vmem:[%s9960_s1 + $0x8] sm:$0xff] }
 0x3e5   :  { %6991 = vmatprep.subr.bf16.mxu0 %v9994_v4 }
 0x3e6   :  { %v7395_v32 = vpop.eup %7394 }
 0x3e7   :  { %7002 = vmatpush3.bf16.msra.mxu1 %v3100_v58  ;;  %v7397_v11 = vpop.eup %7396 }
 0x3e8   :  { %6992 = vmatpush3.bf16.msra.mxu0 %v3057_v63  ;;  %7017 = vmatprep.subr.bf16.mxu1 %v9994_v4 }
 0x3e9   :  { %7007 = vmatprep.subr.bf16.mxu0 %v9994_v4 }
 0x3ea   :  { %7004 = vmatmul.mubr.msk.bf16.vlgmr.msra.gmra.mrb[100].mxu1 %vm2278_vm5, %v8533_v24  ;;  %v7399_v8 = vpop.eup %7398 }
 0x3eb   :  { %6994 = vmatmul.mubr.msk.bf16.vlgmr.msra.gmra.mrb[100].mxu0 %vm2278_vm5, %v8533_v24  ;;  %7018 = vmatpush3.bf16.msra.mxu1 %v2238_v60  ;;  %v2052_v35 = vpop.xlane.xlu0 %2051  ;;  %v7401_v6 = vpop.eup %7400 }
 0x3ec   :  { %7008 = vmatpush3.bf16.msra.mxu0 %v2235_v2  ;;  %7019 = vmatprep.subr.bf16.mxu1 %v9994_v4  ;;  %v2055_v1 = vpop.xlane.xlu1 %2054  ;;  %7402 = vrcp.f32 %v2052_v35 }
 0x3ed   :  { %7009 = vmatprep.subr.bf16.mxu0 %v9994_v4  ;;  %7013 = vmatprep.mubr.msk.bf16.mxu0 %vm9976_vm3, %v9994_v4  ;;  %7404 = vrcp.f32 %v2055_v1 }
 0x3ee   :  { %7023 = vmatprep.mubr.msk.bf16.mxu1 %vm9976_vm3, %v9994_v4 }
 0x3ef   :  { %7020 = vmatpush3.bf16.msra.mxu1 %v2239_v14 }
 0x3f0   :  { %7010 = vmatpush3.bf16.msra.mxu0 %v2236_v48  ;;  %7021 = vmatprep.subr.bf16.mxu1 %v9994_v4 }
 0x3f1   :  { %7011 = vmatprep.subr.bf16.mxu0 %v9994_v4 }
 0x3f3   :  { %7022 = vmatpush3.bf16.msra.mxu1 %v3186_v49 }
 0x3f4   :  { %7012 = vmatpush3.bf16.msra.mxu0 %v3143_v10  ;;  %7037 = vmatprep.subr.bf16.mxu1 %v9994_v4  ;;  %v7437_v10 = vld [vmem:[%s9960_s1 + $0x18] sm:$0xff] }
 0x3f5   :  { %7027 = vmatprep.subr.bf16.mxu0 %v9994_v4 }
 0x3f6   :  { %7024 = vmatmul.mubr.msk.bf16.vlgmr.msra.gmra.mrb[104].mxu1 %vm2278_vm5, %v8533_v24  ;;  %v7403_v34 = vpop.eup %7402 }
 0x3f7   :  { %7014 = vmatmul.mubr.msk.bf16.vlgmr.msra.gmra.mrb[104].mxu0 %vm2278_vm5, %v8533_v24  ;;  %7038 = vmatpush3.bf16.msra.mxu1 %v2244_v33  ;;  %v7405_v37 = vpop.eup %7404 }
 0x3f8   :  { %7028 = vmatpush3.bf16.msra.mxu0 %v2241_v17  ;;  %7039 = vmatprep.subr.bf16.mxu1 %v9994_v4 }
 0x3f9   :  { %7029 = vmatprep.subr.bf16.mxu0 %v9994_v4  ;;  %7033 = vmatprep.mubr.msk.bf16.mxu0 %vm9976_vm3, %v9994_v4 }
 0x3fa   :  { %7043 = vmatprep.mubr.msk.bf16.mxu1 %vm9976_vm3, %v9994_v4 }
 0x3fb   :  { %7040 = vmatpush3.bf16.msra.mxu1 %v2245_v57  ;;  %v2058_v41 = vpop.xlane.xlu0 %2057 }
 0x3fc   :  { %7030 = vmatpush3.bf16.msra.mxu0 %v2242_v25  ;;  %7041 = vmatprep.subr.bf16.mxu1 %v9994_v4  ;;  %7406 = vrcp.f32 %v2058_v41 }
 0x3fd   :  { %7031 = vmatprep.subr.bf16.mxu0 %v9994_v4 }
 0x3ff   :  { %7042 = vmatpush3.bf16.msra.mxu1 %v3272_v53 }
 0x400   :  { %7032 = vmatpush3.bf16.msra.mxu0 %v3229_v46  ;;  %7057 = vmatprep.subr.bf16.mxu1 %v9994_v4 }
 0x401   :  { %7047 = vmatprep.subr.bf16.mxu0 %v9994_v4 }
 0x402   :  { %7044 = vmatmul.mubr.msk.bf16.vlgmr.msra.gmra.mrb[108].mxu1 %vm2278_vm5, %v8533_v24 }
 0x403   :  { %7034 = vmatmul.mubr.msk.bf16.vlgmr.msra.gmra.mrb[108].mxu0 %vm2278_vm5, %v8533_v24  ;;  %7063 = vmatprep.mubr.msk.bf16.mxu1 %vm9976_vm3, %v9994_v4 }
 0x404   :  { %7053 = vmatprep.mubr.msk.bf16.mxu0 %vm9976_vm3, %v9994_v4 }
 0x412   :  { %v1717_v61 = vpop.f32.mrb[48].mxu0 }
 0x413   :  { %v2063_v44 = vmul.f32 %v7395_v32, %v1717_v61  ;;  %v1762_v45 = vpop.f32.mrb[48].mxu1  ;;  %v6749_v54 = vpop.f32.mrb[49].mxu0 }
 0x414   :  { %v2065_v18 = vmul.f32 %v7397_v11, %v1762_v45  ;;  %v6757_v27 = vpop.f32.mrb[49].mxu1  ;;  %v1720_v55 = vpop.f32.mrb[50].mxu0 }
 0x415   :  { %v2102_v0 = vsub.f32 %v7434_v21, %v2063_v44  ;;  %v2247_v42 = vpack.c.bf16 %v2063_v44, %v7434_v21  ;;  %v1765_v19 = vpop.f32.mrb[50].mxu1  ;;  %v6750_v50 = vpop.f32.mrb[51].mxu0  ;;  %v2166_v31 = vmul.f32 %v7434_v21, %v2063_v44  ;;  %v8842_v44 = vld [vmem:[%s9961_s2] sm:$0xf] }
 0x416   :  { %v2103_v7 = vsub.f32 %v7435_v51, %v2065_v18  ;;  %v2250_v26 = vpack.c.bf16 %v2065_v18, %v7435_v51  ;;  %v6758_v56 = vpop.f32.mrb[51].mxu1  ;;  %v2167_v58 = vmul.f32 %v7435_v51, %v2065_v18  ;;  %v2061_v19 = vpop.xlane.xlu1 %2060 }
 0x417   :  { %v2134_v5 = vmul.f32 %v2102_v0, %v2102_v0  ;;  %7048 = vmatpush3.bf16.msra.mxu0 %v2247_v42  ;;  %v2249_v60 = vpack.c.bf16 %v2166_v31, %v2166_v31  ;;  %7408 = vrcp.f32 %v2061_v19 }
 0x418   :  { %v2135_v59 = vmul.f32 %v2103_v7, %v2103_v7  ;;  %7058 = vmatpush3.bf16.msra.mxu1 %v2250_v26  ;;  %7049 = vmatprep.subr.bf16.mxu0 %v9994_v4  ;;  %v2252_v20 = vpack.c.bf16 %v2167_v58, %v2167_v58 }
 0x419   :  { %v2248_v62 = vpack.c.bf16 %v2134_v5, %v2102_v0  ;;  %7059 = vmatprep.subr.bf16.mxu1 %v9994_v4  ;;  %v3315_v13 = vsel %vm738_vm2, %v2249_v60, 0 }
 0x41a   :  { %v2251_v63 = vpack.c.bf16 %v2135_v59, %v2103_v7  ;;  %v3358_v2 = vsel %vm738_vm2, %v2252_v20, 0 }
 0x41b   :  { %7050 = vmatpush3.bf16.msra.mxu0 %v2248_v62 }
 0x41c   :  { %7060 = vmatpush3.bf16.msra.mxu1 %v2251_v63  ;;  %7051 = vmatprep.subr.bf16.mxu0 %v9994_v4 }
 0x41d   :  { %7061 = vmatprep.subr.bf16.mxu1 %v9994_v4 }
 0x41f   :  { %7052 = vmatpush3.bf16.msra.mxu0 %v3315_v13  ;;  %v7407_v13 = vpop.eup %7406 }
 0x420   :  { %7062 = vmatpush3.bf16.msra.mxu1 %v3358_v2  ;;  %7067 = vmatprep.subr.bf16.mxu0 %v9994_v4 }
 0x421   :  { %7077 = vmatprep.subr.bf16.mxu1 %v9994_v4 }
 0x422   :  { %v1807_v36 = vpop.f32.mrb[52].mxu0  ;;  %7054 = vmatmul.mubr.msk.bf16.vlgmr.msra.gmra.mrb[112].mxu0 %vm2278_vm5, %v8533_v24 }
 0x423   :  { %v2067_v22 = vmul.f32 %v7399_v8, %v1807_v36  ;;  %v1852_v23 = vpop.f32.mrb[52].mxu1  ;;  %v6765_v14 = vpop.f32.mrb[53].mxu0  ;;  %7064 = vmatmul.mubr.msk.bf16.vlgmr.msra.gmra.mrb[112].mxu1 %vm2278_vm5, %v8533_v24  ;;  %7073 = vmatprep.mubr.msk.bf16.mxu0 %vm9976_vm3, %v9994_v4 }
 0x424   :  { %v2069_v30 = vmul.f32 %v7401_v6, %v1852_v23  ;;  %v6773_v15 = vpop.f32.mrb[53].mxu1  ;;  %v1810_v48 = vpop.f32.mrb[54].mxu0  ;;  %7083 = vmatprep.mubr.msk.bf16.mxu1 %vm9976_vm3, %v9994_v4 }
 0x425   :  { %v2104_v52 = vsub.f32 %v7436_v9, %v2067_v22  ;;  %v2253_v47 = vpack.c.bf16 %v2067_v22, %v7436_v9  ;;  %v1855_v43 = vpop.f32.mrb[54].mxu1  ;;  %v6766_v49 = vpop.f32.mrb[55].mxu0  ;;  %v2168_v16 = vmul.f32 %v7436_v9, %v2067_v22 }
 0x426   :  { %v2105_v33 = vsub.f32 %v7437_v10, %v2069_v30  ;;  %v2256_v3 = vpack.c.bf16 %v2069_v30, %v7437_v10  ;;  %v6774_v17 = vpop.f32.mrb[55].mxu1  ;;  %v2169_v29 = vmul.f32 %v7437_v10, %v2069_v30  ;;  %v7409_v8 = vpop.eup %7408  ;;  %v7441_v30 = vld [vmem:[%s9960_s1 + $0x30] sm:$0xff]  ;;  %v7442_v43 = vld [vmem:[%s9960_s1 + $0x38] sm:$0xff] }
 0x427   :  { %v2136_v28 = vmul.f32 %v2104_v52, %v2104_v52  ;;  %7068 = vmatpush3.bf16.msra.mxu0 %v2253_v47  ;;  %v2255_v39 = vpack.c.bf16 %v2168_v16, %v2168_v16 }
 0x428   :  { %v2137_v38 = vmul.f32 %v2105_v33, %v2105_v33  ;;  %7078 = vmatpush3.bf16.msra.mxu1 %v2256_v3  ;;  %7069 = vmatprep.subr.bf16.mxu0 %v9994_v4  ;;  %v2258_v12 = vpack.c.bf16 %v2169_v29, %v2169_v29 }
 0x429   :  { %v2254_v57 = vpack.c.bf16 %v2136_v28, %v2104_v52  ;;  %7079 = vmatprep.subr.bf16.mxu1 %v9994_v4  ;;  %v3401_v53 = vsel %vm738_vm2, %v2255_v39, 0 }
 0x42a   :  { %v2257_v25 = vpack.c.bf16 %v2137_v38, %v2105_v33  ;;  %v3444_v46 = vsel %vm738_vm2, %v2258_v12, 0  ;;  %v8890_v12 = vld [vmem:[%s9962_s3] ss:$0 sm:$0xff] }
 0x42b   :  { %7070 = vmatpush3.bf16.msra.mxu0 %v2254_v57  ;;  %v7280_v57 = vld [vmem:[%s9963_s4] sm:$0xff]  }
 0x42c   :  { %7080 = vmatpush3.bf16.msra.mxu1 %v2257_v25  ;;  %7071 = vmatprep.subr.bf16.mxu0 %v9994_v4 }
 0x42d   :  { %7081 = vmatprep.subr.bf16.mxu1 %v9994_v4 }
 0x42f   :  { %7072 = vmatpush3.bf16.msra.mxu0 %v3401_v53  ;;  %v7281_v53 = vld [vmem:[%s9963_s4 + $0x8] sm:$0xff]  }
 0x430   :  { %7082 = vmatpush3.bf16.msra.mxu1 %v3444_v46  ;;  %7087 = vmatprep.subr.bf16.mxu0 %v9994_v4 }
 0x431   :  { %7097 = vmatprep.subr.bf16.mxu1 %v9994_v4 }
 0x432   :  { %v1897_v32 = vpop.f32.mrb[56].mxu0  ;;  %7074 = vmatmul.mubr.msk.bf16.vlgmr.msra.gmra.mrb[116].mxu0 %vm2278_vm5, %v8533_v24  ;;  %v7439_v24 = vld [vmem:[%s9960_s1 + $0x20] sm:$0xff] }
 0x433   :  { %v2071_v61 = vmul.f32 %v7403_v34, %v1897_v32  ;;  %v1942_v11 = vpop.f32.mrb[56].mxu1  ;;  %7084 = vmatmul.mubr.msk.bf16.vlgmr.msra.gmra.mrb[116].mxu1 %vm2278_vm5, %v8842_v44  ;;  %v6781_v45 = vpop.f32.mrb[57].mxu0  ;;  %7093 = vmatprep.mubr.msk.bf16.mxu0 %vm9976_vm3, %v9994_v4 }
 0x434   :  { %v2073_v54 = vmul.f32 %v7405_v37, %v1942_v11  ;;  %v6789_v18 = vpop.f32.mrb[57].mxu1  ;;  %v1900_v27 = vpop.f32.mrb[58].mxu0  ;;  %7103 = vmatprep.mubr.msk.bf16.mxu1 %vm9976_vm3, %v9994_v4 }
 0x435   :  { %v2106_v55 = vsub.f32 %v7439_v24, %v2071_v61  ;;  %v2259_v21 = vpack.c.bf16 %v2071_v61, %v7439_v24  ;;  %v1945_v0 = vpop.f32.mrb[58].mxu1  ;;  %v6782_v42 = vpop.f32.mrb[59].mxu0  ;;  %v2170_v50 = vmul.f32 %v7439_v24, %v2071_v61 }
 0x436   :  { %v2107_v31 = vsub.f32 %v7440_v40, %v2073_v54  ;;  %v2262_v51 = vpack.c.bf16 %v2073_v54, %v7440_v40  ;;  %v6790_v7 = vpop.f32.mrb[59].mxu1  ;;  %v2171_v56 = vmul.f32 %v7440_v40, %v2073_v54 }
 0x437   :  { %v2138_v26 = vmul.f32 %v2106_v55, %v2106_v55  ;;  %7088 = vmatpush3.bf16.msra.mxu0 %v2259_v21  ;;  %v2261_v62 = vpack.c.bf16 %v2170_v50, %v2170_v50 }
 0x438   :  { %v2139_v5 = vmul.f32 %v2107_v31, %v2107_v31  ;;  %7098 = vmatpush3.bf16.msra.mxu1 %v2262_v51  ;;  %7089 = vmatprep.subr.bf16.mxu0 %v9994_v4  ;;  %v2264_v63 = vpack.c.bf16 %v2171_v56, %v2171_v56 }
 0x439   :  { %v2260_v58 = vpack.c.bf16 %v2138_v26, %v2106_v55  ;;  %7099 = vmatprep.subr.bf16.mxu1 %v9994_v4  ;;  %v3487_v60 = vsel %vm738_vm2, %v2261_v62, 0 }
 0x43a   :  { %v2263_v59 = vpack.c.bf16 %v2139_v5, %v2107_v31  ;;  %v3530_v20 = vsel %vm738_vm2, %v2264_v63, 0 }
 0x43b   :  { %7090 = vmatpush3.bf16.msra.mxu0 %v2260_v58 }
 0x43c   :  { %7100 = vmatpush3.bf16.msra.mxu1 %v2263_v59  ;;  %7091 = vmatprep.subr.bf16.mxu0 %v9994_v4 }
 0x43d   :  { %7101 = vmatprep.subr.bf16.mxu1 %v9994_v4 }
 0x43f   :  { %7092 = vmatpush3.bf16.msra.mxu0 %v3487_v60 }
 0x440   :  { %7102 = vmatpush3.bf16.msra.mxu1 %v3530_v20  ;;  %7107 = vmatprep.subr.bf16.mxu0 %v9994_v4 }
 0x441   :  { %7117 = vmatprep.subr.bf16.mxu1 %v9994_v4 }
 0x442   :  { %v1987_v2 = vpop.f32.mrb[60].mxu0  ;;  %7094 = vmatmul.mubr.msk.bf16.vlgmr.msra.gmra.mrb[120].mxu0 %vm2278_vm5, %v8842_v44 }
 0x443   :  { %v2075_v35 = vmul.f32 %v7407_v13, %v1987_v2  ;;  %v2032_v36 = vpop.f32.mrb[60].mxu1  ;;  %v6797_v6 = vpop.f32.mrb[61].mxu0  ;;  %7104 = vmatmul.mubr.msk.bf16.vlgmr.msra.gmra.mrb[120].mxu1 %vm2278_vm5, %v8842_v44  ;;  %7113 = vmatprep.mubr.msk.bf16.mxu0 %vm9976_vm3, %v9994_v4 }
 0x444   :  { %v2077_v22 = vmul.f32 %v7409_v8, %v2032_v36  ;;  %v6805_v23 = vpop.f32.mrb[61].mxu1  ;;  %v1990_v14 = vpop.f32.mrb[62].mxu0  ;;  %7123 = vmatprep.mubr.msk.bf16.mxu1 %vm9976_vm3, %v9994_v4  ;;  %vm4320_vm3 = vcmask 784384  }
 0x445   :  { %v2108_v15 = vsub.f32 %v7441_v30, %v2075_v35  ;;  %v2265_v48 = vpack.c.bf16 %v2075_v35, %v7441_v30  ;;  %v2035_v9 = vpop.f32.mrb[62].mxu1  ;;  %v6798_v52 = vpop.f32.mrb[63].mxu0  ;;  %v2172_v47 = vmul.f32 %v7441_v30, %v2075_v35 }
 0x446   :  { %v2109_v49 = vsub.f32 %v7442_v43, %v2077_v22  ;;  %v2268_v1 = vpack.c.bf16 %v2077_v22, %v7442_v43  ;;  %v6806_v16 = vpop.f32.mrb[63].mxu1  ;;  %v2173_v33 = vmul.f32 %v7442_v43, %v2077_v22 }
 0x447   :  { %v2140_v10 = vmul.f32 %v2108_v15, %v2108_v15  ;;  %7108 = vmatpush3.bf16.msra.mxu0 %v2265_v48  ;;  %v2267_v29 = vpack.c.bf16 %v2172_v47, %v2172_v47 }
 0x448   :  { %v2141_v3 = vmul.f32 %v2109_v49, %v2109_v49  ;;  %7118 = vmatpush3.bf16.msra.mxu1 %v2268_v1  ;;  %7109 = vmatprep.subr.bf16.mxu0 %v9994_v4  ;;  %v2270_v38 = vpack.c.bf16 %v2173_v33, %v2173_v33 }
 0x449   :  { %v2266_v17 = vpack.c.bf16 %v2140_v10, %v2108_v15  ;;  %7119 = vmatprep.subr.bf16.mxu1 %v9994_v4  ;;  %v3573_v25 = vsel %vm738_vm2, %v2267_v29, 0 }
 0x44a   :  { %v2269_v28 = vpack.c.bf16 %v2141_v3, %v2109_v49  ;;  %v3616_v39 = vsel %vm738_vm2, %v2270_v38, 0  ;;  %vm4155_vm2 = vcmask 785411  }
 0x44b   :  { %7110 = vmatpush3.bf16.msra.mxu0 %v2266_v17 }
 0x44c   :  { %7120 = vmatpush3.bf16.msra.mxu1 %v2269_v28  ;;  %7111 = vmatprep.subr.bf16.mxu0 %v9994_v4 }
 0x44d   :  { %7121 = vmatprep.subr.bf16.mxu1 %v9994_v4 }
 0x44f   :  { %7112 = vmatpush3.bf16.msra.mxu0 %v3573_v25 }
 0x450   :  { %7122 = vmatpush3.bf16.msra.mxu1 %v3616_v39  ;;  %7127 = vmatprep.subr.bf16.mxu0 %v7280_v57 }
 0x451   :  { %v2362_v46 = vpop.f32.mrb[64].mxu1  ;;  %7211 = vmatprep.subr.bf16.mxu1 %v7280_v57 }
 0x452   :  { %7114 = vmatmul.mubr.msk.bf16.vlgmr.msra.gmra.mrb[124].mxu0 %vm2278_vm5, %v8842_v44  ;;  %v2319_v4 = vpop.f32.mrb[64].mxu0  ;;  %v2363_v34 = vadd.f32 %v8890_v12, %v2362_v46  ;;  %v6825_v41 = vpop.f32.mrb[65].mxu1 }
 0x453   :  { %7124 = vmatmul.mubr.msk.bf16.vlgmr.msra.gmra.mrb[124].mxu1 %vm2278_vm5, %v8842_v44  ;;  %v2320_v32 = vadd.f32 %v8890_v12, %v2319_v4  ;;  %v6815_v37 = vpop.f32.mrb[65].mxu0  ;;  %v2365_v61 = vpop.f32.mrb[66].mxu1  ;;  %7128 = vmatpush3.bf16.msra.mxu0 %v7280_v57  ;;  %vm4037_vm5 = vcmask 785408  }
 0x454   :  { %v3659_v11 = vmax.f32 %v2363_v34, 0.0  ;;  %v2322_v45 = vpop.f32.mrb[66].mxu0  ;;  %v6826_v54 = vpop.f32.mrb[67].mxu1  ;;  %7129 = vmatprep.subr.bf16.mxu0 %v7281_v53  ;;  %7213 = vmatpush3.bf16.msra.mxu1 %v7280_v57 }
 0x455   :  { %v3658_v18 = vmax.f32 %v2320_v32, 0.0  ;;  %v6816_v27 = vpop.f32.mrb[67].mxu0  ;;  %7212 = vmatprep.subr.bf16.mxu1 %v7281_v53 }
 0x457   :  { %v3690_v24 = vpack.c.bf16 %v3659_v11, %v3658_v18  ;;  %7130 = vmatpush3.bf16.msra.mxu0 %v7281_v53 }
 0x458   :  { %7214 = vmatpush3.bf16.msra.mxu1 %v7281_v53 }
 0x459   :  { %7131 = vmatprep.mubr.msk.bf16.mxu0 %vm114_vm0, %v3690_v24 }
 0x45d   :  { %v2448_v55 = vpop.f32.mrb[68].mxu1 }
 0x45e   :  { %v2405_v44 = vpop.f32.mrb[68].mxu0  ;;  %v2449_v21 = vadd.f32 %v8890_v12, %v2448_v55  ;;  %v6845_v0 = vpop.f32.mrb[69].mxu1 }
 0x45f   :  { %v2406_v42 = vadd.f32 %v8890_v12, %v2405_v44  ;;  %v6835_v19 = vpop.f32.mrb[69].mxu0  ;;  %v2451_v50 = vpop.f32.mrb[70].mxu1 }
 0x460   :  { %v3661_v40 = vmax.f32 %v2449_v21, 0.0  ;;  %v2408_v31 = vpop.f32.mrb[70].mxu0  ;;  %v6846_v51 = vpop.f32.mrb[71].mxu1 }
 0x461   :  { %v3660_v7 = vmax.f32 %v2406_v42, 0.0  ;;  %v6836_v26 = vpop.f32.mrb[71].mxu0 }
 0x463   :  { %v3691_v56 = vpack.c.bf16 %v3661_v40, %v3660_v7 }
 0x465   :  { %7132 = vmatmul.mubr.msk.bf16.vlgmr.msra.gmra.mrb[128].mxu0 %vm114_vm0, %v3691_v56 }
 0x469   :  { %v2534_v5 = vpop.f32.mrb[72].mxu1 }
 0x46a   :  { %v2491_v58 = vpop.f32.mrb[72].mxu0  ;;  %v2535_v59 = vadd.f32 %v8890_v12, %v2534_v5  ;;  %v6865_v62 = vpop.f32.mrb[73].mxu1 }
 0x46b   :  { %v2492_v63 = vadd.f32 %v8890_v12, %v2491_v58  ;;  %v6855_v60 = vpop.f32.mrb[73].mxu0  ;;  %v2537_v20 = vpop.f32.mrb[74].mxu1 }
 0x46c   :  { %v3663_v13 = vmax.f32 %v2535_v59, 0.0  ;;  %v2494_v2 = vpop.f32.mrb[74].mxu0  ;;  %v6866_v8 = vpop.f32.mrb[75].mxu1 }
 0x46d   :  { %v3662_v35 = vmax.f32 %v2492_v63, 0.0  ;;  %v6856_v36 = vpop.f32.mrb[75].mxu0 }
 0x46f   :  { %v3692_v6 = vpack.c.bf16 %v3663_v13, %v3662_v35 }
 0x471   :  { %7135 = vmatprep.mubr.msk.bf16.mxu0 %vm114_vm0, %v3692_v6 }
 0x475   :  { %v2620_v22 = vpop.f32.mrb[76].mxu1 }
 0x476   :  { %v2577_v23 = vpop.f32.mrb[76].mxu0  ;;  %v2621_v14 = vadd.f32 %v8890_v12, %v2620_v22  ;;  %v6885_v30 = vpop.f32.mrb[77].mxu1 }
 0x477   :  { %v2578_v15 = vadd.f32 %v8890_v12, %v2577_v23  ;;  %v6875_v48 = vpop.f32.mrb[77].mxu0  ;;  %v2623_v9 = vpop.f32.mrb[78].mxu1 }
 0x478   :  { %v3665_v52 = vmax.f32 %v2621_v14, 0.0  ;;  %v2580_v47 = vpop.f32.mrb[78].mxu0  ;;  %v6886_v43 = vpop.f32.mrb[79].mxu1 }
 0x479   :  { %v3664_v49 = vmax.f32 %v2578_v15, 0.0  ;;  %v6876_v1 = vpop.f32.mrb[79].mxu0 }
 0x47b   :  { %v3693_v16 = vpack.c.bf16 %v3665_v52, %v3664_v49 }
 0x47d   :  { %7136 = vmatmul.mubr.msk.bf16.gmra.mrb[132].mxu0 %vm114_vm0, %v3693_v16 }
 0x481   :  { %v2706_v10 = vpop.f32.mrb[80].mxu1 }
 0x482   :  { %v2663_v33 = vpop.f32.mrb[80].mxu0  ;;  %v2707_v3 = vadd.f32 %v8890_v12, %v2706_v10  ;;  %v6905_v17 = vpop.f32.mrb[81].mxu1 }
 0x483   :  { %v2664_v28 = vadd.f32 %v8890_v12, %v2663_v33  ;;  %v6895_v29 = vpop.f32.mrb[81].mxu0  ;;  %v2709_v38 = vpop.f32.mrb[82].mxu1 }
 0x484   :  { %v3667_v57 = vmax.f32 %v2707_v3, 0.0  ;;  %v2666_v25 = vpop.f32.mrb[82].mxu0  ;;  %v6906_v39 = vpop.f32.mrb[83].mxu1 }
 0x485   :  { %v3666_v53 = vmax.f32 %v2664_v28, 0.0  ;;  %v6896_v46 = vpop.f32.mrb[83].mxu0 }
 0x487   :  { %v3694_v4 = vpack.c.bf16 %v3667_v57, %v3666_v53 }
 0x489   :  { %7139 = vmatprep.mubr.msk.bf16.mxu0 %vm114_vm0, %v3694_v4 }
 0x48d   :  { %v2792_v34 = vpop.f32.mrb[84].mxu1 }
 0x48e   :  { %v2749_v41 = vpop.f32.mrb[84].mxu0  ;;  %v2793_v32 = vadd.f32 %v8890_v12, %v2792_v34  ;;  %v6925_v37 = vpop.f32.mrb[85].mxu1 }
 0x48f   :  { %v2750_v61 = vadd.f32 %v8890_v12, %v2749_v41  ;;  %v6915_v11 = vpop.f32.mrb[85].mxu0  ;;  %v2795_v45 = vpop.f32.mrb[86].mxu1 }
 0x490   :  { %v3669_v54 = vmax.f32 %v2793_v32, 0.0  ;;  %v2752_v18 = vpop.f32.mrb[86].mxu0  ;;  %v6926_v27 = vpop.f32.mrb[87].mxu1 }
 0x491   :  { %v3668_v24 = vmax.f32 %v2750_v61, 0.0  ;;  %v6916_v55 = vpop.f32.mrb[87].mxu0 }
 0x493   :  { %v3695_v44 = vpack.c.bf16 %v3669_v54, %v3668_v24 }
 0x495   :  { %7140 = vmatmul.mubr.msk.bf16.gmra.mrb[136].mxu0 %vm114_vm0, %v3695_v44 }
 0x499   :  { %v2878_v21 = vpop.f32.mrb[88].mxu1 }
 0x49a   :  { %v2835_v0 = vpop.f32.mrb[88].mxu0  ;;  %v2879_v42 = vadd.f32 %v8890_v12, %v2878_v21  ;;  %v6945_v19 = vpop.f32.mrb[89].mxu1 }
 0x49b   :  { %v2836_v50 = vadd.f32 %v8890_v12, %v2835_v0  ;;  %v6935_v40 = vpop.f32.mrb[89].mxu0  ;;  %v2881_v31 = vpop.f32.mrb[90].mxu1 }
 0x49c   :  { %v3671_v51 = vmax.f32 %v2879_v42, 0.0  ;;  %v2838_v7 = vpop.f32.mrb[90].mxu0  ;;  %v6946_v26 = vpop.f32.mrb[91].mxu1 }
 0x49d   :  { %v3670_v56 = vmax.f32 %v2836_v50, 0.0  ;;  %v6936_v5 = vpop.f32.mrb[91].mxu0 }
 0x49f   :  { %v3696_v58 = vpack.c.bf16 %v3671_v51, %v3670_v56 }
 0x4a1   :  { %7143 = vmatprep.mubr.msk.bf16.mxu0 %vm114_vm0, %v3696_v58 }
 0x4a5   :  { %v2964_v59 = vpop.f32.mrb[92].mxu1 }
 0x4a6   :  { %v2921_v62 = vpop.f32.mrb[92].mxu0  ;;  %v2965_v63 = vadd.f32 %v8890_v12, %v2964_v59  ;;  %v6965_v60 = vpop.f32.mrb[93].mxu1 }
 0x4a7   :  { %v2922_v20 = vadd.f32 %v8890_v12, %v2921_v62  ;;  %v6955_v13 = vpop.f32.mrb[93].mxu0  ;;  %v2967_v2 = vpop.f32.mrb[94].mxu1 }
 0x4a8   :  { %v3673_v8 = vmax.f32 %v2965_v63, 0.0  ;;  %v2924_v35 = vpop.f32.mrb[94].mxu0  ;;  %v6966_v36 = vpop.f32.mrb[95].mxu1 }
 0x4a9   :  { %v3672_v6 = vmax.f32 %v2922_v20, 0.0  ;;  %v6956_v22 = vpop.f32.mrb[95].mxu0 }
 0x4ab   :  { %v3697_v23 = vpack.c.bf16 %v3673_v8, %v3672_v6 }
 0x4ad   :  { %7144 = vmatmul.mubr.msk.bf16.gmra.mrb[140].mxu0 %vm114_vm0, %v3697_v23 }
 0x4b1   :  { %v3050_v14 = vpop.f32.mrb[96].mxu1 }
 0x4b2   :  { %v3007_v30 = vpop.f32.mrb[96].mxu0  ;;  %v3051_v15 = vadd.f32 %v8890_v12, %v3050_v14  ;;  %v6985_v48 = vpop.f32.mrb[97].mxu1 }
 0x4b3   :  { %v3008_v9 = vadd.f32 %v8890_v12, %v3007_v30  ;;  %v6975_v52 = vpop.f32.mrb[97].mxu0  ;;  %v3053_v47 = vpop.f32.mrb[98].mxu1 }
 0x4b4   :  { %v3675_v43 = vmax.f32 %v3051_v15, 0.0  ;;  %v3010_v49 = vpop.f32.mrb[98].mxu0  ;;  %v6986_v1 = vpop.f32.mrb[99].mxu1 }
 0x4b5   :  { %v3674_v16 = vmax.f32 %v3008_v9, 0.0  ;;  %v6976_v10 = vpop.f32.mrb[99].mxu0 }
 0x4b7   :  { %v3698_v33 = vpack.c.bf16 %v3675_v43, %v3674_v16 }
 0x4b9   :  { %7147 = vmatprep.mubr.msk.bf16.mxu1 %vm114_vm0, %v3698_v33 }
 0x4bd   :  { %v3136_v3 = vpop.f32.mrb[100].mxu1 }
 0x4be   :  { %v3093_v17 = vpop.f32.mrb[100].mxu0  ;;  %v3137_v28 = vadd.f32 %v8890_v12, %v3136_v3  ;;  %v7005_v29 = vpop.f32.mrb[101].mxu1 }
 0x4bf   :  { %v3094_v38 = vadd.f32 %v8890_v12, %v3093_v17  ;;  %v6995_v57 = vpop.f32.mrb[101].mxu0  ;;  %v3139_v25 = vpop.f32.mrb[102].mxu1 }
 0x4c0   :  { %v3677_v39 = vmax.f32 %v3137_v28, 0.0  ;;  %v3096_v53 = vpop.f32.mrb[102].mxu0  ;;  %v7006_v46 = vpop.f32.mrb[103].mxu1 }
 0x4c1   :  { %v3676_v4 = vmax.f32 %v3094_v38, 0.0  ;;  %v6996_v34 = vpop.f32.mrb[103].mxu0 }
 0x4c3   :  { %v3699_v41 = vpack.c.bf16 %v3677_v39, %v3676_v4 }
 0x4c5   :  { %7148 = vmatmul.mubr.msk.bf16.vlgmr.msra.gmra.mrb[128].mxu1 %vm114_vm0, %v3699_v41 }
 0x4c9   :  { %v3222_v32 = vpop.f32.mrb[104].mxu1 }
 0x4ca   :  { %v3179_v37 = vpop.f32.mrb[104].mxu0  ;;  %v3223_v61 = vadd.f32 %v8890_v12, %v3222_v32  ;;  %v7025_v11 = vpop.f32.mrb[105].mxu1 }
 0x4cb   :  { %v3180_v45 = vadd.f32 %v8890_v12, %v3179_v37  ;;  %v7015_v54 = vpop.f32.mrb[105].mxu0  ;;  %v3225_v18 = vpop.f32.mrb[106].mxu1 }
 0x4cc   :  { %v3679_v27 = vmax.f32 %v3223_v61, 0.0  ;;  %v3182_v24 = vpop.f32.mrb[106].mxu0  ;;  %v7026_v55 = vpop.f32.mrb[107].mxu1 }
 0x4cd   :  { %v3678_v44 = vmax.f32 %v3180_v45, 0.0  ;;  %v7016_v21 = vpop.f32.mrb[107].mxu0 }
 0x4cf   :  { %v3700_v0 = vpack.c.bf16 %v3679_v27, %v3678_v44 }
 0x4d1   :  { %7151 = vmatprep.mubr.msk.bf16.mxu1 %vm114_vm0, %v3700_v0 }
 0x4d5   :  { %v3308_v42 = vpop.f32.mrb[108].mxu1 }
 0x4d6   :  { %v3265_v19 = vpop.f32.mrb[108].mxu0  ;;  %v3309_v50 = vadd.f32 %v8890_v12, %v3308_v42  ;;  %v7045_v40 = vpop.f32.mrb[109].mxu1 }
 0x4d7   :  { %v3266_v31 = vadd.f32 %v8890_v12, %v3265_v19  ;;  %v7035_v51 = vpop.f32.mrb[109].mxu0  ;;  %v3311_v7 = vpop.f32.mrb[110].mxu1 }
 0x4d8   :  { %v3681_v26 = vmax.f32 %v3309_v50, 0.0  ;;  %v3268_v56 = vpop.f32.mrb[110].mxu0  ;;  %v7046_v5 = vpop.f32.mrb[111].mxu1  ;;  %v8950_v50 = vld [vmem:[%s9965_s6] ss:$0 sm:$0xff] }
 0x4d9   :  { %v3680_v58 = vmax.f32 %v3266_v31, 0.0  ;;  %v7036_v59 = vpop.f32.mrb[111].mxu0 }
 0x4db   :  { %v3701_v62 = vpack.c.bf16 %v3681_v26, %v3680_v58 }
 0x4dd   :  { %7152 = vmatmul.mubr.msk.bf16.gmra.mrb[132].mxu1 %vm114_vm0, %v3701_v62 }
 0x4f5   :  { %v3351_v63 = vpop.f32.mrb[112].mxu0 }
 0x4f6   :  { %v3352_v60 = vadd.f32 %v8890_v12, %v3351_v63  ;;  %v3394_v20 = vpop.f32.mrb[112].mxu1  ;;  %v7055_v13 = vpop.f32.mrb[113].mxu0 }
 0x4f7   :  { %v3395_v2 = vadd.f32 %v8890_v12, %v3394_v20  ;;  %v7065_v8 = vpop.f32.mrb[113].mxu1  ;;  %v3354_v35 = vpop.f32.mrb[114].mxu0 }
 0x4f8   :  { %v3682_v36 = vmax.f32 %v3352_v60, 0.0  ;;  %v3397_v6 = vpop.f32.mrb[114].mxu1  ;;  %v7056_v22 = vpop.f32.mrb[115].mxu0 }
 0x4f9   :  { %v3683_v23 = vmax.f32 %v3395_v2, 0.0  ;;  %v7066_v14 = vpop.f32.mrb[115].mxu1 }
 0x4fb   :  { %v3702_v30 = vpack.c.bf16 %v3683_v23, %v3682_v36 }
 0x4fd   :  { %7155 = vmatprep.mubr.msk.bf16.mxu1 %vm114_vm0, %v3702_v30 }
 0x505   :  { %v3437_v15 = vpop.f32.mrb[116].mxu0 }
 0x506   :  { %v3438_v48 = vadd.f32 %v8890_v12, %v3437_v15  ;;  %v3480_v9 = vpop.f32.mrb[116].mxu1  ;;  %v7075_v52 = vpop.f32.mrb[117].mxu0 }
 0x507   :  { %v3481_v47 = vadd.f32 %v8890_v12, %v3480_v9  ;;  %v7085_v43 = vpop.f32.mrb[117].mxu1  ;;  %v3440_v49 = vpop.f32.mrb[118].mxu0 }
 0x508   :  { %v3684_v1 = vmax.f32 %v3438_v48, 0.0  ;;  %v3483_v16 = vpop.f32.mrb[118].mxu1  ;;  %v7076_v10 = vpop.f32.mrb[119].mxu0 }
 0x509   :  { %v3685_v33 = vmax.f32 %v3481_v47, 0.0  ;;  %v7086_v3 = vpop.f32.mrb[119].mxu1 }
 0x50b   :  { %v3703_v17 = vpack.c.bf16 %v3685_v33, %v3684_v1 }
 0x50d   :  { %7156 = vmatmul.mubr.msk.bf16.gmra.mrb[136].mxu1 %vm114_vm0, %v3703_v17 }
 0x515   :  { %v3523_v28 = vpop.f32.mrb[120].mxu0 }
 0x516   :  { %v3524_v29 = vadd.f32 %v8890_v12, %v3523_v28  ;;  %v3566_v38 = vpop.f32.mrb[120].mxu1  ;;  %v7095_v57 = vpop.f32.mrb[121].mxu0 }
 0x517   :  { %v3567_v25 = vadd.f32 %v8890_v12, %v3566_v38  ;;  %v7105_v39 = vpop.f32.mrb[121].mxu1  ;;  %v3526_v53 = vpop.f32.mrb[122].mxu0 }
 0x518   :  { %v3686_v46 = vmax.f32 %v3524_v29, 0.0  ;;  %v3569_v4 = vpop.f32.mrb[122].mxu1  ;;  %v7096_v34 = vpop.f32.mrb[123].mxu0 }
 0x519   :  { %v3687_v41 = vmax.f32 %v3567_v25, 0.0  ;;  %v7106_v32 = vpop.f32.mrb[123].mxu1 }
 0x51b   :  { %v3704_v37 = vpack.c.bf16 %v3687_v41, %v3686_v46 }
 0x51d   :  { %7159 = vmatprep.mubr.msk.bf16.mxu1 %vm114_vm0, %v3704_v37 }
 0x525   :  { %v3609_v61 = vpop.f32.mrb[124].mxu0 }
 0x526   :  { %v3610_v11 = vadd.f32 %v8890_v12, %v3609_v61  ;;  %v3652_v45 = vpop.f32.mrb[124].mxu1  ;;  %v7115_v54 = vpop.f32.mrb[125].mxu0 }
 0x527   :  { %v3653_v18 = vadd.f32 %v8890_v12, %v3652_v45  ;;  %v7125_v27 = vpop.f32.mrb[125].mxu1  ;;  %v3612_v24 = vpop.f32.mrb[126].mxu0 }
 0x528   :  { %v3688_v55 = vmax.f32 %v3610_v11, 0.0  ;;  %v3655_v44 = vpop.f32.mrb[126].mxu1  ;;  %v7116_v21 = vpop.f32.mrb[127].mxu0 }
 0x529   :  { %v3689_v0 = vmax.f32 %v3653_v18, 0.0  ;;  %v7126_v42 = vpop.f32.mrb[127].mxu1 }
 0x52b   :  { %v3705_v19 = vpack.c.bf16 %v3689_v0, %v3688_v55 }
 0x52d   :  { %7160 = vmatmul.mubr.msk.bf16.gmra.mrb[140].mxu1 %vm114_vm0, %v3705_v19 }
 0x538   :  { %v7133_v40 = vpop.f32.mrb[128].mxu0 }
 0x539   :  { %v3820_v31 = vadd.f32 %v7133_v40, %v8950_v50  ;;  %v3811_v51 = vpop.f32.mrb[129].mxu0 }
 0x53a   :  { %v3812_v12 = vadd.f32 %v8950_v50, %v3811_v51  ;;  %v7134_v7 = vpop.f32.mrb[130].mxu0 }
 0x53b   :  { %v3973_v26 = vrot.slane %v3820_v31, 6  ;;  %v3823_v56 = vadd.f32 %v7134_v7, %v8950_v50  ;;  %v3814_v5 = vpop.f32.mrb[131].mxu0 }
 0x53c   :  { %4316 = vst.msk [vmem:[#allocation2 + $0xd9] sm:$0x80] %vm4315_vm6, %v3812_v12  ;;  %v3815_v58 = vadd.f32 %v8950_v50, %v3814_v5  ;;  %vm4075_vm6 = vcmask 785409  }
 0x53d   :  { %v3976_v59 = vrot.slane %v3823_v56, 5 }
 0x53e   :  { %v3970_v62 = vrot.slane %v3815_v58, 7 }
 0x53f   :  { %v4243_v63 = vsel %vm3971_vm7, %v3976_v59, %v3973_v26 }
 0x540   :  { %v3972_v60 = vsel %vm3971_vm7, %v3970_v62, %v3812_v12  ;;  %v4042_v20 = vsel %vm3974_vm8, %v3970_v62, %v3812_v12  ;;  %v4082_v13 = vsel %vm3977_vm9, %v3970_v62, %v3812_v12  ;;  %v4122_v2 = vsel %vm3980_vm10, %v3970_v62, %v3812_v12 }
 0x541   :  { %v3975_v8 = vsel %vm3974_vm8, %v3973_v26, %v3972_v60  ;;  %v4043_v35 = vsel %vm3977_vm9, %v3973_v26, %v4042_v20  ;;  %v4083_v36 = vsel %vm3980_vm10, %v3973_v26, %v4082_v13  ;;  %v4123_v6 = vsel %vm3983_vm11, %v3973_v26, %v4122_v2 }
 0x542   :  { %v4162_v22 = vsel %vm3983_vm11, %v3970_v62, %v3812_v12  ;;  %v4202_v23 = vsel %vm3986_vm12, %v3970_v62, %v3812_v12  ;;  %v4242_v14 = vsel %vm3989_vm13, %v3970_v62, %v3812_v12  ;;  %v4282_v30 = vsel %vm3971_vm7, %v3973_v26, %v3970_v62 }
 0x543   :  { %v4163_v15 = vsel %vm3986_vm12, %v3973_v26, %v4162_v22  ;;  %v4203_v48 = vsel %vm3989_vm13, %v3973_v26, %v4202_v23  ;;  %4276 = vst.msk [vmem:[#allocation2 + $0xba] sm:$0xc0] %vm4275_vm1, %v4242_v14  ;;  %v3978_v9 = vsel %vm3977_vm9, %v3976_v59, %v3975_v8  ;;  %v4044_v52 = vsel %vm3980_vm10, %v3976_v59, %v4043_v35 }
 0x544   :  { %v4164_v47 = vsel %vm3989_vm13, %v3976_v59, %v4163_v15  ;;  %4236 = vst.msk [vmem:[#allocation2 + $0x9b] sm:$0xe0] %vm4235_vm15, %v4203_v48  ;;  %v4084_v43 = vsel %vm3983_vm11, %v3976_v59, %v4083_v36  ;;  %v4124_v49 = vsel %vm3986_vm12, %v3976_v59, %v4123_v6  ;;  %v4283_v1 = vsel %vm3974_vm8, %v3976_v59, %v4282_v30 }
 0x545   :  { %4196 = vst.msk [vmem:[#allocation2 + $0x7c] sm:$0xf0] %vm4195_vm14, %v4164_v47  ;;  %vm4080_vm14 = vcmask 778240   ;;  %vm4120_vm15 = vcmask 779264   ;;  %vm4160_vm1 = vcmask 780288  }
 0x550   :  { %v7137_v16 = vpop.f32.mrb[132].mxu0 }
 0x551   :  { %v3836_v10 = vadd.f32 %v7137_v16, %v8950_v50  ;;  %v3827_v33 = vpop.f32.mrb[133].mxu0 }
 0x552   :  { %v3828_v3 = vadd.f32 %v8950_v50, %v3827_v33  ;;  %v7138_v17 = vpop.f32.mrb[134].mxu0 }
 0x553   :  { %v3839_v28 = vadd.f32 %v7138_v17, %v8950_v50  ;;  %v3830_v29 = vpop.f32.mrb[135].mxu0  ;;  %v3985_v25 = vrot.slane %v3836_v10, 2 }
 0x554   :  { %v3979_v38 = vrot.slane %v3828_v3, 4  ;;  %v3831_v57 = vadd.f32 %v8950_v50, %v3830_v29 }
 0x555   :  { %v3988_v39 = vrot.slane %v3839_v28, 1 }
 0x556   :  { %v3981_v53 = vsel %vm3980_vm10, %v3979_v38, %v3978_v9  ;;  %v4045_v46 = vsel %vm3983_vm11, %v3979_v38, %v4044_v52  ;;  %v4085_v4 = vsel %vm3986_vm12, %v3979_v38, %v4084_v43  ;;  %v4125_v34 = vsel %vm3989_vm13, %v3979_v38, %v4124_v49 }
 0x557   :  { %4156 = vst.msk [vmem:[#allocation2 + $0x5d] sm:$0xf8] %vm4155_vm2, %v4125_v34  ;;  %v4204_v41 = vsel %vm3971_vm7, %v3979_v38, %v3976_v59  ;;  %v4244_v32 = vsel %vm3974_vm8, %v3979_v38, %v4243_v63  ;;  %v4284_v37 = vsel %vm3977_vm9, %v3979_v38, %v4283_v1  ;;  %v4087_v61 = vsel %vm3971_vm7, %v3988_v39, %v3985_v25 }
 0x558   :  { %v3982_v11 = vrot.slane %v3831_v57, 3  ;;  %vm4200_vm2 = vcmask 781312  }
 0x55a   :  { %v3984_v45 = vsel %vm3983_vm11, %v3982_v11, %v3981_v53  ;;  %v4046_v54 = vsel %vm3986_vm12, %v3982_v11, %v4045_v46  ;;  %v4086_v18 = vsel %vm3989_vm13, %v3982_v11, %v4085_v4  ;;  %v4126_v27 = vsel %vm3971_vm7, %v3985_v25, %v3982_v11 }
 0x55b   :  { %v3987_v24 = vsel %vm3986_vm12, %v3985_v25, %v3984_v45  ;;  %v4047_v55 = vsel %vm3989_vm13, %v3985_v25, %v4046_v54  ;;  %4116 = vst.msk [vmem:[#allocation2 + $0x3e] sm:$0xfc] %vm4115_vm4, %v4086_v18  ;;  %v4165_v44 = vsel %vm3971_vm7, %v3982_v11, %v3979_v38  ;;  %v4205_v21 = vsel %vm3974_vm8, %v3982_v11, %v4204_v41 }
 0x55c   :  { %v3990_v0 = vsel %vm3989_vm13, %v3988_v39, %v3987_v24  ;;  %4076 = vst.msk [vmem:[#allocation2 + $0x1f] sm:$0xfe] %vm4075_vm6, %v4047_v55  ;;  %v4166_v42 = vsel %vm3974_vm8, %v3985_v25, %v4165_v44  ;;  %v4206_v19 = vsel %vm3977_vm9, %v3985_v25, %v4205_v21  ;;  %v4245_v40 = vsel %vm3977_vm9, %v3982_v11, %v4244_v32 }
 0x55d   :  { %4038 = vst.msk [vmem:[#allocation2] sm:$0xff] %vm4037_vm5, %v3990_v0  ;;  %v4246_v31 = vsel %vm3980_vm10, %v3985_v25, %v4245_v40  ;;  %v4285_v51 = vsel %vm3980_vm10, %v3982_v11, %v4284_v37  ;;  %v4127_v12 = vsel %vm3974_vm8, %v3988_v39, %v4126_v27  ;;  %v4167_v7 = vsel %vm3977_vm9, %v3988_v39, %v4166_v42 }
 0x55e   :  { %v4286_v26 = vsel %vm3983_vm11, %v3985_v25, %v4285_v51  ;;  %v4207_v56 = vsel %vm3980_vm10, %v3988_v39, %v4206_v19  ;;  %v4247_v5 = vsel %vm3983_vm11, %v3988_v39, %v4246_v31  ;;  %vm4240_vm4 = vcmask 782336  }
 0x55f   :  { %v4287_v58 = vsel %vm3986_vm12, %v3988_v39, %v4286_v26  ;;  %vm4280_vm6 = vcmask 783360  }
 0x568   :  { %v7141_v59 = vpop.f32.mrb[136].mxu0 }
 0x569   :  { %v3852_v62 = vadd.f32 %v7141_v59, %v8950_v50  ;;  %v3843_v63 = vpop.f32.mrb[137].mxu0 }
 0x56a   :  { %v3844_v60 = vadd.f32 %v8950_v50, %v3843_v63  ;;  %v7142_v20 = vpop.f32.mrb[138].mxu0 }
 0x56b   :  { %v3993_v13 = vrot.slane %v3852_v62, 6  ;;  %v3855_v2 = vadd.f32 %v7142_v20, %v8950_v50  ;;  %v3846_v8 = vpop.f32.mrb[139].mxu0 }
 0x56c   :  { %v4048_v35 = vsel %vm3971_vm7, %v3844_v60, %v3988_v39  ;;  %v4088_v36 = vsel %vm3974_vm8, %v3844_v60, %v4087_v61  ;;  %v4128_v6 = vsel %vm3977_vm9, %v3844_v60, %v4127_v12  ;;  %v4168_v22 = vsel %vm3980_vm10, %v3844_v60, %v4167_v7 }
 0x56d   :  { %v4208_v23 = vsel %vm3983_vm11, %v3844_v60, %v4207_v56  ;;  %v4248_v14 = vsel %vm3986_vm12, %v3844_v60, %v4247_v5  ;;  %v4288_v30 = vsel %vm3989_vm13, %v3844_v60, %v4287_v58  ;;  %v3995_v15 = vrot.slane %v3855_v2, 5 }
 0x56e   :  { %4317 = vst.msk [vmem:[#allocation2 + $0xe1] sm:$0xff] %vm4037_vm5, %v4288_v30  ;;  %v3847_v48 = vadd.f32 %v8950_v50, %v3846_v8 }
 0x56f   :  { %v4250_v9 = vsel %vm3971_vm7, %v3995_v15, %v3993_v13 }
 0x570   :  { %v3991_v52 = vrot.slane %v3847_v48, 7  ;;  %v9087_v48 = vld [vmem:[%s9964_s5] sm:$0xf] }
 0x572   :  { %v3992_v47 = vsel %vm3971_vm7, %v3991_v52, %v3844_v60  ;;  %v4049_v43 = vsel %vm3974_vm8, %v3991_v52, %v4048_v35  ;;  %v4089_v49 = vsel %vm3977_vm9, %v3991_v52, %v4088_v36  ;;  %v4129_v1 = vsel %vm3980_vm10, %v3991_v52, %v4128_v6 }
 0x573   :  { %v3994_v16 = vsel %vm3974_vm8, %v3993_v13, %v3992_v47  ;;  %v4050_v10 = vsel %vm3977_vm9, %v3993_v13, %v4049_v43  ;;  %v4090_v33 = vsel %vm3980_vm10, %v3993_v13, %v4089_v49  ;;  %v4130_v3 = vsel %vm3983_vm11, %v3993_v13, %v4129_v1  ;;  %v9102_v47 = vld [vmem:[%s9964_s5 + $0xc] sm:$0xf]  ;;  %v9107_v43 = vld [vmem:[%s9966_s7] ss:$0 sm:$0xff] }
 0x574   :  { %v4169_v17 = vsel %vm3983_vm11, %v3991_v52, %v4168_v22  ;;  %v4209_v28 = vsel %vm3986_vm12, %v3991_v52, %v4208_v23  ;;  %v4249_v29 = vsel %vm3989_vm13, %v3991_v52, %v4248_v14  ;;  %v4289_v38 = vsel %vm3971_vm7, %v3993_v13, %v3991_v52  ;;  %v9097_v52 = vld [vmem:[%s9964_s5 + $0x8] sm:$0xf] }
 0x575   :  { %v4170_v57 = vsel %vm3986_vm12, %v3993_v13, %v4169_v17  ;;  %v4210_v25 = vsel %vm3989_vm13, %v3993_v13, %v4209_v28  ;;  %4277 = vst.msk [vmem:[#allocation2 + $0xc2] sm:$0xff] %vm4037_vm5, %v4249_v29  ;;  %v3996_v39 = vsel %vm3977_vm9, %v3995_v15, %v3994_v16  ;;  %v4051_v53 = vsel %vm3980_vm10, %v3995_v15, %v4050_v10 }
 0x576   :  { %v4171_v46 = vsel %vm3989_vm13, %v3995_v15, %v4170_v57  ;;  %4237 = vst.msk [vmem:[#allocation2 + $0xa3] sm:$0xff] %vm4037_vm5, %v4210_v25  ;;  %v4091_v4 = vsel %vm3983_vm11, %v3995_v15, %v4090_v33  ;;  %v4131_v34 = vsel %vm3986_vm12, %v3995_v15, %v4130_v3  ;;  %v4290_v41 = vsel %vm3974_vm8, %v3995_v15, %v4289_v38 }
 0x577   :  { %4197 = vst.msk [vmem:[#allocation2 + $0x84] sm:$0xff] %vm4037_vm5, %v4171_v46 }
 0x580   :  { %v7145_v32 = vpop.f32.mrb[140].mxu0 }
 0x581   :  { %v3868_v37 = vadd.f32 %v7145_v32, %v8950_v50  ;;  %v3859_v61 = vpop.f32.mrb[141].mxu0 }
 0x582   :  { %v3860_v11 = vadd.f32 %v8950_v50, %v3859_v61  ;;  %v7146_v45 = vpop.f32.mrb[142].mxu0 }
 0x583   :  { %v3871_v54 = vadd.f32 %v7146_v45, %v8950_v50  ;;  %v3862_v18 = vpop.f32.mrb[143].mxu0  ;;  %v4001_v55 = vrot.slane %v3868_v37, 2 }
 0x584   :  { %v3997_v27 = vrot.slane %v3860_v11, 4  ;;  %v3863_v24 = vadd.f32 %v8950_v50, %v3862_v18 }
 0x585   :  { %v4003_v44 = vrot.slane %v3871_v54, 1 }
 0x586   :  { %v3998_v21 = vsel %vm3980_vm10, %v3997_v27, %v3996_v39  ;;  %v4052_v0 = vsel %vm3983_vm11, %v3997_v27, %v4051_v53  ;;  %v4092_v42 = vsel %vm3986_vm12, %v3997_v27, %v4091_v4  ;;  %v4132_v19 = vsel %vm3989_vm13, %v3997_v27, %v4131_v34 }
 0x587   :  { %4157 = vst.msk [vmem:[#allocation2 + $0x65] sm:$0xff] %vm4037_vm5, %v4132_v19  ;;  %v4211_v40 = vsel %vm3971_vm7, %v3997_v27, %v3995_v15  ;;  %v4251_v31 = vsel %vm3974_vm8, %v3997_v27, %v4250_v9  ;;  %v4291_v51 = vsel %vm3977_vm9, %v3997_v27, %v4290_v41  ;;  %v4094_v12 = vsel %vm3971_vm7, %v4003_v44, %v4001_v55  ;;  %v9092_v9 = vld [vmem:[%s9964_s5 + $0x4] sm:$0xf]  ;;  %s9266_s5 = smov 0  }
 0x588   :  { %v3999_v7 = vrot.slane %v3863_v24, 3 }
 0x58a   :  { %v4000_v26 = vsel %vm3983_vm11, %v3999_v7, %v3998_v21  ;;  %v4053_v56 = vsel %vm3986_vm12, %v3999_v7, %v4052_v0  ;;  %v4093_v5 = vsel %vm3989_vm13, %v3999_v7, %v4092_v42  ;;  %v4133_v58 = vsel %vm3971_vm7, %v4001_v55, %v3999_v7 }
 0x58b   :  { %v4002_v59 = vsel %vm3986_vm12, %v4001_v55, %v4000_v26  ;;  %v4054_v62 = vsel %vm3989_vm13, %v4001_v55, %v4053_v56  ;;  %4117 = vst.msk [vmem:[#allocation2 + $0x46] sm:$0xff] %vm4037_vm5, %v4093_v5  ;;  %v4172_v63 = vsel %vm3971_vm7, %v3999_v7, %v3997_v27  ;;  %v4212_v60 = vsel %vm3974_vm8, %v3999_v7, %v4211_v40 }
 0x58c   :  { %v4004_v20 = vsel %vm3989_vm13, %v4003_v44, %v4002_v59  ;;  %4077 = vst.msk [vmem:[#allocation2 + $0x27] sm:$0xff] %vm4037_vm5, %v4054_v62  ;;  %v4173_v13 = vsel %vm3974_vm8, %v4001_v55, %v4172_v63  ;;  %v4213_v2 = vsel %vm3977_vm9, %v4001_v55, %v4212_v60  ;;  %v4252_v8 = vsel %vm3977_vm9, %v3999_v7, %v4251_v31 }
 0x58d   :  { %4039 = vst.msk [vmem:[#allocation2 + $0x8] sm:$0xff] %vm4037_vm5, %v4004_v20  ;;  %v4253_v35 = vsel %vm3980_vm10, %v4001_v55, %v4252_v8  ;;  %v4292_v36 = vsel %vm3980_vm10, %v3999_v7, %v4291_v51  ;;  %v4134_v6 = vsel %vm3974_vm8, %v4003_v44, %v4133_v58  ;;  %v4174_v22 = vsel %vm3977_vm9, %v4003_v44, %v4173_v13 }
 0x58e   :  { %v4293_v23 = vsel %vm3983_vm11, %v4001_v55, %v4292_v36  ;;  %v4214_v14 = vsel %vm3980_vm10, %v4003_v44, %v4213_v2  ;;  %v4254_v30 = vsel %vm3983_vm11, %v4003_v44, %v4253_v35 }
 0x58f   :  { %v4294_v15 = vsel %vm3986_vm12, %v4003_v44, %v4293_v23 }
 0x598   :  { %v7149_v49 = vpop.f32.mrb[128].mxu1 }
 0x599   :  { %v3884_v1 = vadd.f32 %v7149_v49, %v8950_v50  ;;  %v3875_v16 = vpop.f32.mrb[129].mxu1 }
 0x59a   :  { %v3876_v10 = vadd.f32 %v8950_v50, %v3875_v16  ;;  %v7150_v33 = vpop.f32.mrb[130].mxu1 }
 0x59b   :  { %v4007_v3 = vrot.slane %v3884_v1, 6  ;;  %v3887_v17 = vadd.f32 %v7150_v33, %v8950_v50  ;;  %v3878_v28 = vpop.f32.mrb[131].mxu1 }
 0x59c   :  { %v4055_v29 = vsel %vm3971_vm7, %v3876_v10, %v4003_v44  ;;  %v4095_v38 = vsel %vm3974_vm8, %v3876_v10, %v4094_v12  ;;  %v4135_v57 = vsel %vm3977_vm9, %v3876_v10, %v4134_v6  ;;  %v4175_v25 = vsel %vm3980_vm10, %v3876_v10, %v4174_v22 }
 0x59d   :  { %v4215_v39 = vsel %vm3983_vm11, %v3876_v10, %v4214_v14  ;;  %v4255_v53 = vsel %vm3986_vm12, %v3876_v10, %v4254_v30  ;;  %v4295_v46 = vsel %vm3989_vm13, %v3876_v10, %v4294_v15  ;;  %v4009_v4 = vrot.slane %v3887_v17, 5 }
 0x59e   :  { %4318 = vst.msk [vmem:[#allocation2 + $0xe9] sm:$0xff] %vm4037_vm5, %v4295_v46  ;;  %v3879_v34 = vadd.f32 %v8950_v50, %v3878_v28 }
 0x59f   :  { %v4257_v41 = vsel %vm3971_vm7, %v4009_v4, %v4007_v3 }
 0x5a0   :  { %v4005_v32 = vrot.slane %v3879_v34, 7 }
 0x5a2   :  { %v4006_v37 = vsel %vm3971_vm7, %v4005_v32, %v3876_v10  ;;  %v4056_v61 = vsel %vm3974_vm8, %v4005_v32, %v4055_v29  ;;  %v4096_v11 = vsel %vm3977_vm9, %v4005_v32, %v4095_v38  ;;  %v4136_v45 = vsel %vm3980_vm10, %v4005_v32, %v4135_v57 }
 0x5a3   :  { %v4008_v54 = vsel %vm3974_vm8, %v4007_v3, %v4006_v37  ;;  %v4057_v18 = vsel %vm3977_vm9, %v4007_v3, %v4056_v61  ;;  %v4097_v27 = vsel %vm3980_vm10, %v4007_v3, %v4096_v11  ;;  %v4137_v24 = vsel %vm3983_vm11, %v4007_v3, %v4136_v45 }
 0x5a4   :  { %v4176_v55 = vsel %vm3983_vm11, %v4005_v32, %v4175_v25  ;;  %v4216_v44 = vsel %vm3986_vm12, %v4005_v32, %v4215_v39  ;;  %v4256_v21 = vsel %vm3989_vm13, %v4005_v32, %v4255_v53  ;;  %v4296_v0 = vsel %vm3971_vm7, %v4007_v3, %v4005_v32 }
 0x5a5   :  { %v4177_v42 = vsel %vm3986_vm12, %v4007_v3, %v4176_v55  ;;  %v4217_v19 = vsel %vm3989_vm13, %v4007_v3, %v4216_v44  ;;  %4278 = vst.msk [vmem:[#allocation2 + $0xca] sm:$0xff] %vm4037_vm5, %v4256_v21  ;;  %v4010_v40 = vsel %vm3977_vm9, %v4009_v4, %v4008_v54  ;;  %v4058_v31 = vsel %vm3980_vm10, %v4009_v4, %v4057_v18 }
 0x5a6   :  { %v4178_v51 = vsel %vm3989_vm13, %v4009_v4, %v4177_v42  ;;  %4238 = vst.msk [vmem:[#allocation2 + $0xab] sm:$0xff] %vm4037_vm5, %v4217_v19  ;;  %v4098_v12 = vsel %vm3983_vm11, %v4009_v4, %v4097_v27  ;;  %v4138_v7 = vsel %vm3986_vm12, %v4009_v4, %v4137_v24  ;;  %v4297_v26 = vsel %vm3974_vm8, %v4009_v4, %v4296_v0 }
 0x5a7   :  { %4198 = vst.msk [vmem:[#allocation2 + $0x8c] sm:$0xff] %vm4037_vm5, %v4178_v51 }
 0x5b0   :  { %v7153_v56 = vpop.f32.mrb[132].mxu1 }
 0x5b1   :  { %v3900_v5 = vadd.f32 %v7153_v56, %v8950_v50  ;;  %v3891_v58 = vpop.f32.mrb[133].mxu1 }
 0x5b2   :  { %v3892_v59 = vadd.f32 %v8950_v50, %v3891_v58  ;;  %v7154_v62 = vpop.f32.mrb[134].mxu1 }
 0x5b3   :  { %v3903_v63 = vadd.f32 %v7154_v62, %v8950_v50  ;;  %v3894_v60 = vpop.f32.mrb[135].mxu1  ;;  %v4015_v2 = vrot.slane %v3900_v5, 2 }
 0x5b4   :  { %v4011_v20 = vrot.slane %v3892_v59, 4  ;;  %v3895_v13 = vadd.f32 %v8950_v50, %v3894_v60 }
 0x5b5   :  { %v4017_v8 = vrot.slane %v3903_v63, 1 }
 0x5b6   :  { %v4012_v35 = vsel %vm3980_vm10, %v4011_v20, %v4010_v40  ;;  %v4059_v36 = vsel %vm3983_vm11, %v4011_v20, %v4058_v31  ;;  %v4099_v6 = vsel %vm3986_vm12, %v4011_v20, %v4098_v12  ;;  %v4139_v22 = vsel %vm3989_vm13, %v4011_v20, %v4138_v7 }
 0x5b7   :  { %4158 = vst.msk [vmem:[#allocation2 + $0x6d] sm:$0xff] %vm4037_vm5, %v4139_v22  ;;  %v4218_v23 = vsel %vm3971_vm7, %v4011_v20, %v4009_v4  ;;  %v4258_v14 = vsel %vm3974_vm8, %v4011_v20, %v4257_v41  ;;  %v4298_v30 = vsel %vm3977_vm9, %v4011_v20, %v4297_v26  ;;  %v4101_v15 = vsel %vm3971_vm7, %v4017_v8, %v4015_v2 }
 0x5b8   :  { %v4013_v49 = vrot.slane %v3895_v13, 3 }
 0x5ba   :  { %v4014_v1 = vsel %vm3983_vm11, %v4013_v49, %v4012_v35  ;;  %v4060_v16 = vsel %vm3986_vm12, %v4013_v49, %v4059_v36  ;;  %v4100_v10 = vsel %vm3989_vm13, %v4013_v49, %v4099_v6  ;;  %v4140_v33 = vsel %vm3971_vm7, %v4015_v2, %v4013_v49 }
 0x5bb   :  { %v4016_v3 = vsel %vm3986_vm12, %v4015_v2, %v4014_v1  ;;  %v4061_v17 = vsel %vm3989_vm13, %v4015_v2, %v4060_v16  ;;  %4118 = vst.msk [vmem:[#allocation2 + $0x4e] sm:$0xff] %vm4037_vm5, %v4100_v10  ;;  %v4179_v28 = vsel %vm3971_vm7, %v4013_v49, %v4011_v20  ;;  %v4219_v29 = vsel %vm3974_vm8, %v4013_v49, %v4218_v23 }
 0x5bc   :  { %v4018_v38 = vsel %vm3989_vm13, %v4017_v8, %v4016_v3  ;;  %4078 = vst.msk [vmem:[#allocation2 + $0x2f] sm:$0xff] %vm4037_vm5, %v4061_v17  ;;  %v4180_v57 = vsel %vm3974_vm8, %v4015_v2, %v4179_v28  ;;  %v4220_v25 = vsel %vm3977_vm9, %v4015_v2, %v4219_v29  ;;  %v4259_v39 = vsel %vm3977_vm9, %v4013_v49, %v4258_v14 }
 0x5bd   :  { %4040 = vst.msk [vmem:[#allocation2 + $0x10] sm:$0xff] %vm4037_vm5, %v4018_v38  ;;  %v4260_v53 = vsel %vm3980_vm10, %v4015_v2, %v4259_v39  ;;  %v4299_v46 = vsel %vm3980_vm10, %v4013_v49, %v4298_v30  ;;  %v4141_v4 = vsel %vm3974_vm8, %v4017_v8, %v4140_v33  ;;  %v4181_v34 = vsel %vm3977_vm9, %v4017_v8, %v4180_v57 }
 0x5be   :  { %v4300_v41 = vsel %vm3983_vm11, %v4015_v2, %v4299_v46  ;;  %v4221_v32 = vsel %vm3980_vm10, %v4017_v8, %v4220_v25  ;;  %v4261_v37 = vsel %vm3983_vm11, %v4017_v8, %v4260_v53 }
 0x5bf   :  { %v4301_v61 = vsel %vm3986_vm12, %v4017_v8, %v4300_v41 }
 0x5e0   :  { %v7157_v11 = vpop.f32.mrb[136].mxu1 }
 0x5e1   :  { %v3916_v45 = vadd.f32 %v7157_v11, %v8950_v50  ;;  %v3907_v54 = vpop.f32.mrb[137].mxu1 }
 0x5e2   :  { %v3908_v18 = vadd.f32 %v8950_v50, %v3907_v54  ;;  %v7158_v27 = vpop.f32.mrb[138].mxu1 }
 0x5e3   :  { %v4021_v24 = vrot.slane %v3916_v45, 6  ;;  %v3919_v55 = vadd.f32 %v7158_v27, %v8950_v50  ;;  %v3910_v44 = vpop.f32.mrb[139].mxu1 }
 0x5e4   :  { %v4062_v21 = vsel %vm3971_vm7, %v3908_v18, %v4017_v8  ;;  %v4102_v0 = vsel %vm3974_vm8, %v3908_v18, %v4101_v15  ;;  %v4142_v42 = vsel %vm3977_vm9, %v3908_v18, %v4141_v4  ;;  %v4182_v19 = vsel %vm3980_vm10, %v3908_v18, %v4181_v34 }
 0x5e5   :  { %v4222_v40 = vsel %vm3983_vm11, %v3908_v18, %v4221_v32  ;;  %v4262_v31 = vsel %vm3986_vm12, %v3908_v18, %v4261_v37  ;;  %v4302_v51 = vsel %vm3989_vm13, %v3908_v18, %v4301_v61  ;;  %v4023_v12 = vrot.slane %v3919_v55, 5 }
 0x5e6   :  { %4319 = vst.msk [vmem:[#allocation2 + $0xf1] sm:$0xff] %vm4037_vm5, %v4302_v51  ;;  %v3911_v7 = vadd.f32 %v8950_v50, %v3910_v44 }
 0x5e7   :  { %v4264_v26 = vsel %vm3971_vm7, %v4023_v12, %v4021_v24 }
 0x5e8   :  { %v4019_v56 = vrot.slane %v3911_v7, 7 }
 0x5ea   :  { %v4020_v5 = vsel %vm3971_vm7, %v4019_v56, %v3908_v18  ;;  %v4063_v58 = vsel %vm3974_vm8, %v4019_v56, %v4062_v21  ;;  %v4103_v59 = vsel %vm3977_vm9, %v4019_v56, %v4102_v0  ;;  %v4143_v62 = vsel %vm3980_vm10, %v4019_v56, %v4142_v42 }
 0x5eb   :  { %v4022_v63 = vsel %vm3974_vm8, %v4021_v24, %v4020_v5  ;;  %v4064_v60 = vsel %vm3977_vm9, %v4021_v24, %v4063_v58  ;;  %v4104_v20 = vsel %vm3980_vm10, %v4021_v24, %v4103_v59  ;;  %v4144_v13 = vsel %vm3983_vm11, %v4021_v24, %v4143_v62 }
 0x5ec   :  { %v4183_v2 = vsel %vm3983_vm11, %v4019_v56, %v4182_v19  ;;  %v4223_v8 = vsel %vm3986_vm12, %v4019_v56, %v4222_v40  ;;  %v4263_v35 = vsel %vm3989_vm13, %v4019_v56, %v4262_v31  ;;  %v4303_v36 = vsel %vm3971_vm7, %v4021_v24, %v4019_v56 }
 0x5ed   :  { %v4184_v6 = vsel %vm3986_vm12, %v4021_v24, %v4183_v2  ;;  %v4224_v22 = vsel %vm3989_vm13, %v4021_v24, %v4223_v8  ;;  %4279 = vst.msk [vmem:[#allocation2 + $0xd2] sm:$0xff] %vm4037_vm5, %v4263_v35  ;;  %v4024_v23 = vsel %vm3977_vm9, %v4023_v12, %v4022_v63  ;;  %v4065_v14 = vsel %vm3980_vm10, %v4023_v12, %v4064_v60 }
 0x5ee   :  { %v4185_v30 = vsel %vm3989_vm13, %v4023_v12, %v4184_v6  ;;  %4239 = vst.msk [vmem:[#allocation2 + $0xb3] sm:$0xff] %vm4037_vm5, %v4224_v22  ;;  %v4105_v15 = vsel %vm3983_vm11, %v4023_v12, %v4104_v20  ;;  %v4145_v49 = vsel %vm3986_vm12, %v4023_v12, %v4144_v13  ;;  %v4304_v1 = vsel %vm3974_vm8, %v4023_v12, %v4303_v36 }
 0x5ef   :  { %4199 = vst.msk [vmem:[#allocation2 + $0x94] sm:$0xff] %vm4037_vm5, %v4185_v30  ;;  %v9258_v58 = vmov 0.0   ;;  %v9260_v59 = vmov 0.0   ;;  %v9262_v62 = vmov 0.0   ;;  %v9264_v63 = vmov 0.0  }
 0x600   :  { %v7161_v16 = vpop.f32.mrb[140].mxu1 }
 0x601   :  { %v3932_v10 = vadd.f32 %v7161_v16, %v8950_v50  ;;  %v3923_v33 = vpop.f32.mrb[141].mxu1 }
 0x602   :  { %v3924_v3 = vadd.f32 %v8950_v50, %v3923_v33  ;;  %v7162_v17 = vpop.f32.mrb[142].mxu1 }
 0x603   :  { %v3935_v28 = vadd.f32 %v7162_v17, %v8950_v50  ;;  %v3926_v29 = vpop.f32.mrb[143].mxu1  ;;  %v4029_v25 = vrot.slane %v3932_v10, 2 }
 0x604   :  { %v4025_v38 = vrot.slane %v3924_v3, 4  ;;  %v3927_v57 = vadd.f32 %v8950_v50, %v3926_v29 }
 0x605   :  { %v4031_v39 = vrot.slane %v3935_v28, 1 }
 0x606   :  { %v4026_v53 = vsel %vm3980_vm10, %v4025_v38, %v4024_v23  ;;  %v4066_v46 = vsel %vm3983_vm11, %v4025_v38, %v4065_v14  ;;  %v4106_v4 = vsel %vm3986_vm12, %v4025_v38, %v4105_v15  ;;  %v4146_v34 = vsel %vm3989_vm13, %v4025_v38, %v4145_v49 }
 0x607   :  { %4159 = vst.msk [vmem:[#allocation2 + $0x75] sm:$0xff] %vm4037_vm5, %v4146_v34  ;;  %v4225_v41 = vsel %vm3971_vm7, %v4025_v38, %v4023_v12  ;;  %v4265_v32 = vsel %vm3974_vm8, %v4025_v38, %v4264_v26  ;;  %v4305_v37 = vsel %vm3977_vm9, %v4025_v38, %v4304_v1  ;;  %v4108_v50 = vsel %vm3971_vm7, %v4031_v39, %v4029_v25 }
 0x608   :  { %4081 = vst.msk [vmem:[#allocation2 + $0x3f] sm:$0x1] %vm4080_vm14, %v4031_v39  ;;  %v4027_v61 = vrot.slane %v3927_v57, 3 }
 0x609   :  { %4121 = vst.msk [vmem:[#allocation2 + $0x5e] sm:$0x3] %vm4120_vm15, %v4108_v50 }
 0x60a   :  { %v4028_v11 = vsel %vm3983_vm11, %v4027_v61, %v4026_v53  ;;  %v4067_v45 = vsel %vm3986_vm12, %v4027_v61, %v4066_v46  ;;  %v4107_v54 = vsel %vm3989_vm13, %v4027_v61, %v4106_v4  ;;  %v4147_v18 = vsel %vm3971_vm7, %v4029_v25, %v4027_v61 }
 0x60b   :  { %v4030_v27 = vsel %vm3986_vm12, %v4029_v25, %v4028_v11  ;;  %v4068_v24 = vsel %vm3989_vm13, %v4029_v25, %v4067_v45  ;;  %4119 = vst.msk [vmem:[#allocation2 + $0x56] sm:$0xff] %vm4037_vm5, %v4107_v54  ;;  %v4148_v55 = vsel %vm3974_vm8, %v4031_v39, %v4147_v18  ;;  %v4186_v44 = vsel %vm3971_vm7, %v4027_v61, %v4025_v38 }
 0x60c   :  { %v4032_v21 = vsel %vm3989_vm13, %v4031_v39, %v4030_v27  ;;  %4079 = vst.msk [vmem:[#allocation2 + $0x37] sm:$0xff] %vm4037_vm5, %v4068_v24  ;;  %v4187_v0 = vsel %vm3974_vm8, %v4029_v25, %v4186_v44  ;;  %v4226_v42 = vsel %vm3974_vm8, %v4027_v61, %v4225_v41  ;;  %v4266_v19 = vsel %vm3977_vm9, %v4027_v61, %v4265_v32 }
 0x60d   :  { %4161 = vst.msk [vmem:[#allocation2 + $0x7d] sm:$0x7] %vm4160_vm1, %v4148_v55  ;;  %v4188_v40 = vsel %vm3977_vm9, %v4031_v39, %v4187_v0  ;;  %v4227_v31 = vsel %vm3977_vm9, %v4029_v25, %v4226_v42  ;;  %v4267_v51 = vsel %vm3980_vm10, %v4029_v25, %v4266_v19  ;;  %v4306_v12 = vsel %vm3980_vm10, %v4027_v61, %v4305_v37 }
 0x60e   :  { %4041 = vst.msk [vmem:[#allocation2 + $0x18] sm:$0xff] %vm4037_vm5, %v4032_v21  ;;  %v4228_v7 = vsel %vm3980_vm10, %v4031_v39, %v4227_v31  ;;  %v4268_v26 = vsel %vm3983_vm11, %v4031_v39, %v4267_v51  ;;  %v4307_v56 = vsel %vm3983_vm11, %v4029_v25, %v4306_v12 }
 0x60f   :  { %4201 = vst.msk [vmem:[#allocation2 + $0x9c] sm:$0xf] %vm4200_vm2, %v4188_v40  ;;  %v4308_v5 = vsel %vm3986_vm12, %v4031_v39, %v4307_v56 }
 0x610   :  { %4241 = vst.msk [vmem:[#allocation2 + $0xbb] sm:$0x1f] %vm4240_vm4, %v4228_v7 }
 0x611   :  { %4281 = vst.msk [vmem:[#allocation2 + $0xda] sm:$0x3f] %vm4280_vm6, %v4268_v26 }
 0x612   :  { %4321 = vst.msk [vmem:[#allocation2 + $0xf9] sm:$0x7f] %vm4320_vm3, %v4308_v5 }
 0x613 LB: > { %v4337_v60 = vpack.c.bf16 %v7666_v62, %v7670_v63  ;;  %v6273_v20 = vcombine.low %v9087_v48, %v9092_v9  ;;  %v6274_v13 = vcombine.low %v9097_v52, %v9102_v47  ;;  %s7679_s7 = smov 96   ;;  %v4338_v2 = vpack.c.bf16 %v7658_v58, %v7662_v59  ;;  %s7680_s2 = smov 64   ;;  %s7674_s5 = sphi %s9266_s5, %s4332_s5   ;;  %v7670_v63 = vphi %v9264_v63, %v10014_v63   ;;  %v7666_v62 = vphi %v9262_v62, %v10013_v62   ;;  %v7662_v59 = vphi %v9260_v59, %v10012_v59   ;;  %v7658_v58 = vphi %v9258_v58, %v10011_v58  }
 0x614   : > { %s6277_s29 = sshll.u32 %s7674_s5, 5  ;;  %s4332_s5 = sadd.s32 1, %s7674_s5  }
 0x615   : > { %4347 = vrot.lane.b32.xlu0 %v4337_v60, %s7679_s7  ;;  %7163 = vmatprep.subr.bf16.mxu0 %v6273_v20  ;;  %s4419_s30 = scalar_lea.vmem [#allocation2], %s6277_s29  ;;  %p4329_p5 = scmp.ge.s32.totalorder %s4332_s5, 8  }
 0x616   : > { %7164 = vmatpush3.bf16.msra.mxu0 %v6273_v20  ;;  %vm10016_vm3 = vmmov (%p4329_p5), 0   ;;  %s7681_s16 = smov (%p4329_p5), 96   ;;  %v7469_v48 = vld [vmem:[%s9967_s8] sm:$0xff] (%p4329_p5)   ;;  %v7470_v9 = vld [vmem:[%s9967_s8 + $0x8] sm:$0xff] (%p4329_p5)   ;;  %v7682_v52 = vmov (%p4329_p5), 0   ;;  %s7684_s3 = smov (%p4329_p5), 64  }
 0x617   : > { %7165 = vmatprep.subr.bf16.mxu0 %v6274_v13  ;;  %s6307_s21 = sld [smem:[#allocation3 + $0x1]] (%p4329_p5)  ;;  %s6317_s22 = sld [smem:[#allocation3 + $0x2]] (%p4329_p5) }
 0x618   :  { %s9915_s23 = sld [smem:[#allocation3 + $0x3]] (%p4329_p5) }
 0x619   : > { %4349 = vrot.lane.b32.xlu0 %v4338_v2, %s7679_s7  ;;  %v4420_v1 = vld [vmem:[%s4419_s30] sm:$0xff]  ;;  %v4422_v16 = vld [vmem:[%s4419_s30 + $0x10] sm:$0xff]  ;;  %v4421_v33 = vld [vmem:[%s4419_s30 + $0x8] sm:$0xff] }
 0x61a   : > { %7166 = vmatpush3.bf16.msra.mxu0 %v6274_v13  ;;  %v4423_v29 = vld [vmem:[%s4419_s30 + $0x18] sm:$0xff] }
 0x61b   :  { %7171 = vmatprep.subr.bf16.mxu0 (%p4329_p5), %v7469_v48 }
 0x687   : > { %v4348_v8 = vpop.permute.xlu0 %4347 }
 0x688   : > { %7167 = vmatprep.mubr.msk.bf16.mxu0 %vm114_vm0, %v4348_v8 }
 0x68b   : > { %v4350_v35 = vpop.permute.xlu0 %4349 }
 0x68c   : > { %7168 = vmatmul.mubr.msk.bf16.vlgmr.msra.gmra.mrb[0].mxu0 %vm114_vm0, %v4350_v35 }
 0x68d   :  { %7172 = vmatpush3.bf16.msra.mxu0 (%p4329_p5), %v7469_v48 }
 0x68e   :  { %7173 = vmatprep.subr.bf16.mxu0 (%p4329_p5), %v7470_v9 }
 0x691   :  { %7174 = vmatpush3.bf16.msra.mxu0 (%p4329_p5), %v7470_v9 }
 0x75f   : > { %v7169_v36 = vpop.f32.mrb[0].mxu0 }
 0x760   : > { %v4412_v6 = vadd.f32 %v7169_v36, %v9107_v43  ;;  %v4403_v22 = vpop.f32.mrb[1].mxu0 }
 0x761   : > { %v4404_v23 = vadd.f32 %v9107_v43, %v4403_v22  ;;  %v7170_v14 = vpop.f32.mrb[2].mxu0 }
 0x762   : > { %4460 = vrot.lane.b32.xlu0 %v4412_v6, %s7680_s2  ;;  %v4406_v30 = vpop.f32.mrb[3].mxu0  ;;  %v4415_v49 = vadd.f32 %v7170_v14, %v9107_v43  ;;  %v4426_v3 = vadd.f32 %v4422_v16, %v4412_v6 }
 0x763   : > { %4456 = vrot.lane.b32.xlu1 %v4404_v23, %s7680_s2  ;;  %v4407_v15 = vadd.f32 %v9107_v43, %v4406_v30  ;;  %v4424_v10 = vadd.f32 %v4420_v1, %v4404_v23 }
 0x764   : > { %v6280_v38 = vmul.f32 -1.442695, %v4426_v3  ;;  %v4427_v57 = vadd.f32 %v4423_v29, %v4415_v49 }
 0x765   : > { %v6278_v17 = vmul.f32 -1.442695, %v4424_v10  ;;  %v4425_v28 = vadd.f32 %v4421_v33, %v4407_v15 }
 0x766   : > { %v6281_v39 = vmul.f32 -1.442695, %v4427_v57  ;;  %v10015_v57 = vmov (%p4329_p5), 0.0  }
 0x767   : > { %4458 = vrot.lane.b32.xlu1 %v4407_v15, %s7680_s2  ;;  %7443 = vpow2.f32 %v6278_v17  ;;  %v6279_v25 = vmul.f32 -1.442695, %v4425_v28  ;;  %7179 = vmatprep.subr.bf16.mxu1 (%p4329_p5), %v10015_v57 }
 0x768   : > { %7445 = vpow2.f32 %v6280_v38  ;;  %7183 = vmatprep.mubr.msk.bf16.mxu1 (%p4329_p5), %vm10016_vm3, %v10015_v57  ;;  %7187 = vmatprep.subr.bf16.mxu0 (%p4329_p5), %v10015_v57 }
 0x769   : > { %7447 = vpow2.f32 %v6279_v25  ;;  %v9331_v25 = vld [vmem:[%s9968_s9] sm:$0xff] (%p4329_p5)  }
 0x76a   : > { %7449 = vpow2.f32 %v6281_v39  ;;  %v9338_v39 = vld [vmem:[%s9968_s9 + $0x8] sm:$0xff] (%p4329_p5)   ;;  %7180 = vmatpush3.bf16.msra.mxu1 (%p4329_p5), %v9331_v25 }
 0x76b   : > { %4462 = vrot.lane.b32.xlu1 %v4415_v49, %s7680_s2  ;;  %7181 = vmatprep.subr.bf16.mxu1 (%p4329_p5), %v10015_v57 }
 0x76e   :  { %7182 = vmatpush3.bf16.msra.mxu1 (%p4329_p5), %v9338_v39 }
 0x76f   :  { %7195 = vmatprep.subr.bf16.mxu1 (%p4329_p5), %v10015_v57 }
 0x771   : > { %v7444_v53 = vpop.eup %7443  ;;  %7184 = vmatmul.mubr.bf16.vlgmr.msra.gmra.mrb[0].mxu1 (%p4329_p5), %v7682_v52 }
 0x772   : > { %v7446_v46 = vpop.eup %7445  ;;  %v4440_v4 = vadd.f32 1.0, %v7444_v53  ;;  %7196 = vmatpush3.bf16.msra.mxu1 (%p4329_p5), %v9331_v25  ;;  %7199 = vmatprep.mubr.msk.bf16.mxu1 (%p4329_p5), %vm10016_vm3, %v10015_v57 }
 0x773   : > { %v7448_v34 = vpop.eup %7447  ;;  %v4442_v41 = vadd.f32 1.0, %v7446_v46  ;;  %7197 = vmatprep.subr.bf16.mxu1 (%p4329_p5), %v10015_v57 }
 0x774   : > { %7451 = vrcp.f32 %v4440_v4  ;;  %v4441_v32 = vadd.f32 1.0, %v7448_v34  ;;  %v7450_v37 = vpop.eup %7449  ;;  %v9369_v34 = vld [vmem:[%s9970_s11] ss:$0 sm:$0xff] (%p4329_p5) }
 0x775   : > { %7453 = vrcp.f32 %v4442_v41  ;;  %v4443_v50 = vadd.f32 1.0, %v7450_v37 }
 0x776   : > { %7455 = vrcp.f32 %v4441_v32  ;;  %7198 = vmatpush3.bf16.msra.mxu1 (%p4329_p5), %v9338_v39 }
 0x777   : > { %7457 = vrcp.f32 %v4443_v50 }
 0x77e   : > { %v7452_v61 = vpop.eup %7451 }
 0x77f   : > { %v7454_v18 = vpop.eup %7453  ;;  %v4496_v2 = vsub.f32 1.0, %v7452_v61  ;;  %v4520_v35 = vmul.f32 %v7670_v63, %v7452_v61 }
 0x780   : > { %v7456_v27 = vpop.eup %7455  ;;  %v4498_v14 = vsub.f32 1.0, %v7454_v18 }
 0x781   : > { %v7458_v21 = vpop.eup %7457  ;;  %v4497_v22 = vsub.f32 1.0, %v7456_v27  ;;  %v4521_v30 = vmul.f32 %v7666_v62, %v7456_v27 }
 0x782   : > { %v4523_v28 = vmul.f32 %v7658_v58, %v7458_v21 }
 0x7d4   : > { %v4461_v54 = vpop.permute.xlu0 %4460 }
 0x7d5   : > { %v4457_v11 = vpop.permute.xlu1 %4456  ;;  %v4470_v55 = vmul.f32 %v7454_v18, %v4461_v54 }
 0x7d6   : > { %v4468_v45 = vmul.f32 %v7452_v61, %v4457_v11 }
 0x7d8   : > { %4476 = vrot.lane.b32.xlu0 %v4468_v45, %s7680_s2 }
 0x7d9   : > { %v4459_v24 = vpop.permute.xlu1 %4458 }
 0x7da   : > { %v4469_v44 = vmul.f32 %v7456_v27, %v4459_v24 }
 0x7dc   : > { %4478 = vrot.lane.b32.xlu1 %v4469_v44, %s7680_s2  ;;  %4480 = vrot.lane.b32.xlu0 %v4470_v55, %s7680_s2 }
 0x7dd   : > { %v4463_v0 = vpop.permute.xlu1 %4462 }
 0x7de   : > { %v4471_v42 = vmul.f32 %v7458_v21, %v4463_v0 }
 0x7e0   : > { %4482 = vrot.lane.b32.xlu1 %v4471_v42, %s7680_s2 }
 0x844   :  { %v4848_v32 = vpop.f32.mrb[0].mxu1 (%p4329_p5) }
 0x845   :  { %v4849_v37 = vadd.f32 (%p4329_p5), %v9369_v34, %v4848_v32  ;;  %v7185_v50 = vpop.f32.mrb[1].mxu1 (%p4329_p5) }
 0x846   :  { %v4851_v61 = vpop.f32.mrb[2].mxu1 (%p4329_p5) }
 0x847   :  { %v4855_v11 = vcombine.high (%p4329_p5), %v4849_v37, %v4849_v37  ;;  %v7186_v54 = vpop.f32.mrb[3].mxu1 (%p4329_p5) }
 0x84a   : > { %v4477_v19 = vpop.permute.xlu0 %4476 }
 0x84b   : > { %v4488_v40 = vadd.f32 %v4477_v19, %v4420_v1  ;;  %v4522_v1 = vmul.f32 %v7662_v59, %v7454_v18 }
 0x84d   : > { %7459 = vtanh.f32 %v4488_v40 }
 0x84e   : > { %v4479_v31 = vpop.permute.xlu1 %4478  ;;  %v4481_v51 = vpop.permute.xlu0 %4480 }
 0x84f   : > { %v4489_v12 = vadd.f32 %v4479_v31, %v4421_v33  ;;  %v4490_v7 = vadd.f32 %v4481_v51, %v4422_v16  ;;  %v4499_v33 = vsub.f32 1.0, %v7458_v21  ;;  %v6282_v51 = vld [vmem:[%s9969_s10] ss:$0 sm:$0xff] (%p4329_p5) }
 0x851   : > { %7461 = vtanh.f32 %v4489_v12 }
 0x852   : > { %7463 = vtanh.f32 %v4490_v7  ;;  %v4483_v26 = vpop.permute.xlu1 %4482 }
 0x853   : > { %v4491_v56 = vadd.f32 %v4483_v26, %v4423_v29 }
 0x855   : > { %7465 = vtanh.f32 %v4491_v56 }
 0x857   : > { %v7460_v5 = vpop.eup %7459 }
 0x858   : > { %4504 = vrot.lane.b32.xlu0 %v7460_v5, %s7679_s7 }
 0x85b   : > { %v7462_v60 = vpop.eup %7461 }
 0x85c   : > { %v7464_v20 = vpop.eup %7463  ;;  %4506 = vrot.lane.b32.xlu1 %v7462_v60, %s7679_s7 }
 0x85d   : > { %4508 = vrot.lane.b32.xlu0 %v7464_v20, %s7679_s7 }
 0x85f   : > { %v7466_v13 = vpop.eup %7465 }
 0x860   : > { %4510 = vrot.lane.b32.xlu1 %v7466_v13, %s7679_s7 }
 0x8ca   : > { %v4505_v8 = vpop.permute.xlu0 %4504 }
 0x8cb   : > { %v4516_v36 = vmul.f32 %v4505_v8, %v4496_v2 }
 0x8cd   : > { %v4524_v6 = vadd.f32 %v4520_v35, %v4516_v36  }
 0x8ce   : > { %v4507_v23 = vpop.permute.xlu1 %4506 }
 0x8cf   : > { %v4517_v15 = vmul.f32 %v4507_v23, %v4497_v22  ;;  %v4509_v49 = vpop.permute.xlu0 %4508  ;;  %v10014_v63 = vmov %v4524_v6 }
 0x8d0   : > { %v4518_v16 = vmul.f32 %v4509_v49, %v4498_v14 }
 0x8d1   : > { %v4525_v10 = vadd.f32 %v4521_v30, %v4517_v15   ;;  %4331 = sbr.rel (!%p4329_p5) target bundleno = 1555 (0x613), region = 91 }
 0x8d2   : > { %v4526_v3 = vadd.f32 %v4522_v1, %v4518_v16   ;;  %v4511_v17 = vpop.permute.xlu1 %4510 }
 0x8d3   : > { %v4519_v29 = vmul.f32 %v4511_v17, %v4499_v33  ;;  %v10013_v62 = vmov %v4525_v10  ;;  %v4528_v63 = vpack.c.bf16 (%p4329_p5), %v4525_v10, %v4524_v6 }
 0x8d4   : > { %v10012_v59 = vmov %v4526_v3  ;;  %v4621_v62 = vlaneseq (%p4329_p5) }
 0x8d5   : > { %v4527_v38 = vadd.f32 %v4523_v28, %v4519_v29   ;;  %4543 = vrot.lane.b32.xlu0 (%p4329_p5), %v4528_v63, %s7681_s16 }
 0x8d6   :  { %v4622_v4 = vshrl.u32 (%p4329_p5), %v4621_v62, 7 }
 0x8d7   : > { %v10011_v58 = vmov %v4527_v38  ;;  %v4529_v53 = vpack.c.bf16 (%p4329_p5), %v4527_v38, %v4526_v3 }
 0x8d8   :  { %v7683_v58 = vmov 1966171168  }
 0x8d9   :  { %4545 = vrot.lane.b32.xlu0 %v4529_v53, %s7681_s16  ;;  %v4619_v59 = vunpack.c.l.s4 %v7683_v58 }
 0x8db   :  { %v4620_v46 = vunpack.c.0.s8 %v4619_v59 }
 0x8dd   :  { %v9371_v41 = vsub.s32 %v4620_v46, %v4622_v4 }
 0x8df   :  { %v4862_v45 = vrot.slane %v4849_v37, %v9371_v41  ;;  %v4869_v18 = vrot.slane %v4855_v11, %v9371_v41 }
 0x8e1   :  { %v4870_v27 = vcombine.high %v4862_v45, %v4862_v45  ;;  %v4878_v24 = vrot.slane %v4862_v45, %v9371_v41  ;;  %v4885_v44 = vrot.slane %v4869_v18, %v9371_v41  ;;  %v4871_v19 = vcombine.high %v4869_v18, %v4869_v18 }
 0x8e3   :  { %v4892_v55 = vrot.slane %v4870_v27, %v9371_v41  ;;  %4968 = vrot.lane.b32.xlu0 %v4878_v24, %s7684_s3  ;;  %v4900_v21 = vcombine.high %v4878_v24, %v4878_v24  ;;  %v4901_v0 = vcombine.high %v4885_v44, %v4885_v44  ;;  %v4899_v40 = vrot.slane %v4871_v19, %v9371_v41 }
 0x8e5   :  { %4970 = vrot.lane.b32.xlu1 %v4892_v55, %s7684_s3  ;;  %v4902_v42 = vcombine.high %v4892_v55, %v4892_v55  ;;  %v4903_v31 = vcombine.high %v4899_v40, %v4899_v40 }
 0x8e7   :  { %4976 = vrot.lane.b32.xlu0 %v4885_v44, %s7684_s3 }
 0x8e9   :  { %4972 = vrot.lane.b32.xlu1 %v4900_v21, %s7684_s3 }
 0x8eb   :  { %4980 = vrot.lane.b32.xlu0 %v4901_v0, %s7684_s3 }
 0x8ed   :  { %4974 = vrot.lane.b32.xlu1 %v4902_v42, %s7684_s3 }
 0x8f1   :  { %4978 = vrot.lane.b32.xlu1 %v4899_v40, %s7684_s3 }
 0x8f5   :  { %4982 = vrot.lane.b32.xlu1 %v4903_v31, %s7684_s3 }
 0x947   :  { %v4544_v47 = vpop.permute.xlu0 %4543 }
 0x948   :  { %7175 = vmatprep.mubr.msk.bf16.mxu0 %vm114_vm0, %v4544_v47 }
 0x94b   :  { %v4546_v43 = vpop.permute.xlu0 %4545 }
 0x94c   :  { %7176 = vmatmul.mubr.msk.bf16.vlgmr.msra.gmra.mrb[0].mxu0 %vm114_vm0, %v4546_v43 }
 0x94d   :  { %7188 = vmatpush3.bf16.msra.mxu0 %v9331_v25  ;;  %7191 = vmatprep.mubr.msk.bf16.mxu0 %vm10016_vm3, %v10015_v57 }
 0x94e   :  { %7189 = vmatprep.subr.bf16.mxu0 %v10015_v57 }
 0x951   :  { %7190 = vmatpush3.bf16.msra.mxu0 %v9338_v39 }
 0x952   :  { %7203 = vmatprep.subr.bf16.mxu0 %v10015_v57 }
 0xa1f   :  { %v7177_v12 = vpop.f32.mrb[0].mxu0 }
 0xa20   :  { %v4608_v7 = vadd.f32 %v7177_v12, %v6282_v51  ;;  %v4599_v26 = vpop.f32.mrb[1].mxu0 }
 0xa21   :  { %v4600_v56 = vadd.f32 %v6282_v51, %v4599_v26  ;;  %v7178_v5 = vpop.f32.mrb[2].mxu0 }
 0xa22   :  { %v4715_v60 = vcombine.high %v4608_v7, %v4608_v7  ;;  %v9392_v20 = vrot.slane %v4608_v7, %v9371_v41  ;;  %v9394_v13 = vadd.f32 %v7178_v5, %v6282_v51  ;;  %v4602_v2 = vpop.f32.mrb[3].mxu0 }
 0xa23   :  { %v4617_v8 = vcombine.high %v4600_v56, %v4600_v56  ;;  %v4624_v35 = vrot.slane %v4600_v56, %v9371_v41  ;;  %v4603_v36 = vadd.f32 %v6282_v51, %v4602_v2 }
 0xa24   :  { %v9398_v6 = vrot.slane %v4715_v60, %v9371_v41  ;;  %v9402_v22 = vrot.slane %v9392_v20, %v9371_v41 }
 0xa25   :  { %v9405_v23 = vrot.slane %v4617_v8, %v9371_v41  ;;  %v4632_v14 = vcombine.high %v4624_v35, %v4624_v35  ;;  %v9408_v30 = vrot.slane %v4624_v35, %v9371_v41  ;;  %v4666_v15 = vcombine.high %v4603_v36, %v4603_v36  ;;  %v4969_v8 = vpop.permute.xlu0 %4968 }
 0xa26   :  { %v4731_v49 = vcombine.high %v9398_v6, %v9398_v6  ;;  %v9414_v1 = vcombine.high %v9402_v22, %v9402_v22  ;;  %v9426_v17 = vrot.slane %v4603_v36, %v9371_v41 }
 0xa27   :  { %v9418_v16 = vrot.slane %v9405_v23, %v9371_v41  ;;  %v9421_v10 = vrot.slane %v4632_v14, %v9371_v41  ;;  %v4912_v3 = vadd.f32 %v4878_v24, %v9408_v30  ;;  %v4680_v38 = vrot.slane %v4666_v15, %v9371_v41 }
 0xa28   :  { %v4918_v33 = vadd.f32 %v4901_v0, %v9414_v1  ;;  %v9438_v63 = vrot.slane %v4731_v49, %v9371_v41  ;;  %v4681_v48 = vcombine.high %v9426_v17, %v9426_v17 }
 0xa29   :  { %v9430_v28 = vcombine.high %v9418_v16, %v9418_v16  ;;  %v9434_v29 = vcombine.high %v9421_v10, %v9421_v10  ;;  %v6290_v53 = vmul.f32 -1.442695, %v4912_v3  ;;  %v4682_v47 = vcombine.high %v4680_v38, %v4680_v38 }
 0xa2a   :  { %v6296_v43 = vmul.f32 -1.442695, %v4918_v33  ;;  %v9445_v58 = vrot.slane %v4680_v38, %v9371_v41  ;;  %v9448_v59 = vrot.slane %v4681_v48, %v9371_v41  ;;  %v4919_v32 = vadd.f32 %v4903_v31, %v9438_v63 }
 0xa2b   :  { %v4913_v9 = vadd.f32 %v4892_v55, %v9434_v29  ;;  %v4914_v52 = vadd.f32 %v4900_v21, %v9430_v28  ;;  %7471 = vpow2.f32 %v6290_v53  ;;  %v9451_v4 = vrot.slane %v4682_v47, %v9371_v41  ;;  %v4971_v21 = vpop.permute.xlu1 %4970  ;;  %v4977_v53 = vpop.permute.xlu0 %4976 }
 0xa2c   :  { %v4915_v37 = vadd.f32 %v4902_v42, %v9448_v59  ;;  %v4916_v50 = vadd.f32 %v4885_v44, %v9445_v58  ;;  %v6297_v18 = vmul.f32 -1.442695, %v4919_v32 }
 0xa2d   :  { %v6291_v62 = vmul.f32 -1.442695, %v4913_v9  ;;  %v6292_v46 = vmul.f32 -1.442695, %v4914_v52  ;;  %v9458_v61 = vcombine.high %v9451_v4, %v9451_v4 }
 0xa2e   :  { %v6293_v11 = vmul.f32 -1.442695, %v4915_v37  ;;  %v6294_v45 = vmul.f32 -1.442695, %v4916_v50 }
 0xa2f   :  { %7473 = vpow2.f32 %v6291_v62  ;;  %v4917_v54 = vadd.f32 %v4899_v40, %v9458_v61  ;;  %v4973_v56 = vpop.permute.xlu1 %4972  ;;  %v4981_v32 = vpop.permute.xlu0 %4980 }
 0xa30   :  { %7475 = vpow2.f32 %v6292_v46 }
 0xa31   :  { %7477 = vpow2.f32 %v6296_v43  ;;  %v6295_v27 = vmul.f32 -1.442695, %v4917_v54 }
 0xa32   :  { %7479 = vpow2.f32 %v6293_v11 }
 0xa33   :  { %7481 = vpow2.f32 %v6294_v45  ;;  %v4975_v15 = vpop.permute.xlu1 %4974 }
 0xa34   :  { %7483 = vpow2.f32 %v6295_v27 }
 0xa35   :  { %7485 = vpow2.f32 %v6297_v18  ;;  %v7472_v24 = vpop.eup %7471 }
 0xa36   :  { %v4944_v55 = vadd.f32 1.0, %v7472_v24 }
 0xa37   :  { %v4979_v52 = vpop.permute.xlu1 %4978 }
 0xa38   :  { %7487 = vrcp.f32 %v4944_v55 }
 0xa39   :  { %v7474_v44 = vpop.eup %7473 }
 0xa3a   :  { %v7476_v0 = vpop.eup %7475  ;;  %v4945_v42 = vadd.f32 1.0, %v7474_v44 }
 0xa3b   :  { %v7478_v19 = vpop.eup %7477  ;;  %v4946_v31 = vadd.f32 1.0, %v7476_v0  ;;  %v4983_v45 = vpop.permute.xlu1 %4982 }
 0xa3c   :  { %v7480_v51 = vpop.eup %7479  ;;  %7489 = vrcp.f32 %v4945_v42  ;;  %v4950_v60 = vadd.f32 1.0, %v7478_v19 }
 0xa3d   :  { %v7482_v12 = vpop.eup %7481  ;;  %7491 = vrcp.f32 %v4946_v31  ;;  %v4947_v40 = vadd.f32 1.0, %v7480_v51 }
 0xa3e   :  { %v4948_v7 = vadd.f32 1.0, %v7482_v12  ;;  %v7484_v26 = vpop.eup %7483 }
 0xa3f   :  { %7493 = vrcp.f32 %v4947_v40  ;;  %v7486_v5 = vpop.eup %7485  ;;  %v4949_v2 = vadd.f32 1.0, %v7484_v26 }
 0xa40   :  { %7495 = vrcp.f32 %v4948_v7  ;;  %v4951_v35 = vadd.f32 1.0, %v7486_v5 }
 0xa41   :  { %7497 = vrcp.f32 %v4949_v2 }
 0xa42   :  { %v9461_v36 = vpop.eup %7487  ;;  %7499 = vrcp.f32 %v4950_v60 }
 0xa43   :  { %v4992_v14 = vmul.f32 %v9461_v36, %v4969_v8  ;;  %7501 = vrcp.f32 %v4951_v35  ;;  %v5048_v35 = vsub.f32 1.0, %v9461_v36 }
 0xa45   :  { %5008 = vrot.lane.b32.xlu0 %v4992_v14, %s7684_s3 }
 0xa46   :  { %v9464_v49 = vpop.eup %7489 }
 0xa47   :  { %v9466_v33 = vpop.eup %7491  ;;  %v4993_v3 = vmul.f32 %v9464_v49, %v4971_v21 }
 0xa48   :  { %v4994_v38 = vmul.f32 %v9466_v33, %v4973_v56 }
 0xa49   :  { %v9471_v48 = vpop.eup %7493  ;;  %5010 = vrot.lane.b32.xlu0 %v4993_v3, %s7684_s3  ;;  %v5096_v3 = vmul.f32 0.0, %v9461_v36 }
 0xa4a   :  { %v9473_v9 = vpop.eup %7495  ;;  %5012 = vrot.lane.b32.xlu1 %v4994_v38, %s7684_s3  ;;  %v4995_v47 = vmul.f32 %v9471_v48, %v4975_v15  ;;  %v5050_v38 = vsub.f32 1.0, %v9466_v33 }
 0xa4b   :  { %v9478_v43 = vpop.eup %7497  ;;  %v4996_v62 = vmul.f32 %v9473_v9, %v4977_v53 }
 0xa4c   :  { %v9481_v46 = vpop.eup %7499  ;;  %v4997_v37 = vmul.f32 %v9478_v43, %v4979_v52  ;;  %v5049_v52 = vsub.f32 1.0, %v9464_v49 }
 0xa4d   :  { %5016 = vrot.lane.b32.xlu0 %v4996_v62, %s7684_s3  ;;  %v9486_v50 = vpop.eup %7501  ;;  %v4998_v11 = vmul.f32 %v9481_v46, %v4981_v32  ;;  %v5098_v62 = vmul.f32 0.0, %v9466_v33 }
 0xa4e   :  { %5014 = vrot.lane.b32.xlu1 %v4995_v47, %s7684_s3  ;;  %v4999_v54 = vmul.f32 %v9486_v50, %v4983_v45 }
 0xa51   :  { %5020 = vrot.lane.b32.xlu0 %v4998_v11, %s7684_s3  ;;  %v5097_v11 = vmul.f32 0.0, %v9464_v49 }
 0xa52   :  { %5018 = vrot.lane.b32.xlu1 %v4997_v37, %s7684_s3 }
 0xa56   :  { %5022 = vrot.lane.b32.xlu1 %v4999_v54, %s7684_s3 }
 0xab7   :  { %v5009_v18 = vpop.permute.xlu0 %5008 }
 0xab8   :  { %v5032_v27 = vadd.f32 %v5009_v18, %v9408_v30  ;;  %v5051_v18 = vsub.f32 1.0, %v9471_v48 }
 0xaba   :  { %7503 = vtanh.f32 %v5032_v27 }
 0xabb   :  { %v5011_v44 = vpop.permute.xlu0 %5010 }
 0xabc   :  { %v5013_v24 = vpop.permute.xlu1 %5012  ;;  %v5033_v21 = vadd.f32 %v5011_v44, %v9434_v29  ;;  %v5099_v44 = vmul.f32 0.0, %v9471_v48  ;;  %v5102_v48 = vmul.f32 0.0, %v9481_v46 }
 0xabd   :  { %v5034_v55 = vadd.f32 %v5013_v24, %v9430_v28  ;;  %v5052_v24 = vsub.f32 1.0, %v9473_v9 }
 0xabf   :  { %7505 = vtanh.f32 %v5034_v55  ;;  %v5017_v19 = vpop.permute.xlu0 %5016 }
 0xac0   :  { %7507 = vtanh.f32 %v5033_v21  ;;  %v5015_v0 = vpop.permute.xlu1 %5014  ;;  %v5036_v31 = vadd.f32 %v5017_v19, %v9445_v58 }
 0xac1   :  { %v5035_v42 = vadd.f32 %v5015_v0, %v9448_v59 }
 0xac3   :  { %7509 = vtanh.f32 %v5035_v42  ;;  %v5021_v40 = vpop.permute.xlu0 %5020  ;;  %v5100_v42 = vmul.f32 0.0, %v9473_v9  ;;  %v5101_v9 = vmul.f32 0.0, %v9478_v43 }
 0xac4   :  { %7511 = vtanh.f32 %v5036_v31  ;;  %v5019_v51 = vpop.permute.xlu1 %5018  ;;  %v7504_v7 = vpop.eup %7503  ;;  %v5038_v28 = vadd.f32 %v5021_v40, %v9414_v1 }
 0xac5   :  { %v5037_v12 = vadd.f32 %v5019_v51, %v9458_v61  ;;  %5064 = vrot.lane.b32.xlu0 %v7504_v7, %s7681_s16 }
 0xac7   :  { %7513 = vtanh.f32 %v5037_v12  ;;  %v5053_v12 = vsub.f32 1.0, %v9478_v43 }
 0xac8   :  { %7515 = vtanh.f32 %v5038_v28  ;;  %v5023_v29 = vpop.permute.xlu1 %5022 }
 0xac9   :  { %v7506_v26 = vpop.eup %7505  ;;  %v5039_v56 = vadd.f32 %v5023_v29, %v9438_v63  ;;  %v5054_v29 = vsub.f32 1.0, %v9481_v46 }
 0xaca   :  { %v7508_v5 = vpop.eup %7507  ;;  %5068 = vrot.lane.b32.xlu1 %v7506_v26, %s7681_s16 }
 0xacb   :  { %7517 = vtanh.f32 %v5039_v56  ;;  %5066 = vrot.lane.b32.xlu0 %v7508_v5, %s7681_s16 }
 0xacd   :  { %v7510_v60 = vpop.eup %7509 }
 0xace   :  { %v7512_v61 = vpop.eup %7511  ;;  %5070 = vrot.lane.b32.xlu1 %v7510_v60, %s7681_s16 }
 0xacf   :  { %5072 = vrot.lane.b32.xlu0 %v7512_v61, %s7681_s16 }
 0xad1   :  { %v7514_v1 = vpop.eup %7513 }
 0xad2   :  { %v7516_v2 = vpop.eup %7515  ;;  %5074 = vrot.lane.b32.xlu1 %v7514_v1, %s7681_s16 }
 0xad3   :  { %5076 = vrot.lane.b32.xlu0 %v7516_v2, %s7681_s16 }
 0xad5   :  { %v7518_v8 = vpop.eup %7517 }
 0xad6   :  { %5078 = vrot.lane.b32.xlu1 %v7518_v8, %s7681_s16 }
 0xb37   :  { %v5065_v14 = vpop.permute.xlu0 %5064 }
 0xb38   :  { %v5088_v15 = vmul.f32 %v5065_v14, %v5048_v35 }
 0xb3a   :  { %v9513_v47 = vadd.f32 %v5096_v3, %v5088_v15  ;;  %v5055_v15 = vsub.f32 1.0, %v9486_v50 }
 0xb3c   :  { %v5069_v53 = vpop.permute.xlu1 %5068  ;;  %v5130_v55 = vpack.c.bf16 %v9513_v47, %v9513_v47 }
 0xb3d   :  { %v5090_v32 = vmul.f32 %v5069_v53, %v5050_v38  ;;  %v5067_v37 = vpop.permute.xlu0 %5066 }
 0xb3e   :  { %v5089_v45 = vmul.f32 %v5067_v37, %v5049_v52  ;;  %v5146_v26 = vunpack.c.l.b16 %v5130_v55 }
 0xb3f   :  { %v9517_v54 = vadd.f32 %v5098_v62, %v5090_v32  ;;  %v5103_v62 = vmul.f32 0.0, %v9486_v50 }
 0xb40   :  { %v9520_v27 = vadd.f32 %v5097_v11, %v5089_v45  ;;  %v5071_v36 = vpop.permute.xlu1 %5070 }
 0xb41   :  { %v5132_v33 = vpack.c.bf16 %v9517_v54, %v9517_v54  ;;  %v5091_v21 = vmul.f32 %v5071_v36, %v5051_v18  ;;  %v5073_v49 = vpop.permute.xlu0 %5072 }
 0xb42   :  { %v5131_v0 = vpack.c.bf16 %v9520_v27, %v9520_v27  ;;  %v5092_v19 = vmul.f32 %v5073_v49, %v5052_v24 }
 0xb43   :  { %v5148_v31 = vunpack.c.l.b16 %v5132_v33  ;;  %v9531_v51 = vadd.f32 %v5099_v44, %v5091_v21 }
 0xb44   :  { %v5147_v40 = vunpack.c.l.b16 %v5131_v0  ;;  %v9534_v7 = vadd.f32 %v5100_v42, %v5092_v19  ;;  %v5075_v28 = vpop.permute.xlu1 %5074 }
 0xb45   :  { %v5133_v56 = vpack.c.bf16 %v9531_v51, %v9531_v51  ;;  %v5093_v5 = vmul.f32 %v5075_v28, %v5053_v12  ;;  %v5077_v60 = vpop.permute.xlu0 %5076  ;;  %v5156_v61 = vrot.slane %v5148_v31, 6 }
 0xb46   :  { %v5154_v1 = vrot.slane %v5147_v40, 7  ;;  %v5134_v2 = vpack.c.bf16 %v9534_v7, %v9534_v7  ;;  %v5094_v8 = vmul.f32 %v5077_v60, %v5054_v29 }
 0xb47   :  { %v5149_v35 = vunpack.c.l.b16 %v5133_v56  ;;  %v9543_v14 = vadd.f32 %v5101_v9, %v5093_v5 }
 0xb48   :  { %v5155_v46 = vsel %vm3971_vm7, %v5154_v1, %v5146_v26  ;;  %v5150_v3 = vunpack.c.l.b16 %v5134_v2  ;;  %v9547_v38 = vadd.f32 %v5102_v48, %v5094_v8  ;;  %v5079_v53 = vpop.permute.xlu1 %5078 }
 0xb49   :  { %v5158_v43 = vrot.slane %v5149_v35, 5  ;;  %v5135_v52 = vpack.c.bf16 %v9543_v14, %v9543_v14  ;;  %v5095_v32 = vmul.f32 %v5079_v53, %v5055_v15  ;;  %v5157_v45 = vsel %vm3974_vm8, %v5156_v61, %v5155_v46 }
 0xb4a   :  { %v5160_v37 = vrot.slane %v5150_v3, 4  ;;  %v5136_v11 = vpack.c.bf16 %v9547_v38, %v9547_v38  ;;  %v4633_v3 = vcombine.high %v9405_v23, %v9405_v23 }
 0xb4b   :  { %v5151_v18 = vunpack.c.l.b16 %v5135_v52  ;;  %v9555_v36 = vadd.f32 %v5103_v62, %v5095_v32  ;;  %v5159_v24 = vsel %vm3977_vm9, %v5158_v43, %v5157_v45  ;;  %v9593_v43 = vrot.slane %v9426_v17, %v9371_v41 }
 0xb4c   :  { %v5152_v55 = vunpack.c.l.b16 %v5136_v11  ;;  %v5161_v21 = vsel %vm3980_vm10, %v5160_v37, %v5159_v24  ;;  %v9589_v53 = vrot.slane %v4633_v3, %v9371_v41  ;;  %v4730_v32 = vcombine.high %v9392_v20, %v9392_v20 }
 0xb4d   :  { %v5162_v33 = vrot.slane %v5151_v18, 3  ;;  %v5137_v44 = vpack.c.bf16 %v9555_v36, %v9555_v36  ;;  %v9606_v45 = vcombine.high %v9593_v43, %v9593_v43 }
 0xb4e   :  { %v5164_v50 = vrot.slane %v5152_v55, 2  ;;  %v9598_v62 = vcombine.high %v9589_v53, %v9589_v53  ;;  %v9609_v17 = vrot.slane %v4730_v32, %v9371_v41  ;;  %v9614_v55 = vrot.slane %v9398_v6, %v9371_v41 }
 0xb4f   :  { %v5153_v49 = vunpack.c.l.b16 %v5137_v44  ;;  %v5163_v0 = vsel %vm3983_vm11, %v5162_v33, %v5161_v21 }
 0xb50   :  { %v5165_v19 = vsel %vm3986_vm12, %v5164_v50, %v5163_v0  ;;  %v9620_v50 = vcombine.high %v9609_v17, %v9609_v17  ;;  %v9625_v6 = vcombine.high %v9614_v55, %v9614_v55 }
 0xb51   :  { %v5166_v42 = vrot.slane %v5153_v49, 1 }
 0xb53   :  { %v5167_v31 = vsel %vm3989_vm13, %v5166_v42, %v5165_v19 }
 0xb54   :  { %v5168_v12 = vpack.c.b16 %v5167_v31, %v5167_v31 }
 0xb56   :  { %5169 = vrot.lane.b32.xlu0 %v5168_v12, %s7681_s16 }
 0xbc8   :  { %v5170_v40 = vpop.permute.xlu0 %5169 }
 0xbc9   :  { %7192 = vmatmul.mubr.msk.bf16.vlgmr.msra.gmra.mrb[4].mxu0 %vm114_vm0, %v5170_v40 }
 0xbca   :  { %7204 = vmatpush3.bf16.msra.mxu0 %v9331_v25  ;;  %7207 = vmatprep.mubr.msk.bf16.mxu0 %vm10016_vm3, %v10015_v57 }
 0xbcb   :  { %7205 = vmatprep.subr.bf16.mxu0 %v10015_v57 }
 0xbce   :  { %7206 = vmatpush3.bf16.msra.mxu0 %v9338_v39 }
 0xc9c   :  { %v5208_v28 = vpop.f32.mrb[4].mxu0 }
 0xc9d   :  { %v5209_v29 = vadd.f32 %v9369_v34, %v5208_v28  ;;  %v7193_v48 = vpop.f32.mrb[5].mxu0 }
 0xc9e   :  { %v5211_v26 = vpop.f32.mrb[6].mxu0 }
 0xc9f   :  { %v5215_v56 = vcombine.high %v5209_v29, %v5209_v29  ;;  %v5222_v9 = vrot.slane %v5209_v29, %v9371_v41  ;;  %v7194_v5 = vpop.f32.mrb[7].mxu0 }
 0xca1   :  { %v5230_v60 = vcombine.high %v5222_v9, %v5222_v9  ;;  %v5238_v61 = vrot.slane %v5222_v9, %v9371_v41  ;;  %v5229_v25 = vrot.slane %v5215_v56, %v9371_v41 }
 0xca3   :  { %5328 = vrot.lane.b32.xlu1 %v5238_v61, %s7684_s3  ;;  %v5260_v1 = vcombine.high %v5238_v61, %v5238_v61  ;;  %v5252_v57 = vrot.slane %v5230_v60, %v9371_v41  ;;  %v5231_v2 = vcombine.high %v5229_v25, %v5229_v25  ;;  %v5245_v8 = vrot.slane %v5229_v25, %v9371_v41 }
 0xca4   :  { %v5272_v52 = vadd.f32 %v5238_v61, %v9421_v10 }
 0xca5   :  { %5332 = vrot.lane.b32.xlu0 %v5260_v1, %s7684_s3  ;;  %v5262_v39 = vcombine.high %v5252_v57, %v5252_v57  ;;  %v5259_v35 = vrot.slane %v5231_v2, %v9371_v41  ;;  %v5261_v15 = vcombine.high %v5245_v8, %v5245_v8  ;;  %v5274_v37 = vadd.f32 %v5260_v1, %v9598_v62 }
 0xca6   :  { %v6299_v11 = vmul.f32 -1.442695, %v5272_v52  ;;  %v5273_v23 = vadd.f32 %v5252_v57, %v9418_v16  ;;  %v5276_v33 = vadd.f32 %v5245_v8, %v9451_v4 }
 0xca7   :  { %5330 = vrot.lane.b32.xlu1 %v5252_v57, %s7684_s3  ;;  %v5263_v46 = vcombine.high %v5259_v35, %v5259_v35  ;;  %v6301_v18 = vmul.f32 -1.442695, %v5274_v37  ;;  %v5275_v24 = vadd.f32 %v5262_v39, %v9606_v45  ;;  %v5277_v21 = vadd.f32 %v5259_v35, %v9402_v22 }
 0xca8   :  { %7519 = vpow2.f32 %v6299_v11  ;;  %v6300_v20 = vmul.f32 -1.442695, %v5273_v23  ;;  %v6303_v49 = vmul.f32 -1.442695, %v5276_v33  ;;  %v5278_v0 = vadd.f32 %v5261_v15, %v9620_v50 }
 0xca9   :  { %5334 = vrot.lane.b32.xlu0 %v5262_v39, %s7684_s3  ;;  %7521 = vpow2.f32 %v6301_v18  ;;  %v6302_v44 = vmul.f32 -1.442695, %v5275_v24  ;;  %v6304_v42 = vmul.f32 -1.442695, %v5277_v21  ;;  %v5279_v19 = vadd.f32 %v5263_v46, %v9625_v6 }
 0xcaa   :  { %7523 = vpow2.f32 %v6300_v20  ;;  %v6305_v31 = vmul.f32 -1.442695, %v5278_v0 }
 0xcab   :  { %5336 = vrot.lane.b32.xlu1 %v5245_v8, %s7684_s3  ;;  %7525 = vpow2.f32 %v6302_v44  ;;  %v6306_v40 = vmul.f32 -1.442695, %v5279_v19 }
 0xcac   :  { %7527 = vpow2.f32 %v6303_v49 }
 0xcad   :  { %5338 = vrot.lane.b32.xlu0 %v5259_v35, %s7684_s3  ;;  %7529 = vpow2.f32 %v6304_v42 }
 0xcae   :  { %7531 = vpow2.f32 %v6305_v31 }
 0xcaf   :  { %5340 = vrot.lane.b32.xlu1 %v5261_v15, %s7684_s3  ;;  %7533 = vpow2.f32 %v6306_v40 }
 0xcb1   :  { %5342 = vrot.lane.b32.xlu0 %v5263_v46, %s7684_s3 }
 0xcb2   :  { %v7520_v12 = vpop.eup %7519 }
 0xcb3   :  { %v7522_v28 = vpop.eup %7521  ;;  %v5304_v29 = vadd.f32 1.0, %v7520_v12 }
 0xcb4   :  { %v7524_v48 = vpop.eup %7523  ;;  %v5306_v26 = vadd.f32 1.0, %v7522_v28 }
 0xcb5   :  { %v7526_v56 = vpop.eup %7525  ;;  %7535 = vrcp.f32 %v5304_v29  ;;  %v5305_v9 = vadd.f32 1.0, %v7524_v48 }
 0xcb6   :  { %v7528_v5 = vpop.eup %7527  ;;  %7537 = vrcp.f32 %v5306_v26  ;;  %v5307_v60 = vadd.f32 1.0, %v7526_v56 }
 0xcb7   :  { %v7530_v61 = vpop.eup %7529  ;;  %7539 = vrcp.f32 %v5305_v9  ;;  %v5308_v25 = vadd.f32 1.0, %v7528_v5 }
 0xcb8   :  { %v7532_v1 = vpop.eup %7531  ;;  %7541 = vrcp.f32 %v5307_v60  ;;  %v5309_v57 = vadd.f32 1.0, %v7530_v61 }
 0xcb9   :  { %v7534_v39 = vpop.eup %7533  ;;  %7543 = vrcp.f32 %v5308_v25  ;;  %v5310_v2 = vadd.f32 1.0, %v7532_v1 }
 0xcba   :  { %7545 = vrcp.f32 %v5309_v57  ;;  %v5311_v35 = vadd.f32 1.0, %v7534_v39 }
 0xcbb   :  { %7547 = vrcp.f32 %v5310_v2 }
 0xcbc   :  { %7549 = vrcp.f32 %v5311_v35 }
 0xcbf   :  { %v9628_v8 = vpop.eup %7535 }
 0xcc0   :  { %v9631_v3 = vpop.eup %7537 }
 0xcc1   :  { %v9635_v37 = vpop.eup %7539 }
 0xcc2   :  { %v9639_v18 = vpop.eup %7541 }
 0xcc3   :  { %v9643_v33 = vpop.eup %7543 }
 0xcc4   :  { %v9647_v49 = vpop.eup %7545 }
 0xcc5   :  { %v9651_v19 = vpop.eup %7547 }
 0xcc6   :  { %v9655_v40 = vpop.eup %7549 }
 0xd15   :  { %v5329_v15 = vpop.permute.xlu1 %5328 }
 0xd16   :  { %v5352_v46 = vmul.f32 %v9628_v8, %v5329_v15 }
 0xd17   :  { %v5333_v52 = vpop.permute.xlu0 %5332 }
 0xd18   :  { %v5354_v32 = vmul.f32 %v9631_v3, %v5333_v52  ;;  %5368 = vrot.lane.b32.xlu1 %v5352_v46, %s7684_s3 }
 0xd19   :  { %v5331_v11 = vpop.permute.xlu1 %5330 }
 0xd1a   :  { %v5353_v23 = vmul.f32 %v9635_v37, %v5331_v11  ;;  %5372 = vrot.lane.b32.xlu0 %v5354_v32, %s7684_s3 }
 0xd1b   :  { %v5335_v24 = vpop.permute.xlu0 %5334 }
 0xd1c   :  { %v5355_v20 = vmul.f32 %v9639_v18, %v5335_v24  ;;  %5370 = vrot.lane.b32.xlu1 %v5353_v23, %s7684_s3  ;;  %v5410_v23 = vsub.f32 1.0, %v9631_v3 }
 0xd1d   :  { %v5337_v44 = vpop.permute.xlu1 %5336 }
 0xd1e   :  { %v5356_v21 = vmul.f32 %v9643_v33, %v5337_v44  ;;  %5374 = vrot.lane.b32.xlu0 %v5355_v20, %s7684_s3  ;;  %v5458_v44 = vmul.f32 %v9631_v3, %v9517_v54 }
 0xd1f   :  { %v5339_v0 = vpop.permute.xlu0 %5338 }
 0xd20   :  { %v5357_v42 = vmul.f32 %v9647_v49, %v5339_v0  ;;  %5376 = vrot.lane.b32.xlu1 %v5356_v21, %s7684_s3  ;;  %v5409_v0 = vsub.f32 1.0, %v9635_v37 }
 0xd21   :  { %v5341_v31 = vpop.permute.xlu1 %5340 }
 0xd22   :  { %v5358_v12 = vmul.f32 %v9651_v19, %v5341_v31  ;;  %5378 = vrot.lane.b32.xlu0 %v5357_v42, %s7684_s3  ;;  %v5456_v42 = vmul.f32 %v9628_v8, %v9513_v47 }
 0xd23   :  { %v5343_v28 = vpop.permute.xlu0 %5342 }
 0xd24   :  { %v5359_v29 = vmul.f32 %v9655_v40, %v5343_v28  ;;  %5380 = vrot.lane.b32.xlu1 %v5358_v12, %s7684_s3 }
 0xd26   :  { %5382 = vrot.lane.b32.xlu0 %v5359_v29, %s7684_s3 }
 0xd8a   :  { %v5369_v48 = vpop.permute.xlu1 %5368 }
 0xd8b   :  { %v5392_v26 = vadd.f32 %v5369_v48, %v9421_v10  ;;  %v5457_v48 = vmul.f32 %v9635_v37, %v9520_v27  ;;  %v5413_v37 = vsub.f32 1.0, %v9647_v49 }
 0xd8c   :  { %v5373_v56 = vpop.permute.xlu0 %5372 }
 0xd8d   :  { %7551 = vtanh.f32 %v5392_v26  ;;  %v5394_v9 = vadd.f32 %v5373_v56, %v9598_v62  ;;  %v5411_v26 = vsub.f32 1.0, %v9639_v18 }
 0xd8e   :  { %v5371_v5 = vpop.permute.xlu1 %5370 }
 0xd8f   :  { %7553 = vtanh.f32 %v5394_v9  ;;  %v5393_v60 = vadd.f32 %v5371_v5, %v9418_v16  ;;  %v5412_v9 = vsub.f32 1.0, %v9643_v33 }
 0xd90   :  { %v5375_v61 = vpop.permute.xlu0 %5374 }
 0xd91   :  { %7555 = vtanh.f32 %v5393_v60  ;;  %v5395_v25 = vadd.f32 %v5375_v61, %v9606_v45 }
 0xd92   :  { %v5377_v1 = vpop.permute.xlu1 %5376 }
 0xd93   :  { %7557 = vtanh.f32 %v5395_v25  ;;  %v5396_v57 = vadd.f32 %v5377_v1, %v9451_v4  ;;  %v5460_v25 = vmul.f32 %v9643_v33, %v9534_v7  ;;  %v5414_v33 = vsub.f32 1.0, %v9651_v19 }
 0xd94   :  { %v5379_v39 = vpop.permute.xlu0 %5378 }
 0xd95   :  { %7559 = vtanh.f32 %v5396_v57  ;;  %v5397_v10 = vadd.f32 %v5379_v39, %v9402_v22 }
 0xd96   :  { %v5381_v2 = vpop.permute.xlu1 %5380 }
 0xd97   :  { %v7552_v35 = vpop.eup %7551  ;;  %7561 = vtanh.f32 %v5397_v10  ;;  %v5398_v62 = vadd.f32 %v5381_v2, %v9620_v50  ;;  %v5461_v2 = vmul.f32 %v9647_v49, %v9543_v14  ;;  %v5462_v49 = vmul.f32 %v9651_v19, %v9547_v38 }
 0xd98   :  { %5424 = vrot.lane.b32.xlu1 %v7552_v35, %s7681_s16  ;;  %v5383_v16 = vpop.permute.xlu0 %5382 }
 0xd99   :  { %v7554_v15 = vpop.eup %7553  ;;  %7563 = vtanh.f32 %v5398_v62  ;;  %v5399_v45 = vadd.f32 %v5383_v16, %v9625_v6  ;;  %v5408_v6 = vsub.f32 1.0, %v9628_v8  ;;  %v5459_v8 = vmul.f32 %v9639_v18, %v9531_v51 }
 0xd9a   :  { %5428 = vrot.lane.b32.xlu0 %v7554_v15, %s7681_s16 }
 0xd9b   :  { %v7556_v46 = vpop.eup %7555  ;;  %7565 = vtanh.f32 %v5399_v45 }
 0xd9c   :  { %5426 = vrot.lane.b32.xlu1 %v7556_v46, %s7681_s16 }
 0xd9d   :  { %v7558_v4 = vpop.eup %7557 }
 0xd9e   :  { %5430 = vrot.lane.b32.xlu0 %v7558_v4, %s7681_s16 }
 0xd9f   :  { %v7560_v22 = vpop.eup %7559 }
 0xda0   :  { %5432 = vrot.lane.b32.xlu1 %v7560_v22, %s7681_s16 }
 0xda1   :  { %v7562_v50 = vpop.eup %7561 }
 0xda2   :  { %5434 = vrot.lane.b32.xlu0 %v7562_v50, %s7681_s16 }
 0xda3   :  { %v7564_v52 = vpop.eup %7563 }
 0xda4   :  { %5436 = vrot.lane.b32.xlu1 %v7564_v52, %s7681_s16 }
 0xda5   :  { %v7566_v32 = vpop.eup %7565 }
 0xda6   :  { %5438 = vrot.lane.b32.xlu0 %v7566_v32, %s7681_s16 }
 0xe0a   :  { %v5425_v11 = vpop.permute.xlu1 %5424 }
 0xe0b   :  { %v5448_v24 = vmul.f32 %v5425_v11, %v5408_v6  ;;  %v5415_v11 = vsub.f32 1.0, %v9655_v40 }
 0xe0c   :  { %v5429_v20 = vpop.permute.xlu0 %5428 }
 0xe0d   :  { %v5450_v21 = vmul.f32 %v5429_v20, %v5410_v23  ;;  %v9685_v29 = vadd.f32 %v5456_v42, %v5448_v24 }
 0xe0e   :  { %v5427_v31 = vpop.permute.xlu1 %5426 }
 0xe0f   :  { %v9683_v12 = vadd.f32 %v5458_v44, %v5450_v21  ;;  %v5449_v28 = vmul.f32 %v5427_v31, %v5409_v0  ;;  %v5490_v57 = vpack.c.bf16 %v9685_v29, %v9685_v29  ;;  %v5463_v21 = vmul.f32 %v9655_v40, %v9555_v36 }
 0xe10   :  { %v5431_v56 = vpop.permute.xlu0 %5430 }
 0xe11   :  { %v5492_v3 = vpack.c.bf16 %v9683_v12, %v9683_v12  ;;  %v9693_v5 = vadd.f32 %v5457_v48, %v5449_v28  ;;  %v5451_v60 = vmul.f32 %v5431_v56, %v5411_v26  ;;  %v5506_v52 = vunpack.c.l.b16 %v5490_v57 }
 0xe12   :  { %v5433_v61 = vpop.permute.xlu1 %5432 }
 0xe13   :  { %v5452_v1 = vmul.f32 %v5433_v61, %v5412_v9  ;;  %v5491_v39 = vpack.c.bf16 %v9693_v5, %v9693_v5  ;;  %v9704_v10 = vadd.f32 %v5459_v8, %v5451_v60  ;;  %v5508_v35 = vunpack.c.l.b16 %v5492_v3 }
 0xe14   :  { %v5435_v18 = vpop.permute.xlu0 %5434 }
 0xe15   :  { %v9708_v62 = vadd.f32 %v5460_v25, %v5452_v1  ;;  %v5453_v16 = vmul.f32 %v5435_v18, %v5413_v37  ;;  %v5507_v15 = vunpack.c.l.b16 %v5491_v39  ;;  %v5493_v45 = vpack.c.bf16 %v9704_v10, %v9704_v10 }
 0xe16   :  { %v5437_v46 = vpop.permute.xlu1 %5436  ;;  %v5516_v24 = vrot.slane %v5508_v35, 6 }
 0xe17   :  { %v5494_v4 = vpack.c.bf16 %v9708_v62, %v9708_v62  ;;  %v9715_v22 = vadd.f32 %v5461_v2, %v5453_v16  ;;  %v5454_v50 = vmul.f32 %v5437_v46, %v5414_v33  ;;  %v5514_v32 = vrot.slane %v5507_v15, 7 }
 0xe18   :  { %v5509_v6 = vunpack.c.l.b16 %v5493_v45  ;;  %v5439_v23 = vpop.permute.xlu0 %5438 }
 0xe19   :  { %v5510_v20 = vunpack.c.l.b16 %v5494_v4  ;;  %v5495_v44 = vpack.c.bf16 %v9715_v22, %v9715_v22  ;;  %v5515_v0 = vsel %vm3971_vm7, %v5514_v32, %v5506_v52  ;;  %v9725_v31 = vadd.f32 %v5462_v49, %v5454_v50 }
 0xe1a   :  { %v5518_v42 = vrot.slane %v5509_v6, 5  ;;  %v5455_v19 = vmul.f32 %v5439_v23, %v5415_v11  ;;  %v5517_v26 = vsel %vm3974_vm8, %v5516_v24, %v5515_v0  ;;  %v9758_v0 = vcombine.high %v9408_v30, %v9408_v30 }
 0xe1b   :  { %v5520_v28 = vrot.slane %v5510_v20, 4  ;;  %v5511_v48 = vunpack.c.l.b16 %v5495_v44  ;;  %v5496_v56 = vpack.c.bf16 %v9725_v31, %v9725_v31 }
 0xe1c   :  { %v9730_v3 = vadd.f32 %v5463_v21, %v5455_v19  ;;  %v5519_v9 = vsel %vm3977_vm9, %v5518_v42, %v5517_v26  ;;  %v9765_v26 = vcombine.high %v9448_v59, %v9448_v59 }
 0xe1d   :  { %v5522_v8 = vrot.slane %v5511_v48, 3  ;;  %v5521_v40 = vsel %vm3980_vm10, %v5520_v28, %v5519_v9  ;;  %v5512_v60 = vunpack.c.l.b16 %v5496_v56 }
 0xe1e   :  { %v5497_v61 = vpack.c.bf16 %v9730_v3, %v9730_v3 }
 0xe1f   :  { %v5523_v25 = vsel %vm3983_vm11, %v5522_v8, %v5521_v40  ;;  %v5524_v37 = vrot.slane %v5512_v60, 2  ;;  %v9770_v8 = vcombine.high %v9445_v58, %v9445_v58 }
 0xe20   :  { %v5513_v1 = vunpack.c.l.b16 %v5497_v61 }
 0xe21   :  { %v5525_v57 = vsel %vm3986_vm12, %v5524_v37, %v5523_v25 }
 0xe22   :  { %v5526_v39 = vrot.slane %v5513_v1, 1  ;;  %v9777_v1 = vcombine.high %v9438_v63, %v9438_v63 }
 0xe24   :  { %v5527_v2 = vsel %vm3989_vm13, %v5526_v39, %v5525_v57 }
 0xe25   :  { %v5528_v18 = vpack.c.b16 %v5527_v2, %v5527_v2 }
 0xe27   :  { %5529 = vrot.lane.b32.xlu1 %v5528_v18, %s7681_s16 }
 0xe99   :  { %v5530_v35 = vpop.permute.xlu1 %5529 }
 0xe9a   :  { %7200 = vmatmul.mubr.msk.bf16.vlgmr.msra.gmra.mrb[4].mxu1 %vm114_vm0, %v5530_v35 }
 0xf6d   :  { %v5568_v16 = vpop.f32.mrb[4].mxu1 }
 0xf6e   :  { %v5569_v33 = vadd.f32 %v9369_v34, %v5568_v16  ;;  %v7201_v15 = vpop.f32.mrb[5].mxu1 }
 0xf6f   :  { %v5571_v45 = vpop.f32.mrb[6].mxu1 }
 0xf70   :  { %v5575_v46 = vcombine.high %v5569_v33, %v5569_v33  ;;  %v5582_v4 = vrot.slane %v5569_v33, %v9371_v41  ;;  %v7202_v49 = vpop.f32.mrb[7].mxu1 }
 0xf72   :  { %v5590_v50 = vcombine.high %v5582_v4, %v5582_v4  ;;  %v5598_v52 = vrot.slane %v5582_v4, %v9371_v41  ;;  %v5589_v32 = vrot.slane %v5575_v46, %v9371_v41 }
 0xf74   :  { %5688 = vrot.lane.b32.xlu0 %v5598_v52, %s7684_s3  ;;  %v5620_v6 = vcombine.high %v5598_v52, %v5598_v52  ;;  %v5612_v11 = vrot.slane %v5590_v50, %v9371_v41  ;;  %v5591_v23 = vcombine.high %v5589_v32, %v5589_v32  ;;  %v5605_v24 = vrot.slane %v5589_v32, %v9371_v41 }
 0xf75   :  { %v5632_v42 = vadd.f32 %v5598_v52, %v9758_v0 }
 0xf76   :  { %5692 = vrot.lane.b32.xlu1 %v5620_v6, %s7684_s3  ;;  %v5622_v34 = vcombine.high %v5612_v11, %v5612_v11  ;;  %v5619_v20 = vrot.slane %v5591_v23, %v9371_v41  ;;  %v5621_v44 = vcombine.high %v5605_v24, %v5605_v24  ;;  %v5634_v19 = vadd.f32 %v5620_v6, %v9593_v43 }
 0xf77   :  { %v6309_v28 = vmul.f32 -1.442695, %v5632_v42  ;;  %v5633_v48 = vadd.f32 %v5612_v11, %v9589_v53  ;;  %v5636_v40 = vadd.f32 %v5605_v24, %v9770_v8 }
 0xf78   :  { %5690 = vrot.lane.b32.xlu0 %v5612_v11, %s7684_s3  ;;  %v5623_v21 = vcombine.high %v5619_v20, %v5619_v20  ;;  %v6311_v56 = vmul.f32 -1.442695, %v5634_v19  ;;  %v5635_v9 = vadd.f32 %v5622_v34, %v9765_v26  ;;  %v5637_v61 = vadd.f32 %v5619_v20, %v9609_v17 }
 0xf79   :  { %7567 = vpow2.f32 %v6309_v28  ;;  %v6310_v30 = vmul.f32 -1.442695, %v5633_v48  ;;  %v6313_v25 = vmul.f32 -1.442695, %v5636_v40  ;;  %v5638_v59 = vadd.f32 %v5621_v44, %v9614_v55 }
 0xf7a   :  { %5694 = vrot.lane.b32.xlu1 %v5622_v34, %s7684_s3  ;;  %7569 = vpow2.f32 %v6311_v56  ;;  %v6312_v60 = vmul.f32 -1.442695, %v5635_v9  ;;  %v6314_v37 = vmul.f32 -1.442695, %v5637_v61  ;;  %v5639_v58 = vadd.f32 %v5623_v21, %v9777_v1 }
 0xf7b   :  { %7571 = vpow2.f32 %v6310_v30  ;;  %v6315_v57 = vmul.f32 -1.442695, %v5638_v59 }
 0xf7c   :  { %5696 = vrot.lane.b32.xlu0 %v5605_v24, %s7684_s3  ;;  %7573 = vpow2.f32 %v6312_v60  ;;  %v6316_v2 = vmul.f32 -1.442695, %v5639_v58 }
 0xf7d   :  { %7575 = vpow2.f32 %v6313_v25 }
 0xf7e   :  { %5698 = vrot.lane.b32.xlu1 %v5619_v20, %s7684_s3  ;;  %7577 = vpow2.f32 %v6314_v37 }
 0xf7f   :  { %7579 = vpow2.f32 %v6315_v57 }
 0xf80   :  { %5700 = vrot.lane.b32.xlu0 %v5621_v44, %s7684_s3  ;;  %7581 = vpow2.f32 %v6316_v2 }
 0xf82   :  { %5702 = vrot.lane.b32.xlu1 %v5623_v21, %s7684_s3 }
 0xf83   :  { %v7568_v39 = vpop.eup %7567 }
 0xf84   :  { %v7570_v18 = vpop.eup %7569  ;;  %v5664_v35 = vadd.f32 1.0, %v7568_v39 }
 0xf85   :  { %v7572_v16 = vpop.eup %7571  ;;  %v5666_v33 = vadd.f32 1.0, %v7570_v18 }
 0xf86   :  { %v7574_v15 = vpop.eup %7573  ;;  %7583 = vrcp.f32 %v5664_v35  ;;  %v5665_v45 = vadd.f32 1.0, %v7572_v16 }
 0xf87   :  { %v7576_v63 = vpop.eup %7575  ;;  %7585 = vrcp.f32 %v5666_v33  ;;  %v5667_v46 = vadd.f32 1.0, %v7574_v15 }
 0xf88   :  { %v7578_v4 = vpop.eup %7577  ;;  %7587 = vrcp.f32 %v5665_v45  ;;  %v5668_v49 = vadd.f32 1.0, %v7576_v63 }
 0xf89   :  { %v7580_v50 = vpop.eup %7579  ;;  %7589 = vrcp.f32 %v5667_v46  ;;  %v5669_v52 = vadd.f32 1.0, %v7578_v4 }
 0xf8a   :  { %v7582_v32 = vpop.eup %7581  ;;  %7591 = vrcp.f32 %v5668_v49  ;;  %v5670_v6 = vadd.f32 1.0, %v7580_v50 }
 0xf8b   :  { %7593 = vrcp.f32 %v5669_v52  ;;  %v5671_v34 = vadd.f32 1.0, %v7582_v32 }
 0xf8c   :  { %7595 = vrcp.f32 %v5670_v6 }
 0xf8d   :  { %7597 = vrcp.f32 %v5671_v34 }
 0xf90   :  { %v9780_v11 = vpop.eup %7583 }
 0xf91   :  { %v9783_v20 = vpop.eup %7585 }
 0xf92   :  { %v9787_v42 = vpop.eup %7587 }
 0xf93   :  { %v9791_v48 = vpop.eup %7589 }
 0xf94   :  { %v9795_v30 = vpop.eup %7591 }
 0xf95   :  { %v9799_v61 = vpop.eup %7593 }
 0xf96   :  { %v9803_v37 = vpop.eup %7595 }
 0xf97   :  { %v9807_v39 = vpop.eup %7597 }
 0xfe6   :  { %v5689_v23 = vpop.permute.xlu0 %5688 }
 0xfe7   :  { %v5712_v24 = vmul.f32 %v9780_v11, %v5689_v23 }
 0xfe8   :  { %v5693_v44 = vpop.permute.xlu1 %5692 }
 0xfe9   :  { %v5714_v21 = vmul.f32 %v9783_v20, %v5693_v44  ;;  %5728 = vrot.lane.b32.xlu0 %v5712_v24, %s7684_s3 }
 0xfea   :  { %v5691_v19 = vpop.permute.xlu0 %5690 }
 0xfeb   :  { %v5713_v28 = vmul.f32 %v9787_v42, %v5691_v19  ;;  %5732 = vrot.lane.b32.xlu1 %v5714_v21, %s7684_s3  ;;  %v5770_v19 = vsub.f32 1.0, %v9783_v20 }
 0xfec   :  { %v5695_v56 = vpop.permute.xlu1 %5694 }
 0xfed   :  { %v5715_v9 = vmul.f32 %v9791_v48, %v5695_v56  ;;  %5730 = vrot.lane.b32.xlu0 %v5713_v28, %s7684_s3 }
 0xfee   :  { %v5697_v40 = vpop.permute.xlu0 %5696 }
 0xfef   :  { %v5716_v60 = vmul.f32 %v9795_v30, %v5697_v40  ;;  %5734 = vrot.lane.b32.xlu1 %v5715_v9, %s7684_s3  ;;  %v5818_v9 = vmul.f32 %v9783_v20, %v9683_v12 }
 0xff0   :  { %v5699_v25 = vpop.permute.xlu1 %5698 }
 0xff1   :  { %v5717_v59 = vmul.f32 %v9799_v61, %v5699_v25  ;;  %5736 = vrot.lane.b32.xlu0 %v5716_v60, %s7684_s3  ;;  %v5769_v60 = vsub.f32 1.0, %v9787_v42  ;;  %v5816_v25 = vmul.f32 %v9780_v11, %v9685_v29 }
 0xff2   :  { %v5701_v58 = vpop.permute.xlu0 %5700 }
 0xff3   :  { %v5718_v57 = vmul.f32 %v9803_v37, %v5701_v58  ;;  %5738 = vrot.lane.b32.xlu1 %v5717_v59, %s7684_s3 }
 0xff4   :  { %v5703_v2 = vpop.permute.xlu1 %5702 }
 0xff5   :  { %v5719_v18 = vmul.f32 %v9807_v39, %v5703_v2  ;;  %5740 = vrot.lane.b32.xlu0 %v5718_v57, %s7684_s3 }
 0xff7   :  { %5742 = vrot.lane.b32.xlu1 %v5719_v18, %s7684_s3  ;;  %v5817_v18 = vmul.f32 %v9787_v42, %v9693_v5  ;;  %v5773_v42 = vsub.f32 1.0, %v9799_v61 }
0x105b   :  { %v5729_v35 = vpop.permute.xlu0 %5728 }
0x105c   :  { %v5752_v16 = vadd.f32 %v5729_v35, %v9758_v0  ;;  %v5771_v35 = vsub.f32 1.0, %v9791_v48 }
0x105d   :  { %v5733_v33 = vpop.permute.xlu1 %5732 }
0x105e   :  { %7599 = vtanh.f32 %v5752_v16  ;;  %v5754_v15 = vadd.f32 %v5733_v33, %v9593_v43  ;;  %v5772_v33 = vsub.f32 1.0, %v9795_v30 }
0x105f   :  { %v5731_v45 = vpop.permute.xlu0 %5730 }
0x1060   :  { %7601 = vtanh.f32 %v5754_v15  ;;  %v5753_v63 = vadd.f32 %v5731_v45, %v9589_v53 }
0x1061   :  { %v5735_v46 = vpop.permute.xlu1 %5734 }
0x1062   :  { %7603 = vtanh.f32 %v5753_v63  ;;  %v5755_v4 = vadd.f32 %v5735_v46, %v9765_v26  ;;  %v5820_v46 = vmul.f32 %v9795_v30, %v9708_v62 }
0x1063   :  { %v5737_v49 = vpop.permute.xlu0 %5736 }
0x1064   :  { %7605 = vtanh.f32 %v5755_v4  ;;  %v5756_v50 = vadd.f32 %v5737_v49, %v9770_v8 }
0x1065   :  { %v5739_v52 = vpop.permute.xlu1 %5738 }
0x1066   :  { %7607 = vtanh.f32 %v5756_v50  ;;  %v5757_v0 = vadd.f32 %v5739_v52, %v9609_v17 }
0x1067   :  { %v5741_v32 = vpop.permute.xlu0 %5740 }
0x1068   :  { %v7600_v6 = vpop.eup %7599  ;;  %7609 = vtanh.f32 %v5757_v0  ;;  %v5758_v43 = vadd.f32 %v5741_v32, %v9614_v55 }
0x1069   :  { %5784 = vrot.lane.b32.xlu0 %v7600_v6, %s7681_s16  ;;  %v5743_v53 = vpop.permute.xlu1 %5742 }
0x106a   :  { %v7602_v34 = vpop.eup %7601  ;;  %7611 = vtanh.f32 %v5758_v43  ;;  %v5759_v26 = vadd.f32 %v5743_v53, %v9777_v1  ;;  %v5768_v1 = vsub.f32 1.0, %v9780_v11  ;;  %v5819_v11 = vmul.f32 %v9791_v48, %v9704_v10 }
0x106b   :  { %5788 = vrot.lane.b32.xlu1 %v7602_v34, %s7681_s16  ;;  %v5821_v53 = vmul.f32 %v9799_v61, %v9715_v22  ;;  %v5774_v34 = vsub.f32 1.0, %v9803_v37 }
0x106c   :  { %v7604_v23 = vpop.eup %7603  ;;  %7613 = vtanh.f32 %v5759_v26  ;;  %v5822_v26 = vmul.f32 %v9803_v37, %v9725_v31 }
0x106d   :  { %5786 = vrot.lane.b32.xlu0 %v7604_v23, %s7681_s16 }
0x106e   :  { %v7606_v8 = vpop.eup %7605 }
0x106f   :  { %5790 = vrot.lane.b32.xlu1 %v7606_v8, %s7681_s16 }
0x1070   :  { %v7608_v17 = vpop.eup %7607 }
0x1071   :  { %5792 = vrot.lane.b32.xlu0 %v7608_v17, %s7681_s16 }
0x1072   :  { %v7610_v55 = vpop.eup %7609 }
0x1073   :  { %5794 = vrot.lane.b32.xlu1 %v7610_v55, %s7681_s16 }
0x1074   :  { %v7612_v24 = vpop.eup %7611 }
0x1075   :  { %5796 = vrot.lane.b32.xlu0 %v7612_v24, %s7681_s16  ;;  %v5775_v24 = vsub.f32 1.0, %v9807_v39 }
0x1076   :  { %v7614_v44 = vpop.eup %7613 }
0x1077   :  { %5798 = vrot.lane.b32.xlu1 %v7614_v44, %s7681_s16 }
0x10db   :  { %v5785_v21 = vpop.permute.xlu0 %5784 }
0x10dc   :  { %v5808_v28 = vmul.f32 %v5785_v21, %v5768_v1 }
0x10dd   :  { %v5789_v56 = vpop.permute.xlu1 %5788 }
0x10de   :  { %v5810_v40 = vmul.f32 %v5789_v56, %v5770_v19  ;;  %v9837_v2 = vadd.f32 %v5816_v25, %v5808_v28 }
0x10df   :  { %v5787_v59 = vpop.permute.xlu0 %5786 }
0x10e0   :  { %v9835_v58 = vadd.f32 %v5818_v9, %v5810_v40  ;;  %v5809_v57 = vmul.f32 %v5787_v59, %v5769_v60  ;;  %v5850_v49 = vpack.c.bf16 %v9837_v2, %v9837_v2  ;;  %v5823_v9 = vmul.f32 %v9807_v39, %v9730_v3 }
0x10e1   :  { %v5791_v16 = vpop.permute.xlu1 %5790 }
0x10e2   :  { %v5852_v20 = vpack.c.bf16 %v9835_v58, %v9835_v58  ;;  %v9845_v15 = vadd.f32 %v5817_v18, %v5809_v57  ;;  %v5811_v45 = vmul.f32 %v5791_v16, %v5771_v35  ;;  %v5866_v44 = vunpack.c.l.b16 %v5850_v49 }
0x10e3   :  { %v5793_v63 = vpop.permute.xlu0 %5792 }
0x10e4   :  { %v5812_v4 = vmul.f32 %v5793_v63, %v5772_v33  ;;  %v5851_v50 = vpack.c.bf16 %v9845_v15, %v9845_v15  ;;  %v5966_v52 = vcombine.low %v9837_v2, %v9845_v15  ;;  %v9858_v0 = vadd.f32 %v5819_v11, %v5811_v45 }
0x10e5   :  { %v5795_v48 = vpop.permute.xlu1 %5794  ;;  %v5868_v32 = vunpack.c.l.b16 %v5852_v20 }
0x10e6   :  { %v9860_v6 = vadd.f32 %v5820_v46, %v5812_v4  ;;  %v5813_v43 = vmul.f32 %v5795_v48, %v5773_v42  ;;  %v5867_v30 = vunpack.c.l.b16 %v5851_v50  ;;  %v5853_v8 = vpack.c.bf16 %v9858_v0, %v9858_v0 }
0x10e7   :  { %v5797_v23 = vpop.permute.xlu0 %5796  ;;  %v5967_v17 = vcombine.low %v9835_v58, %v9858_v0  ;;  %v5876_v28 = vrot.slane %v5868_v32, 6  ;;  %v5976_v20 = vrot.slane %v5966_v52, %v9371_v41 }
0x10e8   :  { %v5854_v55 = vpack.c.bf16 %v9860_v6, %v9860_v6  ;;  %v5874_v1 = vrot.slane %v5867_v30, 7  ;;  %v9874_v61 = vadd.f32 %v5821_v53, %v5813_v43  ;;  %v5814_v21 = vmul.f32 %v5797_v23, %v5774_v34 }
0x10e9   :  { %v5799_v19 = vpop.permute.xlu1 %5798  ;;  %v5869_v37 = vunpack.c.l.b16 %v5853_v8  ;;  %v5983_v60 = vrot.slane %v5967_v17, %v9371_v41 }
0x10ea   :  { %v5870_v56 = vunpack.c.l.b16 %v5854_v55  ;;  %v5875_v40 = vsel %vm3971_vm7, %v5874_v1, %v5866_v44  ;;  %v5855_v25 = vpack.c.bf16 %v9874_v61, %v9874_v61  ;;  %v5968_v59 = vcombine.low %v9860_v6, %v9874_v61 }
0x10eb   :  { %v5878_v57 = vrot.slane %v5869_v37, 5  ;;  %v9884_v35 = vadd.f32 %v5822_v26, %v5814_v21  ;;  %v5815_v16 = vmul.f32 %v5799_v19, %v5775_v24  ;;  %v5877_v39 = vsel %vm3974_vm8, %v5876_v28, %v5875_v40  ;;  %v7621_v19 = vld [vmem:[%s9970_s11] ss:$0 sm:$0xff]  ;;  %s5112_s11 = sld [smem:[#allocation3]] }
0x10ec   :  { %v5880_v18 = vrot.slane %v5870_v56, 4  ;;  %v5871_v33 = vunpack.c.l.b16 %v5855_v25  ;;  %v5998_v42 = vcombine.low %v5976_v20, %v5983_v60  ;;  %v5990_v30 = vrot.slane %v5968_v59, %v9371_v41 }
0x10ed   :  { %v5856_v11 = vpack.c.bf16 %v9884_v35, %v9884_v35  ;;  %v9890_v45 = vadd.f32 %v5823_v9, %v5815_v16  ;;  %v5879_v63 = vsel %vm3977_vm9, %v5878_v57, %v5877_v39 }
0x10ee   :  { %v5882_v46 = vrot.slane %v5871_v33, 3  ;;  %v5881_v4 = vsel %vm3980_vm10, %v5880_v18, %v5879_v63  ;;  %v6006_v55 = vrot.slane %v5998_v42, %v9371_v41  ;;  %v5473_v63 = vstv %s6307_s21 }
0x10ef   :  { %v5872_v49 = vunpack.c.l.b16 %v5856_v11  ;;  %v5857_v50 = vpack.c.bf16 %v9890_v45, %v9890_v45  ;;  %v5969_v52 = vcombine.low %v9884_v35, %v9890_v45 }
0x10f0   :  { %v5883_v48 = vsel %vm3983_vm11, %v5882_v46, %v5881_v4 }
0x10f1   :  { %v5873_v32 = vunpack.c.l.b16 %v5857_v50  ;;  %v5884_v43 = vrot.slane %v5872_v49, 2  ;;  %v5997_v53 = vrot.slane %v5969_v52, %v9371_v41  ;;  %v5113_v11 = vstv %s5112_s11 }
0x10f2   :  { %v5114_v46 = vmul.f32 %v5113_v11, %v9513_v47  ;;  %v5116_v4 = vmul.f32 %v5113_v11, %v9517_v54  ;;  %v5115_v42 = vmul.f32 %v5113_v11, %v9520_v27  ;;  %v5118_v50 = vmul.f32 %v5113_v11, %v9534_v7 }
0x10f3   :  { %v5885_v34 = vsel %vm3986_vm12, %v5884_v43, %v5883_v48  ;;  %v5886_v26 = vrot.slane %v5873_v32, 1  ;;  %v5999_v23 = vcombine.low %v5990_v30, %v5997_v53  ;;  %v5474_v52 = vmul.f32 %v5473_v63, %v9685_v29 }
0x10f4   :  { %v5476_v48 = vmul.f32 %v5473_v63, %v9683_v12  ;;  %v5475_v43 = vmul.f32 %v5473_v63, %v9693_v5  ;;  %v5477_v30 = vmul.f32 %v5473_v63, %v9704_v10  ;;  %v5119_v54 = vmul.f32 %v5113_v11, %v9543_v14 }
0x10f5   :  { %v5887_v8 = vsel %vm3989_vm13, %v5886_v26, %v5885_v34  ;;  %v6013_v24 = vrot.slane %v5999_v23, %v9371_v41  ;;  %v5478_v27 = vmul.f32 %v5473_v63, %v9708_v62  ;;  %v5833_v34 = vstv %s6317_s22 }
0x10f6   :  { %v5888_v17 = vpack.c.b16 %v5887_v8, %v5887_v8  ;;  %v6019_v26 = vstv %s9915_s23  ;;  %v5479_v7 = vmul.f32 %v5473_v63, %v9715_v22  ;;  %v5480_v29 = vmul.f32 %v5473_v63, %v9725_v31 }
0x10f7   :  { %v6014_v44 = vcombine.low %v6006_v55, %v6013_v24  ;;  %v5121_v23 = vmul.f32 %v5113_v11, %v9555_v36  ;;  %v5482_v5 = vadd.f32 %v5474_v52, %v5114_v46  ;;  %v5484_v8 = vadd.f32 %v5476_v48, %v5116_v4 }
0x10f8   :  { %5889 = vrot.lane.b32.xlu0 %v5888_v17, %s7681_s16  ;;  %v5481_v10 = vmul.f32 %v5473_v63, %v9730_v3  ;;  %v5483_v17 = vadd.f32 %v5475_v43, %v5115_v42  ;;  %v5834_v14 = vmul.f32 %v5833_v34, %v9837_v2  ;;  %v5486_v24 = vadd.f32 %v5478_v27, %v5118_v50 }
0x10f9   :  { %v5837_v22 = vmul.f32 %v5833_v34, %v9858_v0  ;;  %v5487_v31 = vadd.f32 %v5479_v7, %v5119_v54  ;;  %v5838_v3 = vmul.f32 %v5833_v34, %v9860_v6  ;;  %v5840_v2 = vmul.f32 %v5833_v34, %v9884_v35 }
0x116a   :  { %v5890_v1 = vpop.permute.xlu0 %5889 }
0x116b   :  { %7208 = vmatmul.mubr.msk.bf16.vlgmr.msra.gmra.mrb[8].mxu0 %vm114_vm0, %v5890_v1 }
0x123e   :  { %v5928_v21 = vpop.f32.mrb[8].mxu0 }
0x123f   :  { %v5929_v28 = vadd.f32 %v7621_v19, %v5928_v21  ;;  %v7209_v37 = vpop.f32.mrb[9].mxu0  ;;  %v5489_v19 = vadd.f32 %v5481_v10, %v5121_v23 }
0x1240   :  { %v5931_v56 = vpop.f32.mrb[10].mxu0  ;;  %v5842_v37 = vadd.f32 %v5834_v14, %v5482_v5 }
0x1241   :  { %5942 = vrot.lane.b32.xlu1 %v5929_v28, %s7684_s3  ;;  %v7210_v9 = vpop.f32.mrb[11].mxu0  ;;  %v5934_v40 = vadd.f32 %v5929_v28, %v9394_v13  ;;  %v5839_v28 = vmul.f32 %v5833_v34, %v9874_v61  ;;  %v5846_v61 = vadd.f32 %v5838_v3, %v5486_v24 }
0x1243   :  { %v6319_v60 = vmul.f32 -1.442695, %v5934_v40 }
0x1245   :  { %7615 = vpow2.f32 %v6319_v60  ;;  %v5841_v60 = vmul.f32 %v5833_v34, %v9890_v45 }
0x1247   :  { %v5849_v63 = vadd.f32 %v5841_v60, %v5489_v19 }
0x124f   :  { %v7616_v25 = vpop.eup %7615 }
0x1250   :  { %v5938_v59 = vadd.f32 1.0, %v7616_v25 }
0x1252   :  { %7617 = vrcp.f32 %v5938_v59 }
0x125c   :  { %v7618_v57 = vpop.eup %7617 }
0x125d   :  { %v5952_v49 = vsub.f32 1.0, %v7618_v57  ;;  %v6016_v47 = vmul.f32 %v7618_v57, %v6014_v44  ;;  %v5836_v44 = vmul.f32 %v5833_v34, %v9835_v58 }
0x125f   :  { %v5844_v9 = vadd.f32 %v5836_v44, %v5484_v8 }
0x12b3   :  { %v5943_v18 = vpop.permute.xlu1 %5942 }
0x12b4   :  { %v5945_v16 = vmul.f32 %v7618_v57, %v5943_v18  ;;  %v5847_v18 = vadd.f32 %v5839_v28, %v5487_v31 }
0x12b6   :  { %5947 = vrot.lane.b32.xlu0 %v5945_v16, %s7684_s3 }
0x1328   :  { %v5948_v20 = vpop.permute.xlu0 %5947 }
0x1329   :  { %v5950_v33 = vadd.f32 %v5948_v20, %v9394_v13  ;;  %v5117_v13 = vmul.f32 %v5113_v11, %v9531_v51  ;;  %v5120_v51 = vmul.f32 %v5113_v11, %v9547_v38  ;;  %v5835_v38 = vmul.f32 %v5833_v34, %v9845_v15 }
0x132b   :  { %7619 = vtanh.f32 %v5950_v33  ;;  %v5485_v55 = vadd.f32 %v5477_v30, %v5117_v13  ;;  %v5488_v1 = vadd.f32 %v5480_v29, %v5120_v51  ;;  %v5843_v0 = vadd.f32 %v5835_v38, %v5483_v17 }
0x132d   :  { %v5845_v40 = vadd.f32 %v5837_v22, %v5485_v55  ;;  %v5848_v35 = vadd.f32 %v5840_v2, %v5488_v1 }
0x1335   :  { %v7620_v39 = vpop.eup %7619 }
0x1336   :  { %5954 = vrot.lane.b32.xlu1 %v7620_v39, %s7681_s16 }
0x13a8   :  { %v5955_v32 = vpop.permute.xlu1 %5954 }
0x13a9   :  { %v5957_v53 = vmul.f32 %v5955_v32, %v5952_v49 }
0x13ab   :  { %v6017_v12 = vadd.f32 %v6016_v47, %v5957_v53 }
0x13ad   :  { %v6020_v62 = vmul.f32 %v6019_v26, %v6017_v12 }
0x13af   :  { %v6022_v21 = vcombine.high %v6020_v62, %v6020_v62  ;;  %v6029_v36 = vrot.slane %v6020_v62, %v9371_v41 }
0x13b1   :  { %v6036_v56 = vrot.slane %v6022_v21, %v9371_v41  ;;  %v6037_v58 = vcombine.high %v6029_v36, %v6029_v36  ;;  %v6045_v15 = vrot.slane %v6029_v36, %v9371_v41 }
0x13b3   :  { %v6038_v25 = vcombine.high %v6036_v56, %v6036_v56  ;;  %v6052_v59 = vrot.slane %v6036_v56, %v9371_v41  ;;  %v6059_v6 = vrot.slane %v6037_v58, %v9371_v41  ;;  %v6067_v57 = vcombine.high %v6045_v15, %v6045_v15 }
0x13b4   :  { %v6079_v16 = vadd.f32 %v6045_v15, %v5842_v37 }
0x13b5   :  { %v6066_v20 = vrot.slane %v6038_v25, %v9371_v41  ;;  %v6068_v33 = vcombine.high %v6052_v59, %v6052_v59  ;;  %v6069_v39 = vcombine.high %v6059_v6, %v6059_v6  ;;  %v6080_v11 = vadd.f32 %v6059_v6, %v5843_v0 }
0x13b6   :  { %v6081_v46 = vadd.f32 %v6067_v57, %v5844_v9  ;;  %v6083_v4 = vadd.f32 %v6052_v59, %v5846_v61 }
0x13b7   :  { %v6070_v42 = vcombine.high %v6066_v20, %v6066_v20  ;;  %v6082_v45 = vadd.f32 %v6069_v39, %v5845_v40  ;;  %v6084_v49 = vadd.f32 %v6066_v20, %v5847_v18  ;;  %v6085_v13 = vadd.f32 %v6068_v33, %v5848_v35 }
0x13b8   :  { %v6095_v50 = vcombine.low %v6079_v16, %v6080_v11 }
0x13b9   :  { %v6086_v52 = vadd.f32 %v6070_v42, %v5849_v63  ;;  %v6096_v48 = vcombine.low %v6081_v46, %v6082_v45  ;;  %v6097_v32 = vcombine.low %v6083_v4, %v6084_v49 }
0x13ba   :  { %v6105_v30 = vrot.slane %v6095_v50, %v9371_v41 }
0x13bb   :  { %v6098_v43 = vcombine.low %v6085_v13, %v6086_v52  ;;  %v6112_v47 = vrot.slane %v6096_v48, %v9371_v41  ;;  %v6119_v53 = vrot.slane %v6097_v32, %v9371_v41 }
0x13bd   :  { %v6126_v54 = vrot.slane %v6098_v43, %v9371_v41  ;;  %v6127_v27 = vcombine.low %v6105_v30, %v6112_v47 }
0x13bf   :  { %v6128_v34 = vcombine.low %v6119_v53, %v6126_v54  ;;  %v6135_v26 = vrot.slane %v6127_v27, %v9371_v41 }
0x13c1   :  { %v6142_v51 = vrot.slane %v6128_v34, %v9371_v41 }
0x13c3   :  { %v6143_v7 = vcombine.low %v6135_v26, %v6142_v51 }
0x13c5   :  { %6144 = vrot.lane.b32.xlu0 %v6143_v7, %s7681_s16 }
0x1437   :  { %v6145_v29 = vpop.permute.xlu0 %6144 }
0x1438   :  { %6147 = vst.msk [vmem:[%s9972_s13] sm:$0xff] %vm114_vm0, %v6145_v29 }
0x1439   :  { %6152 = vsyncpa [#allocation4], 1 }

</bundles_post_ra>
